<compile_context>
chip_gen: v6e
topology: v6e:2x2x1
jax: 0.10.0
libtpu: 0.0.40
codegen_flags: <defaults>
</compile_context>

<pallas_src>
import jax
import jax.numpy as jnp
from jax.experimental import pallas as pl
from jax.experimental.pallas import tpu as pltpu

_EPS = 1e-5


# ------------------------------- fused kernel -------------------------------

def inception_kernel(x_ref,
                     wr_ref, br_ref,          # fused 1x1 stage  (Cin, n1+Ci2+Ci3)
                     w2b_ref, b2b_ref,        # branch2 3x3      (9*Ci2, Co2)
                     w3b_ref, b3b_ref,        # branch3 3x3 (a)  (9*Ci3, Co3)
                     w3c_ref, b3c_ref,        # branch3 3x3 (b)  (9*Co3, Co3)
                     w4_ref, b4_ref,          # branch4 1x1 proj (Cin, Co4)
                     o_ref):
    """One batch element per grid step.  x_ref: (1, H, W, Cin) bf16.
    Weights are BN-folded, bf16, already in matmul layout; biases are f32."""
    _, H, W, Cin = x_ref.shape
    HW = H * W
    x2d = x_ref[...].astype(jnp.float32).reshape(HW, Cin)

    # Column-boundary masks (shared by all 3x3 convs and the maxpool).
    col = jax.lax.broadcasted_iota(jnp.int32, (HW, 1), 0) % W
    first_col = col == 0
    last_col = col == (W - 1)

    def mxu(a_f32, w_ref_):
        # bf16 x bf16 MXU matmul with f32 accumulation.
        return jnp.dot(a_f32.astype(jnp.bfloat16), w_ref_[...],
                       preferred_element_type=jnp.float32)

    def shift_cols(a, fill):
        # (reads x-1, reads x+1): roll along the flat HW (sublane) axis on the
        # XLU, then mask out the cross-row wrap at the image's left/right edge.
        left = jnp.where(first_col, fill, pltpu.roll(a, shift=1, axis=0))
        right = jnp.where(last_col, fill, pltpu.roll(a, shift=HW - 1, axis=0))
        return left, right

    def shift_rows(a, fill_row):
        # (reads y-1, reads y+1): sublane-aligned slices + concat (W % 8 == 0).
        up = jnp.concatenate([fill_row, a[:HW - W]], axis=0)
        down = jnp.concatenate([a[W:], fill_row], axis=0)
        return up, down

    def conv3x3(a, w_ref_, b_ref_):
        # "same" 3x3 conv via im2col K-packing -> one (HW, 9*Ci) MXU matmul.
        Ci = a.shape[1]
        l, r = shift_cols(a, 0.0)
        row3 = jnp.concatenate([l, a, r], axis=-1)               # (HW, 3*Ci)
        zero_row = jnp.zeros((W, 3 * Ci), jnp.float32)
        up, down = shift_rows(row3, zero_row)
        patches = jnp.concatenate([up, row3, down], axis=-1)     # (HW, 9*Ci)
        return jnp.maximum(mxu(patches, w_ref_) + b_ref_[...], 0.0)

    # ---- fused 1x1 stage: [branch1 1x1 | branch2 reduce | branch3 reduce] ----
    y_red = jnp.maximum(mxu(x2d, wr_ref) + br_ref[...], 0.0)
    ci2 = w2b_ref.shape[0] // 9
    ci3 = w3b_ref.shape[0] // 9
    n1 = wr_ref.shape[1] - ci2 - ci3
    y1 = y_red[:, :n1]
    r2 = y_red[:, n1:n1 + ci2]
    r3 = y_red[:, n1 + ci2:]

    # ---- branch 2: 3x3 ----
    y2 = conv3x3(r2, w2b_ref, b2b_ref)
    # ---- branch 3: 3x3 -> 3x3 ----
    y3 = conv3x3(conv3x3(r3, w3b_ref, b3b_ref), w3c_ref, b3c_ref)

    # ---- branch 4: separable 3x3/s1/p1 maxpool (-inf pad) + 1x1 projection ----
    neg_inf = jnp.float32(-jnp.inf)
    ml, mr = shift_cols(x2d, neg_inf)
    mw = jnp.maximum(jnp.maximum(ml, mr), x2d)
    inf_row = jnp.full((W, Cin), neg_inf, jnp.float32)
    mu, md = shift_rows(mw, inf_row)
    pooled = jnp.maximum(jnp.maximum(mu, md), mw)
    y4 = jnp.maximum(mxu(pooled, w4_ref) + b4_ref[...], 0.0)

    # ---- channel concat: lane-dense 128-wide slab, single unmasked store ----
    o_ref[...] = jnp.concatenate([y1, y2, y3, y4], axis=-1).reshape(o_ref.shape)


# ------------------------------ pallas_call glue ----------------------------

def _const_spec(shape):
    nd = len(shape)
    return pl.BlockSpec(shape, lambda n, _nd=nd: (0,) * _nd)


@jax.jit
def inception_forward_nhwc(x_nhwc, kparams):
    """NHWC in -> NHWC out; the whole Inception block is one pallas_call."""
    (w_red, b_red, w2b, b2b, w3b, b3b, w3c, b3c, w4, b4) = kparams
    x = x_nhwc.astype(jnp.bfloat16)                  # halve activation HBM bytes
    N, H, W, Cin = x.shape
    c_out = (w_red.shape[1] - w2b.shape[0] // 9 - w3b.shape[0] // 9
             + w2b.shape[1] + w3c.shape[1] + w4.shape[1])
    return pl.pallas_call(
        inception_kernel,
        out_shape=jax.ShapeDtypeStruct((N, H, W, c_out), jnp.float32),
        grid=(N,),
        in_specs=[pl.BlockSpec((1, H, W, Cin), lambda n: (n, 0, 0, 0))]
                 + [_const_spec(p.shape) for p in kparams],
        out_specs=pl.BlockSpec((1, H, W, c_out), lambda n: (n, 0, 0, 0)),
        compiler_params=pltpu.CompilerParams(
            dimension_semantics=("parallel",)),      # shard batch over v7x's 2 TCs
    )(x, *kparams)


# --------------------------- params / folding / ref --------------------------

def init_params(key, in_planes, n1x1, n3x3red, n3x3, n5x5red, n5x5, pool_planes):
    """Per conv+BN layer: (conv_w OIHW, conv_b, bn_gamma, bn_beta, bn_mean, bn_var)."""
    specs = [
        (n1x1, in_planes, 1),         # b1
        (n3x3red, in_planes, 1),      # b2 reduce
        (n3x3, n3x3red, 3),           # b2 3x3
        (n5x5red, in_planes, 1),      # b3 reduce
        (n5x5, n5x5red, 3),           # b3 3x3 (a)
        (n5x5, n5x5, 3),              # b3 3x3 (b)
        (pool_planes, in_planes, 1),  # b4 projection
    ]
    layers = []
    for k, (co, ci, ksz) in zip(jax.random.split(key, len(specs)), specs):
        k1, k2, k3, k4, k5, k6 = jax.random.split(k, 6)
        bound = 1.0 / float(ci * ksz * ksz) ** 0.5
        w = jax.random.uniform(k1, (co, ci, ksz, ksz), jnp.float32, -bound, bound)
        b = jax.random.uniform(k2, (co,), jnp.float32, -bound, bound)
        gamma = jax.random.uniform(k3, (co,), jnp.float32, 0.5, 1.5)
        beta = jax.random.uniform(k4, (co,), jnp.float32, -0.2, 0.2)
        mean = jax.random.uniform(k5, (co,), jnp.float32, -0.2, 0.2)
        var = jax.random.uniform(k6, (co,), jnp.float32, 0.5, 1.5)
        layers.append((w, b, gamma, beta, mean, var))
    return tuple(layers)


def fold_params(layers):
    """Fold inference-mode BN into the conv weights/biases, fuse the three 1x1
    reduce convs, convert 3x3 weights to im2col layout (9*Ci, Co), cast weights
    to bf16.  Done once, off the hot path."""
    folded = []
    for (w, b, gamma, beta, mean, var) in layers:
        scale = gamma / jnp.sqrt(var + _EPS)
        folded.append((w * scale[:, None, None, None], (b - mean) * scale + beta))
    (w1, b1), (w2a, b2a), (w2b, b2b), (w3a, b3a), (w3b, b3b), (w3c, b3c), (w4, b4) = folded

    def to_1x1(w):   # (Co, Ci, 1, 1) -> (Ci, Co)
        return jnp.transpose(w[:, :, 0, 0], (1, 0))

    def to_3x3(w):   # (Co, Ci, 3, 3) -> (9*Ci, Co), row = (dy*3 + dx)*Ci + ci
        co, ci, kh, kw = w.shape
        return jnp.transpose(w, (2, 3, 1, 0)).reshape(kh * kw * ci, co)

    bf16 = jnp.bfloat16
    w_red = jnp.concatenate([to_1x1(w1), to_1x1(w2a), to_1x1(w3a)], axis=1).astype(bf16)
    b_red = jnp.concatenate([b1, b2a, b3a]).reshape(1, -1).astype(jnp.float32)
    return (w_red, b_red,
            to_3x3(w2b).astype(bf16), b2b.reshape(1, -1),
            to_3x3(w3b).astype(bf16), b3b.reshape(1, -1),
            to_3x3(w3c).astype(bf16), b3c.reshape(1, -1),
            to_1x1(w4).astype(bf16), b4.reshape(1, -1))


def inception_reference(x_nchw, layers):
    (p1, p2a, p2b, p3a, p3b, p3c, p4) = layers

    def conv_bn_relu(x, p, pad):
        w, b, gamma, beta, mean, var = p
        y = jax.lax.conv_general_dilated(
            x, w, window_strides=(1, 1), padding=pad,
            dimension_numbers=("NCHW", "OIHW", "NCHW"),
            precision=jax.lax.Precision.HIGHEST)
        y = y + b[None, :, None, None]
        y = (y - mean[None, :, None, None]) * (
            gamma[None, :, None, None]
            / jnp.sqrt(var[None, :, None, None] + _EPS)) + beta[None, :, None, None]
        return jnp.maximum(y, 0.0)

    same = ((1, 1), (1, 1))
    y1 = conv_bn_relu(x_nchw, p1, "VALID")
    y2 = conv_bn_relu(conv_bn_relu(x_nchw, p2a, "VALID"), p2b, same)
    y3 = conv_bn_relu(
        conv_bn_relu(conv_bn_relu(x_nchw, p3a, "VALID"), p3b, same), p3c, same)
    pooled = jax.lax.reduce_window(
        x_nchw, -jnp.inf, jax.lax.max,
        window_dimensions=(1, 1, 3, 3), window_strides=(1, 1, 1, 1),
        padding=((0, 0), (0, 0), (1, 1), (1, 1)))
    y4 = conv_bn_relu(pooled, p4, "VALID")
    return jnp.concatenate([y1, y2, y3, y4], axis=1)


if __name__ == "__main__":
    key = jax.random.PRNGKey(0)
    kx, kp = jax.random.split(key)

    # Inception(in_planes=32, n1x1=32, n3x3red=24, n3x3=48,
    #           n5x5red=16, n5x5=24, pool_planes=24)  -> 128 output channels.
    N, Cin, H, W = 2, 32, 16, 16
    x_nchw = jax.random.normal(kx, (N, Cin, H, W), jnp.float32)
    layers = init_params(kp, Cin, 32, 24, 48, 16, 24, 24)
    kparams = fold_params(layers)           # BN fold + fusion + im2col layout, once

    # Kernel path is NHWC end-to-end; convert the PyTorch-style NCHW input once.
    x_nhwc = jnp.transpose(x_nchw, (0, 2, 3, 1))
    out = jax.block_until_ready(inception_forward_nhwc(x_nhwc, kparams))

    ref = jnp.transpose(inception_reference(x_nchw, layers), (0, 2, 3, 1))
    assert out.shape == ref.shape == (N, H, W, 128), out.shape
    # bf16 MXU inputs (f32 accumulation) vs a Precision.HIGHEST f32 reference
    # over a 3-conv-deep branch -> allow a few bf16 ulps of absolute slack.
    if not jnp.allclose(out, ref, rtol=2e-2, atol=5e-2):
        raise AssertionError(
            f"kernel/reference mismatch, max abs diff = {jnp.max(jnp.abs(out - ref))}")
    print("KERNEL_OK")
</pallas_src>

<mosaic_0001>
module attributes {stable_mosaic.version = 11 : i64} {
  func.func @inception_kernel(%arg0: i32, %arg1: memref<1x16x16x32xbf16, #tpu.memory_space<vmem>>, %arg2: memref<32x72xbf16, #tpu.memory_space<vmem>>, %arg3: memref<1x72xf32, #tpu.memory_space<vmem>>, %arg4: memref<216x48xbf16, #tpu.memory_space<vmem>>, %arg5: memref<1x48xf32, #tpu.memory_space<vmem>>, %arg6: memref<144x24xbf16, #tpu.memory_space<vmem>>, %arg7: memref<1x24xf32, #tpu.memory_space<vmem>>, %arg8: memref<216x24xbf16, #tpu.memory_space<vmem>>, %arg9: memref<1x24xf32, #tpu.memory_space<vmem>>, %arg10: memref<32x24xbf16, #tpu.memory_space<vmem>>, %arg11: memref<1x24xf32, #tpu.memory_space<vmem>>, %arg12: memref<1x16x16x128xf32, #tpu.memory_space<vmem>>) attributes {dimension_semantics = [#tpu.dimension_semantics<parallel>], iteration_bounds = array<i64: 2>, scalar_prefetch = 0 : i64, scratch_operands = 0 : i64, tpu.core_type = #tpu.core_type<tc>, window_params = [{transform_indices = @transform_0, window_bounds = array<i64: 1, 16, 16, 32>}, {pipeline_mode = #tpu.pipeline_mode<synchronous>, transform_indices = @transform_1, window_bounds = array<i64: 32, 72>}, {pipeline_mode = #tpu.pipeline_mode<synchronous>, transform_indices = @transform_2, window_bounds = array<i64: 1, 72>}, {pipeline_mode = #tpu.pipeline_mode<synchronous>, transform_indices = @transform_3, window_bounds = array<i64: 216, 48>}, {pipeline_mode = #tpu.pipeline_mode<synchronous>, transform_indices = @transform_4, window_bounds = array<i64: 1, 48>}, {pipeline_mode = #tpu.pipeline_mode<synchronous>, transform_indices = @transform_5, window_bounds = array<i64: 144, 24>}, {pipeline_mode = #tpu.pipeline_mode<synchronous>, transform_indices = @transform_6, window_bounds = array<i64: 1, 24>}, {pipeline_mode = #tpu.pipeline_mode<synchronous>, transform_indices = @transform_7, window_bounds = array<i64: 216, 24>}, {pipeline_mode = #tpu.pipeline_mode<synchronous>, transform_indices = @transform_8, window_bounds = array<i64: 1, 24>}, {pipeline_mode = #tpu.pipeline_mode<synchronous>, transform_indices = @transform_9, window_bounds = array<i64: 32, 24>}, {pipeline_mode = #tpu.pipeline_mode<synchronous>, transform_indices = @transform_10, window_bounds = array<i64: 1, 24>}, {transform_indices = @transform_11, window_bounds = array<i64: 1, 16, 16, 128>}]} {
    %c0 = arith.constant 0 : index
    %c0_0 = arith.constant 0 : index
    %c0_1 = arith.constant 0 : index
    %c0_2 = arith.constant 0 : index
    %0 = vector.load %arg1[%c0, %c0_0, %c0_1, %c0_2] : memref<1x16x16x32xbf16, #tpu.memory_space<vmem>>, vector<1x16x16x32xbf16>
    %1 = arith.extf %0 : vector<1x16x16x32xbf16> to vector<1x16x16x32xf32>
    %2 = vector.shape_cast %1 : vector<1x16x16x32xf32> to vector<256x32xf32>
    %3 = tpu.iota {dimensions = array<i32: 0>} : vector<256x1xi32>
    %c16_i32 = arith.constant 16 : i32
    %c0_i32 = arith.constant 0 : i32
    %4 = arith.cmpi eq, %c16_i32, %c0_i32 : i32
    %c1_i32 = arith.constant 1 : i32
    %5 = arith.select %4, %c1_i32, %c16_i32 : i32
    %6 = vector.broadcast %5 : i32 to vector<256x1xi32>
    %7 = arith.remsi %3, %6 : vector<256x1xi32>
    %c0_i32_3 = arith.constant 0 : i32
    %8 = vector.broadcast %c0_i32_3 : i32 to vector<256x1xi32>
    %9 = arith.cmpi ne, %7, %8 : vector<256x1xi32>
    %c0_i32_4 = arith.constant 0 : i32
    %10 = vector.broadcast %c0_i32_4 : i32 to vector<256x1xi32>
    %11 = arith.cmpi slt, %7, %10 : vector<256x1xi32>
    %c0_i32_5 = arith.constant 0 : i32
    %12 = arith.cmpi slt, %5, %c0_i32_5 : i32
    %13 = vector.broadcast %12 : i1 to vector<256x1xi1>
    %14 = vector.broadcast %13 : vector<256x1xi1> to vector<256x1xi1>
    %15 = arith.xori %11, %14 : vector<256x1xi1>
    %16 = arith.andi %15, %9 : vector<256x1xi1>
    %17 = vector.broadcast %5 : i32 to vector<256x1xi32>
    %18 = arith.addi %7, %17 : vector<256x1xi32>
    %19 = arith.select %16, %18, %7 : vector<256x1xi1>, vector<256x1xi32>
    %c0_i32_6 = arith.constant 0 : i32
    %20 = vector.broadcast %c0_i32_6 : i32 to vector<256x1xi32>
    %21 = arith.cmpi eq, %19, %20 : vector<256x1xi32>
    %c15_i32 = arith.constant 15 : i32
    %22 = vector.broadcast %c15_i32 : i32 to vector<256x1xi32>
    %23 = arith.cmpi eq, %19, %22 : vector<256x1xi32>
    %24 = arith.truncf %2 : vector<256x32xf32> to vector<256x32xbf16>
    %c0_7 = arith.constant 0 : index
    %c0_8 = arith.constant 0 : index
    %25 = vector.load %arg2[%c0_7, %c0_8] : memref<32x72xbf16, #tpu.memory_space<vmem>>, vector<32x72xbf16>
    %cst = arith.constant dense<0.000000e+00> : vector<256x72xf32>
    %26 = tpu.matmul %24, %25, %cst {dimension_numbers = #tpu.dot_dimension_numbers<[1], [0], [0], [1], [0, 0, 1, 1], [], []>} : vector<256x32xbf16>, vector<32x72xbf16>, vector<256x72xf32> -> vector<256x72xf32>
    %c0_9 = arith.constant 0 : index
    %c0_10 = arith.constant 0 : index
    %27 = vector.load %arg3[%c0_9, %c0_10] : memref<1x72xf32, #tpu.memory_space<vmem>>, vector<1x72xf32>
    %28 = vector.broadcast %27 : vector<1x72xf32> to vector<256x72xf32>
    %29 = arith.addf %26, %28 : vector<256x72xf32>
    %cst_11 = arith.constant 0.000000e+00 : f32
    %30 = vector.broadcast %cst_11 : f32 to vector<256x72xf32>
    %31 = arith.maximumf %29, %30 : vector<256x72xf32>
    %32 = vector.extract_strided_slice %31 {offsets = [0, 0], sizes = [256, 32], strides = [1, 1]} : vector<256x72xf32> to vector<256x32xf32>
    %33 = vector.extract_strided_slice %31 {offsets = [0, 32], sizes = [256, 24], strides = [1, 1]} : vector<256x72xf32> to vector<256x24xf32>
    %34 = vector.extract_strided_slice %31 {offsets = [0, 56], sizes = [256, 16], strides = [1, 1]} : vector<256x72xf32> to vector<256x16xf32>
    %c1_i32_12 = arith.constant 1 : i32
    %35 = tpu.dynamic_rotate %33 by %c1_i32_12 dim 0 : vector<256x24xf32>, i32 -> vector<256x24xf32>
    %cst_13 = arith.constant 0.000000e+00 : f32
    %36 = vector.shape_cast %21 : vector<256x1xi1> to vector<256x1xi1>
    %37 = vector.broadcast %36 : vector<256x1xi1> to vector<256x24xi1>
    %38 = vector.broadcast %cst_13 : f32 to vector<256x24xf32>
    %39 = arith.select %37, %38, %35 : vector<256x24xi1>, vector<256x24xf32>
    %c255_i32 = arith.constant 255 : i32
    %40 = tpu.dynamic_rotate %33 by %c255_i32 dim 0 : vector<256x24xf32>, i32 -> vector<256x24xf32>
    %cst_14 = arith.constant 0.000000e+00 : f32
    %41 = vector.shape_cast %23 : vector<256x1xi1> to vector<256x1xi1>
    %42 = vector.broadcast %41 : vector<256x1xi1> to vector<256x24xi1>
    %43 = vector.broadcast %cst_14 : f32 to vector<256x24xf32>
    %44 = arith.select %42, %43, %40 : vector<256x24xi1>, vector<256x24xf32>
    %45 = tpu.concatenate %39, %33, %44 in 1 : vector<256x24xf32>, vector<256x24xf32>, vector<256x24xf32> -> vector<256x72xf32>
    %cst_15 = arith.constant 0.000000e+00 : f32
    %46 = vector.broadcast %cst_15 : f32 to vector<16x72xf32>
    %47 = vector.extract_strided_slice %45 {offsets = [0, 0], sizes = [240, 72], strides = [1, 1]} : vector<256x72xf32> to vector<240x72xf32>
    %48 = tpu.concatenate %46, %47 in 0 : vector<16x72xf32>, vector<240x72xf32> -> vector<256x72xf32>
    %49 = vector.extract_strided_slice %45 {offsets = [16, 0], sizes = [240, 72], strides = [1, 1]} : vector<256x72xf32> to vector<240x72xf32>
    %50 = tpu.concatenate %49, %46 in 0 : vector<240x72xf32>, vector<16x72xf32> -> vector<256x72xf32>
    %51 = tpu.concatenate %48, %45, %50 in 1 : vector<256x72xf32>, vector<256x72xf32>, vector<256x72xf32> -> vector<256x216xf32>
    %52 = arith.truncf %51 : vector<256x216xf32> to vector<256x216xbf16>
    %c0_16 = arith.constant 0 : index
    %c0_17 = arith.constant 0 : index
    %53 = vector.load %arg4[%c0_16, %c0_17] : memref<216x48xbf16, #tpu.memory_space<vmem>>, vector<216x48xbf16>
    %cst_18 = arith.constant dense<0.000000e+00> : vector<256x48xf32>
    %54 = tpu.matmul %52, %53, %cst_18 {dimension_numbers = #tpu.dot_dimension_numbers<[1], [0], [0], [1], [0, 0, 1, 1], [], []>} : vector<256x216xbf16>, vector<216x48xbf16>, vector<256x48xf32> -> vector<256x48xf32>
    %c0_19 = arith.constant 0 : index
    %c0_20 = arith.constant 0 : index
    %55 = vector.load %arg5[%c0_19, %c0_20] : memref<1x48xf32, #tpu.memory_space<vmem>>, vector<1x48xf32>
    %56 = vector.broadcast %55 : vector<1x48xf32> to vector<256x48xf32>
    %57 = arith.addf %54, %56 : vector<256x48xf32>
    %cst_21 = arith.constant 0.000000e+00 : f32
    %58 = vector.broadcast %cst_21 : f32 to vector<256x48xf32>
    %59 = arith.maximumf %57, %58 : vector<256x48xf32>
    %c1_i32_22 = arith.constant 1 : i32
    %60 = tpu.dynamic_rotate %34 by %c1_i32_22 dim 0 : vector<256x16xf32>, i32 -> vector<256x16xf32>
    %cst_23 = arith.constant 0.000000e+00 : f32
    %61 = vector.shape_cast %21 : vector<256x1xi1> to vector<256x1xi1>
    %62 = vector.broadcast %61 : vector<256x1xi1> to vector<256x16xi1>
    %63 = vector.broadcast %cst_23 : f32 to vector<256x16xf32>
    %64 = arith.select %62, %63, %60 : vector<256x16xi1>, vector<256x16xf32>
    %c255_i32_24 = arith.constant 255 : i32
    %65 = tpu.dynamic_rotate %34 by %c255_i32_24 dim 0 : vector<256x16xf32>, i32 -> vector<256x16xf32>
    %cst_25 = arith.constant 0.000000e+00 : f32
    %66 = vector.shape_cast %23 : vector<256x1xi1> to vector<256x1xi1>
    %67 = vector.broadcast %66 : vector<256x1xi1> to vector<256x16xi1>
    %68 = vector.broadcast %cst_25 : f32 to vector<256x16xf32>
    %69 = arith.select %67, %68, %65 : vector<256x16xi1>, vector<256x16xf32>
    %70 = tpu.concatenate %64, %34, %69 in 1 : vector<256x16xf32>, vector<256x16xf32>, vector<256x16xf32> -> vector<256x48xf32>
    %cst_26 = arith.constant 0.000000e+00 : f32
    %71 = vector.broadcast %cst_26 : f32 to vector<16x48xf32>
    %72 = vector.extract_strided_slice %70 {offsets = [0, 0], sizes = [240, 48], strides = [1, 1]} : vector<256x48xf32> to vector<240x48xf32>
    %73 = tpu.concatenate %71, %72 in 0 : vector<16x48xf32>, vector<240x48xf32> -> vector<256x48xf32>
    %74 = vector.extract_strided_slice %70 {offsets = [16, 0], sizes = [240, 48], strides = [1, 1]} : vector<256x48xf32> to vector<240x48xf32>
    %75 = tpu.concatenate %74, %71 in 0 : vector<240x48xf32>, vector<16x48xf32> -> vector<256x48xf32>
    %76 = tpu.concatenate %73, %70, %75 in 1 : vector<256x48xf32>, vector<256x48xf32>, vector<256x48xf32> -> vector<256x144xf32>
    %77 = arith.truncf %76 : vector<256x144xf32> to vector<256x144xbf16>
    %c0_27 = arith.constant 0 : index
    %c0_28 = arith.constant 0 : index
    %78 = vector.load %arg6[%c0_27, %c0_28] : memref<144x24xbf16, #tpu.memory_space<vmem>>, vector<144x24xbf16>
    %cst_29 = arith.constant dense<0.000000e+00> : vector<256x24xf32>
    %79 = tpu.matmul %77, %78, %cst_29 {dimension_numbers = #tpu.dot_dimension_numbers<[1], [0], [0], [1], [0, 0, 1, 1], [], []>} : vector<256x144xbf16>, vector<144x24xbf16>, vector<256x24xf32> -> vector<256x24xf32>
    %c0_30 = arith.constant 0 : index
    %c0_31 = arith.constant 0 : index
    %80 = vector.load %arg7[%c0_30, %c0_31] : memref<1x24xf32, #tpu.memory_space<vmem>>, vector<1x24xf32>
    %81 = vector.broadcast %80 : vector<1x24xf32> to vector<256x24xf32>
    %82 = arith.addf %79, %81 : vector<256x24xf32>
    %cst_32 = arith.constant 0.000000e+00 : f32
    %83 = vector.broadcast %cst_32 : f32 to vector<256x24xf32>
    %84 = arith.maximumf %82, %83 : vector<256x24xf32>
    %c1_i32_33 = arith.constant 1 : i32
    %85 = tpu.dynamic_rotate %84 by %c1_i32_33 dim 0 : vector<256x24xf32>, i32 -> vector<256x24xf32>
    %cst_34 = arith.constant 0.000000e+00 : f32
    %86 = vector.shape_cast %21 : vector<256x1xi1> to vector<256x1xi1>
    %87 = vector.broadcast %86 : vector<256x1xi1> to vector<256x24xi1>
    %88 = vector.broadcast %cst_34 : f32 to vector<256x24xf32>
    %89 = arith.select %87, %88, %85 : vector<256x24xi1>, vector<256x24xf32>
    %c255_i32_35 = arith.constant 255 : i32
    %90 = tpu.dynamic_rotate %84 by %c255_i32_35 dim 0 : vector<256x24xf32>, i32 -> vector<256x24xf32>
    %cst_36 = arith.constant 0.000000e+00 : f32
    %91 = vector.shape_cast %23 : vector<256x1xi1> to vector<256x1xi1>
    %92 = vector.broadcast %91 : vector<256x1xi1> to vector<256x24xi1>
    %93 = vector.broadcast %cst_36 : f32 to vector<256x24xf32>
    %94 = arith.select %92, %93, %90 : vector<256x24xi1>, vector<256x24xf32>
    %95 = tpu.concatenate %89, %84, %94 in 1 : vector<256x24xf32>, vector<256x24xf32>, vector<256x24xf32> -> vector<256x72xf32>
    %cst_37 = arith.constant 0.000000e+00 : f32
    %96 = vector.broadcast %cst_37 : f32 to vector<16x72xf32>
    %97 = vector.extract_strided_slice %95 {offsets = [0, 0], sizes = [240, 72], strides = [1, 1]} : vector<256x72xf32> to vector<240x72xf32>
    %98 = tpu.concatenate %96, %97 in 0 : vector<16x72xf32>, vector<240x72xf32> -> vector<256x72xf32>
    %99 = vector.extract_strided_slice %95 {offsets = [16, 0], sizes = [240, 72], strides = [1, 1]} : vector<256x72xf32> to vector<240x72xf32>
    %100 = tpu.concatenate %99, %96 in 0 : vector<240x72xf32>, vector<16x72xf32> -> vector<256x72xf32>
    %101 = tpu.concatenate %98, %95, %100 in 1 : vector<256x72xf32>, vector<256x72xf32>, vector<256x72xf32> -> vector<256x216xf32>
    %102 = arith.truncf %101 : vector<256x216xf32> to vector<256x216xbf16>
    %c0_38 = arith.constant 0 : index
    %c0_39 = arith.constant 0 : index
    %103 = vector.load %arg8[%c0_38, %c0_39] : memref<216x24xbf16, #tpu.memory_space<vmem>>, vector<216x24xbf16>
    %cst_40 = arith.constant dense<0.000000e+00> : vector<256x24xf32>
    %104 = tpu.matmul %102, %103, %cst_40 {dimension_numbers = #tpu.dot_dimension_numbers<[1], [0], [0], [1], [0, 0, 1, 1], [], []>} : vector<256x216xbf16>, vector<216x24xbf16>, vector<256x24xf32> -> vector<256x24xf32>
    %c0_41 = arith.constant 0 : index
    %c0_42 = arith.constant 0 : index
    %105 = vector.load %arg9[%c0_41, %c0_42] : memref<1x24xf32, #tpu.memory_space<vmem>>, vector<1x24xf32>
    %106 = vector.broadcast %105 : vector<1x24xf32> to vector<256x24xf32>
    %107 = arith.addf %104, %106 : vector<256x24xf32>
    %cst_43 = arith.constant 0.000000e+00 : f32
    %108 = vector.broadcast %cst_43 : f32 to vector<256x24xf32>
    %109 = arith.maximumf %107, %108 : vector<256x24xf32>
    %c1_i32_44 = arith.constant 1 : i32
    %110 = tpu.dynamic_rotate %2 by %c1_i32_44 dim 0 : vector<256x32xf32>, i32 -> vector<256x32xf32>
    %cst_45 = arith.constant 0xFF800000 : f32
    %111 = vector.shape_cast %21 : vector<256x1xi1> to vector<256x1xi1>
    %112 = vector.broadcast %111 : vector<256x1xi1> to vector<256x32xi1>
    %113 = vector.broadcast %cst_45 : f32 to vector<256x32xf32>
    %114 = arith.select %112, %113, %110 : vector<256x32xi1>, vector<256x32xf32>
    %c255_i32_46 = arith.constant 255 : i32
    %115 = tpu.dynamic_rotate %2 by %c255_i32_46 dim 0 : vector<256x32xf32>, i32 -> vector<256x32xf32>
    %cst_47 = arith.constant 0xFF800000 : f32
    %116 = vector.shape_cast %23 : vector<256x1xi1> to vector<256x1xi1>
    %117 = vector.broadcast %116 : vector<256x1xi1> to vector<256x32xi1>
    %118 = vector.broadcast %cst_47 : f32 to vector<256x32xf32>
    %119 = arith.select %117, %118, %115 : vector<256x32xi1>, vector<256x32xf32>
    %120 = arith.maximumf %114, %119 : vector<256x32xf32>
    %121 = arith.maximumf %120, %2 : vector<256x32xf32>
    %cst_48 = arith.constant 0xFF800000 : f32
    %122 = vector.broadcast %cst_48 : f32 to vector<16x32xf32>
    %123 = vector.extract_strided_slice %121 {offsets = [0, 0], sizes = [240, 32], strides = [1, 1]} : vector<256x32xf32> to vector<240x32xf32>
    %124 = tpu.concatenate %122, %123 in 0 : vector<16x32xf32>, vector<240x32xf32> -> vector<256x32xf32>
    %125 = vector.extract_strided_slice %121 {offsets = [16, 0], sizes = [240, 32], strides = [1, 1]} : vector<256x32xf32> to vector<240x32xf32>
    %126 = tpu.concatenate %125, %122 in 0 : vector<240x32xf32>, vector<16x32xf32> -> vector<256x32xf32>
    %127 = arith.maximumf %124, %126 : vector<256x32xf32>
    %128 = arith.maximumf %127, %121 : vector<256x32xf32>
    %129 = arith.truncf %128 : vector<256x32xf32> to vector<256x32xbf16>
    %c0_49 = arith.constant 0 : index
    %c0_50 = arith.constant 0 : index
    %130 = vector.load %arg10[%c0_49, %c0_50] : memref<32x24xbf16, #tpu.memory_space<vmem>>, vector<32x24xbf16>
    %cst_51 = arith.constant dense<0.000000e+00> : vector<256x24xf32>
    %131 = tpu.matmul %129, %130, %cst_51 {dimension_numbers = #tpu.dot_dimension_numbers<[1], [0], [0], [1], [0, 0, 1, 1], [], []>} : vector<256x32xbf16>, vector<32x24xbf16>, vector<256x24xf32> -> vector<256x24xf32>
    %c0_52 = arith.constant 0 : index
    %c0_53 = arith.constant 0 : index
    %132 = vector.load %arg11[%c0_52, %c0_53] : memref<1x24xf32, #tpu.memory_space<vmem>>, vector<1x24xf32>
    %133 = vector.broadcast %132 : vector<1x24xf32> to vector<256x24xf32>
    %134 = arith.addf %131, %133 : vector<256x24xf32>
    %cst_54 = arith.constant 0.000000e+00 : f32
    %135 = vector.broadcast %cst_54 : f32 to vector<256x24xf32>
    %136 = arith.maximumf %134, %135 : vector<256x24xf32>
    %137 = tpu.concatenate %32, %59, %109, %136 in 1 : vector<256x32xf32>, vector<256x48xf32>, vector<256x24xf32>, vector<256x24xf32> -> vector<256x128xf32>
    %138 = vector.shape_cast %137 : vector<256x128xf32> to vector<1x16x16x128xf32>
    %c0_55 = arith.constant 0 : index
    %c0_56 = arith.constant 0 : index
    %c0_57 = arith.constant 0 : index
    %c0_58 = arith.constant 0 : index
    %139 = vector.load %arg12[%c0_55, %c0_56, %c0_57, %c0_58] : memref<1x16x16x128xf32, #tpu.memory_space<vmem>>, vector<1x16x16x128xf32>
    tpu.vector_store %arg12[%c0_55, %c0_56, %c0_57, %c0_58], %138 {strides = array<i32>} : memref<1x16x16x128xf32, #tpu.memory_space<vmem>>, vector<1x16x16x128xf32>,
    return
  }
  func.func @transform_0(%arg0: i32) -> (i32, i32, i32, i32) {
    %c0_i32 = arith.constant 0 : i32
    %c0_i32_0 = arith.constant 0 : i32
    %c0_i32_1 = arith.constant 0 : i32
    %c0_i32_2 = arith.constant 0 : i32
    return %arg0, %c0_i32, %c0_i32_0, %c0_i32_1 : i32, i32, i32, i32
  }
  func.func @transform_1(%arg0: i32) -> (i32, i32) {
    %c0_i32 = arith.constant 0 : i32
    %c0_i32_0 = arith.constant 0 : i32
    %c0_i32_1 = arith.constant 0 : i32
    return %c0_i32, %c0_i32_0 : i32, i32
  }
  func.func @transform_2(%arg0: i32) -> (i32, i32) {
    %c0_i32 = arith.constant 0 : i32
    %c0_i32_0 = arith.constant 0 : i32
    %c0_i32_1 = arith.constant 0 : i32
    return %c0_i32, %c0_i32_0 : i32, i32
  }
  func.func @transform_3(%arg0: i32) -> (i32, i32) {
    %c0_i32 = arith.constant 0 : i32
    %c0_i32_0 = arith.constant 0 : i32
    %c0_i32_1 = arith.constant 0 : i32
    return %c0_i32, %c0_i32_0 : i32, i32
  }
  func.func @transform_4(%arg0: i32) -> (i32, i32) {
    %c0_i32 = arith.constant 0 : i32
    %c0_i32_0 = arith.constant 0 : i32
    %c0_i32_1 = arith.constant 0 : i32
    return %c0_i32, %c0_i32_0 : i32, i32
  }
  func.func @transform_5(%arg0: i32) -> (i32, i32) {
    %c0_i32 = arith.constant 0 : i32
    %c0_i32_0 = arith.constant 0 : i32
    %c0_i32_1 = arith.constant 0 : i32
    return %c0_i32, %c0_i32_0 : i32, i32
  }
  func.func @transform_6(%arg0: i32) -> (i32, i32) {
    %c0_i32 = arith.constant 0 : i32
    %c0_i32_0 = arith.constant 0 : i32
    %c0_i32_1 = arith.constant 0 : i32
    return %c0_i32, %c0_i32_0 : i32, i32
  }
  func.func @transform_7(%arg0: i32) -> (i32, i32) {
    %c0_i32 = arith.constant 0 : i32
    %c0_i32_0 = arith.constant 0 : i32
    %c0_i32_1 = arith.constant 0 : i32
    return %c0_i32, %c0_i32_0 : i32, i32
  }
  func.func @transform_8(%arg0: i32) -> (i32, i32) {
    %c0_i32 = arith.constant 0 : i32
    %c0_i32_0 = arith.constant 0 : i32
    %c0_i32_1 = arith.constant 0 : i32
    return %c0_i32, %c0_i32_0 : i32, i32
  }
  func.func @transform_9(%arg0: i32) -> (i32, i32) {
    %c0_i32 = arith.constant 0 : i32
    %c0_i32_0 = arith.constant 0 : i32
    %c0_i32_1 = arith.constant 0 : i32
    return %c0_i32, %c0_i32_0 : i32, i32
  }
  func.func @transform_10(%arg0: i32) -> (i32, i32) {
    %c0_i32 = arith.constant 0 : i32
    %c0_i32_0 = arith.constant 0 : i32
    %c0_i32_1 = arith.constant 0 : i32
    return %c0_i32, %c0_i32_0 : i32, i32
  }
  func.func @transform_11(%arg0: i32) -> (i32, i32, i32, i32) {
    %c0_i32 = arith.constant 0 : i32
    %c0_i32_0 = arith.constant 0 : i32
    %c0_i32_1 = arith.constant 0 : i32
    %c0_i32_2 = arith.constant 0 : i32
    return %arg0, %c0_i32, %c0_i32_0, %c0_i32_1 : i32, i32, i32, i32
  }
}

</mosaic_0001>

<bundles_post_ra>
// kernel: inception_forward_nhwc.1
= control target key start
LH: loop header
LB: loop body
LE: loop exit
PB: predicated region body
PF: predicated region fallthrough
CT: control target
= control target key end

     0   :  { %s12915_s0 = inlined_call_operand.vmem [shape: bf16[2,16,16,32], index: 0, kind: input, shape index: {}]   ;;  %s12916_s1 = inlined_call_operand.vmem [shape: bf16[32,72], index: 1, kind: input, shape index: {}]   ;;  %s12917_s2 = inlined_call_operand.vmem [shape: f32[1,72], index: 2, kind: input, shape index: {}]   ;;  %s12918_s3 = inlined_call_operand.vmem [shape: bf16[216,48], index: 3, kind: input, shape index: {}]   ;;  %s12919_s4 = inlined_call_operand.vmem [shape: f32[1,48], index: 4, kind: input, shape index: {}]   ;;  %s12920_s5 = inlined_call_operand.vmem [shape: bf16[144,24], index: 5, kind: input, shape index: {}]   ;;  %s12921_s6 = inlined_call_operand.vmem [shape: f32[1,24], index: 6, kind: input, shape index: {}]   ;;  %s12922_s7 = inlined_call_operand.vmem [shape: bf16[216,24], index: 7, kind: input, shape index: {}]   ;;  %s12923_s8 = inlined_call_operand.vmem [shape: f32[1,24], index: 8, kind: input, shape index: {}]   ;;  %s12924_s9 = inlined_call_operand.vmem [shape: bf16[32,24], index: 9, kind: input, shape index: {}]   ;;  %s12925_s10 = inlined_call_operand.vmem [shape: f32[1,24], index: 10, kind: input, shape index: {}]   ;;  %s12926_s11 = inlined_call_operand.hbm [shape: f32[2,16,16,128], index: 11, kind: output, shape index: {}]  }
   0x1   :  { %13326 = sst [smem:[#allocation176_spill]] %s12915_s0 }
   0x2   :  { %16 = vsyncpa [#allocation3], 0 }
   0x3   :  { %18 = vsyncpa [#allocation3 + $0x1], 0  ;;  %s7888_s17 = smov 0   ;;  %s7890_s18 = smov 0  }
   0x4   :  { %s7892_s19 = smov 0   ;;  %s7894_s20 = smov 0  }
   0x5 LB: > { %s7909_s21 = sadd.s32 4294967295, %s7811_s20   ;;  %s6218_s22 = sadd.s32 4294967294, %s7811_s20   ;;  %s7811_s20 = sphi %s7894_s20, %s14728_s20   ;;  %s7807_s19 = sphi %s7892_s19, %s14727_s19   ;;  %s7803_s18 = sphi %s7890_s18, %s14726_s18   ;;  %s7799_s17 = sphi %s7888_s17, %s14725_s17  }
   0x6   : > { %s7913_s23 = sadd.s32 1, %s7811_s20   ;;  %s267_s24 = sadd.s32 1, %s7807_s19 }
   0x7   : > { %s264_s25 = ssub.s32 %s7811_s20, %s7913_s23  ;;  %p277_p0 = scmp.ne.s32.totalorder %s7807_s19, %s7803_s18 }
   0x8   : > { %p265_p1 = scmp.eq.s32.totalorder %s264_s25, 0  ;;  %p278_p2 = scmp.eq.s32.totalorder %s7909_s21, 1 }
   0x9   : > { %p283_p3 = scmp.ne.s32.totalorder %s7803_s18, %s7799_s17  ;;  %p284_p4 = scmp.eq.s32.totalorder %s6218_s22, 1 }
   0xa   : > { %s7924_s26 = scalar_select %p265_p1, %s7807_s19, %s267_s24  }
   0xb   : > { %p7926_p5 = por %p278_p2, %p277_p0  ;;  %p7930_p6 = por %p284_p4, %p283_p3 }
   0xc   : > { %p6221_p7 = scmp.ge.s32.totalorder %s7811_s20, 1  ;;  %p340_p8 = scmp.lt.s32.totalorder %s7811_s20, 3 }
   0xe   : > { %p341_p9 = pnand %p6221_p7, %p340_p8 }
  0x10   : > { %344 = sbr.rel (%p341_p9) target bundleno = 1659 (0x67b), region = 64 }
  0x15   : > { %v7678_v0 = vld [vmem:[%s12916_s1 + $0x8] sm:$0xff]   ;;  %p380_p10 = scmp.lt.s32.totalorder %s7909_s21, 1  ;;  %v450_v1 = vlaneseq  ;;  %v7679_v2 = vld [vmem:[%s12916_s1] sm:$0xff]   ;;  %s13329_s0 = sld [smem:[#allocation176_spill]]  ;;  %vm12981_vm0 = vcmask 261120   ;;  %v13332_v15 = vmov 0 }
  0x16   : > { %6420 = vmatprep.subr.bf16.mxu0 %v7678_v0  ;;  %v13337_v29 = vmov 0  ;;  %v13343_v49 = vmov 0  ;;  %v13347_v63 = vmov 0  ;;  %s7813_s30 = smov 120   ;;  %s7814_s12 = smov 96  }
  0x17   : > { %s381_s14 = scalar_select %p380_p10, %s7909_s21, 1  ;;  %v7944_v3 = vshrl.u32 %v450_v1, 7  ;;  %6421 = vmatpush3.bf16.msra.mxu0 %v7678_v0 }
  0x18   : > { %6422 = vmatprep.subr.bf16.mxu0 %v7679_v2  ;;  %s7815_s13 = smov 88   ;;  %s13186_s16 = smov 32  }
  0x19   : > { %s6382_s15 = sshll.u32 %s381_s14, 7  ;;  %v452_v4 = vadd.s32 8, %v7944_v3  ;;  %v487_v5 = vand.u32 15, %v7944_v3  ;;  %vm12984_vm1 = vcmp.lt.s32.totalorder %v7944_v3, 1  ;;  %vm12987_vm2 = vcmp.lt.s32.totalorder %v7944_v3, 7  ;;  %s13184_s14 = smov 72  }
  0x1a   : > { %v455_v9 = vadd.s32 32, %v7944_v3  ;;  %v457_v16 = vadd.s32 48, %v7944_v3  ;;  %v459_v40 = vadd.s32 64, %v7944_v3 }
  0x1b   : > { %s7951_s24 = scalar_lea.vmem %s13329_s0, %s6382_s15  ;;  %6423 = vmatpush3.bf16.msra.mxu0 %v7679_v2  ;;  %v494_v14 = vand.u32 15, %v452_v4  ;;  %vm7966_vm3 = vcmp.eq.s32.totalorder %v487_v5, 0  ;;  %s7817_s15 = smov 48  }
  0x1c   : > { %v386_v6 = vld [vmem:[%s7951_s24] sm:$0xff]   ;;  %v388_v7 = vld [vmem:[%s7951_s24 + $0x8] sm:$0xff]   ;;  %v7957_v8 = vld [vmem:[%s7951_s24 + $0x7c] sm:$0xf]  ;;  %v13333_v15 = vsel %vm7966_vm3, 4294967295, %v13332_v15  ;;  %v515_v43 = vand.u32 15, %v455_v9 }
  0x1d   : > { %v418_v10 = vunpack.c.l.bf16 %v386_v6  ;;  %v419_v11 = vunpack.c.h.bf16 %v386_v6  ;;  %v7961_v12 = vunpack.c.l.bf16 %v388_v7  ;;  %v7964_v13 = vunpack.c.l.bf16 %v7957_v8  ;;  %13334 = vst [vmem:[#allocation7_spill] sm:$0xff] %v13333_v15  ;;  %6424 = vmatprep.mubr.msk.bf16.mxu0 %vm12981_vm0, %v386_v6  ;;  %v390_v33 = vld [vmem:[%s7951_s24 + $0x10] sm:$0xff]   ;;  %v392_v44 = vld [vmem:[%s7951_s24 + $0x18] sm:$0xff]   ;;  %v394_v53 = vld [vmem:[%s7951_s24 + $0x20] sm:$0xff]  }
  0x1e   : > { %v7988_v28 = vunpack.c.h.bf16 %v388_v7  ;;  %vm7990_vm4 = vcmp.eq.s32.totalorder %v494_v14, 15  ;;  %v8012_v39 = vunpack.c.l.bf16 %v390_v33  ;;  %6425 = vmatmul.mubr.msk.bf16.vlgmr.msra.gmra.mxu0 %vm12981_vm0, %v388_v7  ;;  %v8018_v42 = vunpack.c.h.bf16 %v390_v33  ;;  %v396_v61 = vld [vmem:[%s7951_s24 + $0x28] sm:$0xff]  }
  0x1f   : > { %13330 = vst [vmem:[#allocation5_spill] sm:$0xff] %v7961_v12  ;;  %13331 = vst [vmem:[#allocation6_spill] sm:$0xff] %v7964_v13  ;;  %v5032_v17 = vrot.slane %v418_v10, 7  ;;  %v5033_v18 = vrot.slane %v419_v11, 7  ;;  %v12963_v19 = vrot.slane %v7961_v12, 7  ;;  %v12928_v20 = vrot.slane %v7964_v13, 7  ;;  %6428 = vmatprep.mubr.msk.bf16.mxu0 %vm12981_vm0, %v390_v33 }
  0x20   : > { %v5128_v21 = vrot.slane %v418_v10, 1  ;;  %v5129_v22 = vrot.slane %v419_v11, 1  ;;  %v12929_v23 = vrot.slane %v7961_v12, 1  ;;  %v12927_v24 = vrot.slane %v7964_v13, 1  ;;  %13336 = vst [vmem:[#allocation9_spill] sm:$0xff] %v7988_v28 }
  0x21   : > { %v7980_v25 = vsel %vm12984_vm1, %v5033_v18, %v12963_v19  ;;  %v5094_v26 = vsel %vm12984_vm1, %v5032_v17, %v5033_v18  ;;  %v5095_v27 = vsel %vm12984_vm1, %v12928_v20, %v5032_v17  ;;  %v13338_v29 = vsel %vm7990_vm4, 4294967295, %v13337_v29 }
  0x22   : > { %13335 = vst [vmem:[#allocation8_spill] sm:$0xff] %v7980_v25  ;;  %13339 = vst [vmem:[#allocation10_spill] sm:$0xff] %v13338_v29  ;;  %v5096_v30 = vsel %vm7966_vm3, -inf, %v5095_v27  ;;  %v5189_v31 = vsel %vm12987_vm2, %v5129_v22, %v12929_v23  ;;  %v5190_v32 = vsel %vm12987_vm2, %v5128_v21, %v5129_v22  ;;  %v8007_v34 = vsel %vm12987_vm2, %v12927_v24, %v5128_v21 }
  0x23   : > { %13340 = vst [vmem:[#allocation11_spill] sm:$0xff] %v8007_v34  ;;  %v5193_v35 = vsel %vm7990_vm4, -inf, %v5189_v31  ;;  %v5224_v36 = vmax.f32 %v5096_v30, %v5190_v32  ;;  %v12964_v38 = vrot.slane %v7988_v28, 7  ;;  %v12954_v46 = vrot.slane %v8012_v39, 7 }
  0x24   : > { %v5225_v37 = vmax.f32 %v5094_v26, %v5193_v35  ;;  %v12962_v47 = vrot.slane %v8012_v39, 1  ;;  %v8025_v48 = vunpack.c.l.bf16 %v392_v44  ;;  %vm8027_vm5 = vcmp.eq.s32.totalorder %v515_v43, 0 }
  0x25   : > { %v8015_v41 = vmax.f32 %v5224_v36, %v418_v10  ;;  %v13344_v49 = vsel %vm8027_vm5, 4294967295, %v13343_v49  ;;  %v12955_v50 = vrot.slane %v8018_v42, 7  ;;  %v12956_v51 = vrot.slane %v8018_v42, 1 }
  0x26   : > { %v8021_v45 = vmax.f32 %v5225_v37, %v419_v11  ;;  %13345 = vst [vmem:[#allocation14_spill] sm:$0xff] %v13344_v49  ;;  %v8034_v52 = vunpack.c.h.bf16 %v392_v44  ;;  %v5091_v54 = vsel %vm12984_vm1, %v12964_v38, %v12954_v46  ;;  %v529_v55 = vand.u32 15, %v457_v16  ;;  %6429 = vmatmul.mubr.msk.bf16.gmra.mxu0 %vm12981_vm0, %v392_v44  ;;  %v398_v37 = vld [vmem:[%s7951_s24 + $0x30] sm:$0xff]  }
  0x27   : > { %13341 = vst [vmem:[#allocation12_spill] sm:$0xff] %v8015_v41  ;;  %v12948_v56 = vrot.slane %v8025_v48, 7  ;;  %v5100_v57 = vsel %vm8027_vm5, -inf, %v5091_v54  ;;  %v5186_v58 = vsel %vm12987_vm2, %v12962_v47, %v12956_v51  ;;  %v12957_v60 = vrot.slane %v8025_v48, 1  ;;  %6432 = vmatprep.mubr.msk.bf16.mxu0 %vm12981_vm0, %v394_v53 }
  0x28   : > { %13342 = vst [vmem:[#allocation13_spill] sm:$0xff] %v8021_v45  ;;  %13346 = vst [vmem:[#allocation15_spill] sm:$0xff] %v8034_v52  ;;  %v12953_v59 = vrot.slane %v8034_v52, 7  ;;  %v5228_v62 = vmax.f32 %v5100_v57, %v5186_v58  ;;  %vm8055_vm6 = vcmp.eq.s32.totalorder %v529_v55, 0  ;;  %v12946_v1 = vrot.slane %v8034_v52, 1 }
  0x29   : > { %v13348_v63 = vsel %vm8055_vm6, 4294967295, %v13347_v63  ;;  %v5089_v0 = vsel %vm12984_vm1, %v12955_v50, %v12948_v56  ;;  %v8068_v4 = vunpack.c.l.bf16 %v394_v53  ;;  %v8070_v5 = vunpack.c.h.bf16 %v394_v53 }
  0x2a   : > { %13349 = vst [vmem:[#allocation16_spill] sm:$0xff] %v13348_v63  ;;  %v5102_v2 = vsel %vm8055_vm6, -inf, %v5089_v0  ;;  %v543_v6 = vand.u32 15, %v459_v40  ;;  %v8073_v7 = vmax.f32 %v5228_v62, %v8012_v39  ;;  %v5184_v9 = vsel %vm12987_vm2, %v12957_v60, %v12946_v1 }
  0x2b   : > { %v8081_v10 = vunpack.c.l.bf16 %v396_v61  ;;  %v5230_v11 = vmax.f32 %v5102_v2, %v5184_v9  ;;  %v13351_v14 = vmov 0  ;;  %v12934_v16 = vrot.slane %v8068_v4, 7 }
  0x2c   : > { %13350 = vst [vmem:[#allocation17_spill] sm:$0xff] %v8073_v7  ;;  %vm8084_vm7 = vcmp.eq.s32.totalorder %v543_v6, 0  ;;  %v12937_v17 = vrot.slane %v8070_v5, 7  ;;  %v12947_v21 = vrot.slane %v8068_v4, 1  ;;  %v12938_v22 = vrot.slane %v8070_v5, 1  ;;  %v400_v6 = vld [vmem:[%s7951_s24 + $0x38] sm:$0xff]  }
  0x2d   : > { %v13352_v14 = vsel %vm8084_vm7, 4294967295, %v13351_v14  ;;  %v8095_v26 = vunpack.c.h.bf16 %v396_v61  ;;  %v8098_v27 = vmax.f32 %v5230_v11, %v8025_v48  ;;  %v5087_v30 = vsel %vm12984_vm1, %v12953_v59, %v12934_v16 }
  0x2e   : > { %13353 = vst [vmem:[#allocation18_spill] sm:$0xff] %v13352_v14  ;;  %v461_v31 = vadd.s32 80, %v7944_v3  ;;  %v5104_v32 = vsel %vm8084_vm7, -inf, %v5087_v30  ;;  %v5182_v33 = vsel %vm12987_vm2, %v12947_v21, %v12938_v22  ;;  %v12931_v35 = vrot.slane %v8081_v10, 7  ;;  %6433 = vmatmul.mubr.msk.bf16.gmra.mxu0 %vm12981_vm0, %v396_v61 }
  0x2f   : > { %13354 = vst [vmem:[#allocation19_spill] sm:$0xff] %v8095_v26  ;;  %13355 = vst [vmem:[#allocation20_spill] sm:$0xff] %v8098_v27  ;;  %v12932_v36 = vrot.slane %v8095_v26, 7  ;;  %v5232_v40 = vmax.f32 %v5104_v32, %v5182_v33  ;;  %v12945_v44 = vrot.slane %v8081_v10, 1  ;;  %v12933_v53 = vrot.slane %v8095_v26, 1  ;;  %6436 = vmatprep.mubr.msk.bf16.mxu0 %vm12981_vm0, %v398_v37 }
  0x30   : > { %v557_v43 = vand.u32 15, %v461_v31  ;;  %v5085_v54 = vsel %vm12984_vm1, %v12937_v17, %v12931_v35  ;;  %v8126_v55 = vunpack.c.l.bf16 %v398_v37  ;;  %v8128_v57 = vunpack.c.h.bf16 %v398_v37 }
  0x31   : > { %v463_v58 = vadd.s32 96, %v7944_v3  ;;  %v8132_v62 = vmax.f32 %v5232_v40, %v8068_v4  ;;  %v13357_v0 = vmov 0  ;;  %v5180_v2 = vsel %vm12987_vm2, %v12945_v44, %v12933_v53  ;;  %v404_v53 = vld [vmem:[%s7951_s24 + $0x48] sm:$0xff]  }
  0x32   : > { %vm8134_vm8 = vcmp.eq.s32.totalorder %v557_v43, 0  ;;  %v12930_v30 = vrot.slane %v8126_v55, 7  ;;  %v12941_v31 = vrot.slane %v8128_v57, 7  ;;  %v12936_v33 = vrot.slane %v8126_v55, 1 }
  0x33   : > { %13356 = vst [vmem:[#allocation21_spill] sm:$0xff] %v8132_v62  ;;  %v13358_v0 = vsel %vm8134_vm8, 4294967295, %v13357_v0  ;;  %v5106_v9 = vsel %vm8134_vm8, -inf, %v5085_v54  ;;  %v571_v11 = vand.u32 15, %v463_v58  ;;  %v12935_v40 = vrot.slane %v8128_v57, 1 }
  0x34   : > { %13359 = vst [vmem:[#allocation22_spill] sm:$0xff] %v13358_v0  ;;  %v5234_v32 = vmax.f32 %v5106_v9, %v5180_v2  ;;  %v8152_v43 = vunpack.c.l.bf16 %v400_v6  ;;  %v13360_v24 = vmov 0  ;;  %v5083_v61 = vsel %vm12984_vm1, %v12932_v36, %v12930_v30  ;;  %v402_v30 = vld [vmem:[%s7951_s24 + $0x40] sm:$0xff]  }
  0x35   : > { %vm8154_vm9 = vcmp.eq.s32.totalorder %v571_v11, 0  ;;  %v8165_v54 = vunpack.c.h.bf16 %v400_v6  ;;  %v465_v58 = vadd.s32 112, %v7944_v3  ;;  %v5178_v37 = vsel %vm12987_vm2, %v12936_v33, %v12935_v40 }
  0x36   : > { %v13361_v24 = vsel %vm8154_vm9, 4294967295, %v13360_v24  ;;  %v8169_v2 = vmax.f32 %v5234_v32, %v8081_v10  ;;  %v5108_v9 = vsel %vm8154_vm9, -inf, %v5083_v61  ;;  %v12939_v18 = vrot.slane %v8152_v43, 7  ;;  %6437 = vmatmul.mubr.msk.bf16.gmra.mxu0 %vm12981_vm0, %v400_v6 }
  0x37   : > { %13362 = vst [vmem:[#allocation23_spill] sm:$0xff] %v13361_v24  ;;  %13363 = vst [vmem:[#allocation24_spill] sm:$0xff] %v8165_v54  ;;  %v5236_v11 = vmax.f32 %v5108_v9, %v5178_v37  ;;  %v585_v20 = vand.u32 15, %v465_v58  ;;  %v12943_v23 = vrot.slane %v8165_v54, 7  ;;  %v12944_v32 = vrot.slane %v8152_v43, 1  ;;  %6440 = vmatprep.mubr.msk.bf16.mxu0 %vm12981_vm0, %v402_v30 }
  0x38   : > { %13364 = vst [vmem:[#allocation25_spill] sm:$0xff] %v8169_v2  ;;  %v12940_v35 = vrot.slane %v8165_v54, 1  ;;  %v8184_v36 = vunpack.c.l.bf16 %v402_v30  ;;  %v8186_v61 = vunpack.c.h.bf16 %v402_v30  ;;  %v13366_v9 = vmov 0 }
  0x39   : > { %v8190_v16 = vmax.f32 %v5236_v11, %v8126_v55  ;;  %vm8192_vm10 = vcmp.eq.s32.totalorder %v585_v20, 0  ;;  %v5081_v58 = vsel %vm12984_vm1, %v12941_v31, %v12939_v18  ;;  %v467_v37 = vadd.s32 128, %v7944_v3 }
  0x3a   : > { %v13367_v9 = vsel %vm8192_vm10, 4294967295, %v13366_v9  ;;  %v5110_v40 = vsel %vm8192_vm10, -inf, %v5081_v58  ;;  %v5176_v20 = vsel %vm12987_vm2, %v12944_v32, %v12940_v35  ;;  %v12942_v11 = vrot.slane %v8184_v36, 7  ;;  %v406_v32 = vld [vmem:[%s7951_s24 + $0x50] sm:$0xff]  }
  0x3b   : > { %13365 = vst [vmem:[#allocation26_spill] sm:$0xff] %v8190_v16  ;;  %13368 = vst [vmem:[#allocation27_spill] sm:$0xff] %v13367_v9  ;;  %v5238_v33 = vmax.f32 %v5110_v40, %v5176_v20  ;;  %v599_v17 = vand.u32 15, %v467_v37  ;;  %v12952_v22 = vrot.slane %v8186_v61, 7  ;;  %v12950_v18 = vrot.slane %v8184_v36, 1 }
  0x3c   : > { %v5079_v58 = vsel %vm12984_vm1, %v12943_v23, %v12942_v11  ;;  %v12949_v35 = vrot.slane %v8186_v61, 1  ;;  %v8222_v31 = vunpack.c.l.bf16 %v404_v53  ;;  %v8224_v40 = vunpack.c.h.bf16 %v404_v53 }
  0x3d   : > { %v8227_v37 = vmax.f32 %v5238_v33, %v8152_v43  ;;  %vm8229_vm11 = vcmp.eq.s32.totalorder %v599_v17, 0  ;;  %v13371_v20 = vmov 0  ;;  %v469_v6 = vadd.s32 144, %v7944_v3 }
  0x3e   : > { %13369 = vst [vmem:[#allocation28_spill] sm:$0xff] %v8224_v40  ;;  %v13372_v20 = vsel %vm8229_vm11, 4294967295, %v13371_v20  ;;  %v5112_v11 = vsel %vm8229_vm11, -inf, %v5079_v58  ;;  %v5174_v33 = vsel %vm12987_vm2, %v12950_v18, %v12949_v35  ;;  %v12951_v17 = vrot.slane %v8222_v31, 7  ;;  %6441 = vmatmul.mubr.msk.bf16.gmra.mxu0 %vm12981_vm0, %v404_v53 }
  0x3f   : > { %13370 = vst [vmem:[#allocation29_spill] sm:$0xff] %v8227_v37  ;;  %13373 = vst [vmem:[#allocation30_spill] sm:$0xff] %v13372_v20  ;;  %v12960_v23 = vrot.slane %v8224_v40, 7  ;;  %v5240_v44 = vmax.f32 %v5112_v11, %v5174_v33  ;;  %v613_v30 = vand.u32 15, %v469_v6  ;;  %v12961_v1 = vrot.slane %v8222_v31, 1  ;;  %6444 = vmatprep.mubr.msk.bf16.mxu0 %vm12981_vm0, %v406_v32 }
  0x40   : > { %v12958_v21 = vrot.slane %v8224_v40, 1  ;;  %v5077_v58 = vsel %vm12984_vm1, %v12952_v22, %v12951_v17  ;;  %v8254_v56 = vunpack.c.l.bf16 %v406_v32  ;;  %v8256_v35 = vunpack.c.h.bf16 %v406_v32  ;;  %v408_v17 = vld [vmem:[%s7951_s24 + $0x58] sm:$0xff]  }
  0x41   : > { %v471_v18 = vadd.s32 160, %v7944_v3  ;;  %v8260_v11 = vmax.f32 %v5240_v44, %v8184_v36  ;;  %vm8262_vm12 = vcmp.eq.s32.totalorder %v613_v30, 0  ;;  %v13375_v6 = vmov 0 }
  0x42   : > { %v13376_v6 = vsel %vm8262_vm12, 4294967295, %v13375_v6  ;;  %v5172_v33 = vsel %vm12987_vm2, %v12961_v1, %v12958_v21  ;;  %v5114_v22 = vsel %vm8262_vm12, -inf, %v5077_v58  ;;  %v12959_v46 = vrot.slane %v8254_v56, 7 }
  0x43   : > { %13374 = vst [vmem:[#allocation31_spill] sm:$0xff] %v8260_v11  ;;  %13377 = vst [vmem:[#allocation32_spill] sm:$0xff] %v13376_v6  ;;  %v627_v59 = vand.u32 15, %v471_v18  ;;  %v5242_v30 = vmax.f32 %v5114_v22, %v5172_v33  ;;  %v12966_v50 = vrot.slane %v8254_v56, 1  ;;  %v12965_v51 = vrot.slane %v8256_v35, 1  ;;  %v414_v11 = vld [vmem:[%s7951_s24 + $0x70] sm:$0xff]  }
  0x44   : > { %v8279_v60 = vunpack.c.l.bf16 %v408_v17  ;;  %v13378_v21 = vmov 0  ;;  %v5075_v18 = vsel %vm12984_vm1, %v12960_v23, %v12959_v46  ;;  %v8292_v22 = vunpack.c.h.bf16 %v408_v17 }
  0x45   : > { %vm8282_vm13 = vcmp.eq.s32.totalorder %v627_v59, 0  ;;  %v473_v58 = vadd.s32 176, %v7944_v3  ;;  %v8296_v33 = vmax.f32 %v5242_v30, %v8222_v31  ;;  %v5170_v53 = vsel %vm12987_vm2, %v12966_v50, %v12965_v51  ;;  %v410_v30 = vld [vmem:[%s7951_s24 + $0x60] sm:$0xff]  }
  0x46   : > { %v13379_v21 = vsel %vm8282_vm13, 4294967295, %v13378_v21  ;;  %13381 = vst [vmem:[#allocation34_spill] sm:$0xff] %v8292_v22  ;;  %v5116_v59 = vsel %vm8282_vm13, -inf, %v5075_v18  ;;  %v12970_v1 = vrot.slane %v8279_v60, 7  ;;  %v12974_v32 = vrot.slane %v8279_v60, 1  ;;  %6445 = vmatmul.mubr.msk.bf16.gmra.mxu0 %vm12981_vm0, %v408_v17 }
  0x47   : > { %13380 = vst [vmem:[#allocation33_spill] sm:$0xff] %v13379_v21  ;;  %13382 = vst [vmem:[#allocation35_spill] sm:$0xff] %v8296_v33  ;;  %v5244_v46 = vmax.f32 %v5116_v59, %v5170_v53  ;;  %v641_v23 = vand.u32 15, %v473_v58  ;;  %v12972_v19 = vrot.slane %v8292_v22, 1  ;;  %v8312_v18 = vunpack.c.l.bf16 %v410_v30  ;;  %6448 = vmatprep.mubr.msk.bf16.mxu0 %vm12981_vm0, %v410_v30 }
  0x48   : > { %v8314_v38 = vunpack.c.h.bf16 %v410_v30  ;;  %v13384_v59 = vmov 0  ;;  %v13387_v58 = vrot.slane %v8256_v35, 7  ;;  %v475_v51 = vadd.s32 192, %v7944_v3 }
  0x49   : > { %v8317_v44 = vmax.f32 %v5244_v46, %v8254_v56  ;;  %vm8319_vm14 = vcmp.eq.s32.totalorder %v641_v23, 0  ;;  %v5168_v23 = vsel %vm12987_vm2, %v12974_v32, %v12972_v19  ;;  %v12973_v46 = vrot.slane %v8312_v18, 7 }
  0x4a   : > { %v13385_v59 = vsel %vm8319_vm14, 4294967295, %v13384_v59  ;;  %v5073_v53 = vsel %vm12984_vm1, %v13387_v58, %v12970_v1  ;;  %v655_v34 = vand.u32 15, %v475_v51  ;;  %v12980_v13 = vrot.slane %v8312_v18, 1 }
  0x4b   : > { %13383 = vst [vmem:[#allocation36_spill] sm:$0xff] %v8317_v44  ;;  %13386 = vst [vmem:[#allocation37_spill] sm:$0xff] %v13385_v59  ;;  %v5118_v50 = vsel %vm8319_vm14, -inf, %v5073_v53  ;;  %v412_v44 = vld [vmem:[%s7951_s24 + $0x68] sm:$0xff]   ;;  %v13388_v58 = vrot.slane %v8292_v22, 7  ;;  %v12979_v1 = vrot.slane %v8314_v38, 1  ;;  %v8382_v16 = vunpack.c.l.bf16 %v414_v11 }
  0x4c   : > { %v5246_v47 = vmax.f32 %v5118_v50, %v5168_v23  ;;  %v8348_v33 = vunpack.c.l.bf16 %v412_v44  ;;  %v8350_v19 = vunpack.c.h.bf16 %v412_v44  ;;  %vm8356_vm15 = vcmp.eq.s32.totalorder %v655_v34, 0 }
  0x4d   : > { %v5071_v53 = vsel %vm12984_vm1, %v13388_v58, %v12973_v46  ;;  %v13391_v51 = vmov 0  ;;  %v477_v58 = vadd.s32 208, %v7944_v3  ;;  %v12995_v17 = vrot.slane %v8382_v16, 7 }
  0x4e   : > { %13389 = vst [vmem:[#allocation38_spill] sm:$0xff] %v8350_v19  ;;  %v8354_v50 = vmax.f32 %v5246_v47, %v8279_v60  ;;  %v13392_v51 = vsel %vm8356_vm15, 4294967295, %v13391_v51  ;;  %v5120_v46 = vsel %vm8356_vm15, -inf, %v5071_v53  ;;  %v5166_v47 = vsel %vm12987_vm2, %v12980_v13, %v12979_v1 }
  0x4f   : > { %13393 = vst [vmem:[#allocation40_spill] sm:$0xff] %v13392_v51  ;;  %v12982_v34 = vrot.slane %v8348_v33, 7  ;;  %v5248_v32 = vmax.f32 %v5120_v46, %v5166_v47  ;;  %v669_v23 = vand.u32 15, %v477_v58  ;;  %v12988_v30 = vrot.slane %v8350_v19, 1 }
  0x50   : > { %13390 = vst [vmem:[#allocation39_spill] sm:$0xff] %v8354_v50  ;;  %v12998_v50 = vrot.slane %v8348_v33, 1  ;;  %v13394_v53 = vrot.slane %v8314_v38, 7  ;;  %v8384_v1 = vunpack.c.h.bf16 %v414_v11  ;;  %v479_v13 = vadd.s32 224, %v7944_v3 }
  0x51   : > { %v8388_v46 = vmax.f32 %v5248_v32, %v8312_v18  ;;  %vm8390_vm0 = vcmp.eq.s32.totalorder %v669_v23, 0  ;;  %v13397_v58 = vmov 0  ;;  %v12997_v23 = vrot.slane %v8382_v16, 1 }
  0x52   : > { %v5069_v37 = vsel %vm12984_vm1, %v13394_v53, %v12982_v34  ;;  %13395 = vst [vmem:[#allocation41_spill] sm:$0xff] %v8384_v1  ;;  %v13398_v58 = vsel %vm8390_vm0, 4294967295, %v13397_v58  ;;  %v5164_v47 = vsel %vm12987_vm2, %v12998_v50, %v12988_v30  ;;  %v683_v34 = vand.u32 15, %v479_v13 }
  0x53   : > { %13396 = vst [vmem:[#allocation42_spill] sm:$0xff] %v8388_v46  ;;  %13399 = vst [vmem:[#allocation43_spill] sm:$0xff] %v13398_v58  ;;  %v5122_v53 = vsel %vm8390_vm0, -inf, %v5069_v37  ;;  %v12996_v46 = vrot.slane %v8384_v1, 1  ;;  %v13400_v2 = vmov 0  ;;  %v13403_v62 = vrot.slane %v8350_v19, 7 }
  0x54   : > { %v5250_v32 = vmax.f32 %v5122_v53, %v5164_v47  ;;  %vm8405_vm1 = vcmp.eq.s32.totalorder %v683_v34, 0  ;;  %vm13404_vm2 = vcmp.lt.s32.totalorder %v7944_v3, 1  ;;  %vm13405_vm0 = vcmask 261120   ;;  %v8429_v53 = vld [vmem:[%s7951_s24 + $0x78] sm:$0xf]  ;;  %s377_s24 = sand.u32 1, %s7803_s18  }
  0x55   : > { %v13401_v2 = vsel %vm8405_vm1, 4294967295, %v13400_v2  ;;  %v5067_v30 = vsel %vm13404_vm2, %v13403_v62, %v12995_v17  ;;  %6449 = vmatmul.mubr.msk.bf16.gmra.mxu0 %vm13405_vm0, %v412_v44  ;;  %vm13407_vm15 = vcmp.lt.s32.totalorder %v7944_v3, 7  ;;  %vm13408_vm14 = vmmov %vm13405_vm0  ;;  %v6240_v44 = vcombine.low %v8429_v53, %v7957_v8  ;;  %s6222_s25 = sshll.u32 %s377_s24, 8 }
  0x56   : > { %13402 = vst [vmem:[#allocation44_spill] sm:$0xff] %v13401_v2  ;;  %v8417_v13 = vmax.f32 %v5250_v32, %v8348_v33  ;;  %v5124_v37 = vsel %vm8405_vm1, -inf, %v5067_v30  ;;  %v5162_v34 = vsel %vm13407_vm15, %v12997_v23, %v12996_v46  ;;  %6452 = vmatprep.mubr.msk.bf16.mxu0 %vm13408_vm14, %v414_v11  ;;  %v8440_v32 = vld [vmem:[%s12917_s2] ss:$0 sm:$0xff]  ;;  %v13428_v51 = vrot.slane %v7988_v28, 7  ;;  %s12661_s29 = scalar_lea.vmem [#allocation2], %s6222_s25 }
  0x57   : > { %v5252_v47 = vmax.f32 %v5124_v37, %v5162_v34  ;;  %v13429_v59 = vrot.slane %v7961_v12, 7  ;;  %vm13430_vm14 = vcmp.lt.s32.totalorder %v7944_v3, 1  ;;  %v13455_v14 = vrot.slane %v8068_v4, 1 }
  0x58   : > { %13406 = vst [vmem:[#allocation45_spill] sm:$0xff] %v8417_v13  ;;  %v13456_v63 = vrot.slane %v8034_v52, 1  ;;  %vm13508_vm12 = vcmp.lt.s32.totalorder %v7944_v3, 1  ;;  %vm13553_vm7 = vcmp.lt.s32.totalorder %v7944_v3, 1  ;;  %vm13578_vm3 = vcmp.lt.s32.totalorder %v7944_v3, 7 }
  0x59   : > { %v8432_v62 = vmax.f32 %v5252_v47, %v8382_v16  ;;  %v5092_v21 = vsel %vm13430_vm14, %v13429_v59, %v13428_v51 }
  0x5b   : > { %13409 = vst [vmem:[#allocation46_spill] sm:$0xff] %v8432_v62 }
  0x5d   : > { %6453 = vmatmul.mubr.msk.bf16.gmra.mxu0 %vm13405_vm0, %v6240_v44  ;;  %vm13444_vm0 = vmmov %vm13407_vm15 }
  0xde   : > { %v6426_v30 = vpop.f32.mrf.mxu0 }
  0xdf   : > { %v1062_v11 = vadd.f32 %v6426_v30, %v8440_v32 }
  0xe0   : > { %v1053_v17 = vpop.f32.mrf.mxu0 }
  0xe1   : > { %v8444_v47 = vmax.f32 %v1062_v11, 0.0  ;;  %v1054_v23 = vadd.f32 %v8440_v32, %v1053_v17 }
  0xe2   : > { %v6427_v37 = vpop.f32.mrf.mxu0 }
  0xe3   : > { %v1065_v34 = vadd.f32 %v6427_v37, %v8440_v32  ;;  %13410 = vst [vmem:[#allocation47_spill] sm:$0xff] %v8444_v47  ;;  %v8452_v27 = vmax.f32 %v1054_v23, 0.0 }
  0xe4   : > { %v1056_v46 = vpop.f32.mrf.mxu0 }
  0xe5   : > { %v8447_v8 = vmax.f32 %v1065_v34, 0.0  ;;  %v1057_v44 = vadd.f32 %v8440_v32, %v1056_v46  ;;  %13412 = vst [vmem:[#allocation49_spill] sm:$0xff] %v8452_v27 }
  0xe6   : > { %v6430_v50 = vpop.f32.mrf.mxu0 }
  0xe7   : > { %13411 = vst [vmem:[#allocation48_spill] sm:$0xff] %v8447_v8  ;;  %v6578_v62 = vpack.i.bf16 %v8447_v8, %v8444_v47  ;;  %v8456_v30 = vmax.f32 %v1057_v44, 0.0  ;;  %v8459_v11 = vadd.f32 %v6430_v50, %v8440_v32  ;;  %v6583_v37 = vpack.i.bf16 %v8447_v8, %v8452_v27 }
  0xe8   : > { %v1069_v13 = vpop.f32.mrf.mxu0 }
  0xe9   : > { %6579 = vrot.lane.b32.xlu1 %v6578_v62, %s7813_s30  ;;  %6574 = vrot.lane.b32.xlu0 %v6578_v62, %s7814_s12  ;;  %13413 = vst [vmem:[#allocation50_spill] sm:$0xff] %v8456_v30  ;;  %13414 = vst [vmem:[#allocation51_spill] sm:$0xff] %v8459_v11  ;;  %v13013_v44 = vmax.f32 %v8459_v11, 0.0  ;;  %v6593_v50 = vpack.i.bf16 %v8456_v30, %v8452_v27  ;;  %v8484_v25 = vadd.f32 %v8440_v32, %v1069_v13 }
  0xea   : > { %v6431_v17 = vpop.f32.mrf.mxu0 }
  0xeb   : > { %v8462_v46 = vadd.f32 %v6431_v17, %v8440_v32  ;;  %13417 = vst [vmem:[#allocation54_spill] sm:$0xff] %v8484_v25 }
  0xec   : > { %v1072_v23 = vpop.f32.mrf.mxu0 }
  0xed   : > { %13415 = vst [vmem:[#allocation52_spill] sm:$0xff] %v8462_v46  ;;  %6589 = vrot.lane.b32.xlu0 %v6578_v62, %s7815_s13  ;;  %6584 = vrot.lane.b32.xlu1 %v6583_v37, %s13184_s14  ;;  %v13012_v7 = vmax.f32 %v8462_v46, 0.0  ;;  %v8475_v41 = vadd.f32 %v8440_v32, %v1072_v23  ;;  %v6603_v23 = vpack.i.bf16 %v8444_v47, %v8456_v30  ;;  %v13019_v46 = vmax.f32 %v8484_v25, 0.0 }
  0xee   : > { %v6434_v34 = vpop.f32.mrf.mxu0 }
  0xef   : > { %13416 = vst [vmem:[#allocation53_spill] sm:$0xff] %v8475_v41  ;;  %v8481_v62 = vpack.i.bf16 %v13012_v7, %v13013_v44  ;;  %v13018_v2 = vmax.f32 %v8475_v41, 0.0  ;;  %v8497_v13 = vadd.f32 %v6434_v34, %v8440_v32  ;;  %v454_v44 = vadd.s32 24, %v7944_v3 }
  0xf0   : > { %v1085_v17 = vpop.f32.mrf.mxu0 }
  0xf1   : > { %6594 = vrot.lane.b32.xlu0 %v6593_v50, %s7814_s12  ;;  %6609 = vrot.lane.b32.xlu1 %v6593_v50, %s7815_s13  ;;  %13418 = vst [vmem:[#allocation55_spill] sm:$0xff] %v8497_v13  ;;  %v8507_v30 = vpack.i.bf16 %v13018_v2, %v13019_v46  ;;  %v508_v41 = vand.u32 15, %v454_v44  ;;  %v13425_v2 = vmov 0 }
  0xf2   : > { %v6435_v8 = vpop.f32.mrf.mxu0 }
  0xf3   : > { %vm8542_vm2 = vcmp.eq.s32.totalorder %v508_v41, 15 }
  0xf4   : > { %v1088_v37 = vpop.f32.mrf.mxu0  ;;  %v13426_v2 = vsel %vm8542_vm2, 4294967295, %v13425_v2 }
  0xf5   : > { %6599 = vrot.lane.b32.xlu0 %v6593_v50, %s7813_s30  ;;  %6614 = vrot.lane.b32.xlu1 %v8481_v62, %s7814_s12  ;;  %v8500_v50 = vadd.f32 %v6435_v8, %v8440_v32  ;;  %v8519_v34 = vadd.f32 %v8440_v32, %v1088_v37  ;;  %v13423_v37 = vmax.f32 %v8497_v13, 0.0  ;;  %13427 = vst [vmem:[#allocation61_spill] sm:$0xff] %v13426_v2  ;;  %v13431_v13 = vrot.slane %v8012_v39, 1 }
  0xf6   : > { %v6438_v27 = vpop.f32.mrf.mxu0 }
  0xf7   : > { %13419 = vst [vmem:[#allocation56_spill] sm:$0xff] %v8500_v50  ;;  %v13029_v8 = vmax.f32 %v8500_v50, 0.0  ;;  %13421 = vst [vmem:[#allocation58_spill] sm:$0xff] %v8519_v34  ;;  %v8524_v25 = vadd.f32 %v6438_v27, %v8440_v32 }
  0xf8   : > { %v1101_v11 = vpop.f32.mrf.mxu0 }
  0xf9   : > { %6604 = vrot.lane.b32.xlu0 %v6603_v23, %s13184_s14  ;;  %6619 = vrot.lane.b32.xlu1 %v8481_v62, %s7813_s30  ;;  %v8510_v23 = vadd.f32 %v8440_v32, %v1085_v17  ;;  %13422 = vst [vmem:[#allocation59_spill] sm:$0xff] %v8524_v25  ;;  %v8537_v44 = vpack.i.bf16 %v13029_v8, %v13423_v37  ;;  %v13432_v37 = vrot.slane %v7988_v28, 1  ;;  %v13436_v59 = vmax.f32 %v8524_v25, 0.0 }
  0xfa   : > { %v6439_v7 = vpop.f32.mrf.mxu0  ;;  %v8588_v12 = vadd.f32 %v8440_v32, %v1101_v11  ;;  %v13443_v11 = vrot.slane %v8018_v42, 1 }
  0xfb   : > { %13420 = vst [vmem:[#allocation57_spill] sm:$0xff] %v8510_v23  ;;  %v8540_v17 = vadd.f32 %v6439_v7, %v8440_v32  ;;  %v5187_v7 = vsel %vm13407_vm15, %v13432_v37, %v13431_v13  ;;  %v13434_v51 = vmax.f32 %v8510_v23, 0.0  ;;  %v13435_v13 = vmax.f32 %v8519_v34, 0.0 }
  0xfc   : > { %v1104_v47 = vpop.f32.mrf.mxu0  ;;  %v5195_v41 = vsel %vm8542_vm2, -inf, %v5187_v7  ;;  %13438 = vst [vmem:[#allocation63_spill] sm:$0xff] %v8588_v12  ;;  %vm13450_vm15 = vcmp.lt.s32.totalorder %v7944_v3, 1 }
  0xfd   : > { %6634 = vrot.lane.b32.xlu0 %v8507_v30, %s7813_s30  ;;  %6624 = vrot.lane.b32.xlu1 %v8481_v62, %s13184_s14  ;;  %13424 = vst [vmem:[#allocation60_spill] sm:$0xff] %v8540_v17  ;;  %v8560_v50 = vmax.f32 %v5092_v21, %v5195_v41  ;;  %v8572_v37 = vpack.i.bf16 %v13435_v13, %v13434_v51  ;;  %v456_v21 = vadd.s32 40, %v7944_v3  ;;  %v13437_v23 = vmax.f32 %v8540_v17, 0.0 }
  0xfe   : > { %v6442_v46 = vpop.f32.mrf.mxu0  ;;  %v8591_v28 = vadd.f32 %v8440_v32, %v1104_v47  ;;  %v13452_v17 = vrot.slane %v8034_v52, 7 }
  0xff   : > { %13433 = vst [vmem:[#allocation62_spill] sm:$0xff] %v8560_v50  ;;  %v1126_v6 = vadd.f32 %v6442_v46, %v8440_v32  ;;  %v8584_v50 = vpack.i.bf16 %v13437_v23, %v13436_v59  ;;  %v522_v34 = vand.u32 15, %v456_v21  ;;  %v13445_v59 = vmov 0 }
 0x100   : > { %v8526_v58 = vpop.f32.mrf.mxu0  ;;  %13439 = vst [vmem:[#allocation64_spill] sm:$0xff] %v8591_v28  ;;  %v13449_v21 = vrot.slane %v8012_v39, 7 }
 0x101   : > { %6639 = vrot.lane.b32.xlu0 %v8507_v30, %s13184_s14  ;;  %6629 = vrot.lane.b32.xlu1 %v8507_v30, %s7814_s12  ;;  %v8595_v9 = vmax.f32 %v1126_v6, 0.0  ;;  %vm8609_vm14 = vcmp.eq.s32.totalorder %v522_v34, 15  ;;  %v13448_v6 = vrot.slane %v8018_v42, 7  ;;  %v458_v34 = vadd.s32 56, %v7944_v3 }
 0x102   : > { %v6443_v27 = vpop.f32.mrf.mxu0  ;;  %v13446_v59 = vsel %vm8609_vm14, 4294967295, %v13445_v59 }
 0x103   : > { %v1129_v51 = vadd.f32 %v6443_v27, %v8440_v32  ;;  %13440 = vst [vmem:[#allocation65_spill] sm:$0xff] %v8595_v9  ;;  %v13442_v27 = vrot.slane %v8025_v48, 1  ;;  %13447 = vst [vmem:[#allocation67_spill] sm:$0xff] %v13446_v59  ;;  %v536_v25 = vand.u32 15, %v458_v34 }
 0x104   : > { %v1120_v8 = vpop.f32.mrf.mxu0 }
 0x105   : > { %6654 = vrot.lane.b32.xlu0 %v8537_v44, %s13184_s14  ;;  %6644 = vrot.lane.b32.xlu1 %v8537_v44, %s7814_s12  ;;  %v8601_v46 = vmax.f32 %v1129_v51, 0.0  ;;  %v5185_v47 = vsel %vm13444_vm0, %v13443_v11, %v13442_v27  ;;  %v5090_v51 = vsel %vm13450_vm15, %v13449_v21, %v13448_v6  ;;  %vm13454_vm0 = vmmov %vm13450_vm15  ;;  %vm13457_vm15 = vcmp.lt.s32.totalorder %v7944_v3, 7 }
 0x106   : > { %v6446_v7 = vpop.f32.mrf.mxu0  ;;  %v5197_v27 = vsel %vm8609_vm14, -inf, %v5185_v47  ;;  %v13453_v47 = vrot.slane %v8025_v48, 7  ;;  %v5183_v49 = vsel %vm13457_vm15, %v13456_v63, %v13455_v14  ;;  %vm8657_vm1 = vcmp.eq.s32.totalorder %v536_v25, 15 }
 0x107   : > { %13441 = vst [vmem:[#allocation66_spill] sm:$0xff] %v8601_v46  ;;  %v8632_v39 = vpack.i.bf16 %v8601_v46, %v8595_v9  ;;  %v5229_v21 = vmax.f32 %v5090_v51, %v5197_v27  ;;  %v1142_v15 = vadd.f32 %v6446_v7, %v8440_v32  ;;  %v13459_v51 = vmax.f32 %v8591_v28, 0.0 }
 0x108   : > { %v1133_v41 = vpop.f32.mrf.mxu0  ;;  %v5088_v0 = vsel %vm13454_vm0, %v13453_v47, %v13452_v17  ;;  %v13461_v17 = vmov 0  ;;  %v5199_v7 = vsel %vm8657_vm1, -inf, %v5183_v49  ;;  %v8679_v47 = vadd.f32 %v8440_v32, %v1120_v8  ;;  %vm13473_vm0 = vmmov %vm13457_vm15 }
 0x109   : > { %6659 = vrot.lane.b32.xlu0 %v8572_v37, %s7814_s12  ;;  %6649 = vrot.lane.b32.xlu1 %v8537_v44, %s7813_s30  ;;  %13451 = vst [vmem:[#allocation68_spill] sm:$0xff] %v8632_v39  ;;  %v1134_v11 = vadd.f32 %v8440_v32, %v1133_v41  ;;  %v13458_v41 = vmax.f32 %v8588_v12, 0.0  ;;  %v8655_v48 = vmax.f32 %v5229_v21, %v8018_v42  ;;  %v13462_v17 = vsel %vm8657_vm1, 4294967295, %v13461_v17 }
 0x10a   : > { %v6447_v13 = vpop.f32.mrf.mxu0  ;;  %13463 = vst [vmem:[#allocation70_spill] sm:$0xff] %v13462_v17  ;;  %v8672_v42 = vmax.f32 %v5088_v0, %v5199_v7  ;;  %v8676_v21 = vadd.f32 %v8440_v32, %v8526_v58  ;;  %13467 = vst [vmem:[#allocation74_spill] sm:$0xff] %v8679_v47  ;;  %v460_v7 = vadd.s32 72, %v7944_v3  ;;  %v13471_v25 = vrot.slane %v8081_v10, 1 }
 0x10b   : > { %v8652_v27 = vpack.i.bf16 %v13459_v51, %v13458_v41  ;;  %13460 = vst [vmem:[#allocation69_spill] sm:$0xff] %v8655_v48  ;;  %v8665_v63 = vmax.f32 %v1134_v11, 0.0  ;;  %v1145_v14 = vadd.f32 %v6447_v13, %v8440_v32  ;;  %v8681_v11 = vmax.f32 %v1142_v15, 0.0 }
 0x10c   : > { %v8593_v20 = vpop.f32.mrf.mxu0  ;;  %13465 = vst [vmem:[#allocation72_spill] sm:$0xff] %v8672_v42  ;;  %13466 = vst [vmem:[#allocation73_spill] sm:$0xff] %v8676_v21  ;;  %v13472_v41 = vrot.slane %v8070_v5, 1  ;;  %v550_v28 = vand.u32 15, %v460_v7  ;;  %v13478_v42 = vrot.slane %v8070_v5, 7  ;;  %vm13480_vm15 = vcmp.lt.s32.totalorder %v7944_v3, 1 }
 0x10d   : > { %6664 = vrot.lane.b32.xlu0 %v8572_v37, %s7813_s30  ;;  %6674 = vrot.lane.b32.xlu1 %v8584_v50, %s7814_s12  ;;  %13464 = vst [vmem:[#allocation71_spill] sm:$0xff] %v8665_v63  ;;  %13468 = vst [vmem:[#allocation75_spill] sm:$0xff] %v8681_v11  ;;  %v8687_v49 = vmax.f32 %v1145_v14, 0.0  ;;  %v6728_v0 = vpack.i.bf16 %v8665_v63, %v8601_v46  ;;  %v13481_v7 = vmov 0 }
 0x10e   : > { %v5181_v58 = vsel %vm13473_vm0, %v13472_v41, %v13471_v25  ;;  %v13479_v25 = vrot.slane %v8068_v4, 7  ;;  %vm8729_vm0 = vcmp.eq.s32.totalorder %v550_v28, 15  ;;  %v13485_v4 = vrot.slane %v8095_v26, 1 }
 0x10f   : > { %13469 = vst [vmem:[#allocation76_spill] sm:$0xff] %v8687_v49  ;;  %v8699_v8 = vpack.i.bf16 %v8687_v49, %v8681_v11  ;;  %v13482_v7 = vsel %vm8729_vm0, 4294967295, %v13481_v7 }
 0x110   : > { %v5086_v41 = vsel %vm13480_vm15, %v13479_v25, %v13478_v42  ;;  %13483 = vst [vmem:[#allocation80_spill] sm:$0xff] %v13482_v7  ;;  %vm13486_vm15 = vcmp.lt.s32.totalorder %v7944_v3, 7 }
 0x111   : > { %6669 = vrot.lane.b32.xlu0 %v8572_v37, %s13184_s14  ;;  %6679 = vrot.lane.b32.xlu1 %v8584_v50, %s7813_s30  ;;  %13470 = vst [vmem:[#allocation77_spill] sm:$0xff] %v8699_v8 }
 0x115   : > { %v6450_v23 = vpop.f32.mrf.mxu0  ;;  %6684 = vrot.lane.b32.xlu0 %v8584_v50, %s13184_s14  ;;  %6704 = vrot.lane.b32.xlu1 %v8632_v39, %s7814_s12 }
 0x116   : > { %v1158_v15 = vadd.f32 %v6450_v23, %v8440_v32  ;;  %v13475_v23 = vmax.f32 %v8679_v47, 0.0  ;;  %v462_v47 = vadd.s32 88, %v7944_v3 }
 0x117   : > { %v8621_v24 = vpop.f32.mrf.mxu0 }
 0x118   : > { %v8715_v12 = vmax.f32 %v1158_v15, 0.0  ;;  %v5201_v15 = vsel %vm8729_vm0, -inf, %v5181_v58 }
 0x119   : > { %v6451_v6 = vpop.f32.mrf.mxu0  ;;  %6689 = vrot.lane.b32.xlu0 %v8652_v27, %s7814_s12  ;;  %6709 = vrot.lane.b32.xlu1 %v8632_v39, %s7813_s30 }
 0x11a   : > { %v1161_v51 = vadd.f32 %v6451_v6, %v8440_v32  ;;  %13476 = vst [vmem:[#allocation78_spill] sm:$0xff] %v8715_v12 }
 0x11b   : > { %v1152_v34 = vpop.f32.mrf.mxu0 }
 0x11c   : > { %v8721_v6 = vmax.f32 %v1161_v51, 0.0  ;;  %v5233_v51 = vmax.f32 %v5086_v41, %v5201_v15  ;;  %v564_v41 = vand.u32 15, %v462_v47  ;;  %v13490_v15 = vrot.slane %v8081_v10, 7 }
 0x11d   : > { %v6454_v13 = vpop.f32.mrf.mxu0  ;;  %6694 = vrot.lane.b32.xlu0 %v8652_v27, %s7813_s30  ;;  %6729 = vrot.lane.b32.xlu1 %v6728_v0, %s13184_s14  ;;  %v13474_v0 = vmax.f32 %v8676_v21, 0.0  ;;  %v13484_v21 = vrot.slane %v8126_v55, 1 }
 0x11e   : > { %13477 = vst [vmem:[#allocation79_spill] sm:$0xff] %v8721_v6  ;;  %v1174_v28 = vadd.f32 %v6454_v13, %v8440_v32  ;;  %v8755_v25 = vmax.f32 %v5233_v51, %v8070_v5  ;;  %vm8765_vm13 = vcmp.eq.s32.totalorder %v564_v41, 15  ;;  %v13493_v13 = vmov 0 }
 0x11f   : > { %v1165_v14 = vpop.f32.mrf.mxu0  ;;  %v8713_v46 = vpack.i.bf16 %v13475_v23, %v13474_v0  ;;  %v1137_v23 = vadd.f32 %v8440_v32, %v8593_v20  ;;  %v5179_v42 = vsel %vm13486_vm15, %v13485_v4, %v13484_v21  ;;  %v8751_v20 = vpack.i.bf16 %v8721_v6, %v8715_v12 }
 0x120   : > { %13488 = vst [vmem:[#allocation82_spill] sm:$0xff] %v8755_v25  ;;  %v13489_v21 = vrot.slane %v8095_v26, 7  ;;  %vm13491_vm15 = vcmp.lt.s32.totalorder %v7944_v3, 1  ;;  %v13494_v13 = vsel %vm8765_vm13, 4294967295, %v13493_v13  ;;  %v8769_v48 = vmax.f32 %v1174_v28, 0.0 }
 0x121   : > { %6699 = vrot.lane.b32.xlu0 %v8652_v27, %s13184_s14  ;;  %6734 = vrot.lane.b32.xlu1 %v8699_v8, %s7814_s12  ;;  %v6455_v0 = vpop.f32.mrf.mxu0  ;;  %13487 = vst [vmem:[#allocation81_spill] sm:$0xff] %v8751_v20  ;;  %v8763_v52 = vmax.f32 %v1137_v23, 0.0  ;;  %13495 = vst [vmem:[#allocation84_spill] sm:$0xff] %v13494_v13  ;;  %v5203_v10 = vsel %vm8765_vm13, -inf, %v5179_v42  ;;  %v1153_v23 = vadd.f32 %v8440_v32, %v1152_v34  ;;  %v464_v28 = vadd.s32 104, %v7944_v3 }
 0x122   : > { %v1177_v58 = vadd.f32 %v6455_v0, %v8440_v32  ;;  %v5084_v4 = vsel %vm13491_vm15, %v13490_v15, %v13489_v21  ;;  %13496 = vst [vmem:[#allocation85_spill] sm:$0xff] %v8769_v48  ;;  %v1150_v0 = vadd.f32 %v8440_v32, %v8621_v24  ;;  %v13501_v24 = vrot.slane %v8152_v43, 1 }
 0x123   : > { %13492 = vst [vmem:[#allocation83_spill] sm:$0xff] %v8763_v52  ;;  %v8779_v47 = vmax.f32 %v5084_v4, %v5203_v10  ;;  %v8790_v51 = vpack.i.bf16 %v8763_v52, %v8665_v63  ;;  %v13502_v34 = vrot.slane %v8128_v57, 1  ;;  %vm13503_vm15 = vcmp.lt.s32.totalorder %v7944_v3, 7 }
 0x124   : > { %v8775_v5 = vmax.f32 %v1177_v58, 0.0  ;;  %v578_v41 = vand.u32 15, %v464_v28  ;;  %v8803_v21 = vmax.f32 %v1150_v0, 0.0  ;;  %v8805_v15 = vmax.f32 %v1153_v23, 0.0 }
 0x125   : > { %6714 = vrot.lane.b32.xlu0 %v8713_v46, %s7814_s12  ;;  %6739 = vrot.lane.b32.xlu1 %v8699_v8, %s7813_s30  ;;  %13498 = vst [vmem:[#allocation87_spill] sm:$0xff] %v8779_v47  ;;  %13499 = vst [vmem:[#allocation88_spill] sm:$0xff] %v8790_v51  ;;  %v5177_v58 = vsel %vm13503_vm15, %v13502_v34, %v13501_v24  ;;  %v13506_v4 = vrot.slane %v8128_v57, 7  ;;  %v13507_v10 = vrot.slane %v8126_v55, 7  ;;  %v13509_v24 = vmov 0 }
 0x126   : > { %13497 = vst [vmem:[#allocation86_spill] sm:$0xff] %v8775_v5  ;;  %v8794_v42 = vpack.i.bf16 %v8775_v5, %v8769_v48  ;;  %13504 = vst [vmem:[#allocation90_spill] sm:$0xff] %v8803_v21  ;;  %vm8817_vm11 = vcmp.eq.s32.totalorder %v578_v41, 15  ;;  %v466_v23 = vadd.s32 120, %v7944_v3  ;;  %v13512_v28 = vrot.slane %v8184_v36, 1 }
 0x127   : > { %13505 = vst [vmem:[#allocation91_spill] sm:$0xff] %v8805_v15  ;;  %v5082_v63 = vsel %vm13508_vm12, %v13507_v10, %v13506_v4  ;;  %v13510_v24 = vsel %vm8817_vm11, 4294967295, %v13509_v24  ;;  %v5205_v0 = vsel %vm8817_vm11, -inf, %v5177_v58  ;;  %v13513_v34 = vrot.slane %v8165_v54, 1  ;;  %v1168_v4 = vpop.f32.mrf.mxu0 }
 0x128   : > { %13500 = vst [vmem:[#allocation89_spill] sm:$0xff] %v8794_v42  ;;  %13511 = vst [vmem:[#allocation92_spill] sm:$0xff] %v13510_v24  ;;  %v5237_v55 = vmax.f32 %v5082_v63, %v5205_v0  ;;  %v8834_v41 = vpack.i.bf16 %v8805_v15, %v8803_v21  ;;  %v592_v58 = vand.u32 15, %v466_v23  ;;  %v13516_v26 = vrot.slane %v8165_v54, 7 }
 0x129   : > { %6719 = vrot.lane.b32.xlu0 %v8713_v46, %s7813_s30  ;;  %6754 = vrot.lane.b32.xlu1 %v8751_v20, %s7814_s12  ;;  %v5175_v47 = vsel %vm13503_vm15, %v13513_v34, %v13512_v28  ;;  %v13517_v28 = vrot.slane %v8152_v43, 7  ;;  %v468_v0 = vadd.s32 136, %v7944_v3  ;;  %v13518_v34 = vrot.slane %v8222_v31, 1 }
 0x12a   : > { %13514 = vst [vmem:[#allocation93_spill] sm:$0xff] %v8834_v41  ;;  %v8839_v10 = vmax.f32 %v5237_v55, %v8128_v57  ;;  %v13519_v25 = vrot.slane %v8186_v61, 1  ;;  %v1166_v45 = vadd.f32 %v8440_v32, %v1165_v14  ;;  %vm8855_vm10 = vcmp.eq.s32.totalorder %v592_v58, 15 }
 0x12b   : > { %v5080_v63 = vsel %vm13508_vm12, %v13517_v28, %v13516_v26  ;;  %v13520_v57 = vmov 0  ;;  %v5207_v43 = vsel %vm8855_vm10, -inf, %v5175_v47  ;;  %v606_v55 = vand.u32 15, %v468_v0 }
 0x12c   : > { %13515 = vst [vmem:[#allocation94_spill] sm:$0xff] %v8839_v10  ;;  %v5173_v23 = vsel %vm13503_vm15, %v13519_v25, %v13518_v34  ;;  %v13521_v57 = vsel %vm8855_vm10, 4294967295, %v13520_v57  ;;  %v470_v26 = vadd.s32 152, %v7944_v3  ;;  %v1169_v28 = vadd.f32 %v8440_v32, %v1168_v4 }
 0x12d   : > { %6724 = vrot.lane.b32.xlu0 %v8713_v46, %s13184_s14  ;;  %6759 = vrot.lane.b32.xlu1 %v8751_v20, %s7813_s30  ;;  %13522 = vst [vmem:[#allocation95_spill] sm:$0xff] %v13521_v57  ;;  %v8865_v54 = vmax.f32 %v5080_v63, %v5207_v43  ;;  %v13524_v25 = vrot.slane %v8186_v61, 7  ;;  %v13525_v14 = vrot.slane %v8184_v36, 7  ;;  %v13526_v34 = vrot.slane %v8254_v56, 1 }
 0x12e   : > { %v13527_v47 = vrot.slane %v8224_v40, 1  ;;  %vm8879_vm9 = vcmp.eq.s32.totalorder %v606_v55, 15  ;;  %v13528_v10 = vmov 0  ;;  %v620_v32 = vand.u32 15, %v470_v26 }
 0x12f   : > { %13523 = vst [vmem:[#allocation96_spill] sm:$0xff] %v8865_v54  ;;  %v5078_v58 = vsel %vm13508_vm12, %v13525_v14, %v13524_v25  ;;  %v13529_v10 = vsel %vm8879_vm9, 4294967295, %v13528_v10  ;;  %v472_v4 = vadd.s32 168, %v7944_v3  ;;  %v5209_v36 = vsel %vm8879_vm9, -inf, %v5173_v23 }
 0x130   : > { %v5171_v0 = vsel %vm13503_vm15, %v13527_v47, %v13526_v34  ;;  %13530 = vst [vmem:[#allocation97_spill] sm:$0xff] %v13529_v10  ;;  %v13531_v63 = vrot.slane %v8224_v40, 7  ;;  %v13532_v43 = vrot.slane %v8222_v31, 7  ;;  %v13533_v14 = vrot.slane %v8279_v60, 1 }
 0x131   : > { %6744 = vrot.lane.b32.xlu0 %v8790_v51, %s7814_s12  ;;  %6774 = vrot.lane.b32.xlu1 %v8794_v42, %s7814_s12  ;;  %v13534_v55 = vrot.slane %v8256_v35, 1  ;;  %v8898_v26 = vmax.f32 %v1166_v45, 0.0  ;;  %v5241_v47 = vmax.f32 %v5078_v58, %v5209_v36  ;;  %vm8900_vm8 = vcmp.eq.s32.totalorder %v620_v32, 15 }
 0x132   : > { %v5076_v25 = vsel %vm13508_vm12, %v13532_v43, %v13531_v63  ;;  %v13536_v54 = vmov 0  ;;  %v634_v23 = vand.u32 15, %v472_v4  ;;  %v8906_v31 = vmax.f32 %v1169_v28, 0.0 }
 0x133   : > { %v5169_v34 = vsel %vm13503_vm15, %v13534_v55, %v13533_v14  ;;  %13535 = vst [vmem:[#allocation98_spill] sm:$0xff] %v8898_v26  ;;  %v13537_v54 = vsel %vm8900_vm8, 4294967295, %v13536_v54  ;;  %v6783_v63 = vpack.i.bf16 %v8775_v5, %v8595_v9  ;;  %v5211_v43 = vsel %vm8900_vm8, -inf, %v5171_v0 }
 0x134   : > { %13538 = vst [vmem:[#allocation99_spill] sm:$0xff] %v13537_v54  ;;  %13539 = vst [vmem:[#allocation100_spill] sm:$0xff] %v8906_v31  ;;  %v13540_v45 = vrot.slane %v8256_v35, 7  ;;  %v13541_v58 = vrot.slane %v8254_v56, 7  ;;  %v8919_v4 = vmax.f32 %v5241_v47, %v8186_v61  ;;  %v8921_v36 = vmax.f32 %v5076_v25, %v5211_v43 }
 0x135   : > { %6749 = vrot.lane.b32.xlu0 %v8790_v51, %s7813_s30  ;;  %6779 = vrot.lane.b32.xlu1 %v8794_v42, %s7813_s30  ;;  %vm8923_vm15 = vcmp.eq.s32.totalorder %v634_v23, 15  ;;  %v13544_v28 = vmov 0  ;;  %v474_v14 = vadd.s32 184, %v7944_v3  ;;  %v13547_v55 = vrot.slane %v8312_v18, 1 }
 0x136   : > { %v5074_v32 = vsel %vm13508_vm12, %v13541_v58, %v13540_v45  ;;  %13542 = vst [vmem:[#allocation101_spill] sm:$0xff] %v8919_v4  ;;  %13543 = vst [vmem:[#allocation102_spill] sm:$0xff] %v8921_v36  ;;  %v13545_v28 = vsel %vm8923_vm15, 4294967295, %v13544_v28  ;;  %v5213_v0 = vsel %vm8923_vm15, -inf, %v5169_v34  ;;  %v13548_v56 = vrot.slane %v8292_v22, 1 }
 0x137   : > { %13546 = vst [vmem:[#allocation103_spill] sm:$0xff] %v13545_v28  ;;  %vm13549_vm12 = vcmp.lt.s32.totalorder %v7944_v3, 7  ;;  %v5245_v61 = vmax.f32 %v5074_v32, %v5213_v0  ;;  %v648_v47 = vand.u32 15, %v474_v14  ;;  %v8939_v25 = vpack.i.bf16 %v8906_v31, %v8898_v26 }
 0x138   : > { %v5167_v45 = vsel %vm13549_vm12, %v13548_v56, %v13547_v55  ;;  %v13551_v23 = vrot.slane %v8292_v22, 7  ;;  %v13552_v43 = vrot.slane %v8279_v60, 7  ;;  %v13555_v55 = vmov 0 }
 0x139   : > { %6764 = vrot.lane.b32.xlu0 %v8834_v41, %s7814_s12  ;;  %13550 = vst [vmem:[#allocation104_spill] sm:$0xff] %v8939_v25  ;;  %v8948_v58 = vmax.f32 %v5245_v61, %v8256_v35  ;;  %vm8950_vm6 = vcmp.eq.s32.totalorder %v648_v47, 15  ;;  %v8956_v32 = vunpack.c.l.bf16 %v8429_v53  ;;  %v13559_v60 = vrot.slane %v8348_v33, 1 }
 0x13a   : > { %v5072_v34 = vsel %vm13553_vm7, %v13552_v43, %v13551_v23  ;;  %v13556_v55 = vsel %vm8950_vm6, 4294967295, %v13555_v55  ;;  %v5215_v14 = vsel %vm8950_vm6, -inf, %v5167_v45  ;;  %v13560_v0 = vrot.slane %v8314_v38, 1  ;;  %vm13561_vm7 = vmmov %vm13549_vm12 }
 0x13b   : > { %13554 = vst [vmem:[#allocation105_spill] sm:$0xff] %v8948_v58  ;;  %13557 = vst [vmem:[#allocation106_spill] sm:$0xff] %v13556_v55  ;;  %v8966_v56 = vmax.f32 %v5072_v34, %v5215_v14  ;;  %v13563_v47 = vrot.slane %v8314_v38, 7  ;;  %v13564_v53 = vrot.slane %v8312_v18, 7  ;;  %vm13565_vm12 = vcmp.lt.s32.totalorder %v7944_v3, 1 }
 0x13c   : > { %13558 = vst [vmem:[#allocation107_spill] sm:$0xff] %v8956_v32  ;;  %v5165_v35 = vsel %vm13561_vm7, %v13560_v0, %v13559_v60  ;;  %v13566_v23 = vmov 0  ;;  %v478_v43 = vadd.s32 216, %v7944_v3  ;;  %v13569_v34 = vrot.slane %v8382_v16, 1 }
 0x13d   : > { %6769 = vrot.lane.b32.xlu0 %v8834_v41, %s7813_s30  ;;  %13562 = vst [vmem:[#allocation108_spill] sm:$0xff] %v8966_v56  ;;  %v5070_v45 = vsel %vm13565_vm12, %v13564_v53, %v13563_v47  ;;  %v13098_v60 = vrot.slane %v8956_v32, 1  ;;  %v13571_v53 = vrot.slane %v8350_v19, 7  ;;  %v13572_v5 = vrot.slane %v8348_v33, 7 }
 0x13e   : > { %v676_v47 = vand.u32 15, %v478_v43  ;;  %v13577_v43 = vrot.slane %v8384_v1, 1 }
 0x13f   : > { %v5068_v9 = vsel %vm13565_vm12, %v13572_v5, %v13571_v53 }
 0x140   : > { %v5161_v33 = vsel %vm13578_vm3, %v13577_v43, %v13098_v60  ;;  %vm13587_vm3 = vmmov %vm13565_vm12 }
 0x141   : > { %6784 = vrot.lane.b32.xlu0 %v6783_v63, %s13184_s14  ;;  %v476_v63 = vadd.s32 200, %v7944_v3 }
 0x143   : > { %v662_v61 = vand.u32 15, %v476_v63  ;;  %v13570_v63 = vrot.slane %v8350_v19, 1 }
 0x145   : > { %6789 = vrot.lane.b32.xlu0 %v8939_v25, %s7814_s12  ;;  %vm8976_vm5 = vcmp.eq.s32.totalorder %v662_v61, 15  ;;  %v5163_v14 = vsel %vm13561_vm7, %v13570_v63, %v13569_v34  ;;  %v13099_v61 = vrot.slane %v8384_v1, 7  ;;  %vm9002_vm7 = vcmp.eq.s32.totalorder %v676_v47, 15 }
 0x146   : > { %v13567_v23 = vsel %vm8976_vm5, 4294967295, %v13566_v23  ;;  %v5217_v18 = vsel %vm8976_vm5, -inf, %v5165_v35  ;;  %v13574_v63 = vmov 0  ;;  %v480_v35 = vadd.s32 232, %v7944_v3 }
 0x147   : > { %13568 = vst [vmem:[#allocation109_spill] sm:$0xff] %v13567_v23  ;;  %v5249_v0 = vmax.f32 %v5070_v45, %v5217_v18  ;;  %v13575_v63 = vsel %vm9002_vm7, 4294967295, %v13574_v63  ;;  %v5219_v45 = vsel %vm9002_vm7, -inf, %v5163_v14  ;;  %v13580_v18 = vrot.slane %v8382_v16, 7 }
 0x148   : > { %13576 = vst [vmem:[#allocation111_spill] sm:$0xff] %v13575_v63  ;;  %v9015_v5 = vmax.f32 %v5068_v9, %v5219_v45  ;;  %v13581_v47 = vmov 0 }
 0x149   : > { %6794 = vrot.lane.b32.xlu0 %v8939_v25, %s7813_s30  ;;  %v9000_v34 = vmax.f32 %v5249_v0, %v8314_v38  ;;  %v690_v38 = vand.u32 15, %v480_v35  ;;  %v5066_v0 = vsel %vm13565_vm12, %v13580_v18, %v13099_v61  ;;  %vm13593_vm12 = vmmov %vm13587_vm3  ;;  %s13786_s30 = smov 32  }
 0x14a   : > { %13579 = vst [vmem:[#allocation112_spill] sm:$0xff] %v9015_v5 }
 0x14b   : > { %13573 = vst [vmem:[#allocation110_spill] sm:$0xff] %v9000_v34  ;;  %vm9023_vm5 = vcmp.eq.s32.totalorder %v690_v38, 15 }
 0x14c   : > { %v13582_v47 = vsel %vm9023_vm5, 4294967295, %v13581_v47  ;;  %v5221_v14 = vsel %vm9023_vm5, -inf, %v5161_v33  ;;  %vm13596_vm5 = vcmp.lt.s32.totalorder %v7944_v3, 7 }
 0x14d   : > { %13583 = vst [vmem:[#allocation113_spill] sm:$0xff] %v13582_v47  ;;  %v5253_v53 = vmax.f32 %v5066_v0, %v5221_v14  ;;  %vm13597_vm7 = vmmov %vm13596_vm5 }
 0x14f   : > { %v9030_v43 = vmax.f32 %v5253_v53, %v8384_v1 }
 0x151   : > { %13584 = vst [vmem:[#allocation114_spill] sm:$0xff] %v9030_v43 }
 0x15b   : > { %v9032_v9 = vpop.permute.xlu1 %6579  ;;  %v9034_v35 = vpop.permute.xlu0 %6574 }
 0x15c   : > { %13585 = vst [vmem:[#allocation115_spill] sm:$0xff] %v9032_v9  ;;  %v13103_v16 = vunpack.i.h.bf16 %v9034_v35  ;;  %v6576_v45 = vunpack.i.l.bf16 %v9034_v35 }
 0x15e   : > { %v9040_v38 = vrot.slane %v13103_v16, 7  ;;  %v1342_v18 = vrot.slane %v6576_v45, 7  ;;  %v9057_v32 = vrot.slane %v6576_v45, 1 }
 0x15f   : > { %v9042_v60 = vpop.permute.xlu0 %6589  ;;  %v9044_v33 = vpop.permute.xlu1 %6584 }
 0x160   : > { %13586 = vst [vmem:[#allocation116_spill] sm:$0xff] %v9042_v60  ;;  %v9049_v0 = vsel %vm13587_vm3, %v1342_v18, %v9040_v38 }
 0x161   : > { %13588 = vst [vmem:[#allocation117_spill] sm:$0xff] %v9049_v0 }
 0x163   : > { %v6595_v14 = vpop.permute.xlu0 %6594  ;;  %v9051_v53 = vpop.permute.xlu1 %6609 }
 0x164   : > { %13589 = vst [vmem:[#allocation118_spill] sm:$0xff] %v9051_v53  ;;  %v6597_v61 = vunpack.i.h.bf16 %v6595_v14  ;;  %v6596_v1 = vunpack.i.l.bf16 %v6595_v14 }
 0x166   : > { %v1341_v43 = vrot.slane %v6597_v61, 7  ;;  %v1502_v5 = vrot.slane %v6597_v61, 1  ;;  %v9053_v19 = vrot.slane %v6596_v1, 7  ;;  %v9055_v16 = vrot.slane %v6596_v1, 1 }
 0x167   : > { %v9059_v34 = vpop.permute.xlu0 %6599  ;;  %v9061_v56 = vpop.permute.xlu1 %6614 }
 0x168   : > { %13590 = vst [vmem:[#allocation119_spill] sm:$0xff] %v9053_v19  ;;  %13591 = vst [vmem:[#allocation120_spill] sm:$0xff] %v9055_v16  ;;  %v9065_v22 = vsel %vm13593_vm12, %v1341_v43, %v1342_v18  ;;  %v9070_v14 = vsel %vm13587_vm3, %v9053_v19, %v1341_v43  ;;  %v13116_v1 = vunpack.i.h.bf16 %v9061_v56  ;;  %v13119_v45 = vunpack.i.l.bf16 %v9061_v56 }
 0x169   : > { %13592 = vst [vmem:[#allocation121_spill] sm:$0xff] %v9059_v34  ;;  %13594 = vst [vmem:[#allocation122_spill] sm:$0xff] %v9065_v22  ;;  %v1563_v58 = vsel %vm13596_vm5, %v1502_v5, %v9057_v32  ;;  %v1564_v18 = vsel %vm13597_vm7, %v9055_v16, %v1502_v5  ;;  %v6586_v19 = vunpack.i.l.bf16 %v9044_v33  ;;  %v13599_v22 = vunpack.i.h.bf16 %v9044_v33 }
 0x16a   : > { %13595 = vst [vmem:[#allocation123_spill] sm:$0xff] %v9070_v14  ;;  %v1631_v36 = vsel %vm7990_vm4, 0.0, %v1563_v58  ;;  %v9085_v43 = vrot.slane %v13116_v1, 7  ;;  %v1346_v61 = vrot.slane %v13119_v45, 7  ;;  %vm13600_vm5 = vmmov %vm13587_vm3 }
 0x16b   : > { %v6605_v40 = vpop.permute.xlu0 %6604  ;;  %v9089_v4 = vpop.permute.xlu1 %6619  ;;  %v2732_v5 = vrot.slane %v13599_v22, 7  ;;  %v6798_v1 = vpack.i.bf16 %v1631_v36, %v1564_v18  ;;  %v9106_v42 = vrot.slane %v6586_v19, 7  ;;  %v9108_v22 = vrot.slane %v6586_v19, 1  ;;  %vm13604_vm7 = vmmov %vm13587_vm3 }
 0x16c   : > { %13598 = vst [vmem:[#allocation124_spill] sm:$0xff] %v9089_v4  ;;  %v6607_v0 = vunpack.i.h.bf16 %v6605_v40  ;;  %v6606_v14 = vunpack.i.l.bf16 %v6605_v40  ;;  %v9097_v58 = vsel %vm13600_vm5, %v1346_v61, %v9085_v43  ;;  %vm13606_vm12 = vmmov %vm13587_vm3  ;;  %vm13608_vm3 = vcmp.lt.s32.totalorder %v7944_v3, 7 }
 0x16d   : > { %13601 = vst [vmem:[#allocation125_spill] sm:$0xff] %v9097_v58  ;;  %6799 = vrot.lane.b32.xlu0 %v6798_v1, %s7817_s15  ;;  %13603 = vst [vmem:[#allocation127_spill] sm:$0xff] %v9108_v22 }
 0x16e   : > { %v2731_v16 = vrot.slane %v6607_v0, 7  ;;  %v9099_v9 = vrot.slane %v6607_v0, 1  ;;  %v2730_v45 = vrot.slane %v6606_v14, 7  ;;  %v2826_v34 = vrot.slane %v6606_v14, 1  ;;  %vm13609_vm5 = vmmov %vm13608_vm3 }
 0x16f   : > { %v9102_v4 = vpop.permute.xlu0 %6634  ;;  %v9104_v40 = vpop.permute.xlu1 %6624 }
 0x170   : > { %13602 = vst [vmem:[#allocation126_spill] sm:$0xff] %v9102_v4  ;;  %v9112_v58 = vsel %vm13604_vm7, %v2731_v16, %v2732_v5  ;;  %v9116_v36 = vsel %vm13606_vm12, %v2730_v45, %v2731_v16  ;;  %v13130_v0 = vunpack.i.h.bf16 %v9104_v40  ;;  %v13132_v14 = vunpack.i.l.bf16 %v9104_v40  ;;  %vm13611_vm12 = vmmov %vm13604_vm7 }
 0x171   : > { %13605 = vst [vmem:[#allocation128_spill] sm:$0xff] %v9112_v58  ;;  %13607 = vst [vmem:[#allocation129_spill] sm:$0xff] %v9116_v36  ;;  %v2886_v1 = vsel %vm13608_vm3, %v2826_v34, %v9099_v9  ;;  %v2887_v19 = vsel %vm13609_vm5, %v9108_v22, %v2826_v34  ;;  %v9131_v16 = vsel %vm13604_vm7, %v9106_v42, %v2730_v45 }
 0x172   : > { %v2890_v18 = vsel %vm7990_vm4, 0.0, %v2886_v1  ;;  %13610 = vst [vmem:[#allocation130_spill] sm:$0xff] %v9131_v16  ;;  %v9135_v4 = vrot.slane %v13130_v0, 7  ;;  %v2735_v25 = vrot.slane %v13132_v14, 7  ;;  %vm13613_vm3 = vmmov %vm13604_vm7 }
 0x173   : > { %v9139_v20 = vpop.permute.xlu0 %6639  ;;  %v6630_v41 = vpop.permute.xlu1 %6629  ;;  %v6803_v8 = vpack.i.bf16 %v2890_v18, %v2887_v19  ;;  %vm13615_vm5 = vmmov %vm13613_vm3 }
 0x174   : > { %v13134_v34 = vunpack.i.h.bf16 %v9139_v20  ;;  %v6641_v29 = vunpack.i.l.bf16 %v9139_v20  ;;  %v6632_v1 = vunpack.i.h.bf16 %v6630_v41  ;;  %v6631_v22 = vunpack.i.l.bf16 %v6630_v41  ;;  %vm13617_vm7 = vmmov %vm13613_vm3 }
 0x175   : > { %v9146_v45 = vsel %vm13611_vm12, %v2735_v25, %v9135_v4  ;;  %6804 = vrot.lane.b32.xlu1 %v6803_v8, %s13186_s16  ;;  %vm13619_vm12 = vmmov %vm13613_vm3 }
 0x176   : > { %13612 = vst [vmem:[#allocation131_spill] sm:$0xff] %v9146_v45  ;;  %v2734_v0 = vrot.slane %v13134_v34, 7  ;;  %v2733_v51 = vrot.slane %v6641_v29, 7  ;;  %v1345_v14 = vrot.slane %v6632_v1, 7  ;;  %v1344_v58 = vrot.slane %v6631_v22, 7  ;;  %vm13621_vm4 = vmmov %vm13613_vm3 }
 0x177   : > { %v9151_v60 = vpop.permute.xlu0 %6654  ;;  %v9153_v36 = vpop.permute.xlu1 %6644  ;;  %v1506_v53 = vrot.slane %v6632_v1, 1 }
 0x178   : > { %v9157_v41 = vsel %vm13613_vm3, %v2734_v0, %v2735_v25  ;;  %v9161_v19 = vsel %vm13615_vm5, %v2733_v51, %v2734_v0  ;;  %v9165_v18 = vsel %vm13617_vm7, %v2732_v5, %v2733_v51  ;;  %v13137_v34 = vunpack.i.h.bf16 %v9151_v60  ;;  %vm13630_vm5 = vmmov %vm13613_vm3 }
 0x179   : > { %13614 = vst [vmem:[#allocation132_spill] sm:$0xff] %v9157_v41  ;;  %13616 = vst [vmem:[#allocation133_spill] sm:$0xff] %v9161_v19  ;;  %v9170_v8 = vsel %vm13619_vm12, %v1345_v14, %v1346_v61  ;;  %v9174_v45 = vsel %vm13621_vm4, %v1344_v58, %v1345_v14  ;;  %v9179_v25 = vsel %vm13613_vm3, %v9040_v38, %v1344_v58  ;;  %v13138_v0 = vunpack.i.l.bf16 %v9151_v60 }
 0x17a   : > { %13618 = vst [vmem:[#allocation134_spill] sm:$0xff] %v9165_v18  ;;  %13620 = vst [vmem:[#allocation135_spill] sm:$0xff] %v9170_v8  ;;  %v9182_v41 = vrot.slane %v6641_v29, 1  ;;  %v9186_v51 = vrot.slane %v13137_v34, 7  ;;  %v9188_v5 = vrot.slane %v6631_v22, 1  ;;  %v13140_v14 = vunpack.i.h.bf16 %v9153_v36 }
 0x17b   : > { %13622 = vst [vmem:[#allocation136_spill] sm:$0xff] %v9174_v45  ;;  %13623 = vst [vmem:[#allocation137_spill] sm:$0xff] %v9179_v25  ;;  %v2739_v61 = vrot.slane %v13138_v0, 7  ;;  %v9194_v8 = vpop.permute.xlu0 %6659  ;;  %v9196_v38 = vpop.permute.xlu1 %6649  ;;  %v13625_v29 = vunpack.i.h.bf16 %v9034_v35  ;;  %v13626_v22 = vunpack.i.h.bf16 %v9044_v33  ;;  %vm13632_vm7 = vcmp.lt.s32.totalorder %v7944_v3, 7 }
 0x17c   : > { %13624 = vst [vmem:[#allocation138_spill] sm:$0xff] %v9196_v38  ;;  %v13141_v25 = vunpack.i.h.bf16 %v9194_v8  ;;  %v6661_v34 = vunpack.i.l.bf16 %v9194_v8  ;;  %vm13627_vm4 = vmmov %vm13613_vm3  ;;  %v9211_v45 = vrot.slane %v13140_v14, 7  ;;  %v13629_v38 = vunpack.i.l.bf16 %v9153_v36 }
 0x17d   : > { %v1504_v58 = vrot.slane %v13625_v29, 1  ;;  %v2828_v19 = vrot.slane %v13626_v22, 1  ;;  %v9207_v0 = vsel %vm13627_vm4, %v2739_v61, %v9186_v51  ;;  %vm13633_vm12 = vmmov %vm13632_vm7 }
 0x17e   : > { %13628 = vst [vmem:[#allocation139_spill] sm:$0xff] %v9207_v0  ;;  %v1350_v35 = vrot.slane %v13629_v38, 7  ;;  %v1349_v29 = vrot.slane %v13141_v25, 7  ;;  %v1348_v18 = vrot.slane %v6661_v34, 7  ;;  %vm13636_vm4 = vmmov %vm13613_vm3 }
 0x17f   : > { %v2884_v22 = vsel %vm13632_vm7, %v2828_v19, %v9182_v41  ;;  %v1561_v14 = vsel %vm13633_vm12, %v1504_v58, %v9188_v5  ;;  %v9228_v0 = vpop.permute.xlu0 %6664  ;;  %v9230_v38 = vpop.permute.xlu1 %6674  ;;  %v2885_v16 = vsel %vm13632_vm7, %v9099_v9, %v2828_v19  ;;  %vm13640_vm12 = vmmov %vm13632_vm7 }
 0x180   : > { %v9220_v33 = vsel %vm13630_vm5, %v1350_v35, %v9211_v45  ;;  %13634 = vst [vmem:[#allocation141_spill] sm:$0xff] %v9228_v0  ;;  %v9234_v25 = vsel %vm13613_vm3, %v1349_v29, %v1350_v35  ;;  %v9238_v39 = vsel %vm13636_vm4, %v1348_v18, %v1349_v29  ;;  %vm13638_vm5 = vmmov %vm13613_vm3  ;;  %v2892_v0 = vsel %vm8542_vm2, 0.0, %v2884_v22 }
 0x181   : > { %13631 = vst [vmem:[#allocation140_spill] sm:$0xff] %v9220_v33  ;;  %13635 = vst [vmem:[#allocation142_spill] sm:$0xff] %v9234_v25  ;;  %v9243_v33 = vsel %vm13638_vm5, %v9085_v43, %v1348_v18  ;;  %v1562_v35 = vsel %vm13640_vm12, %v9057_v32, %v1504_v58  ;;  %v1633_v29 = vsel %vm8542_vm2, 0.0, %v1561_v14  ;;  %v13145_v43 = vunpack.i.h.bf16 %v9230_v38 }
 0x182   : > { %13637 = vst [vmem:[#allocation143_spill] sm:$0xff] %v9238_v39  ;;  %13639 = vst [vmem:[#allocation144_spill] sm:$0xff] %v9243_v33  ;;  %v6813_v39 = vpack.i.bf16 %v2892_v0, %v2885_v16  ;;  %v6808_v25 = vpack.i.bf16 %v1633_v29, %v1562_v35  ;;  %v13147_v18 = vunpack.i.l.bf16 %v9230_v38  ;;  %v13642_v16 = vunpack.i.l.bf16 %v9061_v56 }
 0x183   : > { %v9257_v33 = vpop.permute.xlu0 %6669  ;;  %v9259_v9 = vpop.permute.xlu1 %6679  ;;  %v9269_v1 = vrot.slane %v13145_v43, 7  ;;  %v13643_v58 = vunpack.i.h.bf16 %v9139_v20  ;;  %v13644_v35 = vunpack.i.l.bf16 %v9104_v40  ;;  %vm13646_vm4 = vmmov %vm13632_vm7  ;;  %vm13883_vm2 = vcmask 261120  }
 0x184   : > { %13641 = vst [vmem:[#allocation145_spill] sm:$0xff] %v9259_v9  ;;  %6814 = vrot.lane.b32.xlu0 %v6813_v39, %s13186_s16  ;;  %6809 = vrot.lane.b32.xlu1 %v6808_v25, %s7817_s15  ;;  %v13148_v32 = vunpack.i.h.bf16 %v9257_v33  ;;  %v6671_v19 = vunpack.i.l.bf16 %v9257_v33  ;;  %v1507_v0 = vrot.slane %v13642_v16, 1  ;;  %v1354_v14 = vrot.slane %v13147_v18, 7  ;;  %vm13647_vm5 = vmmov %vm13613_vm3 }
 0x185   : > { %v2830_v22 = vrot.slane %v13643_v58, 1  ;;  %v2831_v29 = vrot.slane %v13644_v35, 1  ;;  %vm13649_vm7 = vmmov %vm13613_vm3 }
 0x186   : > { %v2738_v39 = vrot.slane %v13148_v32, 7  ;;  %v2737_v25 = vrot.slane %v6671_v19, 7  ;;  %v9282_v16 = vsel %vm13613_vm3, %v1354_v14, %v9269_v1  ;;  %v1559_v20 = vsel %vm13646_vm4, %v1506_v53, %v1507_v0  ;;  %vm13650_vm12 = vmmov %vm13613_vm3 }
 0x187   : > { %13645 = vst [vmem:[#allocation146_spill] sm:$0xff] %v9282_v16  ;;  %v9284_v43 = vpop.permute.xlu0 %6684  ;;  %v9286_v2 = vpop.permute.xlu1 %6704  ;;  %vm13652_vm3 = vmmov %vm13646_vm4 }
 0x188   : > { %6819 = vrot.lane.b32.xlu0 %v8507_v30, %s7815_s13  ;;  %6829 = vrot.lane.b32.xlu1 %v8481_v62, %s7815_s13  ;;  %v9296_v58 = vsel %vm13647_vm5, %v2738_v39, %v2739_v61  ;;  %v9300_v35 = vsel %vm13649_vm7, %v2737_v25, %v2738_v39  ;;  %v9305_v18 = vsel %vm13650_vm12, %v9135_v4, %v2737_v25  ;;  %v13152_v32 = vunpack.i.h.bf16 %v9284_v43  ;;  %vm13653_vm4 = vmmov %vm13652_vm3 }
 0x189   : > { %13648 = vst [vmem:[#allocation147_spill] sm:$0xff] %v9296_v58  ;;  %v6823_v30 = vpack.i.bf16 %v8681_v11, %v8763_v52  ;;  %v6833_v62 = vpack.i.bf16 %v8803_v21, %v8687_v49  ;;  %v13156_v61 = vunpack.i.l.bf16 %v9284_v43  ;;  %v13155_v16 = vunpack.i.h.bf16 %v9286_v2  ;;  %vm13656_vm5 = vmmov %vm13652_vm3 }
 0x18a   : > { %v13651_v39 = vunpack.i.h.bf16 %v9104_v40  ;;  %v9318_v58 = vrot.slane %v13152_v32, 7  ;;  %v2882_v25 = vsel %vm13652_vm3, %v2830_v22, %v2831_v29  ;;  %v1560_v40 = vsel %vm13653_vm4, %v9188_v5, %v1506_v53  ;;  %vm13659_vm12 = vmmov %vm13649_vm7 }
 0x18b   : > { %v2743_v11 = vrot.slane %v13156_v61, 7  ;;  %v9327_v21 = vrot.slane %v13155_v16, 7  ;;  %v9334_v32 = vpop.permute.xlu0 %6689  ;;  %v9336_v4 = vpop.permute.xlu1 %6709  ;;  %v9338_v49 = vrot.slane %v6661_v34, 1  ;;  %v9340_v52 = vrot.slane %v6671_v19, 1  ;;  %vm13662_vm4 = vmmov %vm13652_vm3 }
 0x18c   : > { %v2832_v9 = vrot.slane %v13651_v39, 1  ;;  %v1635_v39 = vsel %vm8609_vm14, 0.0, %v1559_v20  ;;  %13654 = vst [vmem:[#allocation148_spill] sm:$0xff] %v9336_v4  ;;  %6824 = vrot.lane.b32.xlu0 %v6823_v30, %s13184_s14  ;;  %6834 = vrot.lane.b32.xlu1 %v6833_v62, %s13184_s14  ;;  %v13655_v16 = vunpack.i.l.bf16 %v9286_v2  ;;  %v2883_v53 = vsel %vm13656_vm5, %v9182_v41, %v2830_v22  ;;  %vm13663_vm5 = vmmov %vm13652_vm3 }
 0x18d   : > { %v9354_v5 = vsel %vm13649_vm7, %v2743_v11, %v9318_v58  ;;  %v2894_v34 = vsel %vm8609_vm14, 0.0, %v2882_v25  ;;  %v13160_v19 = vunpack.i.h.bf16 %v9334_v32  ;;  %v13161_v20 = vunpack.i.l.bf16 %v9334_v32  ;;  %vm13667_vm14 = vmmov %vm13649_vm7 }
 0x18e   : > { %v9346_v61 = vrot.slane %v13655_v16, 7  ;;  %13657 = vst [vmem:[#allocation149_spill] sm:$0xff] %v9354_v5  ;;  %v13658_v30 = vunpack.i.h.bf16 %v9061_v56  ;;  %v6838_v22 = vpack.i.bf16 %v1635_v39, %v1560_v40  ;;  %v6843_v62 = vpack.i.bf16 %v2894_v34, %v2883_v53 }
 0x18f   : > { %v1353_v4 = vrot.slane %v13160_v19, 7  ;;  %v1352_v25 = vrot.slane %v13161_v20, 7  ;;  %v9372_v59 = vpop.permute.xlu0 %6694  ;;  %v9374_v5 = vpop.permute.xlu1 %6729  ;;  %v2880_v56 = vsel %vm13652_vm3, %v2832_v9, %v9340_v52  ;;  %v2881_v40 = vsel %vm13662_vm4, %v2831_v29, %v2832_v9  ;;  %vm13675_vm4 = vmmov %vm13649_vm7 }
 0x190   : > { %v1508_v16 = vrot.slane %v13658_v30, 1  ;;  %v9366_v41 = vsel %vm13659_vm12, %v9346_v61, %v9327_v21  ;;  %13661 = vst [vmem:[#allocation151_spill] sm:$0xff] %v9372_v59  ;;  %6839 = vrot.lane.b32.xlu0 %v6838_v22, %s7817_s15  ;;  %6844 = vrot.lane.b32.xlu1 %v6843_v62, %s13186_s16  ;;  %vm13665_vm12 = vmmov %vm13649_vm7  ;;  %v2896_v9 = vsel %vm8657_vm1, 0.0, %v2880_v56  ;;  %v13163_v19 = vunpack.i.h.bf16 %v9374_v5 }
 0x191   : > { %13660 = vst [vmem:[#allocation150_spill] sm:$0xff] %v9366_v41  ;;  %v9388_v53 = vsel %vm13649_vm7, %v1353_v4, %v1354_v14  ;;  %v9392_v34 = vsel %vm13665_vm12, %v1352_v25, %v1353_v4  ;;  %v9397_v30 = vsel %vm13667_vm14, %v9211_v45, %v1352_v25  ;;  %v6853_v29 = vpack.i.bf16 %v2896_v9, %v2881_v40  ;;  %vm13674_vm14 = vmmov %vm13649_vm7 }
 0x192   : > { %v1557_v39 = vsel %vm13663_vm5, %v1508_v16, %v9338_v49  ;;  %13664 = vst [vmem:[#allocation152_spill] sm:$0xff] %v9388_v53  ;;  %13666 = vst [vmem:[#allocation153_spill] sm:$0xff] %v9392_v34  ;;  %v1558_v22 = vsel %vm13652_vm3, %v1507_v0, %v1508_v16  ;;  %v13164_v45 = vunpack.i.l.bf16 %v9374_v5  ;;  %v13669_v0 = vunpack.i.l.bf16 %v9153_v36 }
 0x193   : > { %13668 = vst [vmem:[#allocation154_spill] sm:$0xff] %v9397_v30  ;;  %v1637_v14 = vsel %vm8657_vm1, 0.0, %v1557_v39  ;;  %v9406_v4 = vpop.permute.xlu0 %6699  ;;  %v9408_v20 = vpop.permute.xlu1 %6734  ;;  %v9419_v40 = vrot.slane %v13163_v19, 7  ;;  %v13670_v9 = vunpack.i.h.bf16 %v9194_v8  ;;  %vm13676_vm5 = vmmov %vm13675_vm4  ;;  %v13704_v7 = vunpack.i.l.bf16 %v9284_v43 }
 0x194   : > { %v6848_v62 = vpack.i.bf16 %v1637_v14, %v1558_v22  ;;  %6854 = vrot.lane.b32.xlu0 %v6853_v29, %s13186_s16  ;;  %v13165_v25 = vunpack.i.h.bf16 %v9406_v4  ;;  %v6701_v56 = vunpack.i.l.bf16 %v9406_v4  ;;  %v1511_v16 = vrot.slane %v13669_v0, 1  ;;  %vm13677_vm7 = vmmov %vm13675_vm4 }
 0x195   : > { %v13166_v39 = vunpack.i.h.bf16 %v9408_v20  ;;  %v1510_v29 = vrot.slane %v13670_v9, 1  ;;  %v9426_v22 = vrot.slane %v13164_v45, 7  ;;  %v13167_v0 = vunpack.i.l.bf16 %v9408_v20  ;;  %vm13678_vm12 = vmmov %vm13675_vm4 }
 0x196   : > { %6849 = vrot.lane.b32.xlu1 %v6848_v62, %s7817_s15  ;;  %v2742_v14 = vrot.slane %v13165_v25, 7  ;;  %v13671_v62 = vunpack.i.l.bf16 %v9151_v60  ;;  %v2741_v41 = vrot.slane %v6701_v56, 7  ;;  %v13673_v9 = vunpack.i.h.bf16 %v9257_v33 }
 0x197   : > { %v9435_v19 = vrot.slane %v13166_v39, 7  ;;  %v9437_v34 = vpop.permute.xlu0 %6714  ;;  %v9439_v8 = vpop.permute.xlu1 %6739  ;;  %v9447_v25 = vsel %vm13674_vm14, %v9426_v22, %v9419_v40  ;;  %v9457_v39 = vrot.slane %v13167_v0, 7  ;;  %vm13683_vm14 = vmmov %vm13652_vm3 }
 0x198   : > { %v2835_v17 = vrot.slane %v13671_v62, 1  ;;  %13672 = vst [vmem:[#allocation155_spill] sm:$0xff] %v9439_v8  ;;  %v2834_v45 = vrot.slane %v13673_v9, 1  ;;  %6859 = vrot.lane.b32.xlu0 %v8572_v37, %s7815_s13  ;;  %v9453_v62 = vsel %vm13675_vm4, %v2742_v14, %v2743_v11  ;;  %v9463_v33 = vsel %vm13676_vm5, %v2741_v41, %v2742_v14  ;;  %vm13684_vm4 = vmmov %vm13652_vm3 }
 0x199   : > { %v9468_v9 = vsel %vm13677_vm7, %v9186_v51, %v2741_v41  ;;  %v13171_v37 = vunpack.i.h.bf16 %v9437_v34  ;;  %v9476_v0 = vsel %vm13678_vm12, %v9457_v39, %v9435_v19  ;;  %v1555_v14 = vsel %vm13652_vm3, %v1510_v29, %v1511_v16  ;;  %vm13686_vm7 = vmmov %vm13676_vm5 }
 0x19a   : > { %6869 = vrot.lane.b32.xlu1 %v8537_v44, %s7815_s13  ;;  %13679 = vst [vmem:[#allocation156_spill] sm:$0xff] %v9476_v0  ;;  %v6863_v44 = vpack.i.bf16 %v8715_v12, %v8805_v15  ;;  %v13680_v8 = vunpack.i.h.bf16 %v9151_v60  ;;  %v6873_v41 = vpack.i.bf16 %v8898_v26, %v8721_v6  ;;  %v13681_v53 = vunpack.i.l.bf16 %v9437_v34  ;;  %vm13688_vm12 = vmmov %vm13676_vm5 }
 0x19b   : > { %v1357_v11 = vrot.slane %v13171_v37, 7  ;;  %v9490_v59 = vpop.permute.xlu0 %6719  ;;  %v9492_v0 = vpop.permute.xlu1 %6754  ;;  %v9494_v12 = vrot.slane %v6701_v56, 1  ;;  %v1556_v60 = vsel %vm13683_vm14, %v9338_v49, %v1510_v29  ;;  %v2878_v37 = vsel %vm13684_vm4, %v2834_v45, %v2835_v17  ;;  %vm13693_vm14 = vmmov %vm13652_vm3 }
 0x19c   : > { %v2836_v51 = vrot.slane %v13680_v8, 1  ;;  %v1356_v30 = vrot.slane %v13681_v53, 7  ;;  %13682 = vst [vmem:[#allocation157_spill] sm:$0xff] %v9490_v59  ;;  %6864 = vrot.lane.b32.xlu0 %v6863_v44, %s13184_s14  ;;  %v1639_v8 = vsel %vm8729_vm0, 0.0, %v1555_v14  ;;  %v13690_v44 = vunpack.i.h.bf16 %v9153_v36  ;;  %vm13694_vm4 = vmmov %vm13652_vm3 }
 0x19d   : > { %v9508_v53 = vsel %vm13676_vm5, %v1357_v11, %v9346_v61  ;;  %v6878_v29 = vpack.i.bf16 %v1639_v8, %v1556_v60  ;;  %v2879_v61 = vsel %vm13652_vm3, %v9340_v52, %v2834_v45  ;;  %v13175_v15 = vunpack.i.h.bf16 %v9492_v0  ;;  %vm13695_vm5 = vmmov %vm13652_vm3 }
 0x19e   : > { %6874 = vrot.lane.b32.xlu1 %v6873_v41, %s13184_s14  ;;  %13685 = vst [vmem:[#allocation158_spill] sm:$0xff] %v9508_v53  ;;  %v9512_v56 = vsel %vm13686_vm7, %v1356_v30, %v1357_v11  ;;  %v9517_v49 = vsel %vm13688_vm12, %v9269_v1, %v1356_v30  ;;  %v1512_v14 = vrot.slane %v13690_v44, 1  ;;  %v13691_v41 = vunpack.i.l.bf16 %v9334_v32  ;;  %vm13696_vm7 = vmmov %vm13652_vm3 }
 0x19f   : > { %13687 = vst [vmem:[#allocation159_spill] sm:$0xff] %v9512_v56  ;;  %13689 = vst [vmem:[#allocation160_spill] sm:$0xff] %v9517_v49  ;;  %v2898_v11 = vsel %vm8729_vm0, 0.0, %v2878_v37  ;;  %v9529_v56 = vpop.permute.xlu0 %6724  ;;  %v9531_v1 = vpop.permute.xlu1 %6759  ;;  %v13176_v36 = vunpack.i.l.bf16 %v9492_v0  ;;  %v2876_v30 = vsel %vm13693_vm14, %v2836_v51, %v9494_v12  ;;  %v9541_v52 = vrot.slane %v13175_v15, 7 }
 0x1a0   : > { %v1513_v26 = vrot.slane %v13691_v41, 1  ;;  %v6883_v6 = vpack.i.bf16 %v2898_v11, %v2879_v61  ;;  %13692 = vst [vmem:[#allocation161_spill] sm:$0xff] %v9531_v1  ;;  %6879 = vrot.lane.b32.xlu0 %v6878_v29, %s7817_s15  ;;  %v2877_v45 = vsel %vm13694_vm4, %v2835_v17, %v2836_v51  ;;  %v2900_v37 = vsel %vm8765_vm13, 0.0, %v2876_v30  ;;  %vm13700_vm3 = vmmov %vm13688_vm12 }
 0x1a1   : > { %v9549_v60 = vrot.slane %v13176_v36, 7  ;;  %v6893_v8 = vpack.i.bf16 %v2900_v37, %v2877_v45  ;;  %v13178_v41 = vunpack.i.h.bf16 %v9529_v56  ;;  %v6726_v17 = vunpack.i.l.bf16 %v9529_v56  ;;  %vm13701_vm14 = vmmov %vm13700_vm3 }
 0x1a2   : > { %6884 = vrot.lane.b32.xlu1 %v6883_v6, %s13186_s16  ;;  %v1553_v29 = vsel %vm13695_vm5, %v1512_v14, %v1513_v26  ;;  %v1554_v6 = vsel %vm13696_vm7, %v1511_v16, %v1512_v14  ;;  %v13698_v14 = vunpack.i.l.bf16 %v9230_v38  ;;  %vm13708_vm4 = vmmov %vm13700_vm3  ;;  %vm13799_vm0 = vcmp.lt.s32.totalorder %v7944_v3, 7 }
 0x1a3   : > { %v1641_v44 = vsel %vm8765_vm13, 0.0, %v1553_v29  ;;  %v9559_v51 = vpop.permute.xlu0 %6744  ;;  %v9561_v61 = vpop.permute.xlu1 %6774  ;;  %v9567_v11 = vsel %vm13688_vm12, %v9549_v60, %v9541_v52  ;;  %v9574_v45 = vrot.slane %v13178_v41, 7  ;;  %v2745_v37 = vrot.slane %v6726_v17, 7  ;;  %vm13710_vm5 = vmmov %vm13700_vm3 }
 0x1a4   : > { %13697 = vst [vmem:[#allocation162_spill] sm:$0xff] %v9567_v11  ;;  %6894 = vrot.lane.b32.xlu0 %v6893_v8, %s13186_s16  ;;  %v6888_v16 = vpack.i.bf16 %v1641_v44, %v1554_v6  ;;  %v1515_v30 = vrot.slane %v13698_v14, 1  ;;  %v13699_v29 = vunpack.i.h.bf16 %v9334_v32  ;;  %v6747_v36 = vunpack.i.h.bf16 %v9559_v51  ;;  %vm13712_vm7 = vmmov %vm13700_vm3 }
 0x1a5   : > { %v6746_v13 = vunpack.i.l.bf16 %v9559_v51  ;;  %v9585_v6 = vsel %vm13700_vm3, %v2745_v37, %v9574_v45  ;;  %v9590_v44 = vsel %vm13701_vm14, %v9318_v58, %v2745_v37  ;;  %v6903_v8 = vpack.i.bf16 %v8769_v48, %v8906_v31 }
 0x1a6   : > { %v1514_v15 = vrot.slane %v13699_v29, 1  ;;  %6889 = vrot.lane.b32.xlu1 %v6888_v16, %s7817_s15  ;;  %v13703_v16 = vunpack.i.h.bf16 %v9230_v38  ;;  %v1361_v51 = vrot.slane %v6747_v36, 7  ;;  %v2839_v11 = vrot.slane %v13704_v7, 1 }
 0x1a7   : > { %v9593_v14 = vpop.permute.xlu0 %6749  ;;  %v1360_v41 = vrot.slane %v6746_v13, 7  ;;  %v13705_v58 = vunpack.i.h.bf16 %v9406_v4  ;;  %v13706_v32 = vunpack.i.h.bf16 %v9561_v61  ;;  %v13707_v38 = vunpack.i.l.bf16 %v9561_v61 }
 0x1a8   : > { %13702 = vst [vmem:[#allocation163_spill] sm:$0xff] %v9593_v14  ;;  %v1516_v29 = vrot.slane %v13703_v16, 1  ;;  %6899 = vrot.lane.b32.xlu0 %v8652_v27, %s7815_s13  ;;  %v9618_v27 = vsel %vm13708_vm4, %v1361_v51, %v9457_v39  ;;  %vm13714_vm12 = vcmp.lt.s32.totalorder %v7944_v3, 7  ;;  %v9635_v39 = vrot.slane %v6726_v17, 1 }
 0x1a9   : > { %v2838_v37 = vrot.slane %v13705_v58, 1  ;;  %v9607_v1 = vrot.slane %v13706_v32, 7  ;;  %v9611_v16 = vrot.slane %v13707_v38, 7  ;;  %13709 = vst [vmem:[#allocation164_spill] sm:$0xff] %v9618_v27  ;;  %v9622_v7 = vsel %vm13710_vm5, %v1360_v41, %v1361_v51  ;;  %vm13719_vm14 = vmmov %vm13714_vm12 }
 0x1aa   : > { %6909 = vrot.lane.b32.xlu1 %v8584_v50, %s7815_s13  ;;  %13711 = vst [vmem:[#allocation165_spill] sm:$0xff] %v9622_v7  ;;  %v9627_v4 = vsel %vm13712_vm7, %v9327_v21, %v1360_v41  ;;  %v1551_v32 = vsel %vm13714_vm12, %v1514_v15, %v1515_v30  ;;  %v13715_v58 = vunpack.i.h.bf16 %v9284_v43  ;;  %v13716_v38 = vunpack.i.l.bf16 %v9437_v34  ;;  %vm13721_vm4 = vmmov %vm13714_vm12 }
 0x1ab   : > { %13713 = vst [vmem:[#allocation166_spill] sm:$0xff] %v9627_v4  ;;  %v9641_v51 = vsel %vm13700_vm3, %v9611_v16, %v9607_v1  ;;  %v6765_v31 = vpop.permute.xlu0 %6764  ;;  %v13718_v21 = vunpack.i.h.bf16 %v9286_v2  ;;  %v1552_v43 = vsel %vm13719_vm14, %v1513_v26, %v1514_v15  ;;  %v1643_v17 = vsel %vm8817_vm11, 0.0, %v1551_v32  ;;  %vm13722_vm5 = vmmov %vm13721_vm4 }
 0x1ac   : > { %v2840_v50 = vrot.slane %v13715_v58, 1  ;;  %v1517_v48 = vrot.slane %v13716_v38, 1  ;;  %13717 = vst [vmem:[#allocation167_spill] sm:$0xff] %v9641_v51  ;;  %6904 = vrot.lane.b32.xlu0 %v6903_v8, %s13184_s14  ;;  %v13720_v58 = vunpack.i.l.bf16 %v9286_v2  ;;  %v2874_v7 = vsel %vm13721_vm4, %v2838_v37, %v2839_v11  ;;  %vm13723_vm7 = vmmov %vm13721_vm4  ;;  %s6383_s14 = sshll.u32 %s7909_s21, 12  ;;  %s12875_s21 = scalar_lea.sflag [#allocation3], %s377_s24 }
 0x1ad   : > { %v1520_v41 = vrot.slane %v13718_v21, 1  ;;  %v2875_v51 = vsel %vm13722_vm5, %v9494_v12, %v2838_v37  ;;  %v6918_v8 = vpack.i.bf16 %v1643_v17, %v1552_v43  ;;  %v2902_v15 = vsel %vm8817_vm11, 0.0, %v2874_v7  ;;  %vm13724_vm12 = vmmov %vm13721_vm4  ;;  %s12866_s22 = scalar_lea.hbm %s12926_s11, %s6383_s14 }
 0x1ae   : > { %v1519_v38 = vrot.slane %v13720_v58, 1  ;;  %6914 = vrot.lane.b32.xlu1 %v8713_v46, %s7815_s13  ;;  %v6767_v26 = vunpack.i.h.bf16 %v6765_v31  ;;  %v6766_v2 = vunpack.i.l.bf16 %v6765_v31  ;;  %v6923_v21 = vpack.i.bf16 %v2902_v15, %v2875_v51  ;;  %vm13725_vm3 = vmmov %vm13721_vm4 }
 0x1af   : > { %v2872_v32 = vsel %vm13723_vm7, %v2840_v50, %v9635_v39  ;;  %v2873_v58 = vsel %vm13724_vm12, %v2839_v11, %v2840_v50  ;;  %v1549_v12 = vsel %vm13725_vm3, %v1516_v29, %v1517_v48  ;;  %v9668_v37 = vpop.permute.xlu0 %6769  ;;  %v13727_v46 = vunpack.i.h.bf16 %v9437_v34  ;;  %vm13728_vm14 = vmmov %vm13725_vm3 }
 0x1b0   : > { %13726 = vst [vmem:[#allocation168_spill] sm:$0xff] %v9668_v37  ;;  %v1521_v17 = vrot.slane %v6746_v13, 1  ;;  %6919 = vrot.lane.b32.xlu0 %v6918_v8, %s7817_s15  ;;  %v1365_v31 = vrot.slane %v6767_v26, 7  ;;  %v1364_v7 = vrot.slane %v6766_v2, 7  ;;  %v2904_v51 = vsel %vm8855_vm10, 0.0, %v2872_v32  ;;  %vm13737_vm12 = vmmov %vm13725_vm3 }
 0x1b1   : > { %v1518_v43 = vrot.slane %v13727_v46, 1  ;;  %v1550_v15 = vsel %vm13728_vm14, %v1515_v30, %v1516_v29  ;;  %v1645_v11 = vsel %vm8855_vm10, 0.0, %v1549_v12  ;;  %vm13729_vm4 = vcmp.lt.s32.totalorder %v7944_v3, 1  ;;  %vm13738_vm14 = vmmov %vm13725_vm3 }
 0x1b2   : > { %6924 = vrot.lane.b32.xlu1 %v6923_v21, %s13186_s16  ;;  %v9683_v34 = vsel %vm13729_vm4, %v1365_v31, %v9549_v60  ;;  %vm13731_vm5 = vmmov %vm13729_vm4  ;;  %v6933_v30 = vpack.i.bf16 %v2904_v51, %v2873_v58  ;;  %v13735_v29 = vunpack.i.h.bf16 %v9408_v20  ;;  %v13736_v21 = vunpack.i.l.bf16 %v9408_v20 }
 0x1b3   : > { %13730 = vst [vmem:[#allocation169_spill] sm:$0xff] %v9683_v34  ;;  %v9687_v13 = vsel %vm13731_vm5, %v1364_v7, %v1365_v31  ;;  %vm13733_vm7 = vmmov %vm13729_vm4  ;;  %v1522_v12 = vrot.slane %v6747_v36, 1  ;;  %v1525_v46 = vrot.slane %v6766_v2, 1  ;;  %v9698_v60 = vpop.permute.xlu0 %6784  ;;  %v6928_v31 = vpack.i.bf16 %v1645_v11, %v1550_v15 }
 0x1b4   : > { %13732 = vst [vmem:[#allocation170_spill] sm:$0xff] %v9687_v13  ;;  %v9692_v50 = vsel %vm13733_vm7, %v9435_v19, %v1364_v7  ;;  %v1524_v8 = vrot.slane %v13735_v29, 1  ;;  %v1523_v32 = vrot.slane %v13736_v21, 1  ;;  %6934 = vrot.lane.b32.xlu0 %v6933_v30, %s13186_s16  ;;  %v1547_v57 = vsel %vm13737_vm12, %v1518_v43, %v1519_v38  ;;  %vm13739_vm4 = vmmov %vm13725_vm3 }
 0x1b5   : > { %13734 = vst [vmem:[#allocation171_spill] sm:$0xff] %v9692_v50  ;;  %v1548_v19 = vsel %vm13725_vm3, %v1517_v48, %v1518_v43  ;;  %v1545_v58 = vsel %vm13738_vm14, %v1520_v41, %v1521_v17  ;;  %v1647_v20 = vsel %vm8879_vm9, 0.0, %v1547_v57  ;;  %v1546_v36 = vsel %vm13739_vm4, %v1519_v38, %v1520_v41  ;;  %vm13742_vm5 = vmmov %vm13725_vm3 }
 0x1b6   : > { %v1649_v2 = vsel %vm8900_vm8, 0.0, %v1545_v58  ;;  %6929 = vrot.lane.b32.xlu1 %v6928_v31, %s7817_s15  ;;  %v6938_v7 = vpack.i.bf16 %v1647_v20, %v1548_v19  ;;  %v6786_v15 = vunpack.i.l.bf16 %v9698_v60  ;;  %v13740_v48 = vunpack.i.l.bf16 %v9492_v0  ;;  %vm13743_vm7 = vmmov %vm13725_vm3 }
 0x1b7   : > { %v6948_v51 = vpack.i.bf16 %v1649_v2, %v1546_v36  ;;  %v13741_v11 = vunpack.i.h.bf16 %v9529_v56  ;;  %v1543_v57 = vsel %vm13742_vm5, %v1522_v12, %v1523_v32  ;;  %v1544_v41 = vsel %vm13743_vm7, %v1521_v17, %v1522_v12  ;;  %v6790_v38 = vpop.permute.xlu0 %6789  ;;  %vm13744_vm12 = vmmov %vm13725_vm3 }
 0x1b8   : > { %v1527_v43 = vrot.slane %v13740_v48, 1  ;;  %v1526_v29 = vrot.slane %v6767_v26, 1  ;;  %6939 = vrot.lane.b32.xlu0 %v6938_v7, %s7817_s15  ;;  %v2747_v21 = vrot.slane %v6786_v15, 7  ;;  %v9724_v31 = vrot.slane %v6786_v15, 1  ;;  %vm13748_vm5 = vmmov %vm13739_vm4 }
 0x1b9   : > { %v2842_v30 = vrot.slane %v13741_v11, 1  ;;  %v1541_v19 = vsel %vm13744_vm12, %v1524_v8, %v1525_v46  ;;  %v1651_v56 = vsel %vm8923_vm15, 0.0, %v1543_v57  ;;  %v6792_v58 = vunpack.i.h.bf16 %v6790_v38  ;;  %vm13749_vm7 = vmmov %vm13739_vm4 }
 0x1ba   : > { %v6791_v20 = vunpack.i.l.bf16 %v6790_v38  ;;  %v13745_v36 = vunpack.i.h.bf16 %v9492_v0  ;;  %6949 = vrot.lane.b32.xlu1 %v6948_v51, %s7817_s15  ;;  %vm13746_vm3 = vcmp.lt.s32.totalorder %v7944_v3, 1  ;;  %v6953_v12 = vpack.i.bf16 %v1651_v56, %v1544_v41  ;;  %vm13750_vm12 = vmmov %vm13739_vm4 }
 0x1bb   : > { %v9736_v26 = vsel %vm13746_vm3, %v2747_v21, %v9426_v22  ;;  %vm13747_vm14 = vmmov %vm13746_vm3  ;;  %v1369_v7 = vrot.slane %v6792_v58, 7  ;;  %v1542_v48 = vsel %vm13739_vm4, %v1523_v32, %v1524_v8  ;;  %v1653_v0 = vsel %vm8950_vm6, 0.0, %v1541_v19 }
 0x1bc   : > { %v1528_v2 = vrot.slane %v13745_v36, 1  ;;  %v9741_v17 = vsel %vm13747_vm14, %v9574_v45, %v2747_v21  ;;  %v1368_v15 = vrot.slane %v6791_v20, 7  ;;  %v1529_v51 = vrot.slane %v6791_v20, 1  ;;  %vm13752_vm14 = vmmov %vm13746_vm3 }
 0x1bd   : > { %v2870_v22 = vsel %vm13748_vm5, %v2842_v30, %v9724_v31  ;;  %v2871_v11 = vsel %vm13749_vm7, %v9635_v39, %v2842_v30  ;;  %v1539_v45 = vsel %vm13750_vm12, %v1526_v29, %v1527_v43  ;;  %v9758_v57 = vsel %vm13746_vm3, %v1369_v7, %v9611_v16  ;;  %vm13754_vm4 = vmmov %vm13746_vm3 }
 0x1be   : > { %13751 = vst [vmem:[#allocation172_spill] sm:$0xff] %v9758_v57  ;;  %v9762_v8 = vsel %vm13752_vm14, %v1368_v15, %v1369_v7  ;;  %v9767_v32 = vsel %vm13754_vm4, %v9541_v52, %v1368_v15  ;;  %v2906_v39 = vsel %vm8879_vm9, 0.0, %v2870_v22  ;;  %6954 = vrot.lane.b32.xlu1 %v6953_v12, %s7817_s15  ;;  %v6958_v30 = vpack.i.bf16 %v1653_v0, %v1542_v48  ;;  %vm13757_vm12 = vmmov %vm13748_vm5  ;;  %v7697_v48 = vld [vmem:[%s12920_s5 + $0x30] sm:$0xff]   ;;  %v7698_v0 = vld [vmem:[%s12920_s5 + $0x28] sm:$0xff]  }
 0x1bf   : > { %13753 = vst [vmem:[#allocation173_spill] sm:$0xff] %v9762_v8  ;;  %13755 = vst [vmem:[#allocation174_spill] sm:$0xff] %v9767_v32  ;;  %v6943_v41 = vpack.i.bf16 %v2906_v39, %v2871_v11  ;;  %v1540_v16 = vsel %vm13748_vm5, %v1525_v46, %v1526_v29  ;;  %vm13756_vm7 = vnez %v13567_v23  ;;  %v1530_v21 = vrot.slane %v6792_v58, 1  ;;  %v7700_v22 = vld [vmem:[%s12920_s5 + $0x18] sm:$0xff]   ;;  %v7701_v11 = vld [vmem:[%s12920_s5 + $0x10] sm:$0xff]  }
 0x1c0   : > { %v1655_v38 = vsel %vm13756_vm7, 0.0, %v1539_v45  ;;  %v1537_v52 = vsel %vm13757_vm12, %v1528_v2, %v1529_v51  ;;  %v13758_v19 = vunpack.i.l.bf16 %v9561_v61  ;;  %vm13759_vm3 = vmmov %vm13748_vm5  ;;  %vm13760_vm14 = vnez %v13575_v63  ;;  %v13796_v57 = vld [vmem:[#allocation133_spill] sm:$0xff]  ;;  %v13842_v23 = vld [vmem:[#allocation23_spill] sm:$0xff] }
 0x1c1   : > { %6944 = vrot.lane.b32.xlu0 %v6943_v41, %s13186_s16  ;;  %v6963_v20 = vpack.i.bf16 %v1655_v38, %v1540_v16  ;;  %v1538_v36 = vsel %vm13759_vm3, %v1527_v43, %v1528_v2  ;;  %v1657_v46 = vsel %vm13760_vm14, 0.0, %v1537_v52  ;;  %vm13761_vm4 = vmmov %vm13759_vm3  ;;  %vm13763_vm12 = vnez %v13582_v47  ;;  %v7696_v43 = vld [vmem:[%s12920_s5 + $0x38] sm:$0xff]   ;;  %v9836_v16 = vpop.permute.xlu1 %6779  ;;  %v13766_v38 = vld [vmem:[#allocation7_spill] sm:$0xff]  ;;  %s7822_s16 = smov 24  }
 0x1c2   : > { %v9781_v56 = vrot.slane %v13758_v19, 1  ;;  %6959 = vrot.lane.b32.xlu1 %v6958_v30, %s7817_s15  ;;  %v6968_v58 = vpack.i.bf16 %v1657_v46, %v1538_v36  ;;  %vm13762_vm5 = vmmov %vm13759_vm3  ;;  %v13191_v15 = vmov 0   ;;  %v13194_v45 = vunpack.i.h.bf16 %v9698_v60  ;;  %v7702_v30 = vld [vmem:[%s12920_s5 + $0x8] sm:$0xff]   ;;  %13765 = vst [vmem:[#allocation175_spill] sm:$0xff] %v9836_v16  ;;  %v7703_v52 = vld [vmem:[%s12920_s5] sm:$0xff]  }
 0x1c3   : > { %v1536_v12 = vsel %vm13762_vm5, %v1529_v51, %v1530_v21  ;;  %3654 = vmatprep.subr.bf16.mxu0 %v13191_v15  ;;  %2440 = vmatprep.subr.bf16.mxu1 %v13191_v15  ;;  %v7699_v51 = vld [vmem:[%s12920_s5 + $0x20] sm:$0xff]   ;;  %vm13764_vm3 = vcmp.lt.s32.totalorder %v7944_v3, 1  ;;  %vm13767_vm5 = vnez %v13766_v38  ;;  %v13768_v19 = vld [vmem:[#allocation118_spill] sm:$0xff]  ;;  %vm13783_vm10 = vcmask 261120  }
 0x1c4   : > { %v1535_v29 = vsel %vm13761_vm4, %v1530_v21, %v9781_v56  ;;  %3655 = vmatpush1.bf16.msra.mxu0 %v7696_v43  ;;  %v9827_v39 = vrot.slane %v13194_v45, 7  ;;  %vm13199_vm4 = vcmask 130048   ;;  %v6611_v36 = vunpack.i.l.bf16 %v13768_v19  ;;  %vm13784_vm11 = vmmov %vm13783_vm10 }
 0x1c5   : > { %v1659_v7 = vsel %vm13763_vm12, 0.0, %v1535_v29  ;;  %3656 = vmatprep.subr.bf16.mxu0 %v13191_v15  ;;  %v453_v43 = vadd.s32 16, %v7944_v3 }
 0x1c6   : > { %6964 = vrot.lane.b32.xlu1 %v6963_v20, %s7817_s15  ;;  %v6973_v2 = vpack.i.bf16 %v1659_v7, %v1536_v12  ;;  %v2792_v41 = vsel %vm13764_vm3, %v9827_v39, %v9106_v42  ;;  %v6612_v20 = vunpack.i.h.bf16 %v13768_v19  ;;  %v13769_v12 = vld [vmem:[#allocation130_spill] sm:$0xff]  ;;  %vm13770_vm3 = vcmask 261120  }
 0x1c7   : > { %v2793_v21 = vsel %vm13767_vm5, 0.0, %v2792_v41  ;;  %vm13771_vm9 = vmmov %vm13770_vm3  ;;  %v13773_v41 = vld [vmem:[#allocation68_spill] sm:$0xff] }
 0x1c8   : > { %3657 = vmatpush1.bf16.msra.mxu0 %v7697_v48  ;;  %v3146_v7 = vsel %vm13199_vm4, %v13769_v12, %v6612_v20  ;;  %v13778_v20 = vunpack.i.l.bf16 %v9374_v5 }
 0x1c9   : > { %3658 = vmatprep.subr.bf16.mxu0 %v13191_v15 }
 0x1ca   : > { %6969 = vrot.lane.b32.xlu1 %v6968_v58, %s7817_s15  ;;  %v3145_v58 = vsel %vm13199_vm4, %v2793_v21, %v6611_v36  ;;  %v13774_v21 = vmov 0  ;;  %v2844_v36 = vrot.slane %v13778_v20, 1 }
 0x1cc   : > { %3659 = vmatpush1.bf16.msra.mxu0 %v7698_v0 }
 0x1cd   : > { %3660 = vmatprep.subr.bf16.mxu0 %v13191_v15 }
 0x1ce   : > { %6974 = vrot.lane.b32.xlu1 %v6973_v2, %s7817_s15 }
 0x1d0   : > { %3661 = vmatpush1.bf16.msra.mxu0 %v7699_v51  ;;  %v9859_v51 = vpop.permute.xlu0 %6794 }
 0x1d1   : > { %3662 = vmatprep.subr.bf16.mxu0 %v13191_v15  ;;  %13772 = vst [vmem:[#allocation7_spill] sm:$0xff] %v9859_v51 }
 0x1d4   : > { %3663 = vmatpush1.bf16.msra.mxu0 %v7700_v22  ;;  %v501_v22 = vand.u32 15, %v453_v43 }
 0x1d5   : > { %3664 = vmatprep.subr.bf16.mxu0 %v13191_v15 }
 0x1d8   : > { %3665 = vmatpush1.bf16.msra.mxu0 %v7701_v11 }
 0x1d9   : > { %3666 = vmatprep.subr.bf16.mxu0 %v13191_v15 }
 0x1dc   : > { %3667 = vmatpush1.bf16.msra.mxu0 %v7702_v30  ;;  %v7704_v30 = vld [vmem:[%s12920_s5 + $0x40] sm:$0xff]  }
 0x1dd   : > { %3668 = vmatprep.subr.bf16.mxu0 %v13191_v15 }
 0x1df   : > { %v9862_v11 = vpop.permute.xlu0 %6799 }
 0x1e0   : > { %3669 = vmatpush1.bf16.msra.mxu0 %v7703_v52  ;;  %v13777_v52 = vunpack.i.h.bf16 %v9374_v5  ;;  %v13781_v5 = vld [vmem:[#allocation128_spill] sm:$0xff] }
 0x1e1   : > { %3684 = vmatprep.subr.bf16.mxu0 %v13191_v15 }
 0x1e2   : > { %v9875_v19 = vrot.slane %v13777_v52, 1 }
 0x1e4   : > { %3685 = vmatpush2.bf16.msra.mxu0 %v7704_v30 }
 0x1e5   : > { %4839 = vmatprep.subr.bf16.mxu0 %v13191_v15 }
 0x1e7   : > { %v6805_v46 = vpop.permute.xlu1 %6804 }
 0x1e8   : > { %v6807_v29 = vunpack.i.h.bf16 %v6805_v46  ;;  %v6806_v42 = vunpack.i.l.bf16 %v6805_v46  ;;  %v13779_v46 = vld [vmem:[#allocation129_spill] sm:$0xff] }
 0x1ea   : > { %v9852_v2 = vsel %vm13770_vm3, %v3145_v58, %v6806_v42  ;;  %v9855_v48 = vsel %vm13771_vm9, %v3146_v7, %v6807_v29  ;;  %vm9869_vm3 = vcmp.eq.s32.totalorder %v501_v22, 0  ;;  %v13780_v42 = vld [vmem:[#allocation116_spill] sm:$0xff]  ;;  %vm13782_vm9 = vcmp.lt.s32.totalorder %v7944_v3, 7 }
 0x1eb   : > { %v6978_v0 = vpack.i.bf16 %v9855_v48, %v9852_v2  ;;  %v13775_v21 = vsel %vm9869_vm3, 4294967295, %v13774_v21  ;;  %v2795_v29 = vsel %vm9869_vm3, 0.0, %v13779_v46  ;;  %v6592_v58 = vunpack.i.h.bf16 %v13780_v42  ;;  %vm13785_vm13 = vmmov %vm13782_vm9 }
 0x1ec   : > { %13776 = vst [vmem:[#allocation118_spill] sm:$0xff] %v13775_v21  ;;  %v6591_v12 = vunpack.i.l.bf16 %v13780_v42  ;;  %v2868_v52 = vsel %vm13782_vm9, %v2844_v36, %v9875_v19 }
 0x1ed   : > { %6979 = vrot.lane.b32.xlu1 %v6978_v0, %s7817_s15  ;;  %v3148_v30 = vsel %vm13199_vm4, %v13781_v5, %v6592_v58  ;;  %v2908_v58 = vsel %vm8900_vm8, 0.0, %v2868_v52  ;;  %vm13797_vm8 = vcmask 130048  }
 0x1f1   : > { %6984 = vrot.lane.b32.xlu1 %v13773_v41, %s7815_s13  ;;  %v3147_v41 = vsel %vm13199_vm4, %v2795_v29, %v6591_v12  ;;  %v2869_v29 = vsel %vm13785_vm13, %v9724_v31, %v2844_v36  ;;  %v13787_v31 = vld [vmem:[#allocation88_spill] sm:$0xff] }
 0x1f6   : > { %v6815_v7 = vpop.permute.xlu0 %6814  ;;  %v9885_v43 = vpop.permute.xlu1 %6809 }
 0x1f7   : > { %v6817_v0 = vunpack.i.h.bf16 %v6815_v7  ;;  %v6816_v22 = vunpack.i.l.bf16 %v6815_v7 }
 0x1f9   : > { %v9894_v20 = vsel %vm13783_vm10, %v3147_v41, %v6816_v22  ;;  %v9897_v46 = vsel %vm13784_vm11, %v3148_v30, %v6817_v0  ;;  %v6993_v0 = vpack.i.bf16 %v2908_v58, %v2869_v29  ;;  %v13789_v58 = vld [vmem:[#allocation134_spill] sm:$0xff]  ;;  %vm13792_vm11 = vcmp.lt.s32.totalorder %v7944_v3, 1 }
 0x1fa   : > { %v6820_v42 = vpop.permute.xlu0 %6819  ;;  %v6830_v15 = vpop.permute.xlu1 %6829  ;;  %v6988_v7 = vpack.i.bf16 %v9897_v46, %v9894_v20  ;;  %vm13793_vm13 = vmmov %vm13792_vm11 }
 0x1fb   : > { %v6822_v10 = vunpack.i.h.bf16 %v6820_v42  ;;  %v6821_v24 = vunpack.i.l.bf16 %v6820_v42  ;;  %vm13794_vm9 = vmmov %vm13792_vm11  ;;  %v6831_v34 = vunpack.i.l.bf16 %v6830_v15 }
 0x1fc   : > { %6989 = vrot.lane.b32.xlu0 %v6988_v7, %s7814_s12  ;;  %6999 = vrot.lane.b32.xlu1 %v6988_v7, %s7817_s15  ;;  %vm13795_vm4 = vmmov %vm13794_vm9 }
 0x1fd   : > { %v3150_v16 = vsel %vm13797_vm8, %v13796_v57, %v6822_v10 }
 0x1fe   : > { %v6825_v12 = vpop.permute.xlu0 %6824  ;;  %v6835_v22 = vpop.permute.xlu1 %6834 }
 0x1ff   : > { %v6827_v41 = vunpack.i.h.bf16 %v6825_v12  ;;  %v6826_v5 = vunpack.i.l.bf16 %v6825_v12  ;;  %v6837_v30 = vunpack.i.h.bf16 %v6835_v22  ;;  %v6836_v45 = vunpack.i.l.bf16 %v6835_v22  ;;  %v13790_v12 = vld [vmem:[#allocation14_spill] sm:$0xff] }
 0x200   : > { %6994 = vrot.lane.b32.xlu0 %v6993_v0, %s13786_s30  ;;  %7004 = vrot.lane.b32.xlu1 %v13787_v31, %s7815_s13  ;;  %vm13791_vm10 = vnez %v13790_v12 }
 0x201   : > { %v2751_v36 = vrot.slane %v6827_v41, 7  ;;  %v2847_v52 = vrot.slane %v6827_v41, 1  ;;  %v2750_v54 = vrot.slane %v6826_v5, 7  ;;  %v2846_v8 = vrot.slane %v6826_v5, 1 }
 0x202   : > { %v9911_v32 = vrot.slane %v6837_v30, 7  ;;  %v2752_v7 = vrot.slane %v6836_v45, 7  ;;  %v9913_v51 = vpop.permute.xlu0 %6839  ;;  %v6845_v29 = vpop.permute.xlu1 %6844  ;;  %v2797_v22 = vsel %vm13791_vm10, 0.0, %v13789_v58 }
 0x203   : > { %13788 = vst [vmem:[#allocation130_spill] sm:$0xff] %v9913_v51  ;;  %v9920_v42 = vsel %vm13792_vm11, %v2750_v54, %v2751_v36  ;;  %v9925_v0 = vsel %vm13793_vm13, %v9419_v40, %v2750_v54  ;;  %v6847_v31 = vunpack.i.h.bf16 %v6845_v29  ;;  %v6846_v58 = vunpack.i.l.bf16 %v6845_v29  ;;  %vm13798_vm11 = vmmov %vm13797_vm8 }
 0x204   : > { %v9930_v41 = vsel %vm13794_vm9, %v2752_v7, %v9911_v32  ;;  %v9934_v5 = vsel %vm13795_vm4, %v2751_v36, %v2752_v7  ;;  %v3149_v13 = vsel %vm13798_vm11, %v2797_v22, %v6821_v24  ;;  %v2866_v54 = vsel %vm13799_vm0, %v2846_v8, %v2847_v52  ;;  %vm13803_vm8 = vmmov %vm13799_vm0 }
 0x205   : > { %v6832_v40 = vunpack.i.h.bf16 %v6830_v15  ;;  %vm13800_vm13 = vcmask 261120   ;;  %v9947_v36 = vrot.slane %v6837_v30, 1  ;;  %v2848_v7 = vrot.slane %v6836_v45, 1  ;;  %v13805_v45 = vld [vmem:[#allocation16_spill] sm:$0xff]  ;;  %vm13808_vm4 = vmmov %vm13798_vm11 }
 0x206   : > { %v6855_v50 = vpop.permute.xlu0 %6854  ;;  %v9942_v37 = vsel %vm13800_vm13, %v3149_v13, %v6846_v58  ;;  %vm13801_vm9 = vmmov %vm13800_vm13  ;;  %v2867_v15 = vsel %vm13803_vm8, %v9875_v19, %v2846_v8  ;;  %v2910_v13 = vsel %vm8923_vm15, 0.0, %v2866_v54  ;;  %vm13806_vm0 = vnez %v13805_v45 }
 0x207   : > { %v9945_v27 = vsel %vm13801_vm9, %v3150_v16, %v6847_v31  ;;  %v6857_v10 = vunpack.i.h.bf16 %v6855_v50  ;;  %v6856_v57 = vunpack.i.l.bf16 %v6855_v50  ;;  %v13804_v16 = vld [vmem:[#allocation132_spill] sm:$0xff]  ;;  %v13807_v31 = vld [vmem:[#allocation131_spill] sm:$0xff]  ;;  %vm13809_vm11 = vmmov %vm13808_vm4  ;;  %v7013_v14 = vpack.i.bf16 %v2910_v13, %v2867_v15 }
 0x208   : > { %v9949_v29 = vpop.permute.xlu1 %6849  ;;  %v7008_v24 = vpack.i.bf16 %v9945_v27, %v9942_v37  ;;  %v2799_v30 = vsel %vm13806_vm0, 0.0, %v13804_v16  ;;  %v3152_v58 = vsel %vm13808_vm4, %v13807_v31, %v6832_v40  ;;  %vm13810_vm13 = vmmov %vm13803_vm8 }
 0x209   : > { %13802 = vst [vmem:[#allocation68_spill] sm:$0xff] %v9949_v29  ;;  %v3151_v50 = vsel %vm13809_vm11, %v2799_v30, %v6831_v34  ;;  %v2864_v8 = vsel %vm13810_vm13, %v2848_v7, %v9947_v36  ;;  %vm13811_vm8 = vmmov %vm13801_vm9  ;;  %v13832_v29 = vld [vmem:[#allocation139_spill] sm:$0xff] }
 0x20a   : > { %7009 = vrot.lane.b32.xlu0 %v7008_v24, %s7814_s12  ;;  %7019 = vrot.lane.b32.xlu1 %v7008_v24, %s7817_s15  ;;  %v6860_v22 = vpop.permute.xlu0 %6859  ;;  %v9970_v19 = vsel %vm13801_vm9, %v3151_v50, %v6856_v57  ;;  %v9973_v54 = vsel %vm13811_vm8, %v3152_v58, %v6857_v10  ;;  %v13812_v24 = vld [vmem:[#allocation77_spill] sm:$0xff]  ;;  %vm13813_vm4 = vmmov %vm13810_vm13  ;;  %v2912_v15 = vsel %vm8950_vm6, 0.0, %v2864_v8  ;;  %vm13817_vm13 = vcmp.lt.s32.totalorder %v7944_v3, 1 }
 0x20b   : > { %v2865_v34 = vsel %vm13813_vm4, %v2847_v52, %v2848_v7  ;;  %v7028_v57 = vpack.i.bf16 %v9973_v54, %v9970_v19  ;;  %v6862_v10 = vunpack.i.h.bf16 %v6860_v22  ;;  %v6861_v31 = vunpack.i.l.bf16 %v6860_v22  ;;  %vm13818_vm9 = vmmov %vm13817_vm13 }
 0x20c   : > { %v6870_v4 = vpop.permute.xlu1 %6869  ;;  %vm13819_vm8 = vmmov %vm13818_vm9 }
 0x20d   : > { %vm13820_vm4 = vmmov %vm13819_vm8 }
 0x20e   : > { %7014 = vrot.lane.b32.xlu0 %v7013_v14, %s13786_s30  ;;  %7024 = vrot.lane.b32.xlu1 %v13812_v24, %s7815_s13  ;;  %v6865_v40 = vpop.permute.xlu0 %6864 }
 0x20f   : > { %v6867_v13 = vunpack.i.h.bf16 %v6865_v40  ;;  %v6866_v16 = vunpack.i.l.bf16 %v6865_v40  ;;  %v13815_v40 = vld [vmem:[#allocation18_spill] sm:$0xff] }
 0x210   : > { %v6875_v30 = vpop.permute.xlu1 %6874  ;;  %vm13816_vm11 = vnez %v13815_v40 }
 0x211   : > { %v6877_v58 = vunpack.i.h.bf16 %v6875_v30  ;;  %v6876_v14 = vunpack.i.l.bf16 %v6875_v30  ;;  %v2755_v50 = vrot.slane %v6867_v13, 7  ;;  %v2851_v28 = vrot.slane %v6867_v13, 1 }
 0x212   : > { %v2754_v24 = vrot.slane %v6866_v16, 7  ;;  %v2850_v53 = vrot.slane %v6866_v16, 1  ;;  %7029 = vrot.lane.b32.xlu0 %v7028_v57, %s7814_s12  ;;  %7039 = vrot.lane.b32.xlu1 %v7028_v57, %s7817_s15  ;;  %v9986_v8 = vpop.permute.xlu0 %6879  ;;  %v2801_v55 = vsel %vm13816_vm11, 0.0, %v9305_v18  ;;  %v7033_v30 = vpack.i.bf16 %v2912_v15, %v2865_v34 }
 0x213   : > { %v2757_v52 = vrot.slane %v6877_v58, 7  ;;  %v2756_v7 = vrot.slane %v6876_v14, 7  ;;  %13814 = vst [vmem:[#allocation129_spill] sm:$0xff] %v9986_v8 }
 0x214   : > { %v9993_v22 = vsel %vm13817_vm13, %v2754_v24, %v2755_v50  ;;  %v9998_v13 = vsel %vm13818_vm9, %v9911_v32, %v2754_v24  ;;  %v6885_v16 = vpop.permute.xlu1 %6884  ;;  %vm13821_vm13 = vcmask 130048   ;;  %v13823_v32 = vld [vmem:[#allocation93_spill] sm:$0xff]  ;;  %vm13824_vm9 = vcmp.lt.s32.totalorder %v7944_v3, 7 }
 0x215   : > { %v10002_v57 = vsel %vm13819_vm8, %v2756_v7, %v2757_v52  ;;  %v10006_v49 = vsel %vm13820_vm4, %v2755_v50, %v2756_v7  ;;  %v6887_v18 = vunpack.i.h.bf16 %v6885_v16  ;;  %v6886_v59 = vunpack.i.l.bf16 %v6885_v16  ;;  %vm13822_vm6 = vmmov %vm13821_vm13 }
 0x216   : > { %v3154_v8 = vsel %vm13821_vm13, %v9300_v35, %v6862_v10  ;;  %v3153_v40 = vsel %vm13822_vm6, %v2801_v55, %v6861_v31  ;;  %7034 = vrot.lane.b32.xlu0 %v7033_v30, %s13786_s30  ;;  %7044 = vrot.lane.b32.xlu1 %v13823_v32, %s7815_s13  ;;  %v2862_v34 = vsel %vm13824_vm9, %v2850_v53, %v2851_v28  ;;  %v6895_v15 = vpop.permute.xlu0 %6894  ;;  %vm13825_vm8 = vcmask 261120   ;;  %vm13828_vm6 = vmmov %vm13824_vm9 }
 0x217   : > { %v10017_v24 = vsel %vm13825_vm8, %v3153_v40, %v6886_v59  ;;  %vm13826_vm4 = vmmov %vm13825_vm8  ;;  %v6872_v7 = vunpack.i.h.bf16 %v6870_v4  ;;  %v6871_v16 = vunpack.i.l.bf16 %v6870_v4  ;;  %v6897_v35 = vunpack.i.h.bf16 %v6895_v15  ;;  %v13829_v4 = vld [vmem:[#allocation147_spill] sm:$0xff] }
 0x218   : > { %v10020_v50 = vsel %vm13826_vm4, %v3154_v8, %v6887_v18  ;;  %v6896_v10 = vunpack.i.l.bf16 %v6895_v15  ;;  %v10024_v31 = vpop.permute.xlu1 %6889  ;;  %v2863_v30 = vsel %vm13828_vm6, %v9947_v36, %v2850_v53  ;;  %v2914_v59 = vsel %vm13756_vm7, 0.0, %v2862_v34  ;;  %v13830_v8 = vld [vmem:[#allocation22_spill] sm:$0xff]  ;;  %vm13835_vm6 = vmmov %vm13826_vm4  ;;  %v13836_v34 = vld [vmem:[#allocation81_spill] sm:$0xff] }
 0x219   : > { %v7048_v55 = vpack.i.bf16 %v10020_v50, %v10017_v24  ;;  %13827 = vst [vmem:[#allocation116_spill] sm:$0xff] %v10024_v31  ;;  %v2853_v40 = vrot.slane %v6877_v58, 1  ;;  %v2852_v32 = vrot.slane %v6876_v14, 1  ;;  %vm13831_vm13 = vnez %v13830_v8 }
 0x21a   : > { %v2803_v18 = vsel %vm13831_vm13, 0.0, %v13829_v4  ;;  %v6900_v15 = vpop.permute.xlu0 %6899  ;;  %vm13833_vm9 = vcmask 130048   ;;  %v7053_v53 = vpack.i.bf16 %v2914_v59, %v2863_v30  ;;  %vm13837_vm7 = vcmp.lt.s32.totalorder %v7944_v3, 7 }
 0x21b   : > { %7049 = vrot.lane.b32.xlu0 %v7048_v55, %s7814_s12  ;;  %7059 = vrot.lane.b32.xlu1 %v7048_v55, %s7817_s15  ;;  %v3156_v31 = vsel %vm13833_vm9, %v13832_v29, %v6872_v7  ;;  %vm13834_vm8 = vmmov %vm13833_vm9  ;;  %v2860_v55 = vsel %vm13837_vm7, %v2852_v32, %v2853_v40  ;;  %v6902_v59 = vunpack.i.h.bf16 %v6900_v15 }
 0x21c   : > { %v3155_v51 = vsel %vm13834_vm8, %v2803_v18, %v6871_v16  ;;  %v10043_v58 = vsel %vm13835_vm6, %v3156_v31, %v6897_v35  ;;  %v6910_v14 = vpop.permute.xlu1 %6909  ;;  %vm13838_vm9 = vmmov %vm13837_vm7  ;;  %v6901_v18 = vunpack.i.l.bf16 %v6900_v15  ;;  %vm13840_vm7 = vcmp.lt.s32.totalorder %v7944_v3, 1 }
 0x21d   : > { %v10040_v36 = vsel %vm13826_vm4, %v3155_v51, %v6896_v10  ;;  %v2861_v35 = vsel %vm13838_vm9, %v2851_v28, %v2852_v32  ;;  %v2916_v10 = vsel %vm13760_vm14, 0.0, %v2860_v55  ;;  %vm13841_vm8 = vmmov %vm13840_vm7  ;;  %vm13843_vm4 = vnez %v13842_v23 }
 0x21e   : > { %v6905_v4 = vpop.permute.xlu0 %6904  ;;  %v7068_v16 = vpack.i.bf16 %v10043_v58, %v10040_v36  ;;  %v7073_v55 = vpack.i.bf16 %v2916_v10, %v2861_v35  ;;  %vm13845_vm6 = vcmask 130048  }
 0x21f   : > { %7054 = vrot.lane.b32.xlu0 %v7053_v53, %s13786_s30  ;;  %7064 = vrot.lane.b32.xlu1 %v13836_v34, %s7815_s13  ;;  %v6907_v29 = vunpack.i.h.bf16 %v6905_v4  ;;  %v6906_v7 = vunpack.i.l.bf16 %v6905_v4  ;;  %vm13846_vm9 = vmmov %vm13845_vm6 }
 0x220   : > { %v10052_v51 = vpop.permute.xlu1 %6914 }
 0x221   : > { %v10058_v31 = vrot.slane %v6907_v29, 7  ;;  %v2758_v30 = vrot.slane %v6906_v7, 7  ;;  %v2855_v53 = vrot.slane %v6907_v29, 1  ;;  %v2854_v34 = vrot.slane %v6906_v7, 1  ;;  %v13844_v7 = vld [vmem:[#allocation104_spill] sm:$0xff] }
 0x222   : > { %v10062_v4 = vpop.permute.xlu0 %6919 }
 0x223   : > { %7069 = vrot.lane.b32.xlu0 %v7068_v16, %s7814_s12  ;;  %7079 = vrot.lane.b32.xlu1 %v7068_v16, %s7817_s15  ;;  %13839 = vst [vmem:[#allocation128_spill] sm:$0xff] %v10062_v4  ;;  %v10067_v28 = vsel %vm13840_vm7, %v2758_v30, %v10058_v31  ;;  %v10071_v32 = vsel %vm13841_vm8, %v2757_v52, %v2758_v30  ;;  %v2805_v16 = vsel %vm13843_vm4, 0.0, %v9468_v9  ;;  %vm13847_vm7 = vcmp.lt.s32.totalorder %v7944_v3, 7 }
 0x224   : > { %v6925_v63 = vpop.permute.xlu1 %6924  ;;  %v3158_v4 = vsel %vm13845_vm6, %v9463_v33, %v6902_v59  ;;  %v3157_v8 = vsel %vm13846_vm9, %v2805_v16, %v6901_v18  ;;  %v2858_v35 = vsel %vm13847_vm7, %v2854_v34, %v2855_v53  ;;  %vm13848_vm8 = vcmask 261120   ;;  %vm13850_vm6 = vmmov %vm13847_vm7 }
 0x225   : > { %v6927_v15 = vunpack.i.h.bf16 %v6925_v63  ;;  %v6926_v29 = vunpack.i.l.bf16 %v6925_v63  ;;  %vm13849_vm14 = vmmov %vm13848_vm8  ;;  %v6912_v63 = vunpack.i.h.bf16 %v6910_v14  ;;  %v6911_v30 = vunpack.i.l.bf16 %v6910_v14 }
 0x226   : > { %v6935_v52 = vpop.permute.xlu0 %6934  ;;  %v2859_v33 = vsel %vm13850_vm6, %v2853_v40, %v2854_v34  ;;  %v2918_v59 = vsel %vm13763_vm12, 0.0, %v2858_v35  ;;  %v13851_v18 = vunpack.i.h.bf16 %v9698_v60  ;;  %vm13855_vm7 = vmmov %vm13846_vm9  ;;  %v13859_v60 = vld [vmem:[#allocation89_spill] sm:$0xff]  ;;  %vm13870_vm12 = vcmask 261120  }
 0x227   : > { %7074 = vrot.lane.b32.xlu0 %v7073_v55, %s13786_s30  ;;  %7084 = vrot.lane.b32.xlu1 %v13844_v7, %s7815_s13  ;;  %v10085_v10 = vsel %vm13848_vm8, %v3158_v4, %v6927_v15  ;;  %v10088_v9 = vsel %vm13849_vm14, %v3157_v8, %v6926_v29  ;;  %v6937_v7 = vunpack.i.h.bf16 %v6935_v52  ;;  %v6936_v23 = vunpack.i.l.bf16 %v6935_v52  ;;  %v13852_v4 = vld [vmem:[#allocation27_spill] sm:$0xff]  ;;  %v13854_v15 = vld [vmem:[#allocation149_spill] sm:$0xff]  ;;  %vm13857_vm6 = vmmov %vm13848_vm8 }
 0x228   : > { %v7088_v55 = vpack.i.bf16 %v10085_v10, %v10088_v9  ;;  %v482_v8 = vadd.s32 248, %v7944_v3  ;;  %v2856_v14 = vrot.slane %v13851_v18, 1  ;;  %vm13853_vm14 = vnez %v13852_v4  ;;  %v13860_v18 = vld [vmem:[#allocation127_spill] sm:$0xff]  ;;  %vm13872_vm15 = vmmov %vm13870_vm12 }
 0x229   : > { %v2807_v16 = vsel %vm13853_vm14, 0.0, %v9453_v62  ;;  %v3160_v29 = vsel %vm13846_vm9, %v13854_v15, %v6912_v63  ;;  %v7093_v34 = vpack.i.bf16 %v2918_v59, %v2859_v33  ;;  %vm13861_vm9 = vcmp.lt.s32.totalorder %v7944_v3, 7 }
 0x22a   : > { %v3159_v40 = vsel %vm13855_vm7, %v2807_v16, %v6911_v30  ;;  %v10111_v35 = vsel %vm13857_vm6, %v3160_v29, %v6937_v7  ;;  %v704_v62 = vand.u32 15, %v482_v8  ;;  %v2888_v63 = vsel %vm13861_vm9, %v2856_v14, %v13860_v18  ;;  %vm13862_vm7 = vmmov %vm13861_vm9  ;;  %v13866_v16 = vld [vmem:[#allocation30_spill] sm:$0xff]  ;;  %v10152_v18 = vpop.permute.xlu1 %6929 }
 0x22b   : > { %7089 = vrot.lane.b32.xlu0 %v7088_v55, %s7814_s12  ;;  %7099 = vrot.lane.b32.xlu1 %v7088_v55, %s7817_s15  ;;  %v10108_v52 = vsel %vm13848_vm8, %v3159_v40, %v6936_v23  ;;  %13858 = vst [vmem:[#allocation134_spill] sm:$0xff] %v10111_v35  ;;  %v10113_v55 = vpop.permute.xlu0 %6939  ;;  %v6917_v30 = vunpack.i.h.bf16 %v10052_v51  ;;  %v6916_v23 = vunpack.i.l.bf16 %v10052_v51  ;;  %v2857_v33 = vsel %vm13862_vm7, %v2855_v53, %v2856_v14 }
 0x22c   : > { %13856 = vst [vmem:[#allocation88_spill] sm:$0xff] %v10108_v52  ;;  %v7108_v7 = vpack.i.bf16 %v10111_v35, %v10108_v52  ;;  %vm10129_vm8 = vcmp.eq.s32.totalorder %v704_v62, 15  ;;  %v13863_v59 = vmov 0  ;;  %vm13867_vm6 = vnez %v13866_v16 }
 0x22d   : > { %v13864_v59 = vsel %vm10129_vm8, 4294967295, %v13863_v59  ;;  %v2809_v15 = vsel %vm13867_vm6, 0.0, %v9590_v44  ;;  %v2920_v51 = vsel %vm10129_vm8, 0.0, %v2888_v63  ;;  %vm13868_vm9 = vcmask 130048  }
 0x22e   : > { %13865 = vst [vmem:[#allocation133_spill] sm:$0xff] %v13864_v59  ;;  %v3162_v53 = vsel %vm13868_vm9, %v9585_v6, %v6917_v30  ;;  %vm13869_vm7 = vmmov %vm13868_vm9  ;;  %v10154_v6 = vpop.permute.xlu1 %6949 }
 0x22f   : > { %7094 = vrot.lane.b32.xlu0 %v7093_v34, %s13786_s30  ;;  %7104 = vrot.lane.b32.xlu1 %v13859_v60, %s7815_s13  ;;  %v3161_v14 = vsel %vm13869_vm7, %v2809_v15, %v6916_v23  ;;  %v7113_v34 = vpack.i.bf16 %v2920_v51, %v2857_v33  ;;  %vm13882_vm1 = vmmov %vm13869_vm7  ;;  %s7821_s13 = smov 16   ;;  %v6951_v16 = vunpack.i.l.bf16 %v10154_v6 }
 0x232   : > { %v10156_v63 = vpop.permute.xlu1 %6954 }
 0x233   : > { %7109 = vrot.lane.b32.xlu0 %v7108_v7, %s7814_s12  ;;  %7119 = vrot.lane.b32.xlu1 %v7108_v7, %s7817_s15  ;;  %v6945_v8 = vpop.permute.xlu0 %6944  ;;  %13874 = vst [vmem:[#allocation131_spill] sm:$0xff] %v10156_v63 }
 0x234   : > { %v6947_v29 = vunpack.i.h.bf16 %v6945_v8  ;;  %v6946_v40 = vunpack.i.l.bf16 %v6945_v8 }
 0x236   : > { %v10142_v60 = vsel %vm13870_vm12, %v3161_v14, %v6946_v40  ;;  %v10145_v62 = vsel %vm13872_vm15, %v3162_v53, %v6947_v29  ;;  %v10158_v30 = vpop.permute.xlu1 %6959  ;;  %vm13233_vm15 = vcmask 785408   ;;  %vm13230_vm12 = vcmask 392192  }
 0x237   : > { %13871 = vst [vmem:[#allocation132_spill] sm:$0xff] %v10142_v60  ;;  %13873 = vst [vmem:[#allocation16_spill] sm:$0xff] %v10145_v62  ;;  %7114 = vrot.lane.b32.xlu0 %v7113_v34, %s13786_s30  ;;  %v7123_v44 = vpack.i.bf16 %v10145_v62, %v10142_v60 }
 0x238   : > { %13875 = vst [vmem:[#allocation77_spill] sm:$0xff] %v10158_v30 }
 0x239   : > { %7129 = vrot.lane.b32.xlu1 %v7123_v44, %s7817_s15 }
 0x23a   : > { %v10160_v23 = vpop.permute.xlu1 %6964 }
 0x23b   : > { %7124 = vrot.lane.b32.xlu0 %v7123_v44, %s7814_s12  ;;  %13876 = vst [vmem:[#allocation93_spill] sm:$0xff] %v10160_v23 }
 0x23e   : > { %v10162_v7 = vpop.permute.xlu1 %6969 }
 0x23f   : > { %13877 = vst [vmem:[#allocation147_spill] sm:$0xff] %v10162_v7  ;;  %v14054_v4 = vld [vmem:[#allocation77_spill] sm:$0xff] }
 0x240   : > { %v6961_v12 = vunpack.i.l.bf16 %v14054_v4 }
 0x242   : > { %v10164_v33 = vpop.permute.xlu1 %6974 }
 0x243   : > { %13878 = vst [vmem:[#allocation139_spill] sm:$0xff] %v10164_v33 }
 0x25f   : > { %v6980_v8 = vpop.permute.xlu1 %6979 }
 0x260   : > { %v6982_v51 = vunpack.i.h.bf16 %v6980_v8  ;;  %v6981_v29 = vunpack.i.l.bf16 %v6980_v8  ;;  %v13879_v8 = vld [vmem:[#allocation32_spill] sm:$0xff] }
 0x261   : > { %vm13880_vm9 = vnez %v13879_v8 }
 0x262   : > { %v3431_v34 = vsel %vm13230_vm12, 0.0, %v6982_v51  ;;  %v3430_v44 = vsel %vm13230_vm12, 0.0, %v6981_v29  ;;  %v2811_v30 = vsel %vm13880_vm9, 0.0, %v9741_v17  ;;  %vm13881_vm12 = vmmov %vm13869_vm7  ;;  %vm13892_vm9 = vcmask 130048  }
 0x263   : > { %v6985_v15 = vpop.permute.xlu1 %6984 }
 0x264   : > { %v6987_v47 = vunpack.i.h.bf16 %v6985_v15  ;;  %v6986_v62 = vunpack.i.l.bf16 %v6985_v15 }
 0x266   : > { %v3164_v51 = vsel %vm13881_vm12, %v9736_v26, %v6987_v47  ;;  %v3163_v15 = vsel %vm13882_vm1, %v2811_v30, %v6986_v62  ;;  %vm13886_vm1 = vcmask 392192  }
 0x26e   : > { %v6990_v40 = vpop.permute.xlu0 %6989  ;;  %v7000_v52 = vpop.permute.xlu1 %6999 }
 0x26f   : > { %v6992_v53 = vunpack.i.h.bf16 %v6990_v40  ;;  %v6991_v14 = vunpack.i.l.bf16 %v6990_v40 }
 0x271   : > { %v3463_v60 = vsel %vm13233_vm15, %v3430_v44, %v6991_v14  ;;  %v3464_v35 = vsel %vm13233_vm15, %v3431_v34, %v6992_v53  ;;  %v3496_v33 = vpack.c.bf16 %v6992_v53, %v6991_v14  ;;  %vm13884_vm15 = vmmov %vm13883_vm2 }
 0x272   : > { %v3495_v7 = vpack.c.bf16 %v3464_v35, %v3463_v60  ;;  %v6995_v23 = vpop.permute.xlu0 %6994  ;;  %v7005_v17 = vpop.permute.xlu1 %7004 }
 0x273   : > { %v6997_v63 = vunpack.i.h.bf16 %v6995_v23  ;;  %v6996_v40 = vunpack.i.l.bf16 %v6995_v23  ;;  %6306 = vmatprep.mubr.msk.bf16.mxu0 %vm13869_vm7, %v3496_v33  ;;  %v7002_v23 = vunpack.i.h.bf16 %v7000_v52  ;;  %v7001_v33 = vunpack.i.l.bf16 %v7000_v52 }
 0x274   : > { %3687 = vmatmul.mubr.bf16.vlgmr.msra.gmra.mxu0 %v3495_v7  ;;  %v7007_v7 = vunpack.i.h.bf16 %v7005_v17  ;;  %v7006_v53 = vunpack.i.l.bf16 %v7005_v17 }
 0x275   : > { %v10178_v29 = vsel %vm13883_vm2, %v3163_v15, %v6996_v40  ;;  %v10181_v35 = vsel %vm13884_vm15, %v3164_v51, %v6997_v63  ;;  %v3432_v63 = vsel %vm13886_vm1, %v9852_v2, %v7001_v33  ;;  %vm13887_vm2 = vmmov %vm13886_vm1  ;;  %vm13888_vm15 = vcmask 785408  }
 0x276   : > { %13885 = vst [vmem:[#allocation81_spill] sm:$0xff] %v10181_v35  ;;  %v7138_v60 = vpack.i.bf16 %v10181_v35, %v10178_v29  ;;  %v3433_v14 = vsel %vm13887_vm2, %v9855_v48, %v7002_v23  ;;  %vm13889_vm12 = vmmov %vm13888_vm15 }
 0x277   : > { %vm13893_vm1 = vmmov %vm13892_vm9 }
 0x278   : > { %7139 = vrot.lane.b32.xlu1 %v7138_v60, %s7817_s15  ;;  %7134 = vrot.lane.b32.xlu0 %v7138_v60, %s7814_s12  ;;  %v13890_v60 = vld [vmem:[#allocation33_spill] sm:$0xff]  ;;  %v3166_v2 = vsel %vm13893_vm1, %v9925_v0, %v7007_v7  ;;  %vm13894_vm2 = vmmov %vm13893_vm1 }
 0x279   : > { %vm13891_vm7 = vnez %v13890_v60 }
 0x27c   : > { %v7010_v47 = vpop.permute.xlu0 %7009  ;;  %v7020_v26 = vpop.permute.xlu1 %7019 }
 0x27d   : > { %v7012_v62 = vunpack.i.h.bf16 %v7010_v47  ;;  %v7011_v30 = vunpack.i.l.bf16 %v7010_v47  ;;  %v2813_v47 = vsel %vm13891_vm7, 0.0, %v9447_v25  ;;  %v7022_v23 = vunpack.i.h.bf16 %v7020_v26  ;;  %v7705_v25 = vld [vmem:[%s12918_s3 + $0x38] sm:$0xff]  }
 0x27e   : > { %v3165_v48 = vsel %vm13894_vm2, %v2813_v47, %v7006_v53  ;;  %v7021_v33 = vunpack.i.l.bf16 %v7020_v26  ;;  %2441 = vmatpush1.bf16.msra.mxu1 %v7705_v25  ;;  %vm13899_vm2 = vcmask 785408   ;;  %v13902_v25 = vld [vmem:[#allocation37_spill] sm:$0xff] }
 0x27f   : > { %v3498_v34 = vpack.c.bf16 %v7012_v62, %v7011_v30  ;;  %v3465_v44 = vsel %vm13888_vm15, %v3432_v63, %v7011_v30  ;;  %v3466_v40 = vsel %vm13889_vm12, %v3433_v14, %v7012_v62  ;;  %vm13895_vm15 = vcmask 261120  }
 0x280   : > { %v7015_v51 = vpop.permute.xlu0 %7014  ;;  %v7025_v15 = vpop.permute.xlu1 %7024  ;;  %v3497_v52 = vpack.c.bf16 %v3466_v40, %v3465_v44  ;;  %vm13896_vm12 = vmmov %vm13895_vm15  ;;  %v7706_v40 = vld [vmem:[%s12918_s3 + $0x30] sm:$0xff]  }
 0x281   : > { %v7017_v35 = vunpack.i.h.bf16 %v7015_v51  ;;  %v7016_v17 = vunpack.i.l.bf16 %v7015_v51  ;;  %6307 = vmatprep.mubr.msk.bf16.mxu0 %vm13892_vm9, %v3498_v34  ;;  %v7027_v26 = vunpack.i.h.bf16 %v7025_v15  ;;  %v7026_v34 = vunpack.i.l.bf16 %v7025_v15 }
 0x282   : > { %3695 = vmatmul.mubr.bf16.gmra.mxu0 %v3497_v52  ;;  %vm13897_vm9 = vcmask 392192   ;;  %v13901_v15 = vmov 0  }
 0x283   : > { %v10201_v62 = vsel %vm13895_vm15, %v3165_v48, %v7016_v17  ;;  %v10204_v30 = vsel %vm13896_vm12, %v3166_v2, %v7017_v35  ;;  %v3434_v35 = vsel %vm13897_vm9, %v9894_v20, %v7021_v33  ;;  %vm13898_vm1 = vmmov %vm13897_vm9  ;;  %2442 = vmatprep.subr.bf16.mxu1 %v13901_v15  ;;  %vm13903_vm12 = vnez %v13902_v25 }
 0x284   : > { %v7030_v63 = vpop.permute.xlu0 %7029  ;;  %v7040_v14 = vpop.permute.xlu1 %7039  ;;  %v7148_v0 = vpack.i.bf16 %v10204_v30, %v10201_v62  ;;  %v3435_v44 = vsel %vm13898_vm1, %v9897_v46, %v7022_v23  ;;  %vm13900_vm15 = vmmov %vm13899_vm2  ;;  %v2815_v20 = vsel %vm13903_vm12, 0.0, %v9920_v42  ;;  %vm13904_vm9 = vcmask 130048   ;;  %2443 = vmatpush1.bf16.msra.mxu1 %v7706_v40 }
 0x285   : > { %v7032_v7 = vunpack.i.h.bf16 %v7030_v63  ;;  %v7031_v53 = vunpack.i.l.bf16 %v7030_v63  ;;  %vm13905_vm1 = vmmov %vm13904_vm9  ;;  %2444 = vmatprep.subr.bf16.mxu1 %v13901_v15 }
 0x286   : > { %7149 = vrot.lane.b32.xlu1 %v7148_v0, %s7817_s15  ;;  %7144 = vrot.lane.b32.xlu0 %v7148_v0, %s7814_s12  ;;  %v3168_v23 = vsel %vm13905_vm1, %v9934_v5, %v7027_v26  ;;  %v7042_v0 = vunpack.i.h.bf16 %v7040_v14 }
 0x287   : > { %v3500_v51 = vpack.c.bf16 %v7032_v7, %v7031_v53  ;;  %v3467_v52 = vsel %vm13899_vm2, %v3434_v35, %v7031_v53  ;;  %v3468_v47 = vsel %vm13900_vm15, %v3435_v44, %v7032_v7  ;;  %vm13906_vm2 = vmmov %vm13905_vm1  ;;  %v7041_v7 = vunpack.i.l.bf16 %v7040_v14  ;;  %v7707_v35 = vld [vmem:[%s12918_s3 + $0x28] sm:$0xff]  }
 0x288   : > { %v7035_v17 = vpop.permute.xlu0 %7034  ;;  %v7045_v2 = vpop.permute.xlu1 %7044  ;;  %v3499_v48 = vpack.c.bf16 %v3468_v47, %v3467_v52  ;;  %v3167_v63 = vsel %vm13906_vm2, %v2815_v20, %v7026_v34  ;;  %vm13907_vm15 = vcmask 261120   ;;  %2445 = vmatpush1.bf16.msra.mxu1 %v7707_v35  ;;  %vm13911_vm1 = vcmask 785408  }
 0x289   : > { %v7037_v33 = vunpack.i.h.bf16 %v7035_v17  ;;  %v7036_v46 = vunpack.i.l.bf16 %v7035_v17  ;;  %6308 = vmatprep.mubr.msk.bf16.mxu0 %vm13904_vm9, %v3500_v51  ;;  %vm13908_vm7 = vmmov %vm13907_vm15  ;;  %v7047_v34 = vunpack.i.h.bf16 %v7045_v2  ;;  %v7046_v51 = vunpack.i.l.bf16 %v7045_v2  ;;  %v7708_v17 = vld [vmem:[%s12918_s3 + $0x20] sm:$0xff]   ;;  %2446 = vmatprep.subr.bf16.mxu1 %v13901_v15 }
 0x28a   : > { %3703 = vmatmul.mubr.bf16.gmra.mxu0 %v3499_v48  ;;  %vm13912_vm2 = vmmov %vm13911_vm1 }
 0x28b   : > { %v10232_v53 = vsel %vm13907_vm15, %v3167_v63, %v7036_v46  ;;  %v10235_v42 = vsel %vm13908_vm7, %v3168_v23, %v7037_v33  ;;  %vm13909_vm7 = vcmask 392192   ;;  %v13913_v63 = vld [vmem:[#allocation40_spill] sm:$0xff] }
 0x28c   : > { %v7158_v5 = vpack.i.bf16 %v10235_v42, %v10232_v53  ;;  %v3436_v52 = vsel %vm13909_vm7, %v9942_v37, %v7041_v7  ;;  %vm13910_vm9 = vmmov %vm13909_vm7  ;;  %vm13914_vm15 = vnez %v13913_v63  ;;  %vm13915_vm7 = vcmask 130048   ;;  %2447 = vmatpush1.bf16.msra.mxu1 %v7708_v17 }
 0x28d   : > { %v7050_v44 = vpop.permute.xlu0 %7049  ;;  %v7060_v40 = vpop.permute.xlu1 %7059  ;;  %v3437_v47 = vsel %vm13910_vm9, %v9945_v27, %v7042_v0  ;;  %v2817_v37 = vsel %vm13914_vm15, 0.0, %v9930_v41  ;;  %vm13916_vm9 = vmmov %vm13915_vm7  ;;  %2448 = vmatprep.subr.bf16.mxu1 %v13901_v15 }
 0x28e   : > { %v7052_v26 = vunpack.i.h.bf16 %v7050_v44  ;;  %v7051_v14 = vunpack.i.l.bf16 %v7050_v44  ;;  %7159 = vrot.lane.b32.xlu1 %v7158_v5, %s7817_s15  ;;  %7154 = vrot.lane.b32.xlu0 %v7158_v5, %s7814_s12  ;;  %v3170_v0 = vsel %vm13916_vm9, %v9998_v13, %v7047_v34  ;;  %v7062_v44 = vunpack.i.h.bf16 %v7060_v40 }
 0x28f   : > { %v7061_v5 = vunpack.i.l.bf16 %v7060_v40  ;;  %vm13923_vm9 = vcmask 785408  }
 0x290   : > { %v3502_v48 = vpack.c.bf16 %v7052_v26, %v7051_v14  ;;  %v3469_v20 = vsel %vm13911_vm1, %v3436_v52, %v7051_v14  ;;  %v3470_v33 = vsel %vm13912_vm2, %v3437_v47, %v7052_v26  ;;  %vm13917_vm1 = vmmov %vm13915_vm7  ;;  %vm13918_vm2 = vcmask 261120   ;;  %v7709_v14 = vld [vmem:[%s12918_s3 + $0x18] sm:$0xff]  }
 0x291   : > { %v7055_v2 = vpop.permute.xlu0 %7054  ;;  %v7065_v46 = vpop.permute.xlu1 %7064  ;;  %v3501_v23 = vpack.c.bf16 %v3470_v33, %v3469_v20  ;;  %v3169_v35 = vsel %vm13917_vm1, %v2817_v37, %v7046_v51  ;;  %vm13919_vm12 = vmmov %vm13918_vm2  ;;  %2449 = vmatpush1.bf16.msra.mxu1 %v7709_v14  ;;  %v7710_v33 = vld [vmem:[%s12918_s3 + $0x10] sm:$0xff]  }
 0x292   : > { %v7057_v7 = vunpack.i.h.bf16 %v7055_v2  ;;  %v7056_v27 = vunpack.i.l.bf16 %v7055_v2  ;;  %6309 = vmatprep.mubr.msk.bf16.mxu0 %vm13915_vm7, %v3502_v48  ;;  %v7067_v51 = vunpack.i.h.bf16 %v7065_v46  ;;  %v7066_v17 = vunpack.i.l.bf16 %v7065_v46  ;;  %vm13924_vm1 = vmmov %vm13923_vm9  ;;  %2450 = vmatprep.subr.bf16.mxu1 %v13901_v15 }
 0x293   : > { %3711 = vmatmul.mubr.bf16.gmra.mxu0 %v3501_v23  ;;  %v481_v46 = vadd.s32 240, %v7944_v3 }
 0x294   : > { %v10263_v26 = vsel %vm13918_vm2, %v3169_v35, %v7056_v27  ;;  %v10266_v41 = vsel %vm13919_vm12, %v3170_v0, %v7057_v7  ;;  %vm13921_vm12 = vcmask 392192   ;;  %v13925_v0 = vld [vmem:[#allocation121_spill] sm:$0xff] }
 0x295   : > { %13920 = vst [vmem:[#allocation104_spill] sm:$0xff] %v10266_v41  ;;  %v7070_v52 = vpop.permute.xlu0 %7069  ;;  %v7080_v47 = vpop.permute.xlu1 %7079  ;;  %v7168_v13 = vpack.i.bf16 %v10266_v41, %v10263_v26  ;;  %v3438_v48 = vsel %vm13921_vm12, %v9970_v19, %v7061_v5  ;;  %vm13922_vm7 = vmmov %vm13921_vm12  ;;  %v6602_v35 = vunpack.i.h.bf16 %v13925_v0  ;;  %2451 = vmatpush1.bf16.msra.mxu1 %v7710_v33 }
 0x296   : > { %v7072_v34 = vunpack.i.h.bf16 %v7070_v52  ;;  %v7071_v40 = vunpack.i.l.bf16 %v7070_v52  ;;  %v3439_v20 = vsel %vm13922_vm7, %v9973_v54, %v7062_v44  ;;  %v13926_v54 = vld [vmem:[#allocation43_spill] sm:$0xff]  ;;  %vm13928_vm7 = vcmask 130048   ;;  %2452 = vmatprep.subr.bf16.mxu1 %v13901_v15 }
 0x297   : > { %7169 = vrot.lane.b32.xlu1 %v7168_v13, %s7817_s15  ;;  %7164 = vrot.lane.b32.xlu0 %v7168_v13, %s7814_s12  ;;  %vm13927_vm12 = vnez %v13926_v54  ;;  %v13929_v52 = vld [vmem:[#allocation115_spill] sm:$0xff]  ;;  %v14081_v54 = vld [vmem:[#allocation132_spill] sm:$0xff] }
 0x298   : > { %v3504_v2 = vpack.c.bf16 %v7072_v34, %v7071_v40  ;;  %v3471_v23 = vsel %vm13923_vm9, %v3438_v48, %v7071_v40  ;;  %v3472_v37 = vsel %vm13924_vm1, %v3439_v20, %v7072_v34  ;;  %v2819_v44 = vsel %vm13927_vm12, 0.0, %v9993_v22  ;;  %v13930_v34 = vld [vmem:[#allocation122_spill] sm:$0xff]  ;;  %vm13931_vm9 = vmmov %vm13928_vm7 }
 0x299   : > { %v7075_v7 = vpop.permute.xlu0 %7074  ;;  %v7085_v27 = vpop.permute.xlu1 %7084  ;;  %v3503_v19 = vpack.c.bf16 %v3472_v37, %v3471_v23  ;;  %v6582_v13 = vunpack.i.h.bf16 %v13929_v52  ;;  %v1471_v40 = vsel %vm9869_vm3, 0.0, %v13930_v34  ;;  %v3172_v48 = vsel %vm13931_vm9, %v10006_v49, %v7067_v51  ;;  %vm13932_vm1 = vmmov %vm13928_vm7  ;;  %v7711_v51 = vld [vmem:[%s12918_s3 + $0x8] sm:$0xff]  }
 0x29a   : > { %v7077_v5 = vunpack.i.h.bf16 %v7075_v7  ;;  %v7076_v14 = vunpack.i.l.bf16 %v7075_v7  ;;  %6310 = vmatprep.mubr.msk.bf16.mxu0 %vm13928_vm7, %v3504_v2  ;;  %v3171_v20 = vsel %vm13932_vm1, %v2819_v44, %v7066_v17  ;;  %v7082_v22 = vunpack.i.h.bf16 %v7080_v47  ;;  %vm13934_vm7 = vmmov %vm13918_vm2  ;;  %v13936_v7 = vld [vmem:[#allocation124_spill] sm:$0xff]  ;;  %2453 = vmatpush1.bf16.msra.mxu1 %v7711_v51 }
 0x29b   : > { %3719 = vmatmul.mubr.bf16.gmra.mxu0 %v3503_v19  ;;  %v7081_v23 = vunpack.i.l.bf16 %v7080_v47  ;;  %v6581_v2 = vunpack.i.l.bf16 %v13929_v52  ;;  %v6622_v34 = vunpack.i.h.bf16 %v13936_v7  ;;  %v13937_v47 = vld [vmem:[#allocation123_spill] sm:$0xff]  ;;  %vm13938_vm9 = vcmask 195584   ;;  %2454 = vmatprep.subr.bf16.mxu1 %v13901_v15 }
 0x29c   : > { %v10300_v37 = vsel %vm13918_vm2, %v3171_v20, %v7076_v14  ;;  %v10303_v33 = vsel %vm13934_vm7, %v3172_v48, %v7077_v5  ;;  %v10315_v19 = vsel %vm13938_vm9, %v13937_v47, %v6602_v35  ;;  %v697_v44 = vand.u32 15, %v481_v46  ;;  %v13939_v5 = vld [vmem:[#allocation117_spill] sm:$0xff]  ;;  %vm13940_vm2 = vmmov %vm13938_vm9  ;;  %v13949_v20 = vld [vmem:[#allocation119_spill] sm:$0xff] }
 0x29d   : > { %13933 = vst [vmem:[#allocation149_spill] sm:$0xff] %v10300_v37  ;;  %13935 = vst [vmem:[#allocation89_spill] sm:$0xff] %v10303_v33  ;;  %v7178_v49 = vpack.i.bf16 %v10303_v33, %v10300_v37  ;;  %v10319_v14 = vsel %vm13940_vm2, %v13939_v5, %v6582_v13  ;;  %v7090_v52 = vpop.permute.xlu0 %7089  ;;  %v7100_v48 = vpop.permute.xlu1 %7099  ;;  %v7087_v35 = vunpack.i.h.bf16 %v7085_v27  ;;  %v7086_v47 = vunpack.i.l.bf16 %v7085_v27 }
 0x29e   : > { %vm13941_vm1 = vmmov %vm13940_vm2  ;;  %v7092_v33 = vunpack.i.h.bf16 %v7090_v52  ;;  %v7091_v37 = vunpack.i.l.bf16 %v7090_v52  ;;  %vm13942_vm7 = vcmask 392192  }
 0x29f   : > { %v10323_v21 = vsel %vm13941_vm1, %v1471_v40, %v6581_v2  ;;  %7179 = vrot.lane.b32.xlu1 %v7178_v49, %s7817_s15  ;;  %7174 = vrot.lane.b32.xlu0 %v7178_v49, %s7814_s12  ;;  %v3440_v46 = vsel %vm13942_vm7, %v10017_v24, %v7081_v23  ;;  %vm13943_vm9 = vmmov %vm13942_vm7  ;;  %v7712_v40 = vld [vmem:[%s12918_s3] sm:$0xff]   ;;  %v13948_v24 = vld [vmem:[#allocation126_spill] sm:$0xff]  ;;  %vm13950_vm7 = vcmp.lt.s32.totalorder %v7944_v3, 1 }
 0x2a0   : > { %v3441_v13 = vsel %vm13943_vm9, %v10020_v50, %v7082_v22  ;;  %v13944_v2 = vld [vmem:[#allocation125_spill] sm:$0xff]  ;;  %vm13945_vm2 = vmmov %vm13941_vm1  ;;  %v3506_v52 = vpack.c.bf16 %v7092_v33, %v7091_v37  ;;  %vm13946_vm1 = vcmask 785408   ;;  %v10346_v50 = vsel %vm13950_vm7, %v9607_v1, %v13949_v20  ;;  %2455 = vmatpush1.bf16.msra.mxu1 %v7712_v40 }
 0x2a1   : > { %v10336_v5 = vsel %vm13945_vm2, %v13944_v2, %v6622_v34  ;;  %v3473_v49 = vsel %vm13946_vm1, %v3440_v46, %v7091_v37  ;;  %vm13947_vm3 = vmmov %vm13946_vm1  ;;  %v13951_v22 = vunpack.i.h.bf16 %v9561_v61  ;;  %vm10350_vm9 = vcmp.eq.s32.totalorder %v697_v44, 0  ;;  %v7095_v37 = vpop.permute.xlu0 %7094  ;;  %v7105_v41 = vpop.permute.xlu1 %7104  ;;  %2460 = vmatprep.subr.bf16.mxu1 %v13901_v15 }
 0x2a2   : > { %v3474_v27 = vsel %vm13947_vm3, %v3441_v13, %v7092_v33  ;;  %v13952_v34 = vmov 0  ;;  %v13955_v33 = vld [vmem:[#allocation44_spill] sm:$0xff]  ;;  %v7101_v2 = vunpack.i.l.bf16 %v7100_v48  ;;  %v7097_v23 = vunpack.i.h.bf16 %v7095_v37 }
 0x2a3   : > { %v1532_v51 = vrot.slane %v13951_v22, 1  ;;  %v13953_v34 = vsel %vm10350_vm9, 4294967295, %v13952_v34  ;;  %v3505_v46 = vpack.c.bf16 %v3474_v27, %v3473_v49  ;;  %vm13956_vm3 = vnez %v13955_v33  ;;  %v13960_v49 = vld [vmem:[#allocation137_spill] sm:$0xff] }
 0x2a4   : > { %13954 = vst [vmem:[#allocation127_spill] sm:$0xff] %v13953_v34  ;;  %v2821_v13 = vsel %vm13956_vm3, 0.0, %v10002_v57  ;;  %v7096_v17 = vunpack.i.l.bf16 %v7095_v37  ;;  %vm13957_vm2 = vcmask 130048   ;;  %v6636_v1 = vunpack.i.l.bf16 %v13948_v24 }
 0x2a5   : > { %6311 = vmatprep.mubr.msk.bf16.mxu0 %vm13957_vm2, %v3506_v52  ;;  %vm13958_vm1 = vmmov %vm13957_vm2  ;;  %v7102_v20 = vunpack.i.h.bf16 %v7100_v48  ;;  %v1469_v27 = vsel %vm13767_vm5, 0.0, %v10346_v50  ;;  %vm13961_vm3 = vcmask 261120   ;;  %v7110_v48 = vpop.permute.xlu0 %7109 }
 0x2a6   : > { %v3174_v61 = vsel %vm13958_vm1, %v10071_v32, %v7087_v35  ;;  %vm13959_vm7 = vmmov %vm13958_vm1  ;;  %3727 = vmatmul.mubr.bf16.gmra.mxu0 %v3505_v46  ;;  %v7713_v32 = vld [vmem:[%s12918_s3 + $0x68] ss:$0 sps:$4 sm:$0xff]   ;;  %vm13964_vm1 = vcmp.lt.s32.totalorder %v7944_v3, 7  ;;  %v7111_v50 = vunpack.i.l.bf16 %v7110_v48  ;;  %v7107_v46 = vunpack.i.h.bf16 %v7105_v41 }
 0x2a7   : > { %v3173_v44 = vsel %vm13959_vm7, %v2821_v13, %v7086_v47  ;;  %vm13962_vm2 = vmmov %vm13961_vm3  ;;  %v13963_v47 = vld [vmem:[#allocation120_spill] sm:$0xff]  ;;  %vm13243_vm7 = vcmask 1043456   ;;  %v7106_v13 = vunpack.i.l.bf16 %v7105_v41  ;;  %v7714_v41 = vld [vmem:[%s12918_s3 + $0x60] sm:$0xff]  }
 0x2a8   : > { %v10369_v52 = vsel %vm13961_vm3, %v3173_v44, %v7096_v17  ;;  %v10372_v22 = vsel %vm13962_vm2, %v3174_v61, %v7097_v23  ;;  %v1565_v40 = vsel %vm13964_vm1, %v1532_v51, %v13963_v47  ;;  %v7112_v17 = vunpack.i.h.bf16 %v7110_v48  ;;  %vm13966_vm2 = vmmov %vm13964_vm1  ;;  %v7120_v48 = vpop.permute.xlu1 %7119 }
 0x2a9   : > { %v7188_v35 = vpack.i.bf16 %v10372_v22, %v10369_v52  ;;  %vm13965_vm3 = vcmask 392192   ;;  %v1534_v37 = vsel %vm13966_vm2, %v9781_v56, %v1532_v51  ;;  %v2438_v44 = vsel %vm13243_vm7, %v7713_v32, 0 }
 0x2aa   : > { %v3442_v23 = vsel %vm13965_vm3, %v10040_v36, %v7101_v2  ;;  %vm13967_vm5 = vmmov %vm13965_vm3  ;;  %v3508_v47 = vpack.c.bf16 %v7112_v17, %v7111_v50  ;;  %vm13968_vm1 = vcmask 785408   ;;  %v1661_v56 = vsel %vm10129_vm8, 0.0, %v1565_v40  ;;  %2461 = vmatpush2.bf16.msra.mxu1 %v2438_v44  ;;  %v13974_v44 = vld [vmem:[#allocation135_spill] sm:$0xff] }
 0x2ab   : > { %7189 = vrot.lane.b32.xlu1 %v7188_v35, %s7817_s15  ;;  %7184 = vrot.lane.b32.xlu0 %v7188_v35, %s7814_s12  ;;  %v3443_v61 = vsel %vm13967_vm5, %v10043_v58, %v7102_v20  ;;  %v3475_v57 = vsel %vm13968_vm1, %v3442_v23, %v7111_v50  ;;  %vm13969_vm3 = vmmov %vm13968_vm1  ;;  %v6802_v51 = vunpack.i.h.bf16 %v9862_v11  ;;  %v6801_v58 = vunpack.i.l.bf16 %v9862_v11  ;;  %v7115_v20 = vpop.permute.xlu0 %7114 }
 0x2ac   : > { %v3476_v36 = vsel %vm13969_vm3, %v3443_v61, %v7112_v17  ;;  %v6812_v2 = vunpack.i.h.bf16 %v9885_v43  ;;  %2462 = vmatprep.subr.bf16.mxu1 %v13901_v15  ;;  %vm13970_vm5 = vcmp.lt.s32.totalorder %v7944_v3, 1  ;;  %v2823_v40 = vsel %vm10350_vm9, 0.0, %v10067_v28 }
 0x2ad   : > { %v3507_v32 = vpack.c.bf16 %v3476_v36, %v3475_v57  ;;  %v2761_v35 = vsel %vm13970_vm5, %v10058_v31, %v9827_v39  ;;  %v7117_v17 = vunpack.i.h.bf16 %v7115_v20  ;;  %v7116_v50 = vunpack.i.l.bf16 %v7115_v20 }
 0x2ae   : > { %vm13971_vm2 = vcmask 130048   ;;  %v7122_v57 = vunpack.i.h.bf16 %v7120_v48  ;;  %v7121_v61 = vunpack.i.l.bf16 %v7120_v48  ;;  %v1475_v36 = vsel %vm13806_vm0, 0.0, %v13974_v44  ;;  %2463 = vmatpush2.bf16.msra.mxu1 %v7714_v41 }
 0x2af   : > { %6312 = vmatprep.mubr.msk.bf16.mxu0 %vm13971_vm2, %v3508_v47  ;;  %vm13972_vm1 = vmmov %vm13971_vm2  ;;  %v13975_v39 = vunpack.i.l.bf16 %v13925_v0  ;;  %vm13976_vm5 = vcmask 195584   ;;  %vm13977_vm7 = vcmask 261120   ;;  %v7125_v48 = vpop.permute.xlu0 %7124  ;;  %2464 = vmatprep.subr.bf16.mxu1 %v13901_v15  ;;  %vm13979_vm2 = vcmask 392192  }
 0x2b0   : > { %v3176_v11 = vsel %vm13972_vm1, %v2761_v35, %v7107_v46  ;;  %vm13973_vm3 = vmmov %vm13972_vm1  ;;  %3735 = vmatmul.mubr.bf16.gmra.mxu0 %v3507_v32  ;;  %v7715_v46 = vld [vmem:[%s12918_s3 + $0x58] sm:$0xff]   ;;  %v7203_v32 = vpack.i.bf16 %v1661_v56, %v1534_v37  ;;  %v7127_v35 = vunpack.i.h.bf16 %v7125_v48  ;;  %v7126_v41 = vunpack.i.l.bf16 %v7125_v48 }
 0x2b1   : > { %v3175_v23 = vsel %vm13973_vm3, %v2823_v40, %v7106_v13  ;;  %v1887_v31 = vsel %vm13976_vm5, %v1469_v27, %v13975_v39  ;;  %vm13978_vm8 = vmmov %vm13977_vm7  ;;  %v6811_v13 = vunpack.i.l.bf16 %v9885_v43  ;;  %v13981_v40 = vld [vmem:[#allocation138_spill] sm:$0xff]  ;;  %vm13985_vm5 = vcmask 785408   ;;  %v13990_v39 = vld [vmem:[#allocation68_spill] sm:$0xff] }
 0x2b2   : > { %v3207_v28 = vsel %vm13977_vm7, %v3175_v23, %v7116_v50  ;;  %v3208_v20 = vsel %vm13978_vm8, %v3176_v11, %v7117_v17  ;;  %v10428_v0 = vsel %vm13979_vm2, %v1887_v31, %v6801_v58  ;;  %vm13980_vm1 = vmmov %vm13979_vm2  ;;  %v6652_v17 = vunpack.i.h.bf16 %v13981_v40  ;;  %2465 = vmatpush2.bf16.msra.mxu1 %v7715_v46 }
 0x2b3   : > { %v7198_v47 = vpack.i.bf16 %v3208_v20, %v3207_v28  ;;  %v10432_v27 = vsel %vm13980_vm1, %v10315_v19, %v6802_v51  ;;  %vm13982_vm8 = vmmov %vm13980_vm1  ;;  %v3510_v19 = vpack.c.bf16 %v7127_v35, %v7126_v41  ;;  %v10452_v58 = vsel %vm13980_vm1, %v10323_v21, %v6811_v13  ;;  %2466 = vmatprep.subr.bf16.mxu1 %v13901_v15  ;;  %v13992_v21 = vld [vmem:[#allocation141_spill] sm:$0xff] }
 0x2b4   : > { %v10437_v50 = vsel %vm13982_vm8, %v10319_v14, %v6812_v2  ;;  %vm13983_vm7 = vmmov %vm13980_vm1  ;;  %v7716_v14 = vld [vmem:[%s12918_s3 + $0x50] sm:$0xff]   ;;  %v13987_v2 = vld [vmem:[#allocation130_spill] sm:$0xff]  ;;  %v6852_v31 = vunpack.i.h.bf16 %v13990_v39  ;;  %v6851_v28 = vunpack.i.l.bf16 %v13990_v39  ;;  %vm13991_vm8 = vcmask 130048  }
 0x2b5   : > { %7199 = vrot.lane.b32.xlu1 %v7198_v47, %s7817_s15  ;;  %7194 = vrot.lane.b32.xlu0 %v7198_v47, %s7814_s12  ;;  %v3444_v43 = vsel %vm13983_vm7, %v10088_v9, %v7121_v61  ;;  %vm13984_vm3 = vmmov %vm13980_vm1  ;;  %v6842_v11 = vunpack.i.h.bf16 %v13987_v2  ;;  %v6841_v9 = vunpack.i.l.bf16 %v13987_v2  ;;  %v6667_v20 = vunpack.i.h.bf16 %v13992_v21  ;;  %v14006_v39 = vld [vmem:[#allocation116_spill] sm:$0xff] }
 0x2b6   : > { %v3445_v37 = vsel %vm13984_vm3, %v10085_v10, %v7122_v57  ;;  %v3477_v56 = vsel %vm13985_vm5, %v3444_v43, %v7126_v41  ;;  %vm13986_vm2 = vmmov %vm13985_vm5  ;;  %v6651_v10 = vunpack.i.l.bf16 %v13981_v40  ;;  %v13988_v57 = vld [vmem:[#allocation142_spill] sm:$0xff]  ;;  %6313 = vmatprep.mubr.msk.bf16.mxu0 %vm13991_vm8, %v3510_v19  ;;  %v6666_v46 = vunpack.i.l.bf16 %v13992_v21  ;;  %v13998_v43 = vld [vmem:[#allocation144_spill] sm:$0xff]  ;;  %2467 = vmatpush2.bf16.msra.mxu1 %v7716_v14 }
 0x2b7   : > { %v3478_v51 = vsel %vm13986_vm2, %v3445_v37, %v7127_v35  ;;  %v1479_v44 = vsel %vm13831_vm13, 0.0, %v13988_v57  ;;  %v13993_v13 = vsel %vm13791_vm10, 0.0, %v13960_v49  ;;  %vm13994_vm7 = vcmask 195584   ;;  %v13996_v35 = vld [vmem:[#allocation136_spill] sm:$0xff]  ;;  %vm14002_vm2 = vmmov %vm13980_vm1  ;;  %2468 = vmatprep.subr.bf16.mxu1 %v13901_v15 }
 0x2b8   : > { %v3509_v23 = vpack.c.bf16 %v3478_v51, %v3477_v56  ;;  %v1891_v47 = vsel %vm13994_vm7, %v13993_v13, %v6636_v1  ;;  %v13995_v48 = vunpack.i.h.bf16 %v13948_v24  ;;  %vm13997_vm3 = vmmov %vm13994_vm7  ;;  %v13246_v40 = vmov 0.0   ;;  %v14007_v13 = vld [vmem:[#allocation140_spill] sm:$0xff] }
 0x2b9   : > { %7204 = vrot.lane.b32.xlu1 %v7203_v32, %s7817_s15  ;;  %3397 = vrot.lane.b32.xlu0 %v13246_v40, %s7814_s12  ;;  %v1477_v19 = vsel %vm13816_vm11, 0.0, %v13998_v43  ;;  %v14000_v56 = vunpack.i.l.bf16 %v13936_v7  ;;  %vm14001_vm5 = vmmov %vm13997_vm3  ;;  %v7213_v24 = vpack.i.bf16 %v10437_v50, %v10452_v58  ;;  %v7208_v1 = vpack.i.bf16 %v10432_v27, %v10428_v0  ;;  %v7717_v32 = vld [vmem:[%s12918_s3 + $0x48] sm:$0xff]   ;;  %v14003_v7 = vld [vmem:[#allocation129_spill] sm:$0xff]  ;;  %s14011_s12 = smov 72  }
 0x2ba   : > { %v1892_v41 = vsel %vm13997_vm3, %v13996_v35, %v13995_v48  ;;  %3743 = vmatmul.mubr.bf16.gmra.mxu0 %v3509_v23  ;;  %v10497_v2 = vsel %vm13980_vm1, %v1891_v47, %v6841_v9  ;;  %v6881_v57 = vunpack.i.l.bf16 %v14003_v7  ;;  %vm14004_vm8 = vmmov %vm13980_vm1  ;;  %v6892_v21 = vunpack.i.h.bf16 %v14006_v39  ;;  %v14009_v48 = vld [vmem:[#allocation143_spill] sm:$0xff]  ;;  %v14014_v43 = vld [vmem:[#allocation154_spill] sm:$0xff]  ;;  %2469 = vmatpush2.bf16.msra.mxu1 %v7717_v32 }
 0x2bb   : > { %v1893_v49 = vsel %vm14001_vm5, %v1475_v36, %v14000_v56  ;;  %v10494_v51 = vsel %vm14002_vm2, %v1892_v41, %v6842_v11  ;;  %v6882_v36 = vunpack.i.h.bf16 %v14003_v7  ;;  %v10504_v23 = vsel %vm14004_vm8, %v10336_v5, %v6852_v31  ;;  %vm14005_vm7 = vmmov %vm13980_vm1  ;;  %v14013_v31 = vld [vmem:[#allocation151_spill] sm:$0xff]  ;;  %2470 = vmatprep.subr.bf16.mxu1 %v13901_v15 }
 0x2bc   : > { %v10507_v14 = vsel %vm14005_vm7, %v1893_v49, %v6851_v28  ;;  %v6891_v11 = vunpack.i.l.bf16 %v14006_v39  ;;  %v1897_v9 = vsel %vm13997_vm3, %v1479_v44, %v6651_v10  ;;  %vm14008_vm5 = vmmov %vm13997_vm3  ;;  %v6697_v28 = vunpack.i.h.bf16 %v14013_v31  ;;  %v14068_v56 = vld [vmem:[#allocation147_spill] sm:$0xff] }
 0x2bd   : > { %v1898_v47 = vsel %vm14008_vm5, %v14007_v13, %v6652_v17  ;;  %vm14010_vm2 = vmmov %vm13997_vm3  ;;  %7214 = vrot.lane.b32.xlu1 %v7213_v24, %s14011_s12  ;;  %7209 = vrot.lane.b32.xlu0 %v7208_v1, %s14011_s12  ;;  %v6696_v41 = vunpack.i.l.bf16 %v14013_v31  ;;  %v1481_v10 = vsel %vm13843_vm4, 0.0, %v14014_v43  ;;  %v14019_v1 = vld [vmem:[#allocation128_spill] sm:$0xff]  ;;  %v6971_v59 = vunpack.i.l.bf16 %v14068_v56 }
 0x2be   : > { %v1896_v35 = vsel %vm14010_vm2, %v14009_v48, %v6667_v20  ;;  %vm14012_vm1 = vmmov %vm14010_vm2  ;;  %v7223_v20 = vpack.i.bf16 %v10504_v23, %v10507_v14  ;;  %v6922_v32 = vunpack.i.h.bf16 %v14019_v1  ;;  %v6921_v7 = vunpack.i.l.bf16 %v14019_v1  ;;  %v14021_v13 = vld [vmem:[#allocation152_spill] sm:$0xff] }
 0x2bf   : > { %v1895_v5 = vsel %vm14012_vm1, %v1477_v19, %v6666_v46  ;;  %vm14016_vm8 = vmmov %vm14005_vm7  ;;  %v7218_v46 = vpack.i.bf16 %v10494_v51, %v10497_v2  ;;  %v6932_v1 = vunpack.i.h.bf16 %v10152_v18 }
 0x2c0   : > { %v10525_v17 = vsel %vm14016_vm8, %v1896_v35, %v6882_v36  ;;  %v10528_v44 = vsel %vm14005_vm7, %v1895_v5, %v6881_v57  ;;  %vm14017_vm3 = vmmov %vm14005_vm7  ;;  %v7718_v36 = vld [vmem:[%s12918_s3 + $0x40] sm:$0xff]  }
 0x2c1   : > { %v10536_v19 = vsel %vm14017_vm3, %v1898_v47, %v6892_v21  ;;  %vm14018_vm5 = vmmov %vm14017_vm3  ;;  %7224 = vrot.lane.b32.xlu1 %v7223_v20, %s14011_s12  ;;  %7219 = vrot.lane.b32.xlu0 %v7218_v46, %s14011_s12  ;;  %v14020_v57 = vld [vmem:[#allocation145_spill] sm:$0xff]  ;;  %v7228_v5 = vpack.i.bf16 %v10525_v17, %v10528_v44 }
 0x2c2   : > { %v10539_v49 = vsel %vm14018_vm5, %v1897_v9, %v6891_v11  ;;  %v6682_v39 = vunpack.i.h.bf16 %v14020_v57  ;;  %v6681_v21 = vunpack.i.l.bf16 %v14020_v57  ;;  %v1483_v11 = vsel %vm13853_vm14, 0.0, %v14021_v13  ;;  %vm14022_vm2 = vmmov %vm14012_vm1  ;;  %v14023_v47 = vld [vmem:[#allocation153_spill] sm:$0xff]  ;;  %2471 = vmatpush2.bf16.msra.mxu1 %v7718_v36 }
 0x2c3   : > { %v1899_v9 = vsel %vm14022_vm2, %v1481_v10, %v6696_v41  ;;  %v1900_v48 = vsel %vm14012_vm1, %v14023_v47, %v6697_v28  ;;  %v10558_v35 = vpack.i.bf16 %v10536_v19, %v10539_v49  ;;  %vm14024_vm8 = vmmov %vm14017_vm3  ;;  %v6931_v41 = vunpack.i.l.bf16 %v10152_v18  ;;  %6492 = vmatprep.subr.bf16.mxu1 %v13901_v15  ;;  %v14026_v28 = vld [vmem:[#allocation146_spill] sm:$0xff]  ;;  %v14028_v36 = vld [vmem:[#allocation157_spill] sm:$0xff] }
 0x2c4   : > { %v10563_v31 = vsel %vm14024_vm8, %v1900_v48, %v6922_v32  ;;  %vm14025_vm7 = vmmov %vm14017_vm3  ;;  %v6722_v32 = vunpack.i.h.bf16 %v14028_v36  ;;  %v6721_v57 = vunpack.i.l.bf16 %v14028_v36  ;;  %vm14035_vm8 = vnez %v13879_v8 }
 0x2c5   : > { %v10566_v43 = vsel %vm14025_vm7, %v1899_v9, %v6921_v7  ;;  %7234 = vrot.lane.b32.xlu1 %v10558_v35, %s14011_s12  ;;  %7229 = vrot.lane.b32.xlu0 %v7228_v5, %s14011_s12  ;;  %vm14027_vm3 = vmmov %vm14012_vm1  ;;  %v14029_v7 = vld [vmem:[#allocation160_spill] sm:$0xff] }
 0x2c6   : > { %v1902_v10 = vsel %vm14027_vm3, %v14026_v28, %v6682_v39  ;;  %v1485_v13 = vsel %vm13867_vm6, 0.0, %v14029_v7  ;;  %vm14030_vm5 = vmmov %vm14012_vm1  ;;  %v10584_v9 = vpack.i.bf16 %v10563_v31, %v10566_v43  ;;  %v6942_v39 = vunpack.i.h.bf16 %v10113_v55  ;;  %v14034_v7 = vld [vmem:[#allocation158_spill] sm:$0xff] }
 0x2c7   : > { %v1901_v18 = vsel %vm14030_vm5, %v1483_v11, %v6681_v21  ;;  %vm14031_vm2 = vmmov %vm14025_vm7  ;;  %v6941_v28 = vunpack.i.l.bf16 %v10113_v55  ;;  %v14033_v21 = vld [vmem:[#allocation148_spill] sm:$0xff] }
 0x2c8   : > { %v10587_v47 = vsel %vm14031_vm2, %v1902_v10, %v6932_v1  ;;  %vm14032_vm1 = vmmov %vm14031_vm2  ;;  %v6712_v11 = vunpack.i.h.bf16 %v14033_v21  ;;  %v6711_v36 = vunpack.i.l.bf16 %v14033_v21  ;;  %v1487_v1 = vsel %vm14035_vm8, 0.0, %v14034_v7  ;;  %v14037_v10 = vld [vmem:[#allocation159_spill] sm:$0xff] }
 0x2c9   : > { %v10590_v48 = vsel %vm14032_vm1, %v1901_v18, %v6931_v41  ;;  %7244 = vrot.lane.b32.xlu1 %v10584_v9, %s14011_s12  ;;  %7239 = vrot.lane.b32.xlu0 %v7213_v24, %s7821_s13  ;;  %vm14036_vm7 = vmmov %vm14027_vm3  ;;  %v1904_v18 = vsel %vm14027_vm3, %v14037_v10, %v6722_v32  ;;  %v6952_v21 = vunpack.i.h.bf16 %v10154_v6 }
 0x2ca   : > { %v1903_v41 = vsel %vm14036_vm7, %v1485_v13, %v6721_v57  ;;  %v7253_v55 = vpack.i.bf16 %v10587_v47, %v10590_v48  ;;  %vm14038_vm5 = vmmov %vm14032_vm1  ;;  %v14040_v57 = vld [vmem:[#allocation150_spill] sm:$0xff]  ;;  %v14042_v13 = vld [vmem:[#allocation163_spill] sm:$0xff]  ;;  %vm14044_vm7 = vnez %v13890_v60 }
 0x2cb   : > { %v10608_v40 = vsel %vm14038_vm5, %v1904_v18, %v6942_v39  ;;  %vm14039_vm2 = vmmov %vm14032_vm1  ;;  %v6752_v7 = vunpack.i.h.bf16 %v14042_v13  ;;  %v6751_v10 = vunpack.i.l.bf16 %v14042_v13  ;;  %v14043_v39 = vld [vmem:[#allocation166_spill] sm:$0xff]  ;;  %v14048_v13 = vld [vmem:[#allocation155_spill] sm:$0xff] }
 0x2cc   : > { %v10611_v24 = vsel %vm14039_vm2, %v1903_v41, %v6941_v28  ;;  %vm14041_vm1 = vmmov %vm14027_vm3  ;;  %v1489_v28 = vsel %vm14044_vm7, 0.0, %v14043_v39  ;;  %v6742_v39 = vunpack.i.h.bf16 %v14048_v13 }
 0x2cd   : > { %7254 = vrot.lane.b32.xlu1 %v7253_v55, %s14011_s12  ;;  %7249 = vrot.lane.b32.xlu0 %v7218_v46, %s7821_s13  ;;  %v1906_v32 = vsel %vm14041_vm1, %v14040_v57, %v6712_v11  ;;  %vm14045_vm3 = vmmov %vm14041_vm1  ;;  %v7263_v6 = vpack.i.bf16 %v10608_v40, %v10611_v24  ;;  %v14047_v11 = vld [vmem:[#allocation131_spill] sm:$0xff]  ;;  %vm14050_vm1 = vnez %v13902_v25 }
 0x2ce   : > { %v1905_v41 = vsel %vm14045_vm3, %v1487_v1, %v6711_v36  ;;  %vm14046_vm5 = vmmov %vm14039_vm2  ;;  %v6957_v57 = vunpack.i.h.bf16 %v14047_v11  ;;  %v6956_v8 = vunpack.i.l.bf16 %v14047_v11  ;;  %v6741_v36 = vunpack.i.l.bf16 %v14048_v13  ;;  %v14049_v1 = vld [vmem:[#allocation164_spill] sm:$0xff] }
 0x2cf   : > { %v10628_v18 = vsel %vm14046_vm5, %v1906_v32, %v6952_v21  ;;  %v10631_v46 = vsel %vm14039_vm2, %v1905_v41, %v6951_v16  ;;  %v1491_v21 = vsel %vm14050_vm1, 0.0, %v14049_v1  ;;  %v1907_v32 = vsel %vm14045_vm3, %v1489_v28, %v6751_v10  ;;  %v14051_v16 = vld [vmem:[#allocation165_spill] sm:$0xff]  ;;  %vm14052_vm5 = vmmov %vm14045_vm3  ;;  %v14055_v10 = vld [vmem:[#allocation156_spill] sm:$0xff] }
 0x2d0   : > { %v1908_v41 = vsel %vm14052_vm5, %v14051_v16, %v6752_v7  ;;  %v7273_v11 = vpack.i.bf16 %v10628_v18, %v10631_v46  ;;  %vm14053_vm7 = vmmov %vm14039_vm2  ;;  %v6962_v13 = vunpack.i.h.bf16 %v14054_v4  ;;  %v1910_v7 = vsel %vm14045_vm3, %v14055_v10, %v6742_v39  ;;  %v14056_v28 = vld [vmem:[#allocation168_spill] sm:$0xff]  ;;  %v14060_v39 = vld [vmem:[#allocation93_spill] sm:$0xff] }
 0x2d1   : > { %7264 = vrot.lane.b32.xlu1 %v7263_v6, %s14011_s12  ;;  %7259 = vrot.lane.b32.xlu0 %v7223_v20, %s7821_s13  ;;  %v10648_v60 = vsel %vm14039_vm2, %v1908_v41, %v6957_v57  ;;  %v10651_v20 = vsel %vm14053_vm7, %v1907_v32, %v6956_v8  ;;  %v6772_v1 = vunpack.i.h.bf16 %v14056_v28  ;;  %v6771_v16 = vunpack.i.l.bf16 %v14056_v28  ;;  %v14057_v57 = vld [vmem:[#allocation171_spill] sm:$0xff]  ;;  %vm14058_vm7 = vmmov %vm14045_vm3  ;;  %v14061_v28 = vld [vmem:[#allocation161_spill] sm:$0xff] }
 0x2d2   : > { %v1493_v8 = vsel %vm13914_vm15, 0.0, %v14057_v57  ;;  %v1909_v32 = vsel %vm14058_vm7, %v1491_v21, %v6741_v36  ;;  %v7283_v4 = vpack.i.bf16 %v10648_v60, %v10651_v20  ;;  %vm14059_vm5 = vmmov %vm14039_vm2  ;;  %v6967_v10 = vunpack.i.h.bf16 %v14060_v39  ;;  %v14062_v57 = vld [vmem:[#allocation169_spill] sm:$0xff] }
 0x2d3   : > { %v10668_v41 = vsel %vm14059_vm5, %v1910_v7, %v6962_v13  ;;  %v6966_v25 = vunpack.i.l.bf16 %v14060_v39  ;;  %v6762_v36 = vunpack.i.h.bf16 %v14061_v28  ;;  %v6761_v21 = vunpack.i.l.bf16 %v14061_v28  ;;  %v14063_v7 = vld [vmem:[#allocation170_spill] sm:$0xff]  ;;  %vm14064_vm7 = vmmov %vm14045_vm3 }
 0x2d4   : > { %v1495_v13 = vsel %vm13927_vm12, 0.0, %v14062_v57  ;;  %vm14065_vm5 = vmmov %vm14039_vm2  ;;  %v6972_v28 = vunpack.i.h.bf16 %v14068_v56  ;;  %vm14080_vm12 = vcmask 130048  }
 0x2d5   : > { %7274 = vrot.lane.b32.xlu1 %v7273_v11, %s14011_s12  ;;  %7269 = vrot.lane.b32.xlu0 %v7228_v5, %s7821_s13  ;;  %v10671_v5 = vsel %vm14039_vm2, %v1909_v32, %v6961_v12  ;;  %v1911_v12 = vsel %vm14045_vm3, %v1493_v8, %v6771_v16  ;;  %v1912_v32 = vsel %vm14064_vm7, %v14063_v7, %v6772_v1  ;;  %v14069_v16 = vld [vmem:[#allocation162_spill] sm:$0xff]  ;;  %vm14070_vm7 = vmmov %vm14045_vm3 }
 0x2d6   : > { %v7293_v39 = vpack.i.bf16 %v10668_v41, %v10671_v5  ;;  %v10689_v63 = vsel %vm14065_vm5, %v1912_v32, %v6967_v10  ;;  %v1914_v1 = vsel %vm14045_vm3, %v14069_v16, %v6762_v36  ;;  %v1913_v8 = vsel %vm14070_vm7, %v1495_v13, %v6761_v21  ;;  %vm14071_vm5 = vmmov %vm14039_vm2  ;;  %v14076_v32 = vld [vmem:[#allocation134_spill] sm:$0xff] }
 0x2d7   : > { %14066 = vst [vmem:[#allocation121_spill] sm:$0xff] %v10689_v63  ;;  %v10708_v57 = vsel %vm14039_vm2, %v1913_v8, %v6971_v59  ;;  %vm14075_vm3 = vmmov %vm14039_vm2 }
 0x2d8   : > { %14073 = vst [vmem:[#allocation124_spill] sm:$0xff] %v10708_v57  ;;  %vm14077_vm7 = vmmov %vm14039_vm2 }
 0x2d9   : > { %7284 = vrot.lane.b32.xlu1 %v7283_v4, %s14011_s12  ;;  %7279 = vrot.lane.b32.xlu0 %v10558_v35, %s7821_s13  ;;  %v10692_v35 = vsel %vm14039_vm2, %v1911_v12, %v6966_v25  ;;  %v10705_v25 = vsel %vm14071_vm5, %v1914_v1, %v6972_v28  ;;  %v14074_v12 = vld [vmem:[#allocation88_spill] sm:$0xff]  ;;  %vm14078_vm5 = vcmask 785408  }
 0x2da   : > { %14067 = vst [vmem:[#allocation115_spill] sm:$0xff] %v10692_v35  ;;  %v7303_v10 = vpack.i.bf16 %v10689_v63, %v10692_v35  ;;  %14072 = vst [vmem:[#allocation122_spill] sm:$0xff] %v10705_v25  ;;  %v10714_v56 = vpack.i.bf16 %v10705_v25, %v10708_v57  ;;  %v14130_v57 = vld [vmem:[#allocation10_spill] sm:$0xff] }
 0x2db   : > { %vm14079_vm2 = vmmov %vm14078_vm5 }
 0x2dc   : > { %vm14091_vm15 = vmmov %vm14079_vm2 }
 0x2dd   : > { %7294 = vrot.lane.b32.xlu1 %v7293_v39, %s14011_s12  ;;  %7289 = vrot.lane.b32.xlu0 %v10584_v9, %s7821_s13  ;;  %v7130_v9 = vpop.permute.xlu1 %7129 }
 0x2de   : > { %v7132_v59 = vunpack.i.h.bf16 %v7130_v9 }
 0x2e1   : > { %7304 = vrot.lane.b32.xlu1 %v7303_v10, %s14011_s12  ;;  %7299 = vrot.lane.b32.xlu0 %v7253_v55, %s7821_s13  ;;  %v7131_v55 = vunpack.i.l.bf16 %v7130_v9 }
 0x2e3   : > { %v3446_v7 = vsel %vm14075_vm3, %v14074_v12, %v7131_v55  ;;  %v14082_v12 = vld [vmem:[#allocation16_spill] sm:$0xff] }
 0x2e5   : > { %7314 = vrot.lane.b32.xlu1 %v10714_v56, %s14011_s12  ;;  %7309 = vrot.lane.b32.xlu0 %v7263_v6, %s7821_s13  ;;  %v3447_v6 = vsel %vm14077_vm7, %v14076_v32, %v7132_v59  ;;  %vm14083_vm7 = vmmov %vm14075_vm3 }
 0x2e9   : > { %7324 = vrot.lane.b32.xlu1 %v7283_v4, %s7821_s13  ;;  %7319 = vrot.lane.b32.xlu0 %v7273_v11, %s7821_s13 }
 0x2ea   : > { %v7135_v36 = vpop.permute.xlu0 %7134 }
 0x2eb   : > { %v7137_v21 = vunpack.i.h.bf16 %v7135_v36  ;;  %v7136_v13 = vunpack.i.l.bf16 %v7135_v36 }
 0x2ed   : > { %7334 = vrot.lane.b32.xlu1 %v7303_v10, %s7821_s13  ;;  %7329 = vrot.lane.b32.xlu0 %v7293_v39, %s7821_s13  ;;  %v3512_v28 = vpack.c.bf16 %v7137_v21, %v7136_v13  ;;  %v3479_v4 = vsel %vm14078_vm5, %v3446_v7, %v7136_v13  ;;  %v3480_v11 = vsel %vm14079_vm2, %v3447_v6, %v7137_v21  ;;  %v7140_v39 = vpop.permute.xlu1 %7139  ;;  %vm14084_vm5 = vmmov %vm14079_vm2 }
 0x2ee   : > { %v3511_v16 = vpack.c.bf16 %v3480_v11, %v3479_v4  ;;  %v7142_v1 = vunpack.i.h.bf16 %v7140_v39  ;;  %v7141_v8 = vunpack.i.l.bf16 %v7140_v39 }
 0x2ef   : > { %6314 = vmatprep.mubr.msk.bf16.mxu0 %vm14080_vm12, %v3512_v28 }
 0x2f0   : > { %3751 = vmatmul.mubr.bf16.gmra.mxu0 %v3511_v16  ;;  %v3448_v55 = vsel %vm14075_vm3, %v14081_v54, %v7141_v8  ;;  %v3449_v59 = vsel %vm14083_vm7, %v14082_v12, %v7142_v1  ;;  %v14085_v8 = vld [vmem:[#allocation81_spill] sm:$0xff]  ;;  %vm14086_vm7 = vmmov %vm14075_vm3 }
 0x2f8   : > { %v7145_v10 = vpop.permute.xlu0 %7144  ;;  %v7150_v32 = vpop.permute.xlu1 %7149 }
 0x2f9   : > { %v7147_v9 = vunpack.i.h.bf16 %v7145_v10  ;;  %v7146_v36 = vunpack.i.l.bf16 %v7145_v10  ;;  %v7152_v28 = vunpack.i.h.bf16 %v7150_v32  ;;  %v7151_v4 = vunpack.i.l.bf16 %v7150_v32 }
 0x2fb   : > { %v3514_v13 = vpack.c.bf16 %v7147_v9, %v7146_v36  ;;  %v3481_v21 = vsel %vm14084_vm5, %v3448_v55, %v7146_v36  ;;  %v3482_v7 = vsel %vm14079_vm2, %v3449_v59, %v7147_v9  ;;  %v3450_v54 = vsel %vm14075_vm3, %v10178_v29, %v7151_v4  ;;  %vm14087_vm5 = vmmov %vm14079_vm2 }
 0x2fc   : > { %v3513_v6 = vpack.c.bf16 %v3482_v7, %v3481_v21  ;;  %v3451_v1 = vsel %vm14086_vm7, %v14085_v8, %v7152_v28  ;;  %vm14088_vm7 = vmmov %vm14075_vm3 }
 0x2fd   : > { %6315 = vmatprep.mubr.msk.bf16.mxu0 %vm14080_vm12, %v3514_v13 }
 0x2fe   : > { %3759 = vmatmul.mubr.bf16.gmra.mxu0 %v3513_v6 }
 0x300   : > { %v7155_v11 = vpop.permute.xlu0 %7154  ;;  %v7160_v10 = vpop.permute.xlu1 %7159 }
 0x301   : > { %v7157_v16 = vunpack.i.h.bf16 %v7155_v11  ;;  %v7156_v39 = vunpack.i.l.bf16 %v7155_v11  ;;  %v7162_v59 = vunpack.i.h.bf16 %v7160_v10  ;;  %v7161_v32 = vunpack.i.l.bf16 %v7160_v10 }
 0x303   : > { %v3516_v12 = vpack.c.bf16 %v7157_v16, %v7156_v39  ;;  %v3483_v36 = vsel %vm14087_vm5, %v3450_v54, %v7156_v39  ;;  %v3484_v9 = vsel %vm14079_vm2, %v3451_v1, %v7157_v16  ;;  %v3452_v29 = vsel %vm14075_vm3, %v10201_v62, %v7161_v32  ;;  %vm14089_vm5 = vmmov %vm14079_vm2 }
 0x304   : > { %v3515_v55 = vpack.c.bf16 %v3484_v9, %v3483_v36  ;;  %v3453_v6 = vsel %vm14088_vm7, %v10204_v30, %v7162_v59  ;;  %vm14090_vm7 = vmmov %vm14075_vm3 }
 0x305   : > { %6316 = vmatprep.mubr.msk.bf16.mxu0 %vm14080_vm12, %v3516_v12 }
 0x306   : > { %3767 = vmatmul.mubr.bf16.gmra.mxu0 %v3515_v55 }
 0x309   : > { %v7165_v13 = vpop.permute.xlu0 %7164  ;;  %v7170_v28 = vpop.permute.xlu1 %7169 }
 0x30a   : > { %v7167_v21 = vunpack.i.h.bf16 %v7165_v13  ;;  %v7166_v7 = vunpack.i.l.bf16 %v7165_v13  ;;  %v7172_v54 = vunpack.i.h.bf16 %v7170_v28  ;;  %v7171_v8 = vunpack.i.l.bf16 %v7170_v28  ;;  %v14095_v28 = vld [vmem:[#allocation104_spill] sm:$0xff] }
 0x30c   : > { %v3518_v4 = vpack.c.bf16 %v7167_v21, %v7166_v7  ;;  %v3485_v11 = vsel %vm14089_vm5, %v3452_v29, %v7166_v7  ;;  %v3486_v16 = vsel %vm14079_vm2, %v3453_v6, %v7167_v21  ;;  %v3454_v62 = vsel %vm14075_vm3, %v10232_v53, %v7171_v8  ;;  %vm14092_vm5 = vmmov %vm14079_vm2 }
 0x30d   : > { %v3517_v39 = vpack.c.bf16 %v3486_v16, %v3485_v11  ;;  %v3455_v30 = vsel %vm14090_vm7, %v10235_v42, %v7172_v54  ;;  %vm14093_vm2 = vmmov %vm14080_vm12 }
 0x30e   : > { %6317 = vmatprep.mubr.msk.bf16.mxu0 %vm14080_vm12, %v3518_v4  ;;  %vm14094_vm12 = vmmov %vm14075_vm3 }
 0x30f   : > { %3775 = vmatmul.mubr.bf16.gmra.mxu0 %v3517_v39  ;;  %vm14097_vm7 = vmmov %vm14092_vm5 }
 0x311   : > { %v7175_v1 = vpop.permute.xlu0 %7174  ;;  %v7180_v59 = vpop.permute.xlu1 %7179 }
 0x312   : > { %v7177_v10 = vunpack.i.h.bf16 %v7175_v1  ;;  %v7176_v12 = vunpack.i.l.bf16 %v7175_v1  ;;  %v7182_v13 = vunpack.i.h.bf16 %v7180_v59  ;;  %v7181_v21 = vunpack.i.l.bf16 %v7180_v59 }
 0x314   : > { %v3520_v36 = vpack.c.bf16 %v7177_v10, %v7176_v12  ;;  %v3487_v9 = vsel %vm14091_vm15, %v3454_v62, %v7176_v12  ;;  %v3488_v55 = vsel %vm14092_vm5, %v3455_v30, %v7177_v10  ;;  %v3456_v53 = vsel %vm14094_vm12, %v10263_v26, %v7181_v21  ;;  %vm14096_vm15 = vmmov %vm14092_vm5  ;;  %v14099_v62 = vld [vmem:[#allocation175_spill] sm:$0xff]  ;;  %v14102_v21 = vld [vmem:[#allocation89_spill] sm:$0xff] }
 0x315   : > { %v3519_v32 = vpack.c.bf16 %v3488_v55, %v3487_v9  ;;  %v3457_v42 = vsel %vm14075_vm3, %v14095_v28, %v7182_v13  ;;  %vm14098_vm5 = vmmov %vm14093_vm2  ;;  %v6782_v30 = vunpack.i.h.bf16 %v14099_v62  ;;  %v6781_v26 = vunpack.i.l.bf16 %v14099_v62 }
 0x316   : > { %6318 = vmatprep.mubr.msk.bf16.mxu0 %vm14093_vm2, %v3520_v36  ;;  %vm14101_vm2 = vmmov %vm14075_vm3 }
 0x317   : > { %3783 = vmatmul.mubr.bf16.gmra.mxu0 %v3519_v32  ;;  %v14100_v32 = vld [vmem:[#allocation149_spill] sm:$0xff]  ;;  %vm14103_vm12 = vmmov %vm14101_vm2 }
 0x318   : > { %vm14105_vm3 = vmmov %vm14097_vm7 }
 0x31d   : > { %v7185_v7 = vpop.permute.xlu0 %7184  ;;  %v7190_v4 = vpop.permute.xlu1 %7189 }
 0x31e   : > { %v7187_v29 = vunpack.i.h.bf16 %v7185_v7  ;;  %v7186_v6 = vunpack.i.l.bf16 %v7185_v7  ;;  %v7192_v8 = vunpack.i.h.bf16 %v7190_v4  ;;  %v7191_v1 = vunpack.i.l.bf16 %v7190_v4 }
 0x320   : > { %v3522_v11 = vpack.c.bf16 %v7187_v29, %v7186_v6  ;;  %v3489_v16 = vsel %vm14096_vm15, %v3456_v53, %v7186_v6  ;;  %v3490_v39 = vsel %vm14097_vm7, %v3457_v42, %v7187_v29  ;;  %v3458_v13 = vsel %vm14101_vm2, %v14100_v32, %v7191_v1  ;;  %v14104_v29 = vld [vmem:[#allocation172_spill] sm:$0xff]  ;;  %vm14106_vm15 = vmmov %vm14105_vm3 }
 0x321   : > { %v3521_v54 = vpack.c.bf16 %v3490_v39, %v3489_v16  ;;  %v3459_v7 = vsel %vm14103_vm12, %v14102_v21, %v7192_v8  ;;  %v1499_v6 = vsel %vm10350_vm9, 0.0, %v14104_v29  ;;  %vm14107_vm7 = vmmov %vm14098_vm5  ;;  %v14109_v8 = vld [vmem:[#allocation167_spill] sm:$0xff] }
 0x322   : > { %6319 = vmatprep.mubr.msk.bf16.mxu0 %vm14098_vm5, %v3522_v11  ;;  %vm14108_vm5 = vcmask 195584   ;;  %vm14114_vm1 = vmmov %vm14107_vm7 }
 0x323   : > { %3791 = vmatmul.mubr.bf16.gmra.mxu0 %v3521_v54  ;;  %v1917_v1 = vsel %vm14108_vm5, %v1499_v6, %v6781_v26  ;;  %vm14110_vm2 = vmmov %vm14108_vm5 }
 0x327   : > { %v7200_v10 = vpop.permute.xlu1 %7199  ;;  %v7195_v12 = vpop.permute.xlu0 %7194 }
 0x328   : > { %v7197_v36 = vunpack.i.h.bf16 %v7195_v12  ;;  %v7196_v9 = vunpack.i.l.bf16 %v7195_v12  ;;  %v7202_v55 = vunpack.i.h.bf16 %v7200_v10  ;;  %v7201_v59 = vunpack.i.l.bf16 %v7200_v10 }
 0x329   : > { %v1918_v12 = vsel %vm14110_vm2, %v14109_v8, %v6782_v30  ;;  %vm14120_vm2 = vcmask 130048  }
 0x32a   : > { %v3524_v53 = vpack.c.bf16 %v7197_v36, %v7196_v9  ;;  %v3491_v28 = vsel %vm14105_vm3, %v3458_v13, %v7196_v9  ;;  %v3492_v42 = vsel %vm14106_vm15, %v3459_v7, %v7197_v36  ;;  %v3460_v62 = vsel %vm14103_vm12, %v10369_v52, %v7201_v59  ;;  %vm14111_vm3 = vmmov %vm14103_vm12 }
 0x32b   : > { %v7205_v4 = vpop.permute.xlu1 %7204  ;;  %v3398_v11 = vpop.permute.xlu0 %3397  ;;  %v3523_v16 = vpack.c.bf16 %v3492_v42, %v3491_v28  ;;  %v3461_v36 = vsel %vm14111_vm3, %v10372_v22, %v7202_v55  ;;  %vm14112_vm15 = vmmov %vm14111_vm3  ;;  %v10798_v22 = vld [vmem:[%s12921_s6] ss:$0 sm:$0xff] }
 0x32c   : > { %v7207_v39 = vunpack.i.h.bf16 %v7205_v4  ;;  %v7206_v54 = vunpack.i.l.bf16 %v7205_v4  ;;  %v3526_v10 = vpack.c.bf16 %v3398_v11, %v3398_v11  ;;  %6320 = vmatprep.mubr.msk.bf16.mxu0 %vm14107_vm7, %v3524_v53  ;;  %vm14113_vm9 = vmmov %vm14111_vm3  ;;  %vm14115_vm7 = vcmask 785408  }
 0x32d   : > { %3799 = vmatmul.mubr.bf16.gmra.mxu0 %v3523_v16  ;;  %v3493_v26 = vsel %vm14115_vm7, %v3460_v62, %v3398_v11  ;;  %vm14116_vm5 = vmmov %vm14115_vm7  ;;  %v14117_v16 = vmov 0  ;;  %vm13276_vm3 = vcmask 719872  }
 0x32e   : > { %v1951_v9 = vsel %vm14112_vm15, %v1918_v12, %v7207_v39  ;;  %v1950_v32 = vsel %vm14113_vm9, %v1917_v1, %v7206_v54  ;;  %6321 = vmatprep.mubr.msk.bf16.mxu0 %vm14114_vm1, %v3526_v10  ;;  %v3494_v30 = vsel %vm14116_vm5, %v3461_v36, %v3398_v11  ;;  %vm13275_vm9 = vcmask 588800   ;;  %vm14121_vm12 = vmmov %vm14120_vm2 }
 0x32f   : > { %v7210_v13 = vpop.permute.xlu0 %7209  ;;  %v10787_v21 = vpack.i.bf16 %v1951_v9, %v1950_v32  ;;  %v3525_v29 = vpack.c.bf16 %v3494_v30, %v3493_v26  ;;  %v7215_v52 = vpop.permute.xlu1 %7214  ;;  %vm10803_vm1 = vmneg %vm13275_vm9 }
 0x330   : > { %v7212_v53 = vunpack.i.h.bf16 %v7210_v13  ;;  %v7211_v28 = vunpack.i.l.bf16 %v7210_v13  ;;  %v14118_v16 = vsel %vm10803_vm1, 4294967295, %v14117_v16  ;;  %v7216_v8 = vunpack.i.l.bf16 %v7215_v52  ;;  %vm13274_vm15 = vmpackc.low %vm10803_vm1, %vm10803_vm1 }
 0x331   : > { %14119 = vst [vmem:[#allocation123_spill] sm:$0xff] %v14118_v16  ;;  %v7217_v36 = vunpack.i.h.bf16 %v7215_v52  ;;  %vm14122_vm7 = vmmov %vm14120_vm2 }
 0x332   : > { %v6279_v9 = vpack.c.bf16 %v7212_v53, %v7211_v28  ;;  %vm14123_vm5 = vmmov %vm14120_vm2 }
 0x333   : > { %v10791_v7 = vpop.permute.xlu0 %7219  ;;  %v10800_v55 = vpop.permute.xlu1 %7224 }
 0x334   : > { %v3688_v11 = vpop.f32.mrf.mxu0 }
 0x335   : > { %3807 = vmatmul.mubr.bf16.gmra.mxu0 %v3525_v29  ;;  %v3689_v39 = vadd.f32 %v10798_v22, %v3688_v11 }
 0x336   : > { %v3690_v54 = vpop.f32.mrf.mxu0 }
 0x337   : > { %v10793_v59 = vpop.permute.xlu0 %7229  ;;  %v10813_v30 = vpop.permute.xlu1 %7234  ;;  %v10815_v29 = vmax.f32 %v3689_v39, 0.0  ;;  %v2177_v39 = vsel %vm13275_vm9, %v10428_v0, %v7216_v8  ;;  %v7222_v54 = vunpack.i.h.bf16 %v10791_v7 }
 0x338   : > { %v3691_v26 = vpop.f32.mrf.mxu0 }
 0x33a   : > { %v3693_v52 = vpop.f32.mrf.mxu0 }
 0x33b   : > { %v7240_v6 = vpop.permute.xlu0 %7239 }
 0x33c   : > { %v7242_v42 = vunpack.i.h.bf16 %v7240_v6  ;;  %v7241_v4 = vunpack.i.l.bf16 %v7240_v6  ;;  %v3692_v6 = vadd.f32 %v10798_v22, %v3691_v26  ;;  %v10841_v26 = vpop.permute.xlu1 %7244 }
 0x33e   : > { %v2208_v10 = vsel %vm14120_vm2, %v7211_v28, %v7241_v4  ;;  %v2209_v1 = vsel %vm14121_vm12, %v7212_v53, %v7242_v42  ;;  %v10826_v53 = vmax.f32 %v3692_v6, 0.0  ;;  %vm14124_vm12 = vmmov %vm14120_vm2 }
 0x33f   : > { %v7250_v12 = vpop.permute.xlu0 %7249  ;;  %v2241_v62 = vpack.c.bf16 %v2209_v1, %v2208_v10  ;;  %v7221_v10 = vunpack.i.l.bf16 %v10791_v7 }
 0x340   : > { %v7252_v32 = vunpack.i.h.bf16 %v7250_v12  ;;  %v7251_v13 = vunpack.i.l.bf16 %v7250_v12 }
 0x341   : > { %6275 = vmatprep.mubr.msk.bf16.mxu1 %vm13276_vm3, %v2241_v62  ;;  %v13261_v62 = vrot.slane %v10815_v29, 7 }
 0x342   : > { %v2211_v42 = vsel %vm14122_vm7, %v7217_v36, %v7252_v32  ;;  %v2210_v4 = vsel %vm14123_vm5, %v7216_v8, %v7251_v13  ;;  %6280 = vmatmul.mubr.msk.bf16.vlgmr.msra.gmra.mxu1 %vm13274_vm15, %v6279_v9  ;;  %v3848_v32 = vrot.slane %v10826_v53, 7  ;;  %v7338_v9 = vpack.i.bf16 %v10826_v53, %v10815_v29  ;;  %vm14126_vm5 = vmmov %vm14120_vm2 }
 0x343   : > { %v7260_v28 = vpop.permute.xlu0 %7259  ;;  %v2243_v11 = vpack.c.bf16 %v2211_v42, %v2210_v4  ;;  %v2178_v13 = vsel %vm13275_vm9, %v10432_v27, %v7217_v36  ;;  %vm14125_vm7 = vcmp.lt.s32.totalorder %v7944_v3, 1  ;;  %v3696_v42 = vpop.f32.mrf.mxu0 }
 0x344   : > { %v7262_v1 = vunpack.i.h.bf16 %v7260_v28  ;;  %v7261_v12 = vunpack.i.l.bf16 %v7260_v28  ;;  %v10847_v7 = vsel %vm14125_vm7, %v13261_v62, %v3848_v32  ;;  %7339 = vrot.lane.b32.xlu1 %v7338_v9, %s7822_s16  ;;  %v2242_v4 = vpack.c.bf16 %v2178_v13, %v2177_v39  ;;  %v10860_v13 = vpop.permute.xlu1 %7254 }
 0x345   : > { %6281 = vmatprep.mubr.msk.bf16.mxu1 %vm13276_vm3, %v2243_v11  ;;  %v3697_v27 = vadd.f32 %v10798_v22, %v3696_v42  ;;  %v3698_v11 = vpop.f32.mrf.mxu0  ;;  %v7226_v62 = vunpack.i.l.bf16 %v10800_v55  ;;  %v2179_v9 = vsel %vm13275_vm9, %v10452_v58, %v7221_v10  ;;  %v2180_v39 = vsel %vm13275_vm9, %v10437_v50, %v7222_v54 }
 0x346   : > { %v2212_v0 = vsel %vm14120_vm2, %v7221_v10, %v7261_v12  ;;  %v2213_v8 = vsel %vm14124_vm12, %v7222_v54, %v7262_v1  ;;  %v7227_v12 = vunpack.i.h.bf16 %v10800_v55  ;;  %vm14127_vm12 = vmmov %vm14125_vm7  ;;  %vm14129_vm7 = vcmp.lt.s32.totalorder %v7944_v3, 7 }
 0x347   : > { %v7270_v6 = vpop.permute.xlu0 %7269  ;;  %v2245_v36 = vpack.c.bf16 %v2213_v8, %v2212_v0  ;;  %v10851_v1 = vmax.f32 %v3697_v27, 0.0  ;;  %v3699_v34 = vpop.f32.mrf.mxu0  ;;  %v3944_v0 = vrot.slane %v10826_v53, 1 }
 0x348   : > { %v7272_v52 = vunpack.i.h.bf16 %v7270_v6  ;;  %v7271_v28 = vunpack.i.l.bf16 %v7270_v6  ;;  %v3700_v42 = vadd.f32 %v10798_v22, %v3699_v34  ;;  %v10879_v63 = vpop.permute.xlu1 %7264 }
 0x349   : > { %v3849_v8 = vrot.slane %v10851_v1, 7  ;;  %v3945_v6 = vrot.slane %v10851_v1, 1  ;;  %v3701_v27 = vpop.f32.mrf.mxu0 }
 0x34a   : > { %2481 = vmatmul.mubr.bf16.gmra.mxu1 %v2242_v4  ;;  %v2215_v4 = vsel %vm14126_vm5, %v7227_v12, %v7272_v52  ;;  %v2214_v55 = vsel %vm14120_vm2, %v7226_v62, %v7271_v28  ;;  %v3818_v54 = vmax.f32 %v3700_v42, 0.0  ;;  %v13269_v28 = vrot.slane %v10815_v29, 1  ;;  %vm14132_vm2 = vmmov %vm14127_vm12 }
 0x34b   : > { %6282 = vmatprep.mubr.msk.bf16.mxu1 %vm13276_vm3, %v2245_v36  ;;  %v10870_v58 = vsel %vm14127_vm12, %v3848_v32, %v3849_v8  ;;  %v7280_v50 = vpop.permute.xlu0 %7279  ;;  %v4004_v53 = vsel %vm14129_vm7, %v3944_v0, %v3945_v6  ;;  %v3704_v10 = vpop.f32.mrf.mxu0  ;;  %v2244_v36 = vpack.c.bf16 %v2180_v39, %v2179_v9  ;;  %v2247_v52 = vpack.c.bf16 %v2215_v4, %v2214_v55  ;;  %vm14134_vm12 = vmmov %vm14129_vm7 }
 0x34c   : > { %14128 = vst [vmem:[#allocation117_spill] sm:$0xff] %v10870_v58  ;;  %v3850_v11 = vrot.slane %v3818_v54, 7  ;;  %v7343_v16 = vpack.i.bf16 %v3818_v54, %v10851_v1  ;;  %v3705_v34 = vadd.f32 %v10798_v22, %v3704_v10  ;;  %v7282_v27 = vunpack.i.h.bf16 %v7280_v50 }
 0x34d   : > { %v7281_v25 = vunpack.i.l.bf16 %v7280_v50  ;;  %v3706_v32 = vpop.f32.mrf.mxu0  ;;  %vm14131_vm5 = vnez %v14130_v57  ;;  %v2181_v1 = vsel %vm13275_vm9, %v10497_v2, %v7226_v62  ;;  %v2182_v4 = vsel %vm13275_vm9, %v10494_v51, %v7227_v12 }
 0x34e   : > { %v4008_v42 = vsel %vm14131_vm5, 0.0, %v4004_v53  ;;  %v10883_v9 = vsel %vm14132_vm2, %v3849_v8, %v3850_v11  ;;  %v10885_v39 = vmax.f32 %v3705_v34, 0.0  ;;  %7344 = vrot.lane.b32.xlu0 %v7343_v16, %s7822_s16  ;;  %v7232_v57 = vunpack.i.h.bf16 %v10793_v59 }
 0x34f   : > { %14133 = vst [vmem:[#allocation125_spill] sm:$0xff] %v10883_v9  ;;  %v7231_v55 = vunpack.i.l.bf16 %v10793_v59  ;;  %v3946_v50 = vrot.slane %v3818_v54, 1  ;;  %v3707_v53 = vpop.f32.mrf.mxu0  ;;  %v4005_v8 = vsel %vm14134_vm12, %v13269_v28, %v3944_v0  ;;  %vm14135_vm7 = vcmask 130048   ;;  %v7290_v59 = vpop.permute.xlu0 %7289 }
 0x350   : > { %v3851_v10 = vrot.slane %v10885_v39, 7  ;;  %v13270_v16 = vrot.slane %v10885_v39, 1  ;;  %v3708_v2 = vadd.f32 %v10798_v22, %v3707_v53  ;;  %v7348_v62 = vpack.i.bf16 %v4008_v42, %v4005_v8  ;;  %vm14136_vm5 = vmmov %vm14135_vm7 }
 0x351   : > { %v2216_v51 = vsel %vm14135_vm7, %v7231_v55, %v7281_v25  ;;  %v2217_v12 = vsel %vm14136_vm5, %v7232_v57, %v7282_v27  ;;  %v2246_v32 = vpack.c.bf16 %v2182_v4, %v2181_v1  ;;  %v10915_v25 = vpop.permute.xlu1 %7274  ;;  %v7291_v8 = vunpack.i.l.bf16 %v7290_v59  ;;  %vm14138_vm7 = vmmov %vm14134_vm12 }
 0x352   : > { %2489 = vmatmul.mubr.bf16.gmra.mxu1 %v2244_v36  ;;  %v3709_v36 = vpop.f32.mrf.mxu0  ;;  %v10906_v54 = vsel %vm14132_vm2, %v3850_v11, %v3851_v10  ;;  %v10908_v34 = vmax.f32 %v3708_v2, 0.0  ;;  %7349 = vrot.lane.b32.xlu0 %v7348_v62, %s7817_s15  ;;  %v4002_v0 = vsel %vm14134_vm12, %v3946_v50, %v13270_v16  ;;  %v2249_v53 = vpack.c.bf16 %v2217_v12, %v2216_v51 }
 0x353   : > { %6283 = vmatprep.mubr.msk.bf16.mxu1 %vm13276_vm3, %v2247_v52  ;;  %14137 = vst [vmem:[#allocation126_spill] sm:$0xff] %v10906_v54  ;;  %v7292_v11 = vunpack.i.h.bf16 %v7290_v59  ;;  %v4003_v62 = vsel %vm14138_vm7, %v3945_v6, %v3946_v50  ;;  %v14139_v36 = vld [vmem:[#allocation61_spill] sm:$0xff]  ;;  %v7237_v51 = vunpack.i.h.bf16 %v10813_v30  ;;  %v7236_v12 = vunpack.i.l.bf16 %v10813_v30 }
 0x354   : > { %v3712_v52 = vpop.f32.mrf.mxu0  ;;  %v3852_v27 = vrot.slane %v10908_v34, 7  ;;  %vm14140_vm5 = vnez %v14139_v36  ;;  %vm14142_vm12 = vcmask 130048  }
 0x355   : > { %v3713_v42 = vadd.f32 %v10798_v22, %v3712_v52  ;;  %v4010_v28 = vsel %vm14140_vm5, 0.0, %v4002_v0  ;;  %v2184_v0 = vsel %vm13275_vm9, %v10504_v23, %v7232_v57  ;;  %vm14143_vm7 = vmmov %vm14142_vm12  ;;  %v10941_v30 = vpop.permute.xlu1 %7284 }
 0x356   : > { %v3714_v2 = vpop.f32.mrf.mxu0  ;;  %v10925_v1 = vsel %vm14132_vm2, %v3851_v10, %v3852_v27  ;;  %v7353_v52 = vpack.i.bf16 %v4010_v28, %v4003_v62  ;;  %v2183_v10 = vsel %vm13275_vm9, %v10507_v14, %v7231_v55  ;;  %v2219_v28 = vsel %vm14142_vm12, %v7237_v51, %v7292_v11  ;;  %vm14144_vm5 = vmmov %vm14132_vm2 }
 0x357   : > { %14141 = vst [vmem:[#allocation119_spill] sm:$0xff] %v10925_v1  ;;  %v10927_v4 = vmax.f32 %v3713_v42, 0.0  ;;  %v2218_v42 = vsel %vm14143_vm7, %v7236_v12, %v7291_v8  ;;  %v2248_v16 = vpack.c.bf16 %v2184_v0, %v2183_v10  ;;  %v7247_v11 = vunpack.i.h.bf16 %v10841_v26  ;;  %vm14146_vm12 = vmmov %vm14143_vm7 }
 0x358   : > { %v3715_v59 = vpop.f32.mrf.mxu0  ;;  %7354 = vrot.lane.b32.xlu1 %v7353_v52, %s7817_s15  ;;  %v2251_v57 = vpack.c.bf16 %v2219_v28, %v2218_v42 }
 0x359   : > { %v3853_v6 = vrot.slane %v10927_v4, 7  ;;  %v3716_v50 = vadd.f32 %v10798_v22, %v3715_v59  ;;  %v10964_v28 = vpop.permute.xlu1 %7294 }
 0x35a   : > { %2497 = vmatmul.mubr.bf16.gmra.mxu1 %v2246_v32  ;;  %v7300_v32 = vpop.permute.xlu0 %7299 }
 0x35b   : > { %6284 = vmatprep.mubr.msk.bf16.mxu1 %vm13276_vm3, %v2249_v53  ;;  %v3717_v53 = vpop.f32.mrf.mxu0  ;;  %v10945_v2 = vsel %vm14144_vm5, %v3852_v27, %v3853_v6  ;;  %v3822_v62 = vmax.f32 %v3716_v50, 0.0  ;;  %v7302_v36 = vunpack.i.h.bf16 %v7300_v32  ;;  %v7301_v52 = vunpack.i.l.bf16 %v7300_v32  ;;  %vm14147_vm5 = vmmov %vm14132_vm2 }
 0x35c   : > { %v7246_v53 = vunpack.i.l.bf16 %v10841_v26  ;;  %v2186_v26 = vsel %vm13275_vm9, %v10525_v17, %v7237_v51 }
 0x35d   : > { %v3720_v59 = vpop.f32.mrf.mxu0  ;;  %v3854_v14 = vrot.slane %v3822_v62, 7  ;;  %v7358_v55 = vpack.i.bf16 %v3822_v62, %v10927_v4  ;;  %v2221_v32 = vsel %vm14146_vm12, %v7247_v11, %v7302_v36  ;;  %v3950_v10 = vrot.slane %v3822_v62, 1 }
 0x35e   : > { %v3721_v23 = vadd.f32 %v10798_v22, %v3720_v59  ;;  %v7310_v42 = vpop.permute.xlu0 %7309  ;;  %v13271_v62 = vrot.slane %v10927_v4, 1 }
 0x35f   : > { %v3722_v8 = vpop.f32.mrf.mxu0  ;;  %v10953_v27 = vsel %vm14132_vm2, %v3853_v6, %v3854_v14  ;;  %7359 = vrot.lane.b32.xlu1 %v7358_v55, %s7822_s16  ;;  %v2220_v6 = vsel %vm14143_vm7, %v7246_v53, %v7301_v52  ;;  %vm14148_vm2 = vcmp.lt.s32.totalorder %v7944_v3, 7  ;;  %v7312_v52 = vunpack.i.h.bf16 %v7310_v42 }
 0x360   : > { %14145 = vst [vmem:[#allocation137_spill] sm:$0xff] %v10953_v27  ;;  %v10955_v50 = vmax.f32 %v3721_v23, 0.0  ;;  %vm14149_vm12 = vmmov %vm14148_vm2  ;;  %v14162_v27 = vld [vmem:[#allocation173_spill] sm:$0xff] }
 0x361   : > { %v3723_v0 = vpop.f32.mrf.mxu0  ;;  %v3999_v8 = vsel %vm14149_vm12, %v13271_v62, %v3950_v10 }
 0x362   : > { %2505 = vmatmul.mubr.bf16.gmra.mxu1 %v2248_v16  ;;  %v2185_v16 = vsel %vm13275_vm9, %v10528_v44, %v7236_v12  ;;  %v3855_v59 = vrot.slane %v10955_v50, 7  ;;  %v3951_v23 = vrot.slane %v10955_v50, 1  ;;  %v3724_v55 = vadd.f32 %v10798_v22, %v3723_v0  ;;  %v14150_v0 = vld [vmem:[#allocation70_spill] sm:$0xff] }
 0x363   : > { %6285 = vmatprep.mubr.msk.bf16.mxu1 %vm13276_vm3, %v2251_v57  ;;  %v3725_v36 = vpop.f32.mrf.mxu0  ;;  %v2250_v17 = vpack.c.bf16 %v2186_v26, %v2185_v16  ;;  %v2253_v57 = vpack.c.bf16 %v2221_v32, %v2220_v6  ;;  %vm14151_vm7 = vnez %v14150_v0  ;;  %v7257_v26 = vunpack.i.h.bf16 %v10860_v13  ;;  %v10987_v6 = vpop.permute.xlu1 %7304 }
 0x364   : > { %v10973_v44 = vsel %vm14147_vm5, %v3854_v14, %v3855_v59  ;;  %v3824_v12 = vmax.f32 %v3724_v55, 0.0  ;;  %v3998_v51 = vsel %vm14148_vm2, %v3950_v10, %v3951_v23  ;;  %v7311_v36 = vunpack.i.l.bf16 %v7310_v42 }
 0x365   : > { %v4014_v1 = vsel %vm14151_vm7, 0.0, %v3998_v51  ;;  %v7256_v32 = vunpack.i.l.bf16 %v10860_v13  ;;  %vm14152_vm2 = vcmask 130048   ;;  %v7320_v51 = vpop.permute.xlu0 %7319  ;;  %vm14155_vm7 = vmmov %vm14147_vm5 }
 0x366   : > { %v3856_v54 = vrot.slane %v3824_v12, 7  ;;  %v7363_v14 = vpack.i.bf16 %v3824_v12, %v10955_v50  ;;  %v3728_v9 = vpop.f32.mrf.mxu0  ;;  %v7368_v55 = vpack.i.bf16 %v4014_v1, %v3999_v8  ;;  %vm14153_vm12 = vmmov %vm14152_vm2  ;;  %v7322_v62 = vunpack.i.h.bf16 %v7320_v51 }
 0x367   : > { %v3729_v16 = vadd.f32 %v10798_v22, %v3728_v9  ;;  %v2223_v9 = vsel %vm14152_vm2, %v7257_v26, %v7312_v52  ;;  %v2222_v1 = vsel %vm14153_vm12, %v7256_v32, %v7311_v36  ;;  %vm14158_vm2 = vnez %v13955_v33 }
 0x368   : > { %v10991_v10 = vsel %vm14147_vm5, %v3855_v59, %v3856_v54  ;;  %v3730_v42 = vpop.f32.mrf.mxu0  ;;  %7369 = vrot.lane.b32.xlu1 %v7368_v55, %s7817_s15  ;;  %7364 = vrot.lane.b32.xlu0 %v7363_v14, %s7822_s16  ;;  %v2188_v59 = vsel %vm13275_vm9, %v10536_v19, %v7247_v11  ;;  %v14154_v14 = vld [vmem:[#allocation7_spill] sm:$0xff]  ;;  %vm14156_vm5 = vcmp.lt.s32.totalorder %v7944_v3, 7  ;;  %v7267_v33 = vunpack.i.h.bf16 %v10879_v63 }
 0x369   : > { %v10995_v50 = vmax.f32 %v3729_v16, 0.0  ;;  %v6797_v16 = vunpack.i.h.bf16 %v14154_v14  ;;  %v6796_v52 = vunpack.i.l.bf16 %v14154_v14  ;;  %v2255_v14 = vpack.c.bf16 %v2223_v9, %v2222_v1 }
 0x36a   : > { %2513 = vmatmul.mubr.bf16.gmra.mxu1 %v2250_v17  ;;  %v3731_v13 = vpop.f32.mrf.mxu0  ;;  %v2187_v17 = vsel %vm13275_vm9, %v10539_v49, %v7246_v53  ;;  %v14157_v53 = vld [vmem:[#allocation174_spill] sm:$0xff] }
 0x36b   : > { %6286 = vmatprep.mubr.msk.bf16.mxu1 %vm13276_vm3, %v2253_v57  ;;  %v3952_v57 = vrot.slane %v3824_v12, 1  ;;  %v3857_v8 = vrot.slane %v10995_v50, 7  ;;  %v3953_v0 = vrot.slane %v10995_v50, 1  ;;  %v3732_v55 = vadd.f32 %v10798_v22, %v3731_v13  ;;  %v11020_v13 = vpop.permute.xlu1 %7314 }
 0x36c   : > { %v3733_v36 = vpop.f32.mrf.mxu0  ;;  %v2252_v19 = vpack.c.bf16 %v2188_v59, %v2187_v17  ;;  %v1497_v12 = vsel %vm14158_vm2, 0.0, %v14157_v53 }
 0x36d   : > { %v11011_v42 = vsel %vm14155_vm7, %v3856_v54, %v3857_v8  ;;  %v11013_v49 = vmax.f32 %v3732_v55, 0.0  ;;  %v3996_v11 = vsel %vm14156_vm5, %v3952_v57, %v3953_v0  ;;  %v14159_v36 = vld [vmem:[#allocation80_spill] sm:$0xff]  ;;  %v7321_v54 = vunpack.i.l.bf16 %v7320_v51  ;;  %vm14161_vm7 = vmmov %vm14156_vm5 }
 0x36e   : > { %vm14160_vm12 = vnez %v14159_v36  ;;  %v3997_v59 = vsel %vm14161_vm7, %v3951_v23, %v3952_v57  ;;  %vm14163_vm5 = vcmask 195584   ;;  %v7266_v51 = vunpack.i.l.bf16 %v10879_v63 }
 0x36f   : > { %v4016_v58 = vsel %vm14160_vm12, 0.0, %v3996_v11  ;;  %v3858_v55 = vrot.slane %v11013_v49, 7  ;;  %v1916_v53 = vsel %vm14163_vm5, %v14162_v27, %v6797_v16  ;;  %vm14164_vm15 = vmmov %vm14163_vm5  ;;  %vm14165_vm12 = vcmp.lt.s32.totalorder %v7944_v3, 1 }
 0x370   : > { %v3736_v35 = vpop.f32.mrf.mxu0  ;;  %v7373_v1 = vpack.i.bf16 %v4016_v58, %v3997_v59  ;;  %v1915_v11 = vsel %vm14164_vm15, %v1497_v12, %v6796_v52  ;;  %vm14167_vm7 = vcmask 130048   ;;  %v3954_v27 = vrot.slane %v11013_v49, 1  ;;  %vm14170_vm5 = vmmov %vm14165_vm12 }
 0x371   : > { %v3737_v17 = vadd.f32 %v10798_v22, %v3736_v35  ;;  %v11036_v35 = vsel %vm14165_vm12, %v3857_v8, %v3858_v55  ;;  %v2225_v23 = vsel %vm14167_vm7, %v7267_v33, %v7322_v62  ;;  %v2189_v58 = vsel %vm13275_vm9, %v10566_v43, %v7256_v32  ;;  %vm14168_vm15 = vmmov %vm14167_vm7  ;;  %v14169_v62 = vld [vmem:[#allocation139_spill] sm:$0xff]  ;;  %v7325_v32 = vpop.permute.xlu1 %7324 }
 0x372   : > { %2521 = vmatmul.mubr.bf16.gmra.mxu1 %v2252_v19  ;;  %v3738_v9 = vpop.f32.mrf.mxu0  ;;  %14166 = vst [vmem:[#allocation120_spill] sm:$0xff] %v11036_v35  ;;  %7374 = vrot.lane.b32.xlu0 %v7373_v1, %s7817_s15  ;;  %v2190_v16 = vsel %vm13275_vm9, %v10563_v31, %v7257_v26  ;;  %v2224_v63 = vsel %vm14168_vm15, %v7266_v51, %v7321_v54  ;;  %v6976_v36 = vunpack.i.l.bf16 %v14169_v62  ;;  %vm14172_vm12 = vcmp.lt.s32.totalorder %v7944_v3, 7 }
 0x373   : > { %6287 = vmatprep.mubr.msk.bf16.mxu1 %vm13276_vm3, %v2255_v14  ;;  %v11038_v19 = vmax.f32 %v3737_v17, 0.0  ;;  %v6977_v14 = vunpack.i.h.bf16 %v14169_v62  ;;  %v3948_v17 = vrot.slane %v10908_v34, 1  ;;  %v7378_v43 = vpack.i.bf16 %v10908_v34, %v10885_v39  ;;  %vm14173_vm7 = vmmov %vm14172_vm12  ;;  %v14174_v62 = vld [vmem:[#allocation84_spill] sm:$0xff] }
 0x374   : > { %v3739_v57 = vpop.f32.mrf.mxu0  ;;  %v2254_v54 = vpack.c.bf16 %v2190_v16, %v2189_v58  ;;  %v2257_v1 = vpack.c.bf16 %v2225_v23, %v2224_v63  ;;  %vm14175_vm15 = vnez %v14174_v62  ;;  %vm14177_vm9 = vmmov %vm14173_vm7  ;;  %v7276_v63 = vunpack.i.l.bf16 %v10915_v25  ;;  %v7330_v62 = vpop.permute.xlu0 %7329 }
 0x375   : > { %v3859_v8 = vrot.slane %v11038_v19, 7  ;;  %v3955_v52 = vrot.slane %v11038_v19, 1  ;;  %v3740_v12 = vadd.f32 %v10798_v22, %v3739_v57  ;;  %v3995_v57 = vsel %vm14173_vm7, %v3953_v0, %v3954_v27 }
 0x376   : > { %v3741_v59 = vpop.f32.mrf.mxu0  ;;  %7379 = vrot.lane.b32.xlu0 %v7378_v43, %s7822_s16  ;;  %v7383_v0 = vpack.i.bf16 %v11013_v49, %v10995_v50  ;;  %v14185_v49 = vrot.slane %v10885_v39, 1 }
 0x377   : > { %v11058_v31 = vsel %vm14170_vm5, %v3858_v55, %v3859_v8  ;;  %v3828_v26 = vmax.f32 %v3740_v12, 0.0  ;;  %v3994_v9 = vsel %vm14172_vm12, %v3954_v27, %v3955_v52  ;;  %v14176_v59 = vrot.slane %v10927_v4, 1 }
 0x378   : > { %14171 = vst [vmem:[#allocation135_spill] sm:$0xff] %v11058_v31  ;;  %v4018_v34 = vsel %vm14175_vm15, 0.0, %v3994_v9  ;;  %v7327_v31 = vunpack.i.h.bf16 %v7325_v32  ;;  %v7326_v12 = vunpack.i.l.bf16 %v7325_v32  ;;  %vm14178_vm5 = vcmask 392192  }
 0x379   : > { %v4000_v55 = vsel %vm14177_vm9, %v3948_v17, %v14176_v59  ;;  %v3860_v58 = vrot.slane %v3828_v26, 7  ;;  %v7393_v16 = vpack.i.bf16 %v4018_v34, %v3995_v57  ;;  %v11072_v43 = vsel %vm14178_vm5, %v1916_v53, %v6977_v14  ;;  %vm14180_vm12 = vmmov %vm14178_vm5 }
 0x37a   : > { %2529 = vmatmul.mubr.bf16.gmra.mxu1 %v2254_v54  ;;  %v3744_v35 = vpop.f32.mrf.mxu0  ;;  %14179 = vst [vmem:[#allocation138_spill] sm:$0xff] %v11072_v43  ;;  %v11075_v23 = vsel %vm14180_vm12, %v1915_v11, %v6976_v36  ;;  %v7277_v27 = vunpack.i.h.bf16 %v10915_v25  ;;  %vm14182_vm9 = vcmp.lt.s32.totalorder %v7944_v3, 1  ;;  %v14183_v11 = vld [vmem:[#allocation67_spill] sm:$0xff]  ;;  %7384 = vrot.lane.b32.xlu0 %v7383_v0, %s7822_s16  ;;  %vm14186_vm15 = vcmp.lt.s32.totalorder %v7944_v3, 7  ;;  %v14194_v0 = vld [vmem:[#allocation92_spill] sm:$0xff] }
 0x37b   : > { %14181 = vst [vmem:[#allocation130_spill] sm:$0xff] %v11075_v23  ;;  %6288 = vmatprep.mubr.msk.bf16.mxu1 %vm13276_vm3, %v2257_v1  ;;  %v3745_v4 = vadd.f32 %v10798_v22, %v3744_v35  ;;  %v11085_v32 = vsel %vm14182_vm9, %v3859_v8, %v3860_v58  ;;  %7394 = vrot.lane.b32.xlu1 %v7393_v16, %s7817_s15  ;;  %vm14184_vm7 = vnez %v14183_v11  ;;  %vm14187_vm5 = vcmask 588800  }
 0x37c   : > { %v3746_v53 = vpop.f32.mrf.mxu0  ;;  %v4012_v14 = vsel %vm14184_vm7, 0.0, %v4000_v55  ;;  %v4001_v35 = vsel %vm14186_vm15, %v14185_v49, %v3948_v17  ;;  %v2191_v25 = vsel %vm14187_vm5, %v10590_v48, %v7266_v51  ;;  %vm14188_vm12 = vmmov %vm14187_vm5  ;;  %vm14189_vm9 = vcmask 130048  }
 0x37d   : > { %v11091_v50 = vmax.f32 %v3745_v4, 0.0  ;;  %v2192_v8 = vsel %vm14188_vm12, %v10587_v47, %v7267_v33  ;;  %v2226_v36 = vsel %vm14189_vm9, %v7276_v63, %v7326_v12  ;;  %vm14190_vm3 = vmmov %vm14189_vm9  ;;  %v3956_v9 = vrot.slane %v3828_v26, 1 }
 0x37e   : > { %v2227_v54 = vsel %vm14190_vm3, %v7277_v27, %v7327_v31  ;;  %v7398_v1 = vpack.i.bf16 %v3828_v26, %v11038_v19  ;;  %v3747_v57 = vpop.f32.mrf.mxu0  ;;  %v7388_v17 = vpack.i.bf16 %v4012_v14, %v4001_v35  ;;  %v2256_v48 = vpack.c.bf16 %v2192_v8, %v2191_v25  ;;  %vm14192_vm7 = vmmov %vm14186_vm15 }
 0x37f   : > { %v3861_v39 = vrot.slane %v11091_v50, 7  ;;  %v3957_v34 = vrot.slane %v11091_v50, 1  ;;  %v3748_v59 = vadd.f32 %v10798_v22, %v3747_v57  ;;  %v7413_v47 = vpack.i.bf16 %v11072_v43, %v11075_v23  ;;  %vm14193_vm15 = vmmov %vm14192_vm7  ;;  %v14251_v23 = vld [vmem:[#allocation111_spill] sm:$0xff] }
 0x380   : > { %7399 = vrot.lane.b32.xlu1 %v7398_v1, %s7822_s16  ;;  %v3749_v33 = vpop.f32.mrf.mxu0  ;;  %vm14191_vm3 = vcmp.lt.s32.totalorder %v7944_v3, 1  ;;  %7389 = vrot.lane.b32.xlu0 %v7388_v17, %s7817_s15  ;;  %v2259_v31 = vpack.c.bf16 %v2227_v54, %v2226_v36  ;;  %v7332_v55 = vunpack.i.h.bf16 %v7330_v62  ;;  %v7331_v12 = vunpack.i.l.bf16 %v7330_v62  ;;  %v7335_v36 = vpop.permute.xlu1 %7334 }
 0x381   : > { %v11112_v51 = vsel %vm14191_vm3, %v3860_v58, %v3861_v39  ;;  %v11115_v19 = vmax.f32 %v3748_v59, 0.0  ;;  %v3992_v26 = vsel %vm14192_vm7, %v3956_v9, %v3957_v34  ;;  %v3993_v16 = vsel %vm14193_vm15, %v3955_v52, %v3956_v9  ;;  %vm14197_vm9 = vmmov %vm14191_vm3 }
 0x382   : > { %2537 = vmatmul.mubr.bf16.gmra.mxu1 %v2256_v48  ;;  %vm14195_vm5 = vnez %v14194_v0  ;;  %vm14196_vm12 = vcmask 719872   ;;  %v7287_v11 = vunpack.i.h.bf16 %v10941_v30  ;;  %v7286_v14 = vunpack.i.l.bf16 %v10941_v30 }
 0x383   : > { %v4020_v58 = vsel %vm14195_vm5, 0.0, %v3992_v26  ;;  %v3862_v4 = vrot.slane %v11115_v19, 7  ;;  %6289 = vmatprep.mubr.msk.bf16.mxu1 %vm14196_vm12, %v2259_v31  ;;  %vm14198_vm3 = vcmask 588800   ;;  %vm14200_vm15 = vcmask 130048  }
 0x384   : > { %v7403_v53 = vpack.i.bf16 %v4020_v58, %v3993_v16  ;;  %7414 = vrot.lane.b32.xlu1 %v7413_v47, %s7821_s13  ;;  %v2193_v52 = vsel %vm14198_vm3, %v10611_v24, %v7276_v63  ;;  %vm14199_vm7 = vmmov %vm14198_vm3  ;;  %v2229_v25 = vsel %vm14200_vm15, %v7287_v11, %v7332_v55  ;;  %v7337_v9 = vunpack.i.h.bf16 %v7335_v36  ;;  %v7720_v16 = vld [vmem:[%s12922_s7 + $0x30] sm:$0xff]  }
 0x385   : > { %v11132_v49 = vsel %vm14197_vm9, %v3861_v39, %v3862_v4  ;;  %v2194_v35 = vsel %vm14199_vm7, %v10608_v40, %v7277_v27  ;;  %vm14201_vm5 = vmmov %vm14200_vm15  ;;  %v7336_v1 = vunpack.i.l.bf16 %v7335_v36  ;;  %v7433_v24 = vpack.i.bf16 %v11115_v19, %v11091_v50 }
 0x386   : > { %7404 = vrot.lane.b32.xlu0 %v7403_v53, %s7817_s15  ;;  %v2228_v8 = vsel %vm14201_vm5, %v7286_v14, %v7331_v12  ;;  %v2258_v30 = vpack.c.bf16 %v2194_v35, %v2193_v52  ;;  %v7297_v40 = vunpack.i.h.bf16 %v10964_v28  ;;  %v7296_v27 = vunpack.i.l.bf16 %v10964_v28  ;;  %vm14202_vm9 = vmmov %vm14198_vm3 }
 0x387   : > { %v2261_v54 = vpack.c.bf16 %v2229_v25, %v2228_v8  ;;  %v2195_v63 = vsel %vm14202_vm9, %v10631_v46, %v7286_v14  ;;  %vm14203_vm7 = vmmov %vm14201_vm5  ;;  %v7721_v8 = vld [vmem:[%s12922_s7 + $0x28] sm:$0xff]  }
 0x388   : > { %7424 = vrot.lane.b32.xlu1 %v10787_v21, %s7821_s13  ;;  %v2230_v57 = vsel %vm14203_vm7, %v7296_v27, %v7336_v1  ;;  %vm14204_vm15 = vmmov %vm14201_vm5  ;;  %vm14209_vm7 = vcmp.lt.s32.totalorder %v7944_v3, 7 }
 0x389   : > { %v2231_v62 = vsel %vm14204_vm15, %v7297_v40, %v7337_v9  ;;  %vm14205_vm5 = vmmov %vm14196_vm12 }
 0x38a   : > { %7409 = vrot.lane.b32.xlu0 %v10714_v56, %s7821_s13  ;;  %2545 = vmatmul.mubr.bf16.gmra.mxu1 %v2258_v30  ;;  %v2196_v56 = vsel %vm14198_vm3, %v10628_v18, %v7287_v11  ;;  %v2263_v17 = vpack.c.bf16 %v2231_v62, %v2230_v57  ;;  %vm14207_vm9 = vmmov %vm14198_vm3  ;;  %v7719_v18 = vld [vmem:[%s12922_s7 + $0x38] sm:$0xff]   ;;  %v14211_v11 = vld [vmem:[#allocation95_spill] sm:$0xff] }
 0x38b   : > { %6290 = vmatprep.mubr.msk.bf16.mxu1 %vm14196_vm12, %v2261_v54  ;;  %v2260_v39 = vpack.c.bf16 %v2196_v56, %v2195_v63  ;;  %vm14206_vm12 = vmmov %vm14198_vm3  ;;  %v2198_v46 = vsel %vm14207_vm9, %v10648_v60, %v7297_v40  ;;  %4840 = vmatpush1.bf16.msra.mxu0 %v7719_v18  ;;  %vm14208_vm3 = vcmp.lt.s32.totalorder %v7944_v3, 1 }
 0x38c   : > { %7434 = vrot.lane.b32.xlu1 %v7433_v24, %s7822_s16  ;;  %v2197_v28 = vsel %vm14206_vm12, %v10651_v20, %v7296_v27  ;;  %6506 = vmatpush1.bf16.msra.mxu1 %v7719_v18  ;;  %vm14210_vm15 = vmmov %vm14209_vm7 }
 0x38d   : > { %v2262_v59 = vpack.c.bf16 %v2198_v46, %v2197_v28  ;;  %4841 = vmatprep.subr.bf16.mxu0 %v13901_v15  ;;  %6493 = vmatprep.subr.bf16.mxu1 %v13901_v15  ;;  %vm14213_vm12 = vmmov %vm14208_vm3 }
 0x38e   : > { %7419 = vrot.lane.b32.xlu0 %v7413_v47, %s14011_s12  ;;  %v3958_v47 = vrot.slane %v11115_v19, 1  ;;  %vm14214_vm9 = vmmov %vm14208_vm3 }
 0x38f   : > { %4842 = vmatpush1.bf16.msra.mxu0 %v7720_v16 }
 0x390   : > { %v3991_v19 = vsel %vm14210_vm15, %v3957_v34, %v3958_v47  ;;  %6507 = vmatpush1.bf16.msra.mxu1 %v7720_v16  ;;  %4843 = vmatprep.subr.bf16.mxu0 %v13901_v15 }
 0x391   : > { %6494 = vmatprep.subr.bf16.mxu1 %v13901_v15 }
 0x392   : > { %7429 = vrot.lane.b32.xlu0 %v10787_v21, %s14011_s12  ;;  %2553 = vmatmul.mubr.bf16.gmra.mxu1 %v2260_v39  ;;  %v14216_v39 = vld [vmem:[#allocation97_spill] sm:$0xff] }
 0x393   : > { %6291 = vmatprep.mubr.msk.bf16.mxu1 %vm14205_vm5, %v2263_v17  ;;  %vm14212_vm5 = vnez %v14211_v11  ;;  %4844 = vmatpush1.bf16.msra.mxu0 %v7721_v8 }
 0x394   : > { %6508 = vmatpush1.bf16.msra.mxu1 %v7721_v8  ;;  %4845 = vmatprep.subr.bf16.mxu0 %v13901_v15 }
 0x395   : > { %6495 = vmatprep.subr.bf16.mxu1 %v13901_v15 }
 0x39a   : > { %2561 = vmatmul.mubr.bf16.gmra.mxu1 %v2262_v59 }
 0x3b0   : > { %v3752_v21 = vpop.f32.mrf.mxu0 }
 0x3b1   : > { %v3753_v48 = vadd.f32 %v10798_v22, %v3752_v21 }
 0x3b2   : > { %v3754_v33 = vpop.f32.mrf.mxu0 }
 0x3b3   : > { %v3831_v20 = vmax.f32 %v3753_v48, 0.0  ;;  %v7722_v48 = vld [vmem:[%s12922_s7 + $0x20] sm:$0xff]  }
 0x3b4   : > { %v3755_v60 = vpop.f32.mrf.mxu0  ;;  %4846 = vmatpush1.bf16.msra.mxu0 %v7722_v48  ;;  %6509 = vmatpush1.bf16.msra.mxu1 %v7722_v48 }
 0x3b5   : > { %v3863_v31 = vrot.slane %v3831_v20, 7  ;;  %v3959_v26 = vrot.slane %v3831_v20, 1  ;;  %v3756_v55 = vadd.f32 %v10798_v22, %v3755_v60  ;;  %4847 = vmatprep.subr.bf16.mxu0 %v13901_v15  ;;  %6496 = vmatprep.subr.bf16.mxu1 %v13901_v15 }
 0x3b6   : > { %v3757_v12 = vpop.f32.mrf.mxu0 }
 0x3b7   : > { %v11178_v0 = vsel %vm14208_vm3, %v3862_v4, %v3863_v31  ;;  %v3832_v58 = vmax.f32 %v3756_v55, 0.0  ;;  %v3990_v53 = vsel %vm14209_vm7, %v3958_v47, %v3959_v26  ;;  %vm14215_vm3 = vmmov %vm14209_vm7  ;;  %vm14217_vm7 = vnez %v14216_v39 }
 0x3b8   : > { %v4022_v14 = vsel %vm14212_vm5, 0.0, %v3990_v53  ;;  %vm14218_vm15 = vmmov %vm14215_vm3 }
 0x3b9   : > { %v3864_v52 = vrot.slane %v3832_v58, 7  ;;  %v7438_v35 = vpack.i.bf16 %v4022_v14, %v3991_v19  ;;  %v7443_v50 = vpack.i.bf16 %v3832_v58, %v3831_v20  ;;  %v3960_v9 = vrot.slane %v3832_v58, 1  ;;  %vm14219_vm5 = vmmov %vm14214_vm9  ;;  %v14222_v14 = vld [vmem:[#allocation99_spill] sm:$0xff] }
 0x3bb   : > { %v11192_v4 = vsel %vm14213_vm12, %v3863_v31, %v3864_v52  ;;  %7439 = vrot.lane.b32.xlu1 %v7438_v35, %s7817_s15  ;;  %v3989_v59 = vsel %vm14218_vm15, %v3959_v26, %v3960_v9  ;;  %vm14220_vm12 = vmmov %vm14219_vm5 }
 0x3bc   : > { %vm14225_vm15 = vmmov %vm14219_vm5 }
 0x3be   : > { %v3760_v25 = vpop.f32.mrf.mxu0 }
 0x3bf   : > { %v3761_v34 = vadd.f32 %v10798_v22, %v3760_v25  ;;  %7444 = vrot.lane.b32.xlu1 %v7443_v50, %s7822_s16 }
 0x3c0   : > { %v3762_v36 = vpop.f32.mrf.mxu0 }
 0x3c1   : > { %v3833_v30 = vmax.f32 %v3761_v34, 0.0 }
 0x3c2   : > { %v3763_v54 = vpop.f32.mrf.mxu0 }
 0x3c3   : > { %v3865_v1 = vrot.slane %v3833_v30, 7  ;;  %v3961_v24 = vrot.slane %v3833_v30, 1  ;;  %v3764_v40 = vadd.f32 %v10798_v22, %v3763_v54 }
 0x3c4   : > { %v3765_v27 = vpop.f32.mrf.mxu0 }
 0x3c5   : > { %v11205_v63 = vsel %vm14214_vm9, %v3864_v52, %v3865_v1  ;;  %v3834_v56 = vmax.f32 %v3764_v40, 0.0  ;;  %v3988_v57 = vsel %vm14215_vm3, %v3960_v9, %v3961_v24  ;;  %vm14221_vm9 = vmmov %vm14215_vm3  ;;  %vm14223_vm3 = vnez %v14222_v14 }
 0x3c6   : > { %v3768_v62 = vpop.f32.mrf.mxu0  ;;  %v4024_v17 = vsel %vm14217_vm7, 0.0, %v3988_v57  ;;  %vm14224_vm7 = vmmov %vm14221_vm9 }
 0x3c7   : > { %v3866_v28 = vrot.slane %v3834_v56, 7  ;;  %v3769_v46 = vadd.f32 %v10798_v22, %v3768_v62  ;;  %v7448_v21 = vpack.i.bf16 %v4024_v17, %v3989_v59  ;;  %v3962_v60 = vrot.slane %v3834_v56, 1  ;;  %v14227_v59 = vld [vmem:[#allocation103_spill] sm:$0xff] }
 0x3c8   : > { %v3770_v18 = vpop.f32.mrf.mxu0  ;;  %v7453_v12 = vpack.i.bf16 %v3834_v56, %v3833_v30 }
 0x3c9   : > { %v11219_v33 = vsel %vm14219_vm5, %v3865_v1, %v3866_v28  ;;  %v3835_v20 = vmax.f32 %v3769_v46, 0.0  ;;  %7449 = vrot.lane.b32.xlu0 %v7448_v21, %s7817_s15  ;;  %v3987_v34 = vsel %vm14224_vm7, %v3961_v24, %v3962_v60  ;;  %v11243_v1 = vpop.permute.xlu0 %7344  ;;  %v7723_v24 = vld [vmem:[%s12922_s7 + $0x18] sm:$0xff]  }
 0x3ca   : > { %v3771_v47 = vpop.f32.mrf.mxu0  ;;  %4848 = vmatpush1.bf16.msra.mxu0 %v7723_v24  ;;  %6510 = vmatpush1.bf16.msra.mxu1 %v7723_v24 }
 0x3cb   : > { %v3867_v31 = vrot.slane %v3835_v20, 7  ;;  %v3963_v55 = vrot.slane %v3835_v20, 1  ;;  %v3772_v26 = vadd.f32 %v10798_v22, %v3771_v47  ;;  %4849 = vmatprep.subr.bf16.mxu0 %v13901_v15  ;;  %6497 = vmatprep.subr.bf16.mxu1 %v13901_v15 }
 0x3cc   : > { %v3773_v16 = vpop.f32.mrf.mxu0 }
 0x3cd   : > { %v11227_v58 = vsel %vm14220_vm12, %v3866_v28, %v3867_v31  ;;  %v3836_v53 = vmax.f32 %v3772_v26, 0.0  ;;  %v3986_v19 = vsel %vm14221_vm9, %v3962_v60, %v3963_v55  ;;  %7454 = vrot.lane.b32.xlu0 %v7453_v12, %s7822_s16  ;;  %vm14226_vm12 = vmmov %vm14224_vm7  ;;  %vm14228_vm9 = vnez %v14227_v59  ;;  %v11262_v60 = vpop.permute.xlu1 %7339  ;;  %v11264_v12 = vpop.permute.xlu0 %7349  ;;  %v7725_v59 = vld [vmem:[%s12922_s7 + $0x8] sm:$0xff]  }
 0x3ce   : > { %v4026_v52 = vsel %vm14223_vm3, 0.0, %v3986_v19  ;;  %vm14229_vm3 = vmmov %vm14224_vm7 }
 0x3cf   : > { %v3776_v11 = vpop.f32.mrf.mxu0  ;;  %v3868_v35 = vrot.slane %v3836_v53, 7  ;;  %v7463_v50 = vpack.i.bf16 %v3836_v53, %v3835_v20  ;;  %v7458_v36 = vpack.i.bf16 %v4026_v52, %v3987_v34  ;;  %v3964_v40 = vrot.slane %v3836_v53, 1  ;;  %vm14230_vm7 = vmmov %vm14219_vm5 }
 0x3d0   : > { %v3777_v25 = vadd.f32 %v10798_v22, %v3776_v11 }
 0x3d1   : > { %v3778_v8 = vpop.f32.mrf.mxu0  ;;  %v11239_v30 = vsel %vm14225_vm15, %v3867_v31, %v3868_v35  ;;  %7459 = vrot.lane.b32.xlu1 %v7458_v36, %s7817_s15  ;;  %7464 = vrot.lane.b32.xlu0 %v7463_v50, %s7822_s16  ;;  %v3985_v47 = vsel %vm14229_vm3, %v3963_v55, %v3964_v40  ;;  %v7724_v55 = vld [vmem:[%s12922_s7 + $0x10] sm:$0xff]   ;;  %vm14231_vm15 = vmmov %vm14219_vm5 }
 0x3d2   : > { %v3837_v54 = vmax.f32 %v3777_v25, 0.0  ;;  %4850 = vmatpush1.bf16.msra.mxu0 %v7724_v55  ;;  %6511 = vmatpush1.bf16.msra.mxu1 %v7724_v55 }
 0x3d3   : > { %v3779_v9 = vpop.f32.mrf.mxu0  ;;  %6498 = vmatprep.subr.bf16.mxu1 %v13901_v15  ;;  %4851 = vmatprep.subr.bf16.mxu0 %v13901_v15 }
 0x3d4   : > { %v3869_v27 = vrot.slane %v3837_v54, 7  ;;  %v3965_v56 = vrot.slane %v3837_v54, 1  ;;  %v3780_v57 = vadd.f32 %v10798_v22, %v3779_v9 }
 0x3d5   : > { %v3781_v62 = vpop.f32.mrf.mxu0 }
 0x3d6   : > { %v11251_v39 = vsel %vm14219_vm5, %v3868_v35, %v3869_v27  ;;  %v3838_v17 = vmax.f32 %v3780_v57, 0.0  ;;  %v3984_v28 = vsel %vm14226_vm12, %v3964_v40, %v3965_v56  ;;  %v11275_v35 = vpop.permute.xlu1 %7354  ;;  %vm14232_vm5 = vmmov %vm14229_vm3  ;;  %v14234_v40 = vld [vmem:[#allocation106_spill] sm:$0xff]  ;;  %6512 = vmatpush1.bf16.msra.mxu1 %v7725_v59  ;;  %4852 = vmatpush1.bf16.msra.mxu0 %v7725_v59 }
 0x3d7   : > { %v3784_v46 = vpop.f32.mrf.mxu0  ;;  %v4028_v18 = vsel %vm14228_vm9, 0.0, %v3984_v28  ;;  %vm14233_vm12 = vmmov %vm14229_vm3  ;;  %vm14235_vm9 = vnez %v14234_v40  ;;  %6499 = vmatprep.subr.bf16.mxu1 %v13901_v15  ;;  %4853 = vmatprep.subr.bf16.mxu0 %v13901_v15 }
 0x3d8   : > { %v3870_v21 = vrot.slane %v3838_v17, 7  ;;  %v7473_v48 = vpack.i.bf16 %v3838_v17, %v3837_v54  ;;  %v3785_v20 = vadd.f32 %v10798_v22, %v3784_v46  ;;  %v7468_v26 = vpack.i.bf16 %v4028_v18, %v3985_v47  ;;  %vm14236_vm3 = vmmov %vm14230_vm7 }
 0x3d9   : > { %v3786_v31 = vpop.f32.mrf.mxu0  ;;  %v3966_v19 = vrot.slane %v3838_v17, 1 }
 0x3da   : > { %v11268_v16 = vsel %vm14230_vm7, %v3869_v27, %v3870_v21  ;;  %v3839_v53 = vmax.f32 %v3785_v20, 0.0  ;;  %7474 = vrot.lane.b32.xlu0 %v7473_v48, %s7822_s16  ;;  %7469 = vrot.lane.b32.xlu1 %v7468_v26, %s7817_s15  ;;  %v11282_v8 = vpop.permute.xlu0 %7364  ;;  %v11292_v62 = vpop.permute.xlu1 %7359  ;;  %v7726_v20 = vld [vmem:[%s12922_s7] sm:$0xff]   ;;  %vm14237_vm7 = vmmov %vm14236_vm3 }
 0x3db   : > { %v3787_v11 = vpop.f32.mrf.mxu0  ;;  %v3983_v9 = vsel %vm14233_vm12, %v3965_v56, %v3966_v19  ;;  %6513 = vmatpush1.bf16.msra.mxu1 %v7726_v20  ;;  %4854 = vmatpush1.bf16.msra.mxu0 %v7726_v20 }
 0x3dc   : > { %v3871_v14 = vrot.slane %v3839_v53, 7  ;;  %v3967_v52 = vrot.slane %v3839_v53, 1  ;;  %v3788_v50 = vadd.f32 %v10798_v22, %v3787_v11  ;;  %v13278_v11 = vunpack.i.h.bf16 %v10987_v6  ;;  %6500 = vmatprep.subr.bf16.mxu1 %v13901_v15  ;;  %4859 = vmatprep.subr.bf16.mxu0 %v13901_v15 }
 0x3dd   : > { %v3789_v25 = vpop.f32.mrf.mxu0 }
 0x3de   : > { %v11280_v34 = vsel %vm14231_vm15, %v3870_v21, %v3871_v14  ;;  %v3982_v36 = vsel %vm14232_vm5, %v3966_v19, %v3967_v52  ;;  %v3840_v54 = vmax.f32 %v3788_v50, 0.0  ;;  %v11312_v26 = vpop.permute.xlu1 %7369  ;;  %vm14239_vm15 = vmmov %vm14232_vm5 }
 0x3df   : > { %v4030_v27 = vsel %vm14235_vm9, 0.0, %v3982_v36  ;;  %vm14242_vm9 = vcmask 588800  }
 0x3e0   : > { %v7478_v24 = vpack.i.bf16 %v4030_v27, %v3983_v9  ;;  %v3872_v17 = vrot.slane %v3840_v54, 7  ;;  %v7483_v28 = vpack.i.bf16 %v3840_v54, %v3839_v53  ;;  %v3968_v47 = vrot.slane %v3840_v54, 1 }
 0x3e2   : > { %7479 = vrot.lane.b32.xlu1 %v7478_v24, %s7817_s15  ;;  %v11303_v21 = vsel %vm14236_vm3, %v3871_v14, %v3872_v17  ;;  %7484 = vrot.lane.b32.xlu0 %v7483_v28, %s7822_s16  ;;  %v13277_v14 = vunpack.i.l.bf16 %v10987_v6  ;;  %v3981_v27 = vsel %vm14232_vm5, %v3967_v52, %v3968_v47  ;;  %v7727_v24 = vld [vmem:[%s12922_s7 + $0x68] ss:$0 sps:$4 sm:$0xff]   ;;  %vm14243_vm3 = vmmov %vm14242_vm9 }
 0x3e3   : > { %v3792_v57 = vpop.f32.mrf.mxu0 }
 0x3e4   : > { %v3793_v46 = vadd.f32 %v10798_v22, %v3792_v57  ;;  %v11298_v56 = vpop.permute.xlu0 %7374  ;;  %v14240_v57 = vld [vmem:[#allocation109_spill] sm:$0xff]  ;;  %v11354_v20 = vsel %vm14242_vm9, %v10671_v5, %v13277_v14  ;;  %v7366_v5 = vunpack.i.l.bf16 %v11282_v8  ;;  %v7361_v14 = vunpack.i.l.bf16 %v11292_v62 }
 0x3e5   : > { %v3794_v18 = vpop.f32.mrf.mxu0  ;;  %vm14241_vm12 = vnez %v14240_v57  ;;  %vm14252_vm9 = vnez %v14251_v23  ;;  %v7367_v23 = vunpack.i.h.bf16 %v11282_v8  ;;  %v7362_v8 = vunpack.i.h.bf16 %v11292_v62  ;;  %v7730_v62 = vld [vmem:[%s12922_s7 + $0x50] sm:$0xff]  }
 0x3e6   : > { %v11305_v48 = vmax.f32 %v3793_v46, 0.0 }
 0x3e7   : > { %v3795_v31 = vpop.f32.mrf.mxu0 }
 0x3e8   : > { %v3873_v53 = vrot.slane %v11305_v48, 7  ;;  %v3969_v19 = vrot.slane %v11305_v48, 1  ;;  %v3796_v55 = vadd.f32 %v10798_v22, %v3795_v31  ;;  %v11320_v50 = vpop.permute.xlu0 %7379 }
 0x3e9   : > { %v3797_v25 = vpop.f32.mrf.mxu0 }
 0x3ea   : > { %v11324_v36 = vsel %vm14237_vm7, %v3872_v17, %v3873_v53  ;;  %v3980_v54 = vsel %vm14239_vm15, %v3968_v47, %v3969_v19  ;;  %v3842_v9 = vmax.f32 %v3796_v55, 0.0  ;;  %v11341_v17 = vld [vmem:[%s12921_s6] ss:$0 sm:$0xff]  ;;  %v11360_v55 = vsel %vm14243_vm3, %v10668_v41, %v13278_v11 }
 0x3eb   : > { %14238 = vst [vmem:[#allocation142_spill] sm:$0xff] %v11324_v36  ;;  %v4032_v22 = vsel %vm14241_vm12, 0.0, %v3980_v54  ;;  %vm14245_vm15 = vcmask 1043456   ;;  %v7376_v54 = vunpack.i.l.bf16 %v11298_v56  ;;  %vm14253_vm3 = vcmask 392192  }
 0x3ec   : > { %v7488_v52 = vpack.i.bf16 %v4032_v22, %v3981_v27  ;;  %v3874_v59 = vrot.slane %v3842_v9, 7  ;;  %v7493_v18 = vpack.i.bf16 %v3842_v9, %v11305_v48  ;;  %v11348_v47 = vpop.permute.xlu0 %7384  ;;  %v3970_v57 = vrot.slane %v3842_v9, 1 }
 0x3ed   : > { %v3800_v40 = vpop.f32.mrf.mxu0  ;;  %v11344_v46 = vpop.permute.xlu1 %7394  ;;  %v7342_v9 = vunpack.i.h.bf16 %v11262_v60 }
 0x3ee   : > { %v3801_v28 = vadd.f32 %v11341_v17, %v3800_v40  ;;  %v3917_v40 = vsel %vm13806_vm0, 0.0, %v10945_v2  ;;  %7489 = vrot.lane.b32.xlu1 %v7488_v52, %s7817_s15  ;;  %v11373_v22 = vsel %vm14237_vm7, %v3873_v53, %v3874_v59  ;;  %7494 = vrot.lane.b32.xlu0 %v7493_v18, %s7822_s16  ;;  %v7728_v53 = vld [vmem:[%s12922_s7 + $0x60] sm:$0xff]   ;;  %vm14246_vm0 = vmmov %vm14237_vm7 }
 0x3ef   : > { %v3802_v31 = vpop.f32.mrf.mxu0  ;;  %14244 = vst [vmem:[#allocation22_spill] sm:$0xff] %v11373_v22 }
 0x3f0   : > { %v11367_v27 = vmax.f32 %v3801_v28, 0.0  ;;  %v4837_v31 = vsel %vm14245_vm15, %v7727_v24, 0  ;;  %v3919_v24 = vsel %vm13816_vm11, 0.0, %v10973_v44  ;;  %vm14248_vm11 = vmmov %vm14232_vm5  ;;  %vm14249_vm5 = vcmask 195584  }
 0x3f1   : > { %v3803_v41 = vpop.f32.mrf.mxu0  ;;  %6514 = vmatpush2.bf16.msra.mxu1 %v4837_v31  ;;  %4860 = vmatpush2.bf16.msra.mxu0 %v4837_v31  ;;  %v7352_v31 = vunpack.i.h.bf16 %v11264_v12  ;;  %vm14250_vm12 = vmmov %vm14248_vm11 }
 0x3f2   : > { %v3875_v45 = vrot.slane %v11367_v27, 7  ;;  %v13281_v2 = vrot.slane %v11367_v27, 1  ;;  %v3804_v18 = vadd.f32 %v11341_v17, %v3803_v41  ;;  %v11393_v25 = vpop.permute.xlu0 %7389  ;;  %6501 = vmatprep.subr.bf16.mxu1 %v13901_v15  ;;  %4861 = vmatprep.subr.bf16.mxu0 %v13901_v15  ;;  %v11403_v44 = vpop.permute.xlu1 %7399  ;;  %v3979_v43 = vsel %vm14250_vm12, %v3969_v19, %v3970_v57  ;;  %vm14254_vm7 = vmmov %vm14249_vm5 }
 0x3f3   : > { %v3805_v28 = vpop.f32.mrf.mxu0  ;;  %v4296_v48 = vsel %vm14254_vm7, %v10847_v7, %v7342_v9  ;;  %vm14255_vm15 = vmmov %vm14253_vm3  ;;  %vm14267_vm7 = vcmask 130048  }
 0x3f4   : > { %v11401_v37 = vsel %vm14246_vm0, %v3874_v59, %v3875_v45  ;;  %v3978_v41 = vsel %vm14248_vm11, %v3970_v57, %v13281_v2  ;;  %v4303_v28 = vsel %vm14249_vm5, %v3919_v24, %v7366_v5  ;;  %v11410_v11 = vmax.f32 %v3804_v18, 0.0  ;;  %v7729_v5 = vld [vmem:[%s12922_s7 + $0x58] sm:$0xff]   ;;  %vm14256_vm0 = vmmov %vm14249_vm5 }
 0x3f5   : > { %14247 = vst [vmem:[#allocation68_spill] sm:$0xff] %v11401_v37  ;;  %v3808_v52 = vpop.f32.mrf.mxu0  ;;  %v4034_v59 = vsel %vm14252_vm9, 0.0, %v3978_v41  ;;  %v11420_v22 = vsel %vm14253_vm3, %v4303_v28, %v7376_v54  ;;  %6515 = vmatpush2.bf16.msra.mxu1 %v7728_v53  ;;  %4862 = vmatpush2.bf16.msra.mxu0 %v7728_v53  ;;  %v4301_v9 = vsel %vm14256_vm0, %v3917_v40, %v7361_v14  ;;  %vm14257_vm11 = vcmp.lt.s32.totalorder %v7944_v3, 1  ;;  %vm14260_vm5 = vmmov %vm14256_vm0 }
 0x3f6   : > { %v3809_v2 = vadd.f32 %v11341_v17, %v3808_v52  ;;  %v7498_v36 = vpack.i.bf16 %v4034_v59, %v3979_v43  ;;  %v3876_v57 = vrot.slane %v11410_v11, 7  ;;  %6502 = vmatprep.subr.bf16.mxu1 %v13901_v15  ;;  %v11436_v52 = vsel %vm14255_vm15, %v4296_v48, %v7352_v31  ;;  %4863 = vmatprep.subr.bf16.mxu0 %v13901_v15  ;;  %v7415_v48 = vpop.permute.xlu1 %7414  ;;  %vm14261_vm12 = vmmov %vm14257_vm11 }
 0x3f7   : > { %v3810_v24 = vpop.f32.mrf.mxu0  ;;  %v14259_v28 = vmov 0.0   ;;  %v7386_v59 = vunpack.i.l.bf16 %v11348_v47  ;;  %v7372_v14 = vunpack.i.h.bf16 %v11312_v26  ;;  %v7371_v40 = vunpack.i.l.bf16 %v11312_v26  ;;  %vm14265_vm3 = vmmov %vm14256_vm0 }
 0x3f8   : > { %v11431_v54 = vpop.permute.xlu0 %7404  ;;  %v11439_v7 = vmax.f32 %v3809_v2, 0.0  ;;  %7499 = vrot.lane.b32.xlu1 %v7498_v36, %s7817_s15  ;;  %v11447_v53 = vsel %vm14257_vm11, %v3875_v45, %v3876_v57  ;;  %v7518_v31 = vpack.i.bf16 %v11420_v22, %v14259_v28  ;;  %v4304_v45 = vsel %vm14260_vm5, %v10991_v10, %v7367_v23  ;;  %vm14269_vm15 = vmmov %vm14267_vm7 }
 0x3f9   : > { %14258 = vst [vmem:[#allocation141_spill] sm:$0xff] %v11447_v53  ;;  %v3811_v41 = vpop.f32.mrf.mxu0  ;;  %6516 = vmatpush2.bf16.msra.mxu1 %v7729_v5  ;;  %v3972_v28 = vrot.slane %v11410_v11, 1  ;;  %4864 = vmatpush2.bf16.msra.mxu0 %v7729_v5  ;;  %v7396_v10 = vunpack.i.l.bf16 %v11344_v46  ;;  %v7417_v23 = vunpack.i.h.bf16 %v7415_v48  ;;  %vm14263_vm9 = vcmp.lt.s32.totalorder %v7944_v3, 7  ;;  %vm14275_vm5 = vmmov %vm14257_vm11 }
 0x3fa   : > { %v3877_v2 = vrot.slane %v11439_v7, 7  ;;  %v13282_v36 = vrot.slane %v11439_v7, 1  ;;  %v3812_v24 = vadd.f32 %v11341_v17, %v3811_v41  ;;  %6503 = vmatprep.subr.bf16.mxu1 %v13901_v15  ;;  %4865 = vmatprep.subr.bf16.mxu0 %v13901_v15  ;;  %v14268_v53 = vunpack.i.l.bf16 %v10987_v6  ;;  %vm14271_vm0 = vmmov %vm14263_vm9 }
 0x3fb   : > { %v3813_v18 = vpop.f32.mrf.mxu0 }
 0x3fc   : > { %v7410_v19 = vpop.permute.xlu0 %7409  ;;  %v11466_v17 = vsel %vm14261_vm12, %v3876_v57, %v3877_v2  ;;  %v11468_v41 = vmax.f32 %v3812_v24, 0.0  ;;  %7519 = vrot.lane.b32.xlu1 %v7518_v31, %s7821_s13  ;;  %v7416_v18 = vunpack.i.l.bf16 %v7415_v48  ;;  %v3976_v5 = vsel %vm14263_vm9, %v3972_v28, %v13282_v36  ;;  %vm14277_vm12 = vmmov %vm14267_vm7 }
 0x3fd   : > { %14262 = vst [vmem:[#allocation136_spill] sm:$0xff] %v11466_v17  ;;  %v7412_v43 = vunpack.i.h.bf16 %v7410_v19  ;;  %v7411_v26 = vunpack.i.l.bf16 %v7410_v19  ;;  %v7377_v57 = vunpack.i.h.bf16 %v11298_v56  ;;  %v7387_v24 = vunpack.i.h.bf16 %v11348_v47  ;;  %6517 = vmatpush2.bf16.msra.mxu1 %v7730_v62  ;;  %v14272_v47 = vld [vmem:[#allocation113_spill] sm:$0xff]  ;;  %4866 = vmatpush2.bf16.msra.mxu0 %v7730_v62  ;;  %vm14279_vm9 = vmmov %vm14267_vm7 }
 0x3fe   : > { %v14264_v31 = vsel %vm13831_vm13, 0.0, %v11011_v42  ;;  %v3878_v37 = vrot.slane %v11468_v41, 7  ;;  %v14266_v48 = vunpack.i.h.bf16 %v10987_v6  ;;  %v14270_v56 = vrot.slane %v11367_v27, 1  ;;  %6504 = vmatprep.subr.bf16.mxu1 %v13901_v15  ;;  %4867 = vmatprep.subr.bf16.mxu0 %v13901_v15 }
 0x3ff   : > { %v4305_v19 = vsel %vm14265_vm3, %v14264_v31, %v7386_v59  ;;  %v2232_v36 = vsel %vm14269_vm15, %v14268_v53, %v7411_v26  ;;  %vm14273_vm13 = vnez %v14272_v47  ;;  %v7731_v59 = vld [vmem:[%s12922_s7 + $0x48] sm:$0xff]   ;;  %v14274_v53 = vrot.slane %v10815_v29, 7 }
 0x400   : > { %v2233_v17 = vsel %vm14267_vm7, %v14266_v48, %v7412_v43  ;;  %v3977_v61 = vsel %vm14271_vm0, %v14270_v56, %v3972_v28  ;;  %v4036_v42 = vsel %vm14273_vm13, 0.0, %v3976_v5  ;;  %v7397_v43 = vunpack.i.h.bf16 %v11344_v46  ;;  %v14282_v56 = vld [vmem:[#allocation120_spill] sm:$0xff] }
 0x401   : > { %v11504_v6 = vsel %vm14257_vm11, %v3877_v2, %v3878_v37  ;;  %v3910_v28 = vsel %vm14275_vm5, %v3878_v37, %v14274_v53  ;;  %v7523_v26 = vpack.i.bf16 %v4036_v42, %v3977_v61  ;;  %v14276_v5 = vunpack.i.h.bf16 %v11020_v13  ;;  %v14286_v53 = vld [vmem:[#allocation137_spill] sm:$0xff]  ;;  %6518 = vmatpush2.bf16.msra.mxu1 %v7731_v59  ;;  %4868 = vmatpush2.bf16.msra.mxu0 %v7731_v59 }
 0x402   : > { %v14278_v62 = vunpack.i.l.bf16 %v11020_v13  ;;  %vm14280_vm3 = vnez %v13766_v38  ;;  %vm14281_vm7 = vcmask 392192   ;;  %vm14283_vm15 = vcmask 195584   ;;  %v11526_v47 = vpop.f32.mrf.mxu1  ;;  %6505 = vmatprep.subr.bf16.mxu1 %v13901_v15  ;;  %4869 = vmatprep.subr.bf16.mxu0 %v13901_v15 }
 0x403   : > { %v2235_v31 = vsel %vm14277_vm12, %v14276_v5, %v7417_v23  ;;  %v3911_v2 = vsel %vm14280_vm3, 0.0, %v3910_v28  ;;  %v11520_v48 = vsel %vm14281_vm7, %v4305_v19, %v7396_v10  ;;  %v4306_v37 = vsel %vm14283_vm15, %v14282_v56, %v7387_v24  ;;  %7524 = vrot.lane.b32.xlu1 %v7523_v26, %s7817_s15  ;;  %v11528_v23 = vpop.permute.xlu0 %7419  ;;  %vm14285_vm0 = vmmov %vm14283_vm15  ;;  %v7425_v5 = vpop.permute.xlu1 %7424 }
 0x404   : > { %v2234_v46 = vsel %vm14279_vm9, %v14278_v62, %v7416_v18  ;;  %v3974_v61 = vrot.slane %v11468_v41, 1  ;;  %v2265_v42 = vpack.c.bf16 %v2233_v17, %v2232_v36  ;;  %v14284_v18 = vunpack.i.l.bf16 %v11262_v60  ;;  %vm14287_vm13 = vmmov %vm14285_vm0  ;;  %v14292_v36 = vld [vmem:[#allocation117_spill] sm:$0xff]  ;;  %v14293_v17 = vld [vmem:[#allocation118_spill] sm:$0xff]  ;;  %v2476_v62 = vpop.f32.mrf.mxu1 }
 0x405   : > { %v4302_v10 = vsel %vm14287_vm13, %v14286_v53, %v7362_v8  ;;  %vm14288_vm11 = vmmov %vm14281_vm7  ;;  %v14290_v28 = vunpack.i.l.bf16 %v11264_v12  ;;  %vm14294_vm9 = vnez %v14293_v17  ;;  %vm14295_vm3 = vcmask 719872   ;;  %v7732_v12 = vld [vmem:[%s12922_s7 + $0x40] sm:$0xff]   ;;  %v14362_v17 = vld [vmem:[#allocation62_spill] sm:$0xff] }
 0x406   : > { %v4295_v38 = vsel %vm14285_vm0, %v3911_v2, %v14284_v18  ;;  %v11536_v19 = vsel %vm14288_vm11, %v4301_v9, %v7371_v40  ;;  %vm14289_vm5 = vmmov %vm14281_vm7  ;;  %v3913_v60 = vsel %vm14294_vm9, 0.0, %v14292_v36  ;;  %6292 = vmatprep.mubr.msk.bf16.mxu1 %vm14295_vm3, %v2265_v42  ;;  %v2267_v9 = vpack.c.bf16 %v2235_v31, %v2234_v46  ;;  %6519 = vmatpush2.bf16.msra.mxu1 %v7732_v12 }
 0x407   : > { %v11539_v24 = vsel %vm14289_vm5, %v4304_v45, %v7377_v57  ;;  %vm14291_vm12 = vmmov %vm14289_vm5  ;;  %v7422_v57 = vunpack.i.h.bf16 %v11528_v23  ;;  %v7421_v2 = vunpack.i.l.bf16 %v11528_v23  ;;  %v14297_v56 = vpack.c.bf16 %v11360_v55, %v11354_v20  ;;  %4870 = vmatpush2.bf16.msra.mxu0 %v7732_v12 }
 0x408   : > { %v11544_v26 = vsel %vm14291_vm12, %v4295_v38, %v14290_v28  ;;  %v7538_v8 = vpack.i.bf16 %v11520_v48, %v11539_v24  ;;  %vm14296_vm7 = vmmov %vm14289_vm5  ;;  %v14299_v46 = vunpack.i.l.bf16 %v11243_v1  ;;  %v14301_v23 = vrot.slane %v10815_v29, 1  ;;  %v14310_v29 = vld [vmem:[#allocation121_spill] sm:$0xff] }
 0x409   : > { %v7503_v40 = vpack.i.bf16 %v11436_v52, %v11544_v26  ;;  %v11559_v45 = vsel %vm14296_vm7, %v4302_v10, %v7372_v14  ;;  %2569 = vmatmul.mubr.bf16.gmra.mxu1 %v14297_v56  ;;  %vm14298_vm15 = vmmov %vm14289_vm5  ;;  %v11573_v14 = vpop.f32.mrf.mxu1  ;;  %vm14302_vm11 = vcmp.lt.s32.totalorder %v7944_v3, 7  ;;  %v14303_v55 = vunpack.i.l.bf16 %v11020_v13 }
 0x40a   : > { %v11567_v31 = vsel %vm14298_vm15, %v4306_v37, %v7397_v43  ;;  %v4297_v42 = vsel %vm14285_vm0, %v3913_v60, %v14299_v46  ;;  %7539 = vrot.lane.b32.xlu1 %v7538_v8, %s7821_s13  ;;  %vm14300_vm13 = vmmov %vm14295_vm3  ;;  %v4006_v20 = vsel %vm14302_vm11, %v3974_v61, %v14301_v23  ;;  %v14304_v43 = vld [vmem:[#allocation115_spill] sm:$0xff]  ;;  %vm14305_vm5 = vcmask 588800   ;;  %v14316_v46 = vld [vmem:[#allocation133_spill] sm:$0xff] }
 0x40b   : > { %6293 = vmatprep.mubr.msk.bf16.mxu1 %vm14300_vm13, %v2267_v9  ;;  %v2201_v59 = vsel %vm14305_vm5, %v14304_v43, %v14303_v55  ;;  %v14306_v37 = vunpack.i.l.bf16 %v11275_v35  ;;  %vm14307_vm12 = vmmov %vm14296_vm7  ;;  %v7427_v38 = vunpack.i.h.bf16 %v7425_v5  ;;  %v7426_v53 = vunpack.i.l.bf16 %v7425_v5  ;;  %7504 = vrot.lane.b32.xlu0 %v7503_v40, %s14011_s12  ;;  %v2479_v62 = vpop.f32.mrf.mxu1  ;;  %v14318_v43 = vld [vmem:[#allocation135_spill] sm:$0xff] }
 0x40c   : > { %v14309_v10 = vunpack.i.h.bf16 %v11020_v13  ;;  %vm14311_vm3 = vmmov %vm14305_vm5  ;;  %v7401_v36 = vunpack.i.l.bf16 %v11403_v44  ;;  %v7406_v60 = vunpack.i.l.bf16 %v11431_v54  ;;  %v7508_v9 = vpack.i.bf16 %v11559_v45, %v11536_v19 }
 0x40d   : > { %v11587_v18 = vsel %vm14307_vm12, %v4297_v42, %v14306_v37  ;;  %vm14312_vm7 = vcmask 130048   ;;  %v14314_v40 = vrot.slane %v11439_v7, 1  ;;  %vm14315_vm0 = vmmov %vm14302_vm11  ;;  %vm14317_vm13 = vnez %v14316_v46  ;;  %v11611_v55 = vpop.f32.mrf.mxu1 }
 0x40e   : > { %14308 = vst [vmem:[#allocation144_spill] sm:$0xff] %v11587_v18  ;;  %v2202_v28 = vsel %vm14311_vm3, %v14310_v29, %v14309_v10  ;;  %v7543_v8 = vpack.i.bf16 %v11587_v18, %v11567_v31  ;;  %v2237_v5 = vsel %vm14312_vm7, %v7422_v57, %v7427_v38  ;;  %vm14313_vm15 = vmmov %vm14312_vm7  ;;  %v4038_v42 = vsel %vm14317_vm13, 0.0, %v4006_v20 }
 0x40f   : > { %v2236_v13 = vsel %vm14313_vm15, %v7421_v2, %v7426_v53  ;;  %v3975_v56 = vsel %vm14315_vm0, %v14314_v40, %v3974_v61  ;;  %v7347_v23 = vunpack.i.h.bf16 %v11243_v1  ;;  %v7357_v15 = vunpack.i.h.bf16 %v11275_v35  ;;  %7509 = vrot.lane.b32.xlu0 %v7508_v9, %s14011_s12  ;;  %v2484_v12 = vpop.f32.mrf.mxu1  ;;  %vm14321_vm5 = vmmov %vm14307_vm12 }
 0x410   : > { %7544 = vrot.lane.b32.xlu1 %v7543_v8, %s7821_s13  ;;  %v3923_v38 = vsel %vm13843_vm4, 0.0, %v14318_v43  ;;  %v2266_v53 = vpack.c.bf16 %v2202_v28, %v2201_v59  ;;  %v7402_v61 = vunpack.i.h.bf16 %v11403_v44  ;;  %vm14320_vm11 = vcmask 195584   ;;  %v14323_v8 = vld [vmem:[#allocation125_spill] sm:$0xff]  ;;  %vm14326_vm3 = vmmov %vm14321_vm5 }
 0x411   : > { %v4307_v20 = vsel %vm14320_vm11, %v3923_v38, %v7401_v36  ;;  %v7558_v10 = vpack.i.bf16 %v4038_v42, %v3975_v56  ;;  %v2269_v1 = vpack.c.bf16 %v2237_v5, %v2236_v13  ;;  %v7513_v29 = vpack.i.bf16 %v11410_v11, %v11367_v27  ;;  %vm14324_vm4 = vmmov %vm14320_vm11  ;;  %v11630_v44 = vpop.f32.mrf.mxu1  ;;  %v14331_v13 = vld [vmem:[#allocation122_spill] sm:$0xff]  ;;  %v7435_v42 = vpop.permute.xlu1 %7434 }
 0x412   : > { %v7407_v62 = vunpack.i.h.bf16 %v11431_v54  ;;  %v11624_v35 = vsel %vm14321_vm5, %v4307_v20, %v7406_v60  ;;  %2577 = vmatmul.mubr.bf16.gmra.mxu1 %v2266_v53  ;;  %v4298_v9 = vsel %vm14324_vm4, %v14323_v8, %v7347_v23  ;;  %v7381_v59 = vunpack.i.l.bf16 %v11320_v50  ;;  %vm14328_vm7 = vmmov %vm14324_vm4  ;;  %v14329_v60 = vld [vmem:[#allocation124_spill] sm:$0xff]  ;;  %v14333_v56 = vld [vmem:[#allocation126_spill] sm:$0xff] }
 0x413   : > { %14322 = vst [vmem:[#allocation18_spill] sm:$0xff] %v11624_v35  ;;  %vm14325_vm12 = vcmask 719872   ;;  %v11634_v28 = vsel %vm14326_vm3, %v4298_v9, %v7357_v15  ;;  %v7391_v11 = vunpack.i.l.bf16 %v11393_v25  ;;  %7514 = vrot.lane.b32.xlu0 %v7513_v29, %s7822_s16  ;;  %v4308_v27 = vsel %vm14328_vm7, %v11085_v32, %v7402_v61  ;;  %v2487_v54 = vpop.f32.mrf.mxu1  ;;  %vm14335_vm11 = vmmov %vm14326_vm3 }
 0x414   : > { %7559 = vrot.lane.b32.xlu1 %v7558_v10, %s7817_s15  ;;  %6294 = vmatprep.mubr.msk.bf16.mxu1 %vm14325_vm12, %v2269_v1  ;;  %14327 = vst [vmem:[#allocation129_spill] sm:$0xff] %v11634_v28  ;;  %v7563_v36 = vpack.i.bf16 %v11624_v35, %v11634_v28  ;;  %vm14330_vm15 = vcmask 588800   ;;  %v3915_v23 = vsel %vm13791_vm10, 0.0, %v14333_v56  ;;  %v11650_v15 = vsel %vm14335_vm11, %v4308_v27, %v7407_v62  ;;  %vm14337_vm5 = vmmov %vm14324_vm4  ;;  %v14339_v27 = vld [vmem:[#allocation119_spill] sm:$0xff] }
 0x415   : > { %v2203_v5 = vsel %vm14330_vm15, %v14329_v60, %v7421_v2  ;;  %vm14332_vm0 = vmmov %vm14330_vm15  ;;  %14336 = vst [vmem:[#allocation116_spill] sm:$0xff] %v11650_v15  ;;  %v7528_v32 = vpack.i.bf16 %v11539_v24, %v11420_v22  ;;  %v4299_v43 = vsel %vm14337_vm5, %v3915_v23, %v7381_v59  ;;  %v11656_v37 = vpop.f32.mrf.mxu1  ;;  %v7533_v61 = vpack.i.bf16 %v11634_v28, %v11587_v18 }
 0x416   : > { %v2204_v40 = vsel %vm14332_vm0, %v14331_v13, %v7422_v57  ;;  %vm14338_vm4 = vmmov %vm14326_vm3  ;;  %v7548_v10 = vpack.i.bf16 %v11567_v31, %v11520_v48  ;;  %v7382_v62 = vunpack.i.h.bf16 %v11320_v50  ;;  %v7553_v8 = vpack.i.bf16 %v11468_v41, %v11439_v7 }
 0x417   : > { %v11659_v2 = vsel %vm14338_vm4, %v4299_v43, %v7391_v11  ;;  %7529 = vrot.lane.b32.xlu0 %v7528_v32, %s14011_s12  ;;  %v2268_v57 = vpack.c.bf16 %v2204_v40, %v2203_v5  ;;  %v2492_v38 = vpop.f32.mrf.mxu1  ;;  %v7392_v9 = vunpack.i.h.bf16 %v11393_v25  ;;  %vm14340_vm10 = vmmov %vm14337_vm5  ;;  %v11704_v32 = vld [vmem:[%s12924_s9 + $0x8] sm:$0xff]   ;;  %v7437_v43 = vunpack.i.h.bf16 %v7435_v42 }
 0x418   : > { %7564 = vrot.lane.b32.xlu1 %v7563_v36, %s7821_s13  ;;  %v7568_v53 = vpack.i.bf16 %v11659_v2, %v11650_v15  ;;  %v4300_v54 = vsel %vm14340_vm10, %v14339_v27, %v7382_v62  ;;  %v7573_v36 = vpack.i.bf16 %v11650_v15, %v11624_v35  ;;  %vm14341_vm12 = vmmov %vm14326_vm3  ;;  %6456 = vmatprep.subr.bf16.mxu0 %v11704_v32 }
 0x419   : > { %v11667_v20 = vpop.f32.mrf.mxu1  ;;  %v11687_v60 = vsel %vm14341_vm12, %v4300_v54, %v7392_v9  ;;  %vm14343_vm3 = vmmov %vm14337_vm5 }
 0x41a   : > { %2585 = vmatmul.mubr.bf16.gmra.mxu1 %v2268_v57  ;;  %v7578_v25 = vpack.i.bf16 %v11687_v60, %v11659_v2  ;;  %v7436_v57 = vunpack.i.l.bf16 %v7435_v42  ;;  %vm14344_vm7 = vmmov %vm14343_vm3  ;;  %v11733_v42 = vpop.permute.xlu0 %7429 }
 0x41b   : > { %7534 = vrot.lane.b32.xlu0 %v7533_v61, %s14011_s12  ;;  %v2495_v12 = vpop.f32.mrf.mxu1  ;;  %vm14345_vm15 = vmmov %vm14338_vm4 }
 0x41c   : > { %7569 = vrot.lane.b32.xlu1 %v7568_v53, %s7821_s13  ;;  %vm14347_vm0 = vmmov %vm14338_vm4 }
 0x41d   : > { %v11672_v1 = vpop.f32.mrf.mxu1  ;;  %vm14351_vm11 = vmmov %vm14343_vm3 }
 0x41e   : > { %vm14352_vm5 = vmmov %vm14347_vm0 }
 0x41f   : > { %7549 = vrot.lane.b32.xlu0 %v7548_v10, %s14011_s12  ;;  %v2500_v29 = vpop.f32.mrf.mxu1  ;;  %v3925_v10 = vsel %vm13853_vm14, 0.0, %v11112_v51  ;;  %vm14350_vm14 = vmmov %vm14343_vm3 }
 0x420   : > { %v4309_v9 = vsel %vm14344_vm7, %v3925_v10, %v7436_v57  ;;  %vm14354_vm4 = vmmov %vm14347_vm0 }
 0x421   : > { %v11679_v59 = vpop.f32.mrf.mxu1  ;;  %vm14365_vm10 = vmmov %vm14343_vm3 }
 0x422   : > { %vm14367_vm12 = vmmov %vm14347_vm0 }
 0x423   : > { %7554 = vrot.lane.b32.xlu0 %v7553_v8, %s7822_s16  ;;  %v2503_v11 = vpop.f32.mrf.mxu1  ;;  %v4310_v8 = vsel %vm14343_vm3, %v11132_v49, %v7437_v43  ;;  %s7824_s16 = smov 104  }
 0x425   : > { %v11689_v50 = vpop.f32.mrf.mxu1 }
 0x427   : > { %7574 = vrot.lane.b32.xlu0 %v7573_v36, %s14011_s12  ;;  %v2508_v7 = vpop.f32.mrf.mxu1 }
 0x429   : > { %v11694_v41 = vpop.f32.mrf.mxu1 }
 0x42b   : > { %7579 = vrot.lane.b32.xlu0 %v7578_v25, %s14011_s12  ;;  %v2511_v5 = vpop.f32.mrf.mxu1 }
 0x42d   : > { %v11697_v13 = vpop.f32.mrf.mxu1  ;;  %v7440_v61 = vpop.permute.xlu1 %7439 }
 0x42e   : > { %v7442_v29 = vunpack.i.h.bf16 %v7440_v61  ;;  %v7441_v62 = vunpack.i.l.bf16 %v7440_v61 }
 0x42f   : > { %v2516_v40 = vpop.f32.mrf.mxu1 }
 0x430   : > { %v11718_v27 = vsel %vm14345_vm15, %v4309_v9, %v7441_v62  ;;  %v11721_v54 = vsel %vm14347_vm0, %v4310_v8, %v7442_v29  ;;  %v3927_v29 = vsel %vm13867_vm6, 0.0, %v11178_v0  ;;  %vm14361_vm6 = vcmp.lt.s32.totalorder %v7944_v3, 7  ;;  %vm14386_vm15 = vmmov %vm14344_vm7 }
 0x431   : > { %v11699_v56 = vpop.f32.mrf.mxu1  ;;  %14346 = vst [vmem:[#allocation140_spill] sm:$0xff] %v11718_v27  ;;  %14348 = vst [vmem:[#allocation143_spill] sm:$0xff] %v11721_v54  ;;  %v7583_v7 = vpack.i.bf16 %v11718_v27, %v11687_v60  ;;  %v7593_v51 = vpack.i.bf16 %v11721_v54, %v11718_v27  ;;  %v7588_v5 = vpack.i.bf16 %v11536_v19, %v11721_v54  ;;  %v7445_v40 = vpop.permute.xlu1 %7444 }
 0x432   : > { %v7447_v43 = vunpack.i.h.bf16 %v7445_v40  ;;  %v7446_v57 = vunpack.i.l.bf16 %v7445_v40 }
 0x433   : > { %v2519_v23 = vpop.f32.mrf.mxu1  ;;  %7584 = vrot.lane.b32.xlu1 %v7583_v7, %s7821_s13  ;;  %7594 = vrot.lane.b32.xlu0 %v7593_v51, %s14011_s12 }
 0x434   : > { %v4312_v9 = vsel %vm14350_vm14, %v11192_v4, %v7447_v43  ;;  %vm14390_vm14 = vmmov %vm14347_vm0 }
 0x435   : > { %v11706_v38 = vpop.f32.mrf.mxu1 }
 0x437   : > { %v2524_v53 = vpop.f32.mrf.mxu1  ;;  %7589 = vrot.lane.b32.xlu1 %v7588_v5, %s7821_s13 }
 0x439   : > { %v11715_v11 = vpop.f32.mrf.mxu1 }
 0x43b   : > { %v2527_v36 = vpop.f32.mrf.mxu1  ;;  %v7450_v12 = vpop.permute.xlu0 %7449 }
 0x43c   : > { %v7452_v62 = vunpack.i.h.bf16 %v7450_v12  ;;  %v7451_v8 = vunpack.i.l.bf16 %v7450_v12  ;;  %v4311_v36 = vsel %vm14351_vm11, %v3927_v29, %v7446_v57  ;;  %v14356_v12 = vld [vmem:[#allocation8_spill] sm:$0xff]  ;;  %v14357_v29 = vld [vmem:[#allocation9_spill] sm:$0xff] }
 0x43d   : > { %v11727_v25 = vpop.f32.mrf.mxu1  ;;  %v5098_v4 = vsel %vm14294_vm9, -inf, %v14356_v12  ;;  %v5259_v12 = vmax.f32 %v14362_v17, %v14357_v29  ;;  %vm14364_vm9 = vmmov %vm14343_vm3  ;;  %v14376_v17 = vld [vmem:[#allocation17_spill] sm:$0xff] }
 0x43e   : > { %v11747_v51 = vsel %vm14352_vm5, %v4312_v9, %v7452_v62  ;;  %v14358_v62 = vrot.slane %v14357_v29, 1  ;;  %vm14369_vm3 = vmmov %vm14347_vm0 }
 0x43f   : > { %v2532_v49 = vpop.f32.mrf.mxu1  ;;  %14353 = vst [vmem:[#allocation151_spill] sm:$0xff] %v11747_v51  ;;  %v7455_v40 = vpop.permute.xlu0 %7454  ;;  %vm14399_vm5 = vmmov %vm14344_vm7 }
 0x440   : > { %v11750_v49 = vsel %vm14354_vm4, %v4311_v36, %v7451_v8  ;;  %v7457_v43 = vunpack.i.h.bf16 %v7455_v40  ;;  %v7456_v57 = vunpack.i.l.bf16 %v7455_v40  ;;  %v14359_v8 = vld [vmem:[#allocation5_spill] sm:$0xff]  ;;  %vm14400_vm4 = vmmov %vm14399_vm5 }
 0x441   : > { %v11735_v23 = vpop.f32.mrf.mxu1  ;;  %14355 = vst [vmem:[#allocation154_spill] sm:$0xff] %v11750_v49  ;;  %v7598_v0 = vpack.i.bf16 %v11750_v49, %v11559_v45  ;;  %v14360_v9 = vrot.slane %v14359_v8, 1 }
 0x442   : > { %v4314_v27 = vsel %vm14364_vm9, %v11219_v33, %v7457_v43  ;;  %vm14403_vm9 = vmmov %vm14347_vm0 }
 0x443   : > { %v2535_v53 = vpop.f32.mrf.mxu1  ;;  %7599 = vrot.lane.b32.xlu1 %v7598_v0, %s7821_s13  ;;  %v5188_v36 = vsel %vm14361_vm6, %v14360_v9, %v14358_v62  ;;  %v3929_v0 = vsel %vm14035_vm8, 0.0, %v11205_v63  ;;  %v14366_v62 = vld [vmem:[#allocation13_spill] sm:$0xff]  ;;  %vm14401_vm6 = vmmov %vm14347_vm0 }
 0x444   : > { %v7603_v53 = vpack.i.bf16 %v11747_v51, %v11750_v49  ;;  %v7460_v49 = vpop.permute.xlu1 %7459  ;;  %v5226_v54 = vmax.f32 %v5098_v4, %v5188_v36  ;;  %v4313_v15 = vsel %vm14365_vm10, %v3929_v0, %v7456_v57  ;;  %v5317_v9 = vmax.f32 %v5259_v12, %v14366_v62  ;;  %v14371_v36 = vld [vmem:[#allocation69_spill] sm:$0xff] }
 0x445   : > { %v11738_v61 = vpop.f32.mrf.mxu1  ;;  %v14372_v33 = vmax.f32 %v14366_v62, %v14371_v36  ;;  %v14380_v62 = vld [vmem:[#allocation72_spill] sm:$0xff] }
 0x446   : > { %7604 = vrot.lane.b32.xlu0 %v7603_v53, %s14011_s12  ;;  %v7461_v53 = vunpack.i.l.bf16 %v7460_v49  ;;  %v5258_v4 = vmax.f32 %v5226_v54, %v14359_v8  ;;  %v14375_v54 = vld [vmem:[#allocation12_spill] sm:$0xff] }
 0x447   : > { %v2540_v7 = vpop.f32.mrf.mxu1  ;;  %4517 = vrot.lane.b32.xlu1 %v11747_v51, %s7821_s13  ;;  %v11792_v43 = vmax.f32 %v14372_v33, %v5259_v12  ;;  %v14381_v51 = vld [vmem:[#allocation20_spill] sm:$0xff] }
 0x448   : > { %v11784_v29 = vsel %vm14367_vm12, %v4313_v15, %v7461_v53  ;;  %v5316_v8 = vmax.f32 %v5258_v4, %v14375_v54  ;;  %v14377_v15 = vmax.f32 %v14375_v54, %v14376_v17  ;;  %v14379_v53 = vld [vmem:[#allocation15_spill] sm:$0xff]  ;;  %v5290_v28 = vmax.f32 %v5258_v4, %v14381_v51  ;;  %vm14417_vm12 = vmmov %vm14400_vm4 }
 0x449   : > { %v11752_v5 = vpop.f32.mrf.mxu1  ;;  %14368 = vst [vmem:[#allocation128_spill] sm:$0xff] %v11784_v29  ;;  %14373 = vst [vmem:[#allocation152_spill] sm:$0xff] %v11792_v43  ;;  %v5263_v33 = vmax.f32 %v14380_v62, %v14379_v53 }
 0x44a   : > { %v11802_v40 = vmax.f32 %v14377_v15, %v5258_v4 }
 0x44b   : > { %v2543_v10 = vpop.f32.mrf.mxu1  ;;  %v5291_v18 = vmax.f32 %v5259_v12, %v5263_v33  ;;  %v14388_v12 = vld [vmem:[#allocation21_spill] sm:$0xff] }
 0x44c   : > { %v7462_v10 = vunpack.i.h.bf16 %v7460_v49  ;;  %v7465_v49 = vpop.permute.xlu0 %7464  ;;  %14378 = vst [vmem:[#allocation146_spill] sm:$0xff] %v11802_v40  ;;  %v7470_v15 = vpop.permute.xlu1 %7469 }
 0x44d   : > { %v11769_v7 = vpop.f32.mrf.mxu1  ;;  %v7466_v0 = vunpack.i.l.bf16 %v7465_v49  ;;  %v7471_v53 = vunpack.i.l.bf16 %v7470_v15 }
 0x44e   : > { %v11787_v63 = vsel %vm14369_vm3, %v4314_v27, %v7462_v10  ;;  %v7467_v27 = vunpack.i.h.bf16 %v7465_v49  ;;  %v11816_v49 = vmax.f32 %v5290_v28, %v14376_v17  ;;  %v5292_v28 = vmax.f32 %v14376_v17, %v14388_v12  ;;  %vm14418_vm3 = vmmov %vm14400_vm4 }
 0x44f   : > { %v2548_v35 = vpop.f32.mrf.mxu1  ;;  %14370 = vst [vmem:[#allocation145_spill] sm:$0xff] %v11787_v63  ;;  %v7608_v57 = vpack.i.bf16 %v11787_v63, %v11784_v29  ;;  %v11809_v63 = vpack.c.bf16 %v5317_v9, %v5316_v8  ;;  %v11825_v29 = vmax.f32 %v5291_v18, %v14371_v36 }
 0x450   : > { %14383 = vst [vmem:[#allocation160_spill] sm:$0xff] %v11816_v49  ;;  %v4316_v4 = vsel %vm14344_vm7, %v11239_v30, %v7467_v27  ;;  %v7475_v8 = vpop.permute.xlu0 %7474  ;;  %v14408_v49 = vld [vmem:[#allocation25_spill] sm:$0xff]  ;;  %vm14421_vm7 = vmmov %vm14347_vm0 }
 0x451   : > { %v11794_v35 = vpop.f32.mrf.mxu1  ;;  %7609 = vrot.lane.b32.xlu1 %v7608_v57, %s7821_s13  ;;  %7614 = vrot.lane.b32.xlu0 %v7608_v57, %s14011_s12  ;;  %14382 = vst [vmem:[#allocation157_spill] sm:$0xff] %v11809_v63  ;;  %14387 = vst [vmem:[#allocation148_spill] sm:$0xff] %v11825_v29  ;;  %v7477_v17 = vunpack.i.h.bf16 %v7475_v8  ;;  %v14415_v29 = vld [vmem:[#allocation40_spill] sm:$0xff] }
 0x452   : > { %14374 = vst [vmem:[#allocation153_spill] sm:$0xff] %v11794_v35  ;;  %v7472_v35 = vunpack.i.h.bf16 %v7470_v15  ;;  %v14392_v15 = vld [vmem:[#allocation82_spill] sm:$0xff]  ;;  %vm14416_vm10 = vnez %v14415_v29  ;;  %v14441_v63 = vld [vmem:[#allocation36_spill] sm:$0xff] }
 0x453   : > { %v2551_v10 = vpop.f32.mrf.mxu1 }
 0x454   : > { %v14384_v10 = vld [vmem:[#allocation33_spill] sm:$0xff] }
 0x455   : > { %v11813_v54 = vpop.f32.mrf.mxu1  ;;  %vm14385_vm8 = vnez %v14384_v10  ;;  %v5293_v10 = vmax.f32 %v14371_v36, %v14392_v15  ;;  %v7480_v36 = vpop.permute.xlu1 %7479 }
 0x456   : > { %v3931_v57 = vsel %vm14385_vm8, 0.0, %v11227_v58  ;;  %v11833_v58 = vsel %vm14390_vm14, %v4316_v4, %v7472_v35  ;;  %v7485_v4 = vpop.permute.xlu0 %7484  ;;  %vm14419_vm8 = vmmov %vm14347_vm0 }
 0x457   : > { %v4315_v9 = vsel %vm14386_vm15, %v3931_v57, %v7466_v0  ;;  %v2556_v62 = vpop.f32.mrf.mxu1  ;;  %14391 = vst [vmem:[#allocation159_spill] sm:$0xff] %v11833_v58  ;;  %v11844_v0 = vmax.f32 %v5292_v28, %v14381_v51  ;;  %v7476_v57 = vunpack.i.l.bf16 %v7475_v8  ;;  %v7482_v28 = vunpack.i.h.bf16 %v7480_v36 }
 0x458   : > { %v11830_v40 = vsel %vm14347_vm0, %v4315_v9, %v7471_v53  ;;  %v11846_v53 = vmax.f32 %v5293_v10, %v5263_v33  ;;  %v14396_v9 = vld [vmem:[#allocation37_spill] sm:$0xff]  ;;  %v4318_v8 = vsel %vm14399_vm5, %v11268_v16, %v7477_v17  ;;  %v5294_v16 = vmax.f32 %v14381_v51, %v14408_v49  ;;  %v14409_v17 = vld [vmem:[#allocation26_spill] sm:$0xff]  ;;  %vm14436_vm0 = vmmov %vm14418_vm3 }
 0x459   : > { %14389 = vst [vmem:[#allocation158_spill] sm:$0xff] %v11830_v40  ;;  %v11837_v30 = vpop.f32.mrf.mxu1  ;;  %v7618_v27 = vpack.i.bf16 %v11833_v58, %v11830_v40  ;;  %14394 = vst [vmem:[#allocation163_spill] sm:$0xff] %v11844_v0  ;;  %vm14397_vm11 = vnez %v14396_v9  ;;  %v7481_v58 = vunpack.i.l.bf16 %v7480_v36  ;;  %v14406_v0 = vld [vmem:[#allocation19_spill] sm:$0xff] }
 0x45a   : > { %14393 = vst [vmem:[#allocation150_spill] sm:$0xff] %v11837_v30  ;;  %14395 = vst [vmem:[#allocation166_spill] sm:$0xff] %v11846_v53  ;;  %v3933_v62 = vsel %vm14397_vm11, 0.0, %v11251_v39  ;;  %v14407_v36 = vld [vmem:[#allocation87_spill] sm:$0xff] }
 0x45b   : > { %v2559_v35 = vpop.f32.mrf.mxu1  ;;  %7619 = vrot.lane.b32.xlu1 %v7618_v27, %s7821_s13  ;;  %7624 = vrot.lane.b32.xlu0 %v7618_v27, %s14011_s12  ;;  %v4317_v10 = vsel %vm14400_vm4, %v3933_v62, %v7476_v57  ;;  %v11864_v27 = vsel %vm14403_vm9, %v4318_v8, %v7482_v28  ;;  %v5267_v53 = vmax.f32 %v14407_v36, %v14406_v0  ;;  %v7487_v57 = vunpack.i.h.bf16 %v7485_v4  ;;  %v14410_v62 = vld [vmem:[#allocation94_spill] sm:$0xff]  ;;  %vm14437_vm14 = vmmov %vm14436_vm0 }
 0x45c   : > { %v11861_v35 = vsel %vm14401_vm6, %v4317_v10, %v7481_v58  ;;  %14404 = vst [vmem:[#allocation164_spill] sm:$0xff] %v11864_v27  ;;  %v5296_v58 = vmax.f32 %v14388_v12, %v14409_v17  ;;  %v7486_v28 = vunpack.i.l.bf16 %v7485_v4  ;;  %v3935_v4 = vsel %vm14416_vm10, 0.0, %v11280_v34  ;;  %v14423_v34 = vld [vmem:[#allocation24_spill] sm:$0xff]  ;;  %vm14443_vm11 = vmmov %vm14401_vm6 }
 0x45d   : > { %v11855_v18 = vpop.f32.mrf.mxu1  ;;  %14402 = vst [vmem:[#allocation155_spill] sm:$0xff] %v11861_v35  ;;  %v7628_v39 = vpack.i.bf16 %v11864_v27, %v11861_v35  ;;  %v5295_v10 = vmax.f32 %v5263_v33, %v5267_v53  ;;  %v11881_v27 = vmax.f32 %v5294_v16, %v14388_v12  ;;  %v4320_v12 = vsel %vm14417_vm12, %v11303_v21, %v7487_v57  ;;  %vm14445_vm5 = vmmov %vm14401_vm6 }
 0x45e   : > { %14398 = vst [vmem:[#allocation131_spill] sm:$0xff] %v11855_v18  ;;  %v11884_v0 = vmax.f32 %v5296_v58, %v14408_v49  ;;  %v4319_v16 = vsel %vm14418_vm3, %v3935_v4, %v7486_v28  ;;  %v14435_v58 = vld [vmem:[#allocation22_spill] sm:$0xff]  ;;  %vm14452_vm4 = vcmask 588800   ;;  %vm14456_vm9 = vcmask 130048  }
 0x45f   : > { %v2564_v40 = vpop.f32.mrf.mxu1  ;;  %7629 = vrot.lane.b32.xlu1 %v7628_v39, %s7821_s13  ;;  %7634 = vrot.lane.b32.xlu0 %v7628_v39, %s14011_s12  ;;  %14411 = vst [vmem:[#allocation77_spill] sm:$0xff] %v11881_v27  ;;  %v11889_v35 = vmax.f32 %v5295_v10, %v14392_v15  ;;  %vm14454_vm6 = vmmov %vm14452_vm4  ;;  %vm14458_vm12 = vcmask 719872  }
 0x460   : > { %v5297_v40 = vmax.f32 %v14392_v15, %v14410_v62  ;;  %14412 = vst [vmem:[#allocation156_spill] sm:$0xff] %v11884_v0  ;;  %v7490_v36 = vpop.permute.xlu1 %7489  ;;  %v7495_v39 = vpop.permute.xlu0 %7494  ;;  %vm14457_vm10 = vmmov %vm14456_vm9 }
 0x461   : > { %v11868_v9 = vpop.f32.mrf.mxu1  ;;  %14414 = vst [vmem:[#allocation171_spill] sm:$0xff] %v11889_v35  ;;  %v7491_v43 = vunpack.i.l.bf16 %v7490_v36  ;;  %v7497_v0 = vunpack.i.h.bf16 %v7495_v39  ;;  %v14440_v35 = vld [vmem:[#allocation35_spill] sm:$0xff]  ;;  %vm14465_vm3 = vmmov %vm14452_vm4 }
 0x462   : > { %14405 = vst [vmem:[#allocation165_spill] sm:$0xff] %v11868_v9  ;;  %v11886_v51 = vmax.f32 %v5297_v40, %v5267_v53  ;;  %v14424_v40 = vld [vmem:[#allocation96_spill] sm:$0xff] }
 0x463   : > { %v2567_v8 = vpop.f32.mrf.mxu1  ;;  %v11902_v15 = vsel %vm14419_vm8, %v4319_v16, %v7491_v43  ;;  %v5271_v10 = vmax.f32 %v14424_v40, %v14423_v34  ;;  %v14427_v43 = vld [vmem:[#allocation31_spill] sm:$0xff]  ;;  %v7431_v40 = vunpack.i.l.bf16 %v11733_v42  ;;  %vm14466_vm8 = vmmov %vm14456_vm9 }
 0x464   : > { %14413 = vst [vmem:[#allocation168_spill] sm:$0xff] %v11886_v51  ;;  %v7492_v8 = vunpack.i.h.bf16 %v7490_v36  ;;  %14420 = vst [vmem:[#allocation93_spill] sm:$0xff] %v11902_v15  ;;  %v14425_v36 = vld [vmem:[#allocation29_spill] sm:$0xff]  ;;  %v7496_v51 = vunpack.i.l.bf16 %v7495_v39  ;;  %v5300_v4 = vmax.f32 %v14409_v17, %v14427_v43  ;;  %v14430_v16 = vld [vmem:[#allocation43_spill] sm:$0xff] }
 0x465   : > { %v5298_v33 = vmax.f32 %v14408_v49, %v14425_v36  ;;  %v5299_v57 = vmax.f32 %v5267_v53, %v5271_v10  ;;  %v14429_v49 = vld [vmem:[#allocation142_spill] sm:$0xff]  ;;  %vm14431_vm15 = vnez %v14430_v16 }
 0x466   : > { %v11905_v29 = vsel %vm14421_vm7, %v4320_v12, %v7492_v8  ;;  %v14428_v8 = vld [vmem:[#allocation101_spill] sm:$0xff]  ;;  %v3937_v39 = vsel %vm14431_vm15, 0.0, %v14429_v49  ;;  %v11929_v53 = vmax.f32 %v5300_v4, %v14425_v36  ;;  %v14438_v4 = vld [vmem:[#allocation28_spill] sm:$0xff]  ;;  %vm14467_vm7 = vmmov %vm14465_vm3 }
 0x467   : > { %14422 = vst [vmem:[#allocation161_spill] sm:$0xff] %v11905_v29  ;;  %v7638_v21 = vpack.i.bf16 %v11905_v29, %v11902_v15  ;;  %v11914_v28 = vmax.f32 %v5298_v33, %v14409_v17  ;;  %v5301_v12 = vmax.f32 %v14410_v62, %v14428_v8  ;;  %v11926_v34 = vmax.f32 %v5299_v57, %v14410_v62  ;;  %vm14468_vm15 = vmmov %vm14466_vm8 }
 0x468   : > { %14433 = vst [vmem:[#allocation147_spill] sm:$0xff] %v11929_v53  ;;  %v7432_v17 = vunpack.i.h.bf16 %v11733_v42  ;;  %v4322_v29 = vsel %vm14436_vm0, %v14435_v58, %v7497_v0  ;;  %v5302_v42 = vmax.f32 %v14425_v36, %v14440_v35  ;;  %v5304_v0 = vmax.f32 %v14427_v43, %v14441_v63  ;;  %v14442_v58 = vld [vmem:[#allocation105_spill] sm:$0xff] }
 0x469   : > { %14426 = vst [vmem:[#allocation169_spill] sm:$0xff] %v11914_v28  ;;  %7639 = vrot.lane.b32.xlu1 %v7638_v21, %s7821_s13  ;;  %7644 = vrot.lane.b32.xlu0 %v7638_v21, %s14011_s12  ;;  %14432 = vst [vmem:[#allocation170_spill] sm:$0xff] %v11926_v34  ;;  %v11931_v33 = vmax.f32 %v5301_v12, %v5271_v10  ;;  %v4321_v21 = vsel %vm14437_vm14, %v3937_v39, %v7496_v51  ;;  %v14439_v12 = vld [vmem:[#allocation102_spill] sm:$0xff]  ;;  %v14460_v28 = vld [vmem:[#allocation108_spill] sm:$0xff] }
 0x46a   : > { %v7500_v15 = vpop.permute.xlu1 %7499  ;;  %v5275_v27 = vmax.f32 %v14439_v12, %v14438_v4  ;;  %v5305_v51 = vmax.f32 %v14428_v8, %v14442_v58  ;;  %v11959_v12 = vmax.f32 %v5302_v42, %v14427_v43  ;;  %v11964_v53 = vmax.f32 %v5304_v0, %v14440_v35  ;;  %vm14473_vm14 = vmmov %vm14436_vm0 }
 0x46b   : > { %14434 = vst [vmem:[#allocation162_spill] sm:$0xff] %v11931_v33  ;;  %v7502_v16 = vunpack.i.h.bf16 %v7500_v15  ;;  %v7501_v49 = vunpack.i.l.bf16 %v7500_v15 }
 0x46c   : > { %v5303_v4 = vmax.f32 %v5271_v10, %v5275_v27  ;;  %14447 = vst [vmem:[#allocation132_spill] sm:$0xff] %v11959_v12  ;;  %14449 = vst [vmem:[#allocation81_spill] sm:$0xff] %v11964_v53  ;;  %v11966_v33 = vmax.f32 %v5305_v51, %v5275_v27 }
 0x46d   : > { %v11951_v15 = vsel %vm14443_vm11, %v4321_v21, %v7501_v49  ;;  %v11954_v39 = vsel %vm14445_vm5, %v4322_v29, %v7502_v16  ;;  %v14451_v29 = vld [vmem:[#allocation130_spill] sm:$0xff]  ;;  %vm14475_vm11 = vmmov %vm14445_vm5 }
 0x46e   : > { %14444 = vst [vmem:[#allocation88_spill] sm:$0xff] %v11951_v15  ;;  %14446 = vst [vmem:[#allocation134_spill] sm:$0xff] %v11954_v39  ;;  %v7520_v62 = vpop.permute.xlu1 %7519  ;;  %v7648_v57 = vpack.i.bf16 %v11954_v39, %v11951_v15  ;;  %v2205_v21 = vsel %vm14452_vm4, %v14451_v29, %v7431_v40  ;;  %v14453_v16 = vld [vmem:[#allocation138_spill] sm:$0xff]  ;;  %v11975_v43 = vmax.f32 %v5303_v4, %v14428_v8 }
 0x46f   : > { %v11961_v36 = vunpack.i.l.bf16 %v7520_v62  ;;  %14450 = vst [vmem:[#allocation104_spill] sm:$0xff] %v11966_v33  ;;  %v2206_v10 = vsel %vm14454_vm6, %v14453_v16, %v7432_v17  ;;  %vm14478_vm4 = vmmov %vm14466_vm8 }
 0x470   : > { %7649 = vrot.lane.b32.xlu1 %v7648_v57, %s7821_s13  ;;  %7654 = vrot.lane.b32.xlu0 %v7648_v57, %s14011_s12  ;;  %14455 = vst [vmem:[#allocation175_spill] sm:$0xff] %v11975_v43  ;;  %v2270_v29 = vpack.c.bf16 %v2206_v10, %v2205_v21  ;;  %v14462_v10 = vld [vmem:[#allocation68_spill] sm:$0xff]  ;;  %vm14479_vm6 = vmmov %vm14478_vm4 }
 0x471   : > { %14448 = vst [vmem:[#allocation16_spill] sm:$0xff] %v11961_v36  ;;  %v2238_v49 = vsel %vm14456_vm9, %v7431_v40, %v11961_v36  ;;  %v2239_v42 = vsel %vm14457_vm10, %v7432_v17, %v11961_v36  ;;  %v14459_v40 = vld [vmem:[#allocation34_spill] sm:$0xff]  ;;  %v14461_v17 = vld [vmem:[#allocation39_spill] sm:$0xff]  ;;  %vm14481_vm9 = vmmov %vm14478_vm4 }
 0x472   : > { %v2271_v51 = vpack.c.bf16 %v2239_v42, %v2238_v49  ;;  %v11988_v34 = vmax.f32 %v14460_v28, %v14459_v40  ;;  %v5306_v0 = vmax.f32 %v14440_v35, %v14461_v17  ;;  %v7522_v49 = vunpack.i.h.bf16 %v7520_v62  ;;  %vm14482_vm10 = vmmov %vm14478_vm4 }
 0x474   : > { %6295 = vmatprep.mubr.msk.bf16.mxu1 %vm14458_vm12, %v2271_v51  ;;  %v3939_v51 = vsel %vm14158_vm2, 0.0, %v14462_v10  ;;  %v11997_v33 = vmax.f32 %v5306_v0, %v14441_v63  ;;  %vm14470_vm2 = vmmov %vm14458_vm12 }
 0x475   : > { %v7525_v39 = vpop.permute.xlu1 %7524  ;;  %2593 = vmatmul.mubr.bf16.gmra.mxu1 %v2270_v29  ;;  %v5307_v29 = vmax.f32 %v5275_v27, %v11988_v34  ;;  %vm14483_vm12 = vmmov %vm14465_vm3 }
 0x476   : > { %v7527_v21 = vunpack.i.h.bf16 %v7525_v39  ;;  %14464 = vst [vmem:[#allocation149_spill] sm:$0xff] %v11997_v33  ;;  %v7526_v12 = vunpack.i.l.bf16 %v7525_v39 }
 0x477   : > { %v12008_v18 = vmax.f32 %v5307_v29, %v14442_v58 }
 0x47c   : > { %v7540_v8 = vpop.permute.xlu1 %7539 }
 0x47d   : > { %v7505_v4 = vpop.permute.xlu0 %7504  ;;  %v7541_v42 = vunpack.i.l.bf16 %v7540_v8  ;;  %v7542_v53 = vunpack.i.h.bf16 %v7540_v8  ;;  %v14472_v8 = vld [vmem:[#allocation141_spill] sm:$0xff] }
 0x47e   : > { %v7506_v30 = vunpack.i.l.bf16 %v7505_v4 }
 0x481   : > { %v7510_v15 = vpop.permute.xlu0 %7509 }
 0x482   : > { %v7545_v16 = vpop.permute.xlu1 %7544  ;;  %v7512_v36 = vunpack.i.h.bf16 %v7510_v15  ;;  %v7511_v57 = vunpack.i.l.bf16 %v7510_v15 }
 0x484   : > { %v4584_v28 = vsel %vm14465_vm3, %v11687_v60, %v7512_v36  ;;  %v4616_v40 = vsel %vm14466_vm8, %v7512_v36, %v7541_v42  ;;  %v4583_v35 = vsel %vm14467_vm7, %v11659_v2, %v7511_v57  ;;  %v4615_v62 = vsel %vm14468_vm15, %v7511_v57, %v7522_v49  ;;  %v14469_v60 = vld [vmem:[#allocation42_spill] sm:$0xff]  ;;  %vm14484_vm3 = vmmov %vm14470_vm2 }
 0x485   : > { %v4647_v10 = vpack.c.bf16 %v4584_v28, %v4583_v35  ;;  %v7515_v43 = vpop.permute.xlu0 %7514  ;;  %v4648_v27 = vpack.c.bf16 %v4616_v40, %v4615_v62  ;;  %v5308_v36 = vmax.f32 %v14441_v63, %v14469_v60  ;;  %v7507_v42 = vunpack.i.h.bf16 %v7505_v4  ;;  %v14471_v57 = vld [vmem:[#allocation110_spill] sm:$0xff]  ;;  %vm14485_vm8 = vmmov %vm14467_vm7 }
 0x486   : > { %v12005_v15 = vpop.permute.xlu1 %7559  ;;  %v7517_v9 = vunpack.i.h.bf16 %v7515_v43  ;;  %v7516_v0 = vunpack.i.l.bf16 %v7515_v43  ;;  %v7547_v2 = vunpack.i.h.bf16 %v7545_v16  ;;  %v5309_v39 = vmax.f32 %v14442_v58, %v14471_v57  ;;  %vm14487_vm7 = vmpackc.low %vm10803_vm1, %vm10803_vm1 }
 0x487   : > { %6345 = vmatprep.mubr.msk.bf16.mxu1 %vm14470_vm2, %v4648_v27  ;;  %v12021_v63 = vmax.f32 %v5308_v36, %v14461_v17  ;;  %v7546_v4 = vunpack.i.l.bf16 %v7545_v16  ;;  %vm14488_vm15 = vmmov %vm14470_vm2 }
 0x488   : > { %v4324_v49 = vsel %vm14436_vm0, %v14472_v8, %v7517_v9  ;;  %v4323_v28 = vsel %vm14473_vm14, %v3939_v51, %v7516_v0  ;;  %4896 = vmatmul.mubr.bf16.vlgmr.msra.gmra.mxu1 %v4647_v10  ;;  %v4609_v10 = vsel %vm14478_vm4, %v7506_v30, %v7547_v2  ;;  %v12034_v36 = vmax.f32 %v5309_v39, %v11988_v34  ;;  %v7734_v39 = vld [vmem:[%s12924_s9] sm:$0xff]   ;;  %vm14498_vm1 = vmmov %vm14478_vm4 }
 0x489   : > { %14474 = vst [vmem:[#allocation89_spill] sm:$0xff] %v12021_v63  ;;  %v7530_v35 = vpop.permute.xlu0 %7529  ;;  %v12024_v62 = vsel %vm14475_vm11, %v4323_v28, %v7526_v12  ;;  %v12027_v58 = vsel %vm14445_vm5, %v4324_v49, %v7527_v21  ;;  %v6341_v8 = vpack.c.bf16 %v7507_v42, %v7506_v30  ;;  %vm14499_vm0 = vmmov %vm14498_vm1  ;;  %vm14505_vm4 = vcmp.lt.s32.totalorder %v7944_v3, 1 }
 0x48a   : > { %v7565_v43 = vpop.permute.xlu1 %7564  ;;  %14476 = vst [vmem:[#allocation172_spill] sm:$0xff] %v12024_v62  ;;  %14477 = vst [vmem:[#allocation167_spill] sm:$0xff] %v12027_v58  ;;  %v7532_v9 = vunpack.i.h.bf16 %v7530_v35  ;;  %v7531_v27 = vunpack.i.l.bf16 %v7530_v35  ;;  %v7663_v51 = vpack.i.bf16 %v12027_v58, %v12024_v62 }
 0x48b   : > { %v7566_v40 = vunpack.i.l.bf16 %v7565_v43  ;;  %14480 = vst [vmem:[#allocation10_spill] sm:$0xff] %v12034_v36  ;;  %vm14500_vm14 = vmmov %vm14485_vm8 }
 0x48c   : > { %v4618_v16 = vsel %vm14481_vm9, %v7532_v9, %v7546_v4  ;;  %v4617_v12 = vsel %vm14482_vm10, %v7531_v27, %v7542_v53  ;;  %7664 = vrot.lane.b32.xlu0 %v7663_v51, %s14011_s12  ;;  %7659 = vrot.lane.b32.xlu1 %v7663_v51, %s7821_s13  ;;  %v4585_v2 = vsel %vm14483_vm12, %v11536_v19, %v7531_v27  ;;  %v14490_v51 = vld [vmem:[#allocation136_spill] sm:$0xff]  ;;  %v14496_v4 = vld [vmem:[#allocation46_spill] sm:$0xff]  ;;  %vm14501_vm11 = vmmov %vm14485_vm8  ;;  %vm14511_vm9 = vcmp.lt.s32.totalorder %v7944_v3, 7 }
 0x48d   : > { %v4610_v0 = vsel %vm14479_vm6, %v7507_v42, %v7566_v40  ;;  %v12040_v49 = vpop.permute.xlu0 %7534  ;;  %v4650_v28 = vpack.c.bf16 %v4618_v16, %v4617_v12  ;;  %v4586_v53 = vsel %vm14485_vm8, %v11559_v45, %v7532_v9  ;;  %v14489_v42 = vld [vmem:[#allocation107_spill] sm:$0xff]  ;;  %v7562_v45 = vunpack.i.h.bf16 %v12005_v15  ;;  %vm14502_vm5 = vmmov %vm14484_vm3 }
 0x48e   : > { %v4642_v21 = vpack.c.bf16 %v4610_v0, %v4609_v10  ;;  %v12052_v40 = vpop.permute.xlu1 %7569  ;;  %v4649_v19 = vpack.c.bf16 %v4586_v53, %v4585_v2  ;;  %v5062_v35 = vrot.slane %v14489_v42, 7  ;;  %v7561_v9 = vunpack.i.l.bf16 %v12005_v15  ;;  %v14491_v10 = vld [vmem:[#allocation127_spill] sm:$0xff]  ;;  %v14495_v53 = vld [vmem:[#allocation45_spill] sm:$0xff]  ;;  %vm14508_vm6 = vmmov %vm14505_vm4 }
 0x48f   : > { %6346 = vmatprep.mubr.msk.bf16.mxu1 %vm14488_vm15, %v4650_v28  ;;  %vm14492_vm2 = vnez %v14491_v10  ;;  %v7567_v16 = vunpack.i.h.bf16 %v7565_v43  ;;  %v7571_v12 = vunpack.i.l.bf16 %v12052_v40  ;;  %v14493_v28 = vld [vmem:[#allocation38_spill] sm:$0xff]  ;;  %v5310_v30 = vmax.f32 %v14461_v17, %v14495_v53  ;;  %vm14519_vm15 = vmmov %vm14499_vm0 }
 0x490   : > { %6337 = vmatprep.mubr.msk.bf16.mxu0 %vm14484_vm3, %v4642_v21  ;;  %4904 = vmatmul.mubr.bf16.gmra.mxu1 %v4649_v19  ;;  %v3941_v0 = vsel %vm14492_vm2, 0.0, %v14490_v51  ;;  %v5312_v15 = vmax.f32 %v14469_v60, %v14496_v4  ;;  %v14497_v19 = vld [vmem:[#allocation114_spill] sm:$0xff]  ;;  %vm14512_vm10 = vcmask 195584   ;;  %vm14514_vm3 = vcmask 392192  }
 0x491   : > { %6342 = vmatmul.mubr.msk.bf16.vlgmr.msra.gmra.mxu0 %vm14487_vm7, %v6341_v8  ;;  %v7550_v27 = vpop.permute.xlu0 %7549  ;;  %v5313_v29 = vmax.f32 %v14471_v57, %v14497_v19  ;;  %v12084_v63 = vmax.f32 %v5310_v30, %v14469_v60  ;;  %v14510_v30 = vrot.slane %v14489_v42, 1  ;;  %vm14513_vm12 = vmmov %vm14512_vm10 }
 0x492   : > { %6457 = vmatpush3.bf16.msra.mxu0 %v11704_v32  ;;  %v7552_v21 = vunpack.i.h.bf16 %v7550_v27  ;;  %v7551_v8 = vunpack.i.l.bf16 %v7550_v27  ;;  %v14494_v32 = vld [vmem:[#allocation112_spill] sm:$0xff]  ;;  %vm14515_vm8 = vmmov %vm14514_vm3 }
 0x493   : > { %6458 = vmatprep.subr.bf16.mxu0 %v7734_v39  ;;  %v5283_v2 = vmax.f32 %v14494_v32, %v14493_v28  ;;  %vm14518_vm7 = vmmov %vm14501_vm11 }
 0x494   : > { %v4620_v51 = vsel %vm14498_vm1, %v7552_v21, %v7571_v12  ;;  %v4619_v43 = vsel %vm14499_vm0, %v7551_v8, %v7567_v16  ;;  %v4587_v62 = vsel %vm14500_vm14, %v11420_v22, %v7551_v8  ;;  %v4588_v27 = vsel %vm14501_vm11, %v11539_v24, %v7552_v21  ;;  %v12094_v22 = vld [vmem:[%s12919_s4] ss:$0 sm:$0xff]  ;;  %vm14521_vm1 = vmmov %vm14502_vm5 }
 0x495   : > { %v7555_v28 = vpop.permute.xlu0 %7554  ;;  %v4652_v32 = vpack.c.bf16 %v4620_v51, %v4619_v43  ;;  %v4651_v17 = vpack.c.bf16 %v4588_v27, %v4587_v62  ;;  %v5311_v58 = vmax.f32 %v11988_v34, %v5283_v2  ;;  %v12087_v12 = vmax.f32 %v5312_v15, %v14495_v53  ;;  %v14503_v34 = vld [vmem:[#allocation6_spill] sm:$0xff] }
 0x496   : > { %6459 = vmatpush3.bf16.msra.mxu0 %v7734_v39  ;;  %v7557_v36 = vunpack.i.h.bf16 %v7555_v28  ;;  %v7556_v33 = vunpack.i.l.bf16 %v7555_v28  ;;  %v12089_v16 = vmax.f32 %v5313_v29, %v5283_v2  ;;  %v14504_v60 = vrot.slane %v14503_v34, 7  ;;  %v14506_v39 = vld [vmem:[#allocation41_spill] sm:$0xff]  ;;  %v14516_v28 = vld [vmem:[#allocation11_spill] sm:$0xff] }
 0x497   : > { %6347 = vmatprep.mubr.msk.bf16.mxu1 %vm14502_vm5, %v4652_v32  ;;  %v12098_v24 = vmax.f32 %v5311_v58, %v14471_v57  ;;  %v14507_v21 = vrot.slane %v14506_v39, 7  ;;  %v14509_v8 = vrot.slane %v14503_v34, 1 }
 0x498   : > { %v5064_v62 = vsel %vm14505_vm4, %v5062_v35, %v14504_v60  ;;  %v4326_v57 = vsel %vm14512_vm10, %v11504_v6, %v7557_v36  ;;  %v4325_v58 = vsel %vm14513_vm12, %v3941_v0, %v7556_v33  ;;  %v5361_v51 = vpack.c.bf16 %v12089_v16, %v12087_v12  ;;  %4912 = vmatmul.mubr.bf16.gmra.mxu1 %v4651_v17  ;;  %vm14526_vm4 = vmmov %vm14521_vm1 }
 0x499   : > { %v5065_v29 = vsel %vm14508_vm6, %v14507_v21, %v5062_v35  ;;  %v5160_v15 = vsel %vm14511_vm9, %v14510_v30, %v14509_v8  ;;  %v4357_v35 = vsel %vm14514_vm3, %v4325_v58, %v7561_v9  ;;  %v4358_v27 = vsel %vm14515_vm8, %v4326_v57, %v7562_v45 }
 0x49a   : > { %v5126_v43 = vsel %vm14492_vm2, -inf, %v5065_v29  ;;  %v5360_v3 = vpack.c.bf16 %v12098_v24, %v12084_v63  ;;  %v5223_v6 = vsel %vm14317_vm13, -inf, %v14516_v28  ;;  %v2475_v33 = vadd.f32 %v12094_v22, %v11526_v47  ;;  %vm14517_vm13 = vmmov %vm14501_vm11  ;;  %v14628_v24 = vld [vmem:[#allocation161_spill] sm:$0xff] }
 0x49b   : > { %v2478_v36 = vadd.f32 %v12094_v22, %v11573_v14  ;;  %v7673_v10 = vpack.i.bf16 %v4358_v27, %v4357_v35  ;;  %v5254_v0 = vmax.f32 %v5126_v43, %v5160_v15  ;;  %v5255_v32 = vmax.f32 %v5064_v62, %v5223_v6  ;;  %vm14520_vm2 = vmmov %vm14499_vm0 }
 0x49c   : > { %v2601_v17 = vmax.f32 %v2475_v33, 0.0  ;;  %v2483_v60 = vadd.f32 %v12094_v22, %v11611_v55  ;;  %v2486_v47 = vadd.f32 %v12094_v22, %v11630_v44  ;;  %v2499_v30 = vadd.f32 %v12094_v22, %v11672_v1  ;;  %vm14522_vm0 = vmmov %vm14518_vm7 }
 0x49d   : > { %7674 = vrot.lane.b32.xlu0 %v7673_v10, %s14011_s12  ;;  %7669 = vrot.lane.b32.xlu1 %v7673_v10, %s7821_s13  ;;  %v5286_v45 = vmax.f32 %v5254_v0, %v14489_v42  ;;  %v5287_v9 = vmax.f32 %v5255_v32, %v14503_v34  ;;  %v2602_v46 = vmax.f32 %v2478_v36, 0.0  ;;  %v2502_v15 = vadd.f32 %v12094_v22, %v11679_v59  ;;  %vm14523_vm14 = vmmov %vm14522_vm0  ;;  %s6156_s12 = sshll.u32 %s12661_s29, 4  ;;  %s12868_s12 = int_to_ptr.vmem [resolvable:$true] %s6156_s12 }
 0x49e   : > { %v2603_v44 = vmax.f32 %v2483_v60, 0.0  ;;  %v2604_v29 = vmax.f32 %v2486_v47, 0.0  ;;  %v2507_v57 = vadd.f32 %v12094_v22, %v11689_v50  ;;  %v2510_v58 = vadd.f32 %v12094_v22, %v11694_v41  ;;  %v7575_v50 = vpop.permute.xlu0 %7574  ;;  %vm14524_vm11 = vmmov %vm14520_vm2  ;;  %s7751_s15 = scalar_lea.vmem %s12868_s12, 4096 }
 0x49f   : > { %v5314_v14 = vmax.f32 %v14495_v53, %v5286_v45  ;;  %v5315_v39 = vmax.f32 %v5283_v2, %v5287_v9  ;;  %v5346_v62 = vmax.f32 %v14496_v4, %v5286_v45  ;;  %v5347_v21 = vmax.f32 %v14497_v19, %v5287_v9  ;;  %vm14525_vm5 = vmmov %vm14520_vm2  ;;  %p7752_p11 = scmp.ne.s32.totalorder %s12868_s12, %s7751_s15 }
 0x4a0   : > { %v2491_v2 = vadd.f32 %v12094_v22, %v11656_v37  ;;  %v2494_v53 = vadd.f32 %v12094_v22, %v11667_v20  ;;  %v2607_v37 = vmax.f32 %v2499_v30, 0.0  ;;  %v2608_v20 = vmax.f32 %v2502_v15, 0.0  ;;  %v14527_v30 = vld [vmem:[#allocation153_spill] sm:$0xff]  ;;  %vm14528_vm6 = vmmov %vm14520_vm2 }
 0x4a1   : > { %5662 = vrot.lane.b32.xlu0 %v2602_v46, %s13786_s30  ;;  %5660 = vrot.lane.b32.xlu1 %v2601_v17, %s13786_s30  ;;  %v12146_v42 = vmax.f32 %v5314_v14, %v14496_v4  ;;  %v12149_v34 = vmax.f32 %v5315_v39, %v14497_v19  ;;  %v12151_v55 = vpack.c.bf16 %v5347_v21, %v5346_v62  ;;  %v2609_v59 = vmax.f32 %v2507_v57, 0.0  ;;  %vm14529_vm9 = vmmov %vm14520_vm2  ;;  %p7753_p12 = pnand %p7752_p11, %p7926_p5 }
 0x4a2   : > { %v2605_v4 = vmax.f32 %v2491_v2, 0.0  ;;  %v2606_v19 = vmax.f32 %v2494_v53, 0.0  ;;  %v2515_v43 = vadd.f32 %v12094_v22, %v11697_v13  ;;  %v2518_v1 = vadd.f32 %v12094_v22, %v11699_v56  ;;  %v7580_v21 = vpop.permute.xlu0 %7579  ;;  %vm14531_vm10 = vmmov %vm14522_vm0 }
 0x4a3   : > { %v5362_v8 = vpack.c.bf16 %v12149_v34, %v12146_v42  ;;  %v2610_v35 = vmax.f32 %v2510_v58, 0.0  ;;  %v7537_v27 = vunpack.i.h.bf16 %v12040_v49  ;;  %v7536_v28 = vunpack.i.l.bf16 %v12040_v49  ;;  %vm14533_vm12 = vmmov %vm14522_vm0  ;;  %p7754_p13 = pneg %p7753_p12 }
 0x4a4   : > { %v2611_v6 = vmax.f32 %v2515_v43, 0.0  ;;  %v2612_v33 = vmax.f32 %v2518_v1, 0.0  ;;  %v2523_v13 = vadd.f32 %v12094_v22, %v11706_v38  ;;  %v2526_v56 = vadd.f32 %v12094_v22, %v11715_v11  ;;  %vm14536_vm3 = vmmov %vm14522_vm0 }
 0x4a5   : > { %5666 = vrot.lane.b32.xlu0 %v2604_v29, %s13786_s30  ;;  %5664 = vrot.lane.b32.xlu1 %v2603_v44, %s13786_s30  ;;  %v7585_v41 = vpop.permute.xlu1 %7584  ;;  %v7572_v36 = vunpack.i.h.bf16 %v12052_v40  ;;  %v7577_v0 = vunpack.i.h.bf16 %v7575_v50  ;;  %v7576_v32 = vunpack.i.l.bf16 %v7575_v50  ;;  %v4579_v49 = vsel %vm14517_vm13, %v11544_v26, %v7536_v28  ;;  %vm14538_vm8 = vmmov %vm14522_vm0 }
 0x4a6   : > { %v7586_v10 = vunpack.i.l.bf16 %v7585_v41  ;;  %v4580_v45 = vsel %vm14518_vm7, %v11436_v52, %v7537_v27  ;;  %v7587_v17 = vunpack.i.h.bf16 %v7585_v41  ;;  %v2613_v40 = vmax.f32 %v2523_v13, 0.0  ;;  %v14532_v13 = vld [vmem:[#allocation129_spill] sm:$0xff]  ;;  %vm14539_vm13 = vmmov %vm14520_vm2 }
 0x4a7   : > { %v4611_v9 = vsel %vm14519_vm15, %v7536_v28, %v7572_v36  ;;  %v2614_v60 = vmax.f32 %v2526_v56, 0.0  ;;  %v4643_v14 = vpack.c.bf16 %v4580_v45, %v4579_v49  ;;  %v2531_v26 = vadd.f32 %v12094_v22, %v11727_v25  ;;  %v14534_v36 = vld [vmem:[#allocation150_spill] sm:$0xff]  ;;  %v14537_v45 = vld [vmem:[#allocation116_spill] sm:$0xff]  ;;  %vm14540_vm7 = vmmov %vm14520_vm2 }
 0x4a8   : > { %v4612_v46 = vsel %vm14520_vm2, %v7537_v27, %v7586_v10  ;;  %v2534_v52 = vadd.f32 %v12094_v22, %v11735_v23  ;;  %v4589_v39 = vsel %vm14522_vm0, %v11520_v48, %v7576_v32  ;;  %v4590_v62 = vsel %vm14523_vm14, %v11567_v31, %v7577_v0  ;;  %vm14543_vm15 = vmmov %vm14521_vm1 }
 0x4a9   : > { %5670 = vrot.lane.b32.xlu0 %v2606_v19, %s13786_s30  ;;  %5668 = vrot.lane.b32.xlu1 %v2605_v4, %s13786_s30  ;;  %v7590_v38 = vpop.permute.xlu1 %7589  ;;  %v4644_v11 = vpack.c.bf16 %v4612_v46, %v4611_v9  ;;  %v4621_v44 = vsel %vm14524_vm11, %v7576_v32, %v7587_v17  ;;  %v4653_v23 = vpack.c.bf16 %v4590_v62, %v4589_v39  ;;  %v2615_v2 = vmax.f32 %v2531_v26, 0.0  ;;  %v7595_v4 = vpop.permute.xlu0 %7594  ;;  %vm14544_vm2 = vmmov %vm14521_vm1 }
 0x4aa   : > { %v7591_v47 = vunpack.i.l.bf16 %v7590_v38  ;;  %v2616_v53 = vmax.f32 %v2534_v52, 0.0  ;;  %v2539_v48 = vadd.f32 %v12094_v22, %v11738_v61  ;;  %v2542_v31 = vadd.f32 %v12094_v22, %v11752_v5  ;;  %vm14547_vm0 = vmmov %vm14525_vm5 }
 0x4ab   : > { %6343 = vmatprep.mubr.msk.bf16.mxu0 %vm14521_vm1, %v4644_v11  ;;  %v2547_v19 = vadd.f32 %v12094_v22, %v11769_v7  ;;  %v2550_v15 = vadd.f32 %v12094_v22, %v14527_v30  ;;  %v7592_v61 = vunpack.i.h.bf16 %v7590_v38  ;;  %v7597_v5 = vunpack.i.h.bf16 %v7595_v4  ;;  %vm14548_vm14 = vmmov %vm14547_vm0 }
 0x4ac   : > { %v4622_v29 = vsel %vm14525_vm5, %v7577_v0, %v7591_v47  ;;  %4880 = vmatmul.mubr.bf16.gmra.mxu0 %v4643_v14  ;;  %v2617_v57 = vmax.f32 %v2539_v48, 0.0  ;;  %v2618_v58 = vmax.f32 %v2542_v31, 0.0  ;;  %v7596_v43 = vunpack.i.l.bf16 %v7595_v4  ;;  %v14542_v14 = vld [vmem:[#allocation165_spill] sm:$0xff]  ;;  %vm14550_vm11 = vmmov %vm14536_vm3 }
 0x4ad   : > { %5674 = vrot.lane.b32.xlu0 %v2608_v20, %s13786_s30  ;;  %5672 = vrot.lane.b32.xlu1 %v2607_v37, %s13786_s30  ;;  %v4654_v25 = vpack.c.bf16 %v4622_v29, %v4621_v44  ;;  %v7582_v37 = vunpack.i.h.bf16 %v7580_v21  ;;  %v7581_v20 = vunpack.i.l.bf16 %v7580_v21  ;;  %v2619_v27 = vmax.f32 %v2547_v19, 0.0  ;;  %vm14552_vm5 = vmmov %vm14536_vm3 }
 0x4ae   : > { %v2620_v28 = vmax.f32 %v2550_v15, 0.0  ;;  %v2555_v7 = vadd.f32 %v12094_v22, %v11813_v54  ;;  %v2558_v10 = vadd.f32 %v12094_v22, %v14534_v36  ;;  %v14535_v54 = vld [vmem:[#allocation18_spill] sm:$0xff]  ;;  %v4592_v9 = vsel %vm14538_vm8, %v14537_v45, %v7597_v5  ;;  %v14558_v36 = vld [vmem:[#allocation148_spill] sm:$0xff]  ;;  %vm14566_vm8 = vmmov %vm14536_vm3 }
 0x4af   : > { %6348 = vmatprep.mubr.msk.bf16.mxu1 %vm14526_vm4, %v4654_v25  ;;  %v4613_v50 = vsel %vm14528_vm6, %v7581_v20, %v7592_v61  ;;  %v4582_v56 = vsel %vm14533_vm12, %v14532_v13, %v7582_v37  ;;  %v4591_v49 = vsel %vm14536_vm3, %v14535_v54, %v7596_v43  ;;  %v2566_v26 = vadd.f32 %v12094_v22, %v14542_v14  ;;  %v14551_v61 = vld [vmem:[#allocation143_spill] sm:$0xff]  ;;  %vm14553_vm4 = vmmov %vm14544_vm2 }
 0x4b0   : > { %4920 = vmatmul.mubr.bf16.gmra.mxu1 %v4653_v23  ;;  %v4655_v52 = vpack.c.bf16 %v4592_v9, %v4591_v49  ;;  %v2621_v39 = vmax.f32 %v2555_v7, 0.0  ;;  %v2622_v62 = vmax.f32 %v2558_v10, 0.0  ;;  %vm14546_vm1 = vcmask 261120   ;;  %v14554_v7 = vld [vmem:[#allocation152_spill] sm:$0xff]  ;;  %vm14563_vm12 = vmmov %vm14547_vm0 }
 0x4b1   : > { %5678 = vrot.lane.b32.xlu0 %v2610_v35, %s13786_s30  ;;  %5676 = vrot.lane.b32.xlu1 %v2609_v59, %s13786_s30  ;;  %v2624_v48 = vmax.f32 %v2566_v26, 0.0  ;;  %vm14557_vm6 = vmmov %vm14546_vm1  ;;  %v14559_v10 = vld [vmem:[#allocation160_spill] sm:$0xff] }
 0x4b5   : > { %5682 = vrot.lane.b32.xlu0 %v2612_v33, %s13786_s30  ;;  %5680 = vrot.lane.b32.xlu1 %v2611_v6, %s13786_s30  ;;  %v7600_v1 = vpop.permute.xlu1 %7599  ;;  %v14530_v33 = vld [vmem:[#allocation144_spill] sm:$0xff] }
 0x4b6   : > { %v7602_v59 = vunpack.i.h.bf16 %v7600_v1  ;;  %v7601_v35 = vunpack.i.l.bf16 %v7600_v1  ;;  %v4581_v41 = vsel %vm14531_vm10, %v14530_v33, %v7581_v20  ;;  %vm14562_vm10 = vmmov %vm14547_vm0 }
 0x4b8   : > { %v4614_v6 = vsel %vm14529_vm9, %v7582_v37, %v7601_v35  ;;  %v7605_v17 = vpop.permute.xlu0 %7604  ;;  %v4623_v46 = vsel %vm14539_vm13, %v7596_v43, %v7602_v59  ;;  %v14549_v37 = vld [vmem:[#allocation140_spill] sm:$0xff]  ;;  %vm14561_vm9 = vmmov %vm14546_vm1 }
 0x4b9   : > { %5686 = vrot.lane.b32.xlu0 %v2614_v60, %s13786_s30  ;;  %5684 = vrot.lane.b32.xlu1 %v2613_v40, %s13786_s30  ;;  %v4518_v0 = vpop.permute.xlu1 %4517  ;;  %v4646_v32 = vpack.c.bf16 %v4614_v6, %v4613_v50  ;;  %v4645_v40 = vpack.c.bf16 %v4582_v56, %v4581_v41  ;;  %v14541_v60 = vld [vmem:[#allocation131_spill] sm:$0xff]  ;;  %v7607_v21 = vunpack.i.h.bf16 %v7605_v17  ;;  %v7606_v44 = vunpack.i.l.bf16 %v7605_v17  ;;  %v14555_v50 = vld [vmem:[#allocation146_spill] sm:$0xff]  ;;  %vm14567_vm13 = vmmov %vm14544_vm2 }
 0x4ba   : > { %v4624_v38 = vsel %vm14540_vm7, %v7597_v5, %v4518_v0  ;;  %v2563_v47 = vadd.f32 %v12094_v22, %v14541_v60  ;;  %v14556_v6 = vpack.c.bf16 %v14554_v7, %v14555_v50  ;;  %v14560_v0 = vpack.c.bf16 %v14558_v36, %v14559_v10  ;;  %vm14571_vm7 = vmmov %vm14546_vm1 }
 0x4bb   : > { %v4656_v11 = vpack.c.bf16 %v4624_v38, %v4623_v46  ;;  %6344 = vmatprep.mubr.msk.bf16.mxu0 %vm14543_vm15, %v4646_v32  ;;  %v4593_v20 = vsel %vm14550_vm11, %v14549_v37, %v7606_v44  ;;  %v14564_v38 = vld [vmem:[#allocation154_spill] sm:$0xff]  ;;  %vm14575_vm15 = vmmov %vm14546_vm1 }
 0x4bc   : > { %4888 = vmatmul.mubr.bf16.gmra.mxu0 %v4645_v40  ;;  %v14565_v40 = vld [vmem:[#allocation151_spill] sm:$0xff]  ;;  %vm14582_vm11 = vmmov %vm14553_vm4 }
 0x4bd   : > { %5690 = vrot.lane.b32.xlu0 %v2616_v53, %s13786_s30  ;;  %5688 = vrot.lane.b32.xlu1 %v2615_v2, %s13786_s30  ;;  %v14545_v2 = vld [vmem:[#allocation157_spill] sm:$0xff]  ;;  %v2623_v53 = vmax.f32 %v2563_v47, 0.0 }
 0x4be   : > { %6349 = vmatprep.mubr.msk.bf16.mxu1 %vm14544_vm2, %v4656_v11  ;;  %6460 = vmatprep.mubr.msk.bf16.mxu0 %vm14546_vm1, %v14545_v2  ;;  %vm14576_vm2 = vmmov %vm14547_vm0 }
 0x4bf   : > { %4928 = vmatmul.mubr.bf16.gmra.mxu1 %v4655_v52  ;;  %vm14577_vm1 = vmmov %vm14547_vm0 }
 0x4c1   : > { %5694 = vrot.lane.b32.xlu0 %v2618_v58, %s13786_s30  ;;  %5692 = vrot.lane.b32.xlu1 %v2617_v57, %s13786_s30  ;;  %v4594_v57 = vsel %vm14552_vm5, %v14551_v61, %v7607_v21  ;;  %vm14586_vm5 = vmmov %vm14557_vm6 }
 0x4c2   : > { %v4657_v59 = vpack.c.bf16 %v4594_v57, %v4593_v20 }
 0x4c3   : > { %v7610_v29 = vpop.permute.xlu1 %7609  ;;  %v7615_v58 = vpop.permute.xlu0 %7614 }
 0x4c4   : > { %v7612_v25 = vunpack.i.h.bf16 %v7610_v29  ;;  %v7611_v23 = vunpack.i.l.bf16 %v7610_v29  ;;  %v7617_v35 = vunpack.i.h.bf16 %v7615_v58  ;;  %6461 = vmatmul.mubr.msk.bf16.vlgmr.msra.gmra.mxu0 %vm14557_vm6, %v14556_v6  ;;  %v14568_v29 = vld [vmem:[#allocation166_spill] sm:$0xff]  ;;  %vm14591_vm6 = vmmov %vm14577_vm1 }
 0x4c5   : > { %5698 = vrot.lane.b32.xlu0 %v2620_v28, %s13786_s30  ;;  %5696 = vrot.lane.b32.xlu1 %v2619_v27, %s13786_s30  ;;  %v7616_v27 = vunpack.i.l.bf16 %v7615_v58  ;;  %v14578_v58 = vld [vmem:[#allocation128_spill] sm:$0xff] }
 0x4c6   : > { %v4625_v31 = vsel %vm14547_vm0, %v7606_v44, %v7611_v23  ;;  %v4626_v4 = vsel %vm14548_vm14, %v7607_v21, %v7612_v25  ;;  %6464 = vmatprep.mubr.msk.bf16.mxu0 %vm14561_vm9, %v14560_v0  ;;  %v4596_v60 = vsel %vm14566_vm8, %v14565_v40, %v7617_v35  ;;  %v14569_v25 = vld [vmem:[#allocation163_spill] sm:$0xff]  ;;  %vm14579_vm0 = vmmov %vm14536_vm3 }
 0x4c7   : > { %v4658_v15 = vpack.c.bf16 %v4626_v4, %v4625_v31  ;;  %v4595_v11 = vsel %vm14536_vm3, %v14564_v38, %v7616_v27  ;;  %v14570_v23 = vpack.c.bf16 %v14568_v29, %v14569_v25  ;;  %v14572_v31 = vld [vmem:[#allocation171_spill] sm:$0xff]  ;;  %v14573_v4 = vld [vmem:[#allocation77_spill] sm:$0xff]  ;;  %vm14581_vm14 = vmmov %vm14579_vm0 }
 0x4c8   : > { %vm14592_vm9 = vmmov %vm14577_vm1 }
 0x4c9   : > { %5702 = vrot.lane.b32.xlu0 %v2622_v62, %s13786_s30  ;;  %5700 = vrot.lane.b32.xlu1 %v2621_v39, %s13786_s30  ;;  %v2570_v19 = vpop.f32.mrf.mxu1  ;;  %v4659_v62 = vpack.c.bf16 %v4596_v60, %v4595_v11  ;;  %v14593_v11 = vld [vmem:[#allocation158_spill] sm:$0xff]  ;;  %v14595_v60 = vld [vmem:[#allocation159_spill] sm:$0xff]  ;;  %vm14597_vm3 = vmmov %vm14582_vm11 }
 0x4ca   : > { %v2571_v30 = vadd.f32 %v12094_v22, %v2570_v19  ;;  %6350 = vmatprep.mubr.msk.bf16.mxu1 %vm14553_vm4, %v4658_v15  ;;  %v14574_v19 = vpack.c.bf16 %v14572_v31, %v14573_v4  ;;  %vm14590_vm4 = vmmov %vm14586_vm5 }
 0x4cb   : > { %v2572_v5 = vpop.f32.mrf.mxu1  ;;  %4936 = vmatmul.mubr.bf16.gmra.mxu1 %v4657_v59  ;;  %vm14601_vm8 = vmmov %vm14590_vm4 }
 0x4cc   : > { %v2625_v43 = vmax.f32 %v2571_v30, 0.0  ;;  %6465 = vmatmul.mubr.msk.bf16.gmra.mxu0 %vm14571_vm7, %v14570_v23  ;;  %vm14606_vm7 = vmmov %vm14577_vm1 }
 0x4cd   : > { %5706 = vrot.lane.b32.xlu0 %v2624_v48, %s13786_s30  ;;  %5704 = vrot.lane.b32.xlu1 %v2623_v53, %s13786_s30  ;;  %v2573_v1 = vpop.f32.mrf.mxu1  ;;  %v7620_v33 = vpop.permute.xlu1 %7619 }
 0x4ce   : > { %v2574_v28 = vadd.f32 %v12094_v22, %v2573_v1  ;;  %v7622_v41 = vunpack.i.h.bf16 %v7620_v33  ;;  %v7621_v13 = vunpack.i.l.bf16 %v7620_v33  ;;  %v7625_v9 = vpop.permute.xlu0 %7624  ;;  %6468 = vmatprep.mubr.msk.bf16.mxu0 %vm14575_vm15, %v14574_v19  ;;  %vm14607_vm15 = vmmov %vm14577_vm1 }
 0x4cf   : > { %v2575_v56 = vpop.f32.mrf.mxu1  ;;  %v7627_v26 = vunpack.i.h.bf16 %v7625_v9  ;;  %v7626_v21 = vunpack.i.l.bf16 %v7625_v9 }
 0x4d0   : > { %v2626_v32 = vmax.f32 %v2574_v28, 0.0  ;;  %v4627_v54 = vsel %vm14562_vm10, %v7616_v27, %v7621_v13  ;;  %v4628_v49 = vsel %vm14563_vm12, %v7617_v35, %v7622_v41  ;;  %v14583_v13 = vld [vmem:[#allocation168_spill] sm:$0xff]  ;;  %vm14594_vm10 = vmmov %vm14579_vm0 }
 0x4d1   : > { %5708 = vrot.lane.b32.xlu1 %v2625_v43, %s13786_s30  ;;  %v4660_v46 = vpack.c.bf16 %v4628_v49, %v4627_v54  ;;  %v7630_v39 = vpop.permute.xlu1 %7629  ;;  %v4597_v5 = vsel %vm14579_vm0, %v14578_v58, %v7626_v21  ;;  %v14580_v43 = vld [vmem:[#allocation145_spill] sm:$0xff]  ;;  %v14584_v56 = vld [vmem:[#allocation156_spill] sm:$0xff]  ;;  %v14587_v54 = vld [vmem:[#allocation170_spill] sm:$0xff] }
 0x4d2   : > { %v2578_v45 = vpop.f32.mrf.mxu1  ;;  %5710 = vrot.lane.b32.xlu0 %v2626_v32, %s13786_s30  ;;  %v7632_v2 = vunpack.i.h.bf16 %v7630_v39  ;;  %v7631_v53 = vunpack.i.l.bf16 %v7630_v39  ;;  %v4598_v1 = vsel %vm14581_vm14, %v14580_v43, %v7627_v26  ;;  %v7635_v59 = vpop.permute.xlu0 %7634  ;;  %v14585_v36 = vpack.c.bf16 %v14583_v13, %v14584_v56  ;;  %v14588_v49 = vld [vmem:[#allocation169_spill] sm:$0xff]  ;;  %vm14596_vm12 = vmmov %vm14579_vm0 }
 0x4d3   : > { %v2579_v17 = vadd.f32 %v12094_v22, %v2578_v45  ;;  %6351 = vmatprep.mubr.msk.bf16.mxu1 %vm14567_vm13, %v4660_v46  ;;  %v4661_v7 = vpack.c.bf16 %v4598_v1, %v4597_v5  ;;  %v7637_v50 = vunpack.i.h.bf16 %v7635_v59  ;;  %v7636_v6 = vunpack.i.l.bf16 %v7635_v59  ;;  %vm14605_vm13 = vmmov %vm14590_vm4  ;;  %v14614_v58 = vld [vmem:[#allocation81_spill] sm:$0xff]  ;;  %v14620_v59 = vld [vmem:[#allocation10_spill] sm:$0xff] }
 0x4d4   : > { %v2580_v47 = vpop.f32.mrf.mxu1  ;;  %4944 = vmatmul.mubr.bf16.gmra.mxu1 %v4659_v62  ;;  %v4629_v15 = vsel %vm14576_vm2, %v7626_v21, %v7631_v53  ;;  %v4630_v37 = vsel %vm14577_vm1, %v7627_v26, %v7632_v2  ;;  %6469 = vmatmul.mubr.msk.bf16.gmra.mxu0 %vm14586_vm5, %v14585_v36  ;;  %v14589_v45 = vpack.c.bf16 %v14587_v54, %v14588_v49  ;;  %v14598_v21 = vld [vmem:[#allocation162_spill] sm:$0xff]  ;;  %v14602_v2 = vld [vmem:[#allocation175_spill] sm:$0xff]  ;;  %v14603_v53 = vld [vmem:[#allocation132_spill] sm:$0xff] }
 0x4d5   : > { %v2627_v14 = vmax.f32 %v2579_v17, 0.0  ;;  %v4662_v61 = vpack.c.bf16 %v4630_v37, %v4629_v15  ;;  %v4599_v40 = vsel %vm14594_vm10, %v14593_v11, %v7636_v6  ;;  %v4600_v47 = vsel %vm14596_vm12, %v14595_v60, %v7637_v50  ;;  %vm14609_vm2 = vmmov %vm14579_vm0  ;;  %v14610_v37 = vld [vmem:[#allocation164_spill] sm:$0xff]  ;;  %v14617_v43 = vld [vmem:[#allocation149_spill] sm:$0xff] }
 0x4d6   : > { %v2581_v52 = vpop.f32.mrf.mxu1  ;;  %6472 = vmatprep.mubr.msk.bf16.mxu0 %vm14590_vm4, %v14589_v45  ;;  %v4663_v26 = vpack.c.bf16 %v4600_v47, %v4599_v40  ;;  %vm14611_vm1 = vmmov %vm14579_vm0  ;;  %v14618_v1 = vpack.c.bf16 %v12008_v18, %v14617_v43  ;;  %v14634_v49 = vld [vmem:[#allocation88_spill] sm:$0xff] }
 0x4d7   : > { %v2582_v44 = vadd.f32 %v12094_v22, %v2581_v52  ;;  %5712 = vrot.lane.b32.xlu1 %v2627_v14, %s13786_s30  ;;  %6352 = vmatprep.mubr.msk.bf16.mxu1 %vm14582_vm11, %v4662_v61  ;;  %vm14612_vm0 = vmmov %vm14597_vm3 }
 0x4d8   : > { %v2583_v48 = vpop.f32.mrf.mxu1  ;;  %vm14616_vm14 = vmmov %vm14590_vm4 }
 0x4d9   : > { %v2628_v30 = vmax.f32 %v2582_v44, 0.0  ;;  %v14599_v44 = vld [vmem:[#allocation147_spill] sm:$0xff]  ;;  %v14604_v48 = vpack.c.bf16 %v14602_v2, %v14603_v53  ;;  %vm14619_vm11 = vmmov %vm14590_vm4 }
 0x4da   : > { %v2586_v20 = vpop.f32.mrf.mxu1  ;;  %v14600_v29 = vpack.c.bf16 %v14598_v21, %v14599_v44  ;;  %vm14623_vm5 = vmmov %vm14590_vm4 }
 0x4db   : > { %v2587_v57 = vadd.f32 %v12094_v22, %v2586_v20  ;;  %5714 = vrot.lane.b32.xlu0 %v2628_v30, %s13786_s30  ;;  %v7640_v41 = vpop.permute.xlu1 %7639  ;;  %v7645_v14 = vpop.permute.xlu0 %7644  ;;  %v14608_v30 = vld [vmem:[#allocation155_spill] sm:$0xff]  ;;  %vm14627_vm10 = vmmov %vm14611_vm1 }
 0x4dc   : > { %v2588_v35 = vpop.f32.mrf.mxu1  ;;  %v7642_v10 = vunpack.i.h.bf16 %v7640_v41  ;;  %v7641_v0 = vunpack.i.l.bf16 %v7640_v41  ;;  %4952 = vmatmul.mubr.bf16.gmra.mxu1 %v4661_v7  ;;  %v7647_v52 = vunpack.i.h.bf16 %v7645_v14  ;;  %v7646_v39 = vunpack.i.l.bf16 %v7645_v14  ;;  %6473 = vmatmul.mubr.msk.bf16.gmra.mxu0 %vm14601_vm8, %v14600_v29  ;;  %v14626_v41 = vld [vmem:[#allocation93_spill] sm:$0xff]  ;;  %vm14629_vm12 = vmmov %vm14611_vm1 }
 0x4dd   : > { %v2629_v27 = vmax.f32 %v2587_v57, 0.0  ;;  %6476 = vmatprep.mubr.msk.bf16.mxu0 %vm14605_vm13, %v14604_v48  ;;  %v14613_v57 = vld [vmem:[#allocation104_spill] sm:$0xff]  ;;  %v14621_v35 = vld [vmem:[#allocation89_spill] sm:$0xff]  ;;  %vm14632_vm13 = vmmov %vm14612_vm0 }
 0x4de   : > { %v2589_v28 = vpop.f32.mrf.mxu1  ;;  %v4631_v17 = vsel %vm14591_vm6, %v7636_v6, %v7641_v0  ;;  %v4632_v46 = vsel %vm14592_vm9, %v7637_v50, %v7642_v10  ;;  %v4601_v15 = vsel %vm14609_vm2, %v14608_v30, %v7646_v39  ;;  %v4602_v20 = vsel %vm14611_vm1, %v14610_v37, %v7647_v52  ;;  %vm14624_vm6 = vmmov %vm14590_vm4  ;;  %v12385_v37 = vld [vmem:[%s12923_s8] ss:$0 sm:$0xff] }
 0x4df   : > { %v2590_v33 = vadd.f32 %v12094_v22, %v2589_v28  ;;  %5716 = vrot.lane.b32.xlu1 %v2629_v27, %s13786_s30  ;;  %v4664_v38 = vpack.c.bf16 %v4632_v46, %v4631_v17  ;;  %v4665_v61 = vpack.c.bf16 %v4602_v20, %v4601_v15  ;;  %v14615_v5 = vpack.c.bf16 %v14613_v57, %v14614_v58  ;;  %vm14625_vm9 = vmmov %vm14590_vm4  ;;  %v14638_v46 = vld [vmem:[#allocation16_spill] sm:$0xff] }
 0x4e0   : > { %v2591_v32 = vpop.f32.mrf.mxu1  ;;  %v14622_v27 = vpack.c.bf16 %v14620_v59, %v14621_v35  ;;  %vm14637_vm2 = vmmov %vm14611_vm1 }
 0x4e1   : > { %v2630_v9 = vmax.f32 %v2590_v33, 0.0  ;;  %6353 = vmatprep.mubr.msk.bf16.mxu1 %vm14597_vm3, %v4664_v38  ;;  %vm14630_vm3 = vmmov %vm14606_vm7 }
 0x4e2   : > { %v7650_v62 = vpop.permute.xlu1 %7649  ;;  %v7655_v28 = vpop.permute.xlu0 %7654  ;;  %vm14631_vm8 = vmmov %vm14630_vm3 }
 0x4e3   : > { %5718 = vrot.lane.b32.xlu0 %v2630_v9, %s13786_s30  ;;  %v7652_v25 = vunpack.i.h.bf16 %v7650_v62  ;;  %v7651_v23 = vunpack.i.l.bf16 %v7650_v62  ;;  %v7657_v7 = vunpack.i.h.bf16 %v7655_v28  ;;  %v7656_v50 = vunpack.i.l.bf16 %v7655_v28  ;;  %v14636_v9 = vld [vmem:[#allocation134_spill] sm:$0xff] }
 0x4e4   : > { %4960 = vmatmul.mubr.bf16.gmra.mxu1 %v4663_v26  ;;  %6477 = vmatmul.mubr.msk.bf16.gmra.mxu0 %vm14616_vm14, %v14615_v5  ;;  %v14645_v26 = vld [vmem:[#allocation167_spill] sm:$0xff] }
 0x4e5   : > { %v4633_v31 = vsel %vm14606_vm7, %v7646_v39, %v7651_v23  ;;  %v4634_v4 = vsel %vm14607_vm15, %v7647_v52, %v7652_v25  ;;  %6480 = vmatprep.mubr.msk.bf16.mxu0 %vm14619_vm11, %v14618_v1  ;;  %v4603_v63 = vsel %vm14627_vm10, %v14626_v41, %v7656_v50  ;;  %vm14633_vm7 = vmmov %vm14590_vm4  ;;  %v14647_v39 = vld [vmem:[#allocation172_spill] sm:$0xff]  ;;  %vm6077_vm10 = vcmask 850944  }
 0x4e6   : > { %v4666_v19 = vpack.c.bf16 %v4634_v4, %v4633_v31  ;;  %vm14635_vm15 = vmmov %vm14611_vm1 }
 0x4e7   : > { %vm14639_vm1 = vmmov %vm14630_vm3 }
 0x4e8   : > { %6354 = vmatprep.mubr.msk.bf16.mxu1 %vm14612_vm0, %v4666_v19  ;;  %vm14640_vm0 = vmmov %vm14639_vm1 }
 0x4e9   : > { %vm14641_vm14 = vmmov %vm14640_vm0 }
 0x4ea   : > { %vm14642_vm11 = vmmov %vm14640_vm0 }
 0x4ec   : > { %4968 = vmatmul.mubr.bf16.gmra.mxu1 %v4665_v61  ;;  %6481 = vmatmul.mubr.msk.bf16.gmra.mxu0 %vm14623_vm5, %v14622_v27  ;;  %vm14643_vm5 = vmmov %vm14632_vm13 }
 0x4ed   : > { %6484 = vmatprep.mubr.msk.bf16.mxu0 %vm14590_vm4, %v5360_v3  ;;  %v4604_v3 = vsel %vm14629_vm12, %v14628_v24, %v7657_v7  ;;  %vm14644_vm4 = vmmov %vm14643_vm5 }
 0x4ee   : > { %v4667_v16 = vpack.c.bf16 %v4604_v3, %v4603_v63  ;;  %vm14650_vm12 = vmmov %vm14633_vm7 }
 0x4f4   : > { %6485 = vmatmul.mubr.msk.bf16.gmra.mxu0 %vm14624_vm6, %v5361_v51  ;;  %vm14646_vm6 = vmmov %vm14637_vm2 }
 0x4f5   : > { %6488 = vmatprep.mubr.msk.bf16.mxu0 %vm14625_vm9, %v5362_v8  ;;  %vm14648_vm9 = vmmov %vm14637_vm2 }
 0x4fc   : > { %6489 = vmatmul.mubr.msk.bf16.gmra.mxu0 %vm14633_vm7, %v12151_v55 }
 0x4fe   : > { %v7660_v6 = vpop.permute.xlu1 %7659  ;;  %v7665_v51 = vpop.permute.xlu0 %7664 }
 0x4ff   : > { %v7662_v18 = vunpack.i.h.bf16 %v7660_v6  ;;  %v7661_v33 = vunpack.i.l.bf16 %v7660_v6  ;;  %v7667_v42 = vunpack.i.h.bf16 %v7665_v51  ;;  %v7666_v34 = vunpack.i.l.bf16 %v7665_v51 }
 0x501   : > { %v4636_v13 = vsel %vm14630_vm3, %v7657_v7, %v7662_v18  ;;  %v4635_v56 = vsel %vm14631_vm8, %v7656_v50, %v7661_v33  ;;  %v4605_v45 = vsel %vm14635_vm15, %v14634_v49, %v7666_v34  ;;  %v4606_v17 = vsel %vm14637_vm2, %v14636_v9, %v7667_v42  ;;  %vm14652_vm8 = vmmov %vm14633_vm7 }
 0x502   : > { %v4668_v12 = vpack.c.bf16 %v4636_v13, %v4635_v56  ;;  %v4669_v47 = vpack.c.bf16 %v4606_v17, %v4605_v45  ;;  %vm6044_vm3 = vcmask 654336   ;;  %vm14658_vm15 = vmmov %vm14633_vm7 }
 0x503   : > { %vm14661_vm2 = vmmov %vm14633_vm7 }
 0x504   : > { %6355 = vmatprep.mubr.msk.bf16.mxu1 %vm14632_vm13, %v4668_v12  ;;  %vm14654_vm13 = vmmov %vm14633_vm7 }
 0x505   : > { %4976 = vmatmul.mubr.bf16.gmra.mxu1 %v4667_v16 }
 0x50f   : > { %v7675_v8 = vpop.permute.xlu0 %7674  ;;  %v7670_v36 = vpop.permute.xlu1 %7669 }
 0x510   : > { %v7677_v10 = vunpack.i.h.bf16 %v7675_v8  ;;  %v7676_v0 = vunpack.i.l.bf16 %v7675_v8  ;;  %v7672_v32 = vunpack.i.h.bf16 %v7670_v36  ;;  %v7671_v54 = vunpack.i.l.bf16 %v7670_v36 }
 0x512   : > { %v4640_v38 = vsel %vm14639_vm1, %v7677_v10, %v14638_v46  ;;  %v4639_v55 = vsel %vm14640_vm0, %v7676_v0, %v14638_v46  ;;  %v4638_v11 = vsel %vm14641_vm14, %v7667_v42, %v7672_v32  ;;  %v4637_v40 = vsel %vm14642_vm11, %v7666_v34, %v7671_v54  ;;  %vm14664_vm1 = vmmov %vm14661_vm2 }
 0x513   : > { %v4670_v60 = vpack.c.bf16 %v4638_v11, %v4637_v40  ;;  %v4672_v14 = vpack.c.bf16 %v4640_v38, %v4639_v55  ;;  %v4608_v52 = vsel %vm14646_vm6, %v14645_v26, %v7677_v10  ;;  %v4607_v62 = vsel %vm14648_vm9, %v14647_v39, %v7676_v0  ;;  %v12418_v38 = vld [vmem:[%s12925_s10] ss:$0 sm:$0xff]  ;;  %vm14667_vm0 = vmmov %vm14664_vm1 }
 0x514   : > { %v4671_v21 = vpack.c.bf16 %v4608_v52, %v4607_v62  ;;  %vm14670_vm14 = vmmov %vm14667_vm0 }
 0x515   : > { %6356 = vmatprep.mubr.msk.bf16.mxu1 %vm14643_vm5, %v4670_v60  ;;  %vm14673_vm11 = vmmov %vm14667_vm0 }
 0x516   : > { %4984 = vmatmul.mubr.bf16.gmra.mxu1 %v4669_v47  ;;  %vm14676_vm5 = vmmov %vm14667_vm0 }
 0x517   : > { %6357 = vmatprep.mubr.msk.bf16.mxu1 %vm14644_vm4, %v4672_v14  ;;  %vm14679_vm4 = vmmov %vm14667_vm0 }
 0x518   : > { %vm14682_vm6 = vmmov %vm14667_vm0 }
 0x519   : > { %vm14685_vm9 = vmmov %vm14667_vm0 }
 0x51e   : > { %4992 = vmatmul.mubr.bf16.gmra.mxu1 %v4671_v21 }
 0x535   : > { %v2594_v44 = vpop.f32.mrf.mxu1 }
 0x536   : > { %v2595_v29 = vadd.f32 %v12094_v22, %v2594_v44 }
 0x537   : > { %v2596_v25 = vpop.f32.mrf.mxu1 }
 0x538   : > { %v2631_v23 = vmax.f32 %v2595_v29, 0.0 }
 0x539   : > { %v2597_v2 = vpop.f32.mrf.mxu1 }
 0x53a   : > { %v2598_v53 = vadd.f32 %v12094_v22, %v2597_v2  ;;  %5720 = vrot.lane.b32.xlu1 %v2631_v23, %s13786_s30 }
 0x53b   : > { %v2599_v48 = vpop.f32.mrf.mxu1 }
 0x53c   : > { %v2632_v31 = vmax.f32 %v2598_v53, 0.0 }
 0x53e   : > { %5722 = vrot.lane.b32.xlu0 %v2632_v31, %s13786_s30  ;;  %s7823_s30 = smov 80  }
 0x548   : > { %v4897_v4 = vpop.f32.mrf.mxu1 }
 0x549   : > { %v4898_v32 = vadd.f32 %v12385_v37, %v4897_v4 }
 0x54a   : > { %v4899_v19 = vpop.f32.mrf.mxu1 }
 0x54b   : > { %v5006_v55 = vmax.f32 %v4898_v32, 0.0 }
 0x54c   : > { %v4900_v30 = vpop.f32.mrf.mxu1 }
 0x54d   : > { %v4901_v11 = vadd.f32 %v12385_v37, %v4900_v30 }
 0x54e   : > { %v4902_v15 = vpop.f32.mrf.mxu1 }
 0x54f   : > { %v5007_v39 = vmax.f32 %v4901_v11, 0.0 }
 0x550   : > { %v12388_v22 = vpop.f32.mrf.mxu1 }
 0x551   : > { %v4873_v20 = vpop.f32.mrf.mxu0  ;;  %v4906_v53 = vadd.f32 %v12385_v37, %v12388_v22 }
 0x552   : > { %v4874_v61 = vadd.f32 %v12385_v37, %v4873_v20  ;;  %v4907_v43 = vpop.f32.mrf.mxu1 }
 0x553   : > { %v4875_v57 = vpop.f32.mrf.mxu0 }
 0x554   : > { %v5000_v58 = vmax.f32 %v4874_v61, 0.0  ;;  %v12392_v35 = vpop.f32.mrf.mxu1  ;;  %v5008_v57 = vmax.f32 %v4906_v53, 0.0 }
 0x555   : > { %v4876_v5 = vpop.f32.mrf.mxu0 }
 0x556   : > { %v4877_v1 = vadd.f32 %v12385_v37, %v4876_v5  ;;  %5788 = vrot.lane.b32.xlu1 %v5000_v58, %s7823_s30  ;;  %v4910_v28 = vpop.f32.mrf.mxu1  ;;  %v4909_v58 = vadd.f32 %v12385_v37, %v12392_v35 }
 0x557   : > { %v4878_v59 = vpop.f32.mrf.mxu0  ;;  %v12446_v28 = vpop.permute.xlu1 %5660 }
 0x558   : > { %v5001_v27 = vmax.f32 %v4877_v1, 0.0  ;;  %v12395_v7 = vpop.f32.mrf.mxu1 }
 0x55a   : > { %5790 = vrot.lane.b32.xlu0 %v5001_v27, %s7823_s30  ;;  %v4915_v50 = vpop.f32.mrf.mxu1 }
 0x55b   : > { %v5009_v50 = vmax.f32 %v4909_v58, 0.0 }
 0x55c   : > { %v12397_v6 = vpop.f32.mrf.mxu1 }
 0x55e   : > { %v4918_v18 = vpop.f32.mrf.mxu1 }
 0x56c   : > { %v4881_v33 = vpop.f32.mrf.mxu0 }
 0x56d   : > { %v4882_v41 = vadd.f32 %v12385_v37, %v4881_v33 }
 0x56e   : > { %v4883_v63 = vpop.f32.mrf.mxu0 }
 0x56f   : > { %v5002_v24 = vmax.f32 %v4882_v41, 0.0 }
 0x570   : > { %v4884_v3 = vpop.f32.mrf.mxu0  ;;  %v12400_v13 = vpop.f32.mrf.mxu1 }
 0x571   : > { %v4885_v56 = vadd.f32 %v12385_v37, %v4884_v3  ;;  %5792 = vrot.lane.b32.xlu1 %v5002_v24, %s7823_s30  ;;  %v4914_v3 = vadd.f32 %v12385_v37, %v12395_v7 }
 0x572   : > { %v4886_v12 = vpop.f32.mrf.mxu0  ;;  %v4923_v16 = vpop.f32.mrf.mxu1 }
 0x573   : > { %v5003_v51 = vmax.f32 %v4885_v56, 0.0  ;;  %v5010_v7 = vmax.f32 %v4914_v3, 0.0 }
 0x574   : > { %v12404_v42 = vpop.f32.mrf.mxu1 }
 0x575   : > { %5794 = vrot.lane.b32.xlu0 %v5003_v51, %s7823_s30 }
 0x576   : > { %v4926_v34 = vpop.f32.mrf.mxu1 }
 0x577   : > { %v12457_v34 = vpop.permute.xlu0 %5662 }
 0x57c   : > { %v4889_v8 = vpop.f32.mrf.mxu0 }
 0x57d   : > { %v4890_v36 = vadd.f32 %v12385_v37, %v4889_v8 }
 0x57e   : > { %v4891_v0 = vpop.f32.mrf.mxu0 }
 0x57f   : > { %v12408_v10 = vpop.f32.mrf.mxu1  ;;  %v5004_v54 = vmax.f32 %v4890_v36, 0.0  ;;  %v12459_v36 = vpop.permute.xlu1 %5664 }
 0x580   : > { %v4892_v45 = vpop.f32.mrf.mxu0 }
 0x581   : > { %v4931_v49 = vpop.f32.mrf.mxu1  ;;  %v4893_v9 = vadd.f32 %v12385_v37, %v4892_v45  ;;  %5796 = vrot.lane.b32.xlu1 %v5004_v54, %s7823_s30 }
 0x582   : > { %v4894_v46 = vpop.f32.mrf.mxu0  ;;  %v4917_v49 = vadd.f32 %v12385_v37, %v12397_v6 }
 0x583   : > { %v12413_v17 = vpop.f32.mrf.mxu1  ;;  %v5005_v40 = vmax.f32 %v4893_v9, 0.0 }
 0x584   : > { %v6462_v47 = vpop.f32.mrf.mxu0 }
 0x585   : > { %v4934_v60 = vpop.f32.mrf.mxu1  ;;  %v5478_v14 = vadd.f32 %v6462_v47, %v12418_v38  ;;  %5798 = vrot.lane.b32.xlu0 %v5005_v40, %s7823_s30  ;;  %5800 = vrot.lane.b32.xlu1 %v5006_v55, %s7823_s30  ;;  %v12472_v40 = vpop.permute.xlu0 %5666 }
 0x586   : > { %v5469_v52 = vpop.f32.mrf.mxu0  ;;  %v12474_v47 = vpop.permute.xlu1 %5668 }
 0x587   : > { %v5598_v62 = vmax.f32 %v5478_v14, 0.0  ;;  %v5470_v21 = vadd.f32 %v12418_v38, %v5469_v52  ;;  %v5011_v14 = vmax.f32 %v4917_v49, 0.0 }
 0x588   : > { %v6463_v29 = vpop.f32.mrf.mxu0 }
 0x589   : > { %v5481_v25 = vadd.f32 %v6463_v29, %v12418_v38  ;;  %5802 = vrot.lane.b32.xlu0 %v5007_v39, %s7823_s30  ;;  %5920 = vrot.lane.b32.xlu1 %v5598_v62, %s7824_s16  ;;  %v5596_v48 = vmax.f32 %v5470_v21, 0.0  ;;  %v4922_v29 = vadd.f32 %v12385_v37, %v12400_v13 }
 0x58a   : > { %v5472_v2 = vpop.f32.mrf.mxu0 }
 0x58b   : > { %v12424_v26 = vpop.f32.mrf.mxu1  ;;  %v5599_v31 = vmax.f32 %v5481_v25, 0.0  ;;  %v5473_v4 = vadd.f32 %v12418_v38, %v5472_v2  ;;  %v5012_v13 = vmax.f32 %v4922_v29, 0.0 }
 0x58c   : > { %v6466_v30 = vpop.f32.mrf.mxu0 }
 0x58d   : > { %v4939_v44 = vpop.f32.mrf.mxu1  ;;  %v5494_v15 = vadd.f32 %v6466_v30, %v12418_v38  ;;  %5922 = vrot.lane.b32.xlu0 %v5599_v31, %s7824_s16  ;;  %5916 = vrot.lane.b32.xlu1 %v5596_v48, %s7824_s16  ;;  %v5597_v22 = vmax.f32 %v5473_v4, 0.0  ;;  %v12485_v31 = vpop.permute.xlu0 %5670 }
 0x58e   : > { %v5485_v61 = vpop.f32.mrf.mxu0 }
 0x58f   : > { %v12430_v23 = vpop.f32.mrf.mxu1  ;;  %v5602_v1 = vmax.f32 %v5494_v15, 0.0  ;;  %v5486_v18 = vadd.f32 %v12418_v38, %v5485_v61 }
 0x590   : > { %v6467_v43 = vpop.f32.mrf.mxu0 }
 0x591   : > { %v4942_v19 = vpop.f32.mrf.mxu1  ;;  %5918 = vrot.lane.b32.xlu0 %v5597_v22, %s7824_s16  ;;  %5804 = vrot.lane.b32.xlu1 %v5008_v57, %s7823_s30  ;;  %v5497_v33 = vadd.f32 %v6467_v43, %v12418_v38  ;;  %v5600_v56 = vmax.f32 %v5486_v18, 0.0  ;;  %v4925_v57 = vadd.f32 %v12385_v37, %v12404_v42 }
 0x592   : > { %v5488_v27 = vpop.f32.mrf.mxu0  ;;  %v12487_v19 = vpop.permute.xlu1 %5672 }
 0x593   : > { %v5603_v12 = vmax.f32 %v5497_v33, 0.0  ;;  %v5489_v16 = vadd.f32 %v12418_v38, %v5488_v27  ;;  %v5013_v18 = vmax.f32 %v4925_v57, 0.0 }
 0x594   : > { %v12438_v20 = vpop.f32.mrf.mxu1  ;;  %v6470_v35 = vpop.f32.mrf.mxu0 }
 0x595   : > { %5806 = vrot.lane.b32.xlu0 %v5009_v50, %s7823_s30  ;;  %5928 = vrot.lane.b32.xlu1 %v5602_v1, %s7824_s16  ;;  %v5510_v0 = vadd.f32 %v6470_v35, %v12418_v38  ;;  %v5601_v45 = vmax.f32 %v5489_v16, 0.0  ;;  %v12500_v1 = vpop.permute.xlu0 %5674 }
 0x596   : > { %v4947_v5 = vpop.f32.mrf.mxu1  ;;  %v5501_v24 = vpop.f32.mrf.mxu0 }
 0x597   : > { %v5606_v55 = vmax.f32 %v5510_v0, 0.0  ;;  %v5502_v52 = vadd.f32 %v12418_v38, %v5501_v24  ;;  %v12502_v50 = vpop.permute.xlu1 %5676  ;;  %v4930_v24 = vadd.f32 %v12385_v37, %v12408_v10 }
 0x598   : > { %v12444_v59 = vpop.f32.mrf.mxu1  ;;  %v6471_v8 = vpop.f32.mrf.mxu0 }
 0x599   : > { %5930 = vrot.lane.b32.xlu0 %v5603_v12, %s7824_s16  ;;  %5924 = vrot.lane.b32.xlu1 %v5600_v56, %s7824_s16  ;;  %v5513_v6 = vadd.f32 %v6471_v8, %v12418_v38  ;;  %v5604_v25 = vmax.f32 %v5502_v52, 0.0  ;;  %v12511_v16 = vpop.permute.xlu0 %5678 }
 0x59a   : > { %v4950_v41 = vpop.f32.mrf.mxu1  ;;  %v5504_v54 = vpop.f32.mrf.mxu0 }
 0x59b   : > { %v5607_v2 = vmax.f32 %v5513_v6, 0.0  ;;  %v5505_v53 = vadd.f32 %v12418_v38, %v5504_v54  ;;  %v12513_v8 = vpop.permute.xlu1 %5680  ;;  %v5014_v54 = vmax.f32 %v4930_v24, 0.0 }
 0x59c   : > { %v12452_v63 = vpop.f32.mrf.mxu1  ;;  %v6474_v46 = vpop.f32.mrf.mxu0 }
 0x59d   : > { %5926 = vrot.lane.b32.xlu0 %v5601_v45, %s7824_s16  ;;  %5808 = vrot.lane.b32.xlu1 %v5010_v7, %s7823_s30  ;;  %v5526_v30 = vadd.f32 %v6474_v46, %v12418_v38  ;;  %v5605_v58 = vmax.f32 %v5505_v53, 0.0  ;;  %v4933_v7 = vadd.f32 %v12385_v37, %v12413_v17  ;;  %v4938_v17 = vadd.f32 %v12385_v37, %v12424_v26 }
 0x59e   : > { %v4955_v51 = vpop.f32.mrf.mxu1  ;;  %v5517_v60 = vpop.f32.mrf.mxu0 }
 0x59f   : > { %v5610_v5 = vmax.f32 %v5526_v30, 0.0  ;;  %v5518_v33 = vadd.f32 %v12418_v38, %v5517_v60  ;;  %v12524_v46 = vpop.permute.xlu1 %5684  ;;  %v5016_v26 = vmax.f32 %v4938_v17, 0.0  ;;  %v4941_v30 = vadd.f32 %v12385_v37, %v12430_v23 }
 0x5a0   : > { %v12464_v32 = vpop.f32.mrf.mxu1  ;;  %v6475_v62 = vpop.f32.mrf.mxu0 }
 0x5a1   : > { %5810 = vrot.lane.b32.xlu0 %v5011_v14, %s7823_s30  ;;  %5936 = vrot.lane.b32.xlu1 %v5606_v55, %s7824_s16  ;;  %v5529_v41 = vadd.f32 %v6475_v62, %v12418_v38  ;;  %v5608_v3 = vmax.f32 %v5518_v33, 0.0  ;;  %v5015_v55 = vmax.f32 %v4933_v7, 0.0  ;;  %v4949_v7 = vadd.f32 %v12385_v37, %v12444_v59 }
 0x5a2   : > { %v4958_v9 = vpop.f32.mrf.mxu1  ;;  %v5520_v44 = vpop.f32.mrf.mxu0 }
 0x5a3   : > { %v5611_v56 = vmax.f32 %v5529_v41, 0.0  ;;  %v5521_v12 = vadd.f32 %v12418_v38, %v5520_v44  ;;  %v12522_v9 = vpop.permute.xlu0 %5682 }
 0x5a4   : > { %v12470_v11 = vpop.f32.mrf.mxu1  ;;  %v6478_v4 = vpop.f32.mrf.mxu0 }
 0x5a5   : > { %5938 = vrot.lane.b32.xlu0 %v5607_v2, %s7824_s16  ;;  %5932 = vrot.lane.b32.xlu1 %v5604_v25, %s7824_s16  ;;  %v5542_v0 = vadd.f32 %v6478_v4, %v12418_v38  ;;  %v5609_v10 = vmax.f32 %v5521_v12, 0.0  ;;  %v12537_v2 = vpop.permute.xlu1 %5688 }
 0x5a6   : > { %v4963_v39 = vpop.f32.mrf.mxu1  ;;  %v5533_v61 = vpop.f32.mrf.mxu0 }
 0x5a7   : > { %v5614_v45 = vmax.f32 %v5542_v0, 0.0  ;;  %v5534_v60 = vadd.f32 %v12418_v38, %v5533_v61  ;;  %v12535_v29 = vpop.permute.xlu0 %5686 }
 0x5a8   : > { %v12480_v21 = vpop.f32.mrf.mxu1  ;;  %v6479_v27 = vpop.f32.mrf.mxu0 }
 0x5a9   : > { %5934 = vrot.lane.b32.xlu0 %v5605_v58, %s7824_s16  ;;  %5812 = vrot.lane.b32.xlu1 %v5012_v13, %s7823_s30  ;;  %v5545_v14 = vadd.f32 %v6479_v27, %v12418_v38  ;;  %v5612_v6 = vmax.f32 %v5534_v60, 0.0  ;;  %v12550_v27 = vpop.permute.xlu1 %5692 }
 0x5aa   : > { %v4966_v48 = vpop.f32.mrf.mxu1  ;;  %v5536_v35 = vpop.f32.mrf.mxu0 }
 0x5ab   : > { %v5615_v39 = vmax.f32 %v5545_v14, 0.0  ;;  %v5537_v62 = vadd.f32 %v12418_v38, %v5536_v35 }
 0x5ac   : > { %v12492_v15 = vpop.f32.mrf.mxu1  ;;  %v6482_v51 = vpop.f32.mrf.mxu0 }
 0x5ad   : > { %5814 = vrot.lane.b32.xlu0 %v5013_v18, %s7823_s30  ;;  %5944 = vrot.lane.b32.xlu1 %v5610_v5, %s7824_s16  ;;  %v5558_v53 = vadd.f32 %v6482_v51, %v12418_v38  ;;  %v5613_v61 = vmax.f32 %v5537_v62, 0.0  ;;  %v12548_v5 = vpop.permute.xlu0 %5690  ;;  %v5017_v18 = vmax.f32 %v4941_v30, 0.0  ;;  %v12561_v12 = vpop.permute.xlu1 %5696 }
 0x5ae   : > { %v4971_v22 = vpop.f32.mrf.mxu1  ;;  %v5549_v49 = vpop.f32.mrf.mxu0 }
 0x5af   : > { %v5618_v57 = vmax.f32 %v5558_v53, 0.0  ;;  %v5550_v33 = vadd.f32 %v12418_v38, %v5549_v49 }
 0x5b0   : > { %v12498_v43 = vpop.f32.mrf.mxu1  ;;  %v6483_v52 = vpop.f32.mrf.mxu0 }
 0x5b1   : > { %5946 = vrot.lane.b32.xlu0 %v5611_v56, %s7824_s16  ;;  %5940 = vrot.lane.b32.xlu1 %v5608_v3, %s7824_s16  ;;  %v5561_v41 = vadd.f32 %v6483_v52, %v12418_v38  ;;  %v5616_v35 = vmax.f32 %v5550_v33, 0.0  ;;  %v12559_v56 = vpop.permute.xlu0 %5694  ;;  %v12576_v14 = vpop.permute.xlu1 %5700  ;;  %v5019_v52 = vmax.f32 %v4949_v7, 0.0 }
 0x5b2   : > { %v4974_v42 = vpop.f32.mrf.mxu1  ;;  %v5552_v25 = vpop.f32.mrf.mxu0 }
 0x5b3   : > { %v4946_v42 = vadd.f32 %v12385_v37, %v12438_v20  ;;  %v5619_v24 = vmax.f32 %v5561_v41, 0.0  ;;  %v5553_v3 = vadd.f32 %v12418_v38, %v5552_v25  ;;  %v4954_v25 = vadd.f32 %v12385_v37, %v12452_v63 }
 0x5b4   : > { %v6486_v4 = vpop.f32.mrf.mxu0  ;;  %v4957_v63 = vadd.f32 %v12385_v37, %v12464_v32 }
 0x5b5   : > { %5942 = vrot.lane.b32.xlu0 %v5609_v10, %s7824_s16  ;;  %5816 = vrot.lane.b32.xlu1 %v5014_v54, %s7823_s30  ;;  %v5574_v51 = vadd.f32 %v6486_v4, %v12418_v38  ;;  %v5018_v54 = vmax.f32 %v4946_v42, 0.0  ;;  %v5617_v20 = vmax.f32 %v5553_v3, 0.0  ;;  %v12574_v60 = vpop.permute.xlu0 %5698 }
 0x5b6   : > { %v5565_v22 = vpop.f32.mrf.mxu0  ;;  %v5021_v3 = vmax.f32 %v4957_v63, 0.0 }
 0x5b7   : > { %v5566_v17 = vadd.f32 %v12418_v38, %v5565_v22  ;;  %v5020_v22 = vmax.f32 %v4954_v25, 0.0 }
 0x5b8   : > { %v6487_v23 = vpop.f32.mrf.mxu0 }
 0x5b9   : > { %5818 = vrot.lane.b32.xlu0 %v5015_v55, %s7823_s30  ;;  %5952 = vrot.lane.b32.xlu1 %v5614_v45, %s7824_s16  ;;  %v5622_v45 = vmax.f32 %v5574_v51, 0.0  ;;  %v5577_v59 = vadd.f32 %v6487_v23, %v12418_v38  ;;  %v5620_v53 = vmax.f32 %v5566_v17, 0.0  ;;  %v4962_v51 = vadd.f32 %v12385_v37, %v12470_v11 }
 0x5ba   : > { %v5568_v0 = vpop.f32.mrf.mxu0 }
 0x5bb   : > { %v5569_v4 = vadd.f32 %v12418_v38, %v5568_v0 }
 0x5bc   : > { %v12570_v49 = vpop.f32.mrf.mxu0 }
 0x5bd   : > { %5954 = vrot.lane.b32.xlu0 %v5615_v39, %s7824_s16  ;;  %5948 = vrot.lane.b32.xlu1 %v5612_v6, %s7824_s16 }
 0x5be   : > { %v5581_v39 = vpop.f32.mrf.mxu0 }
 0x5bf   : > { %v5582_v33 = vadd.f32 %v12418_v38, %v5581_v39 }
 0x5c0   : > { %v12585_v30 = vpop.f32.mrf.mxu0 }
 0x5c1   : > { %5950 = vrot.lane.b32.xlu0 %v5613_v61, %s7824_s16  ;;  %5820 = vrot.lane.b32.xlu1 %v5016_v26, %s7823_s30  ;;  %v12587_v61 = vpop.permute.xlu0 %5702  ;;  %v5624_v0 = vmax.f32 %v5582_v33, 0.0 }
 0x5c2   : > { %v5584_v41 = vpop.f32.mrf.mxu0 }
 0x5c3   : > { %v5585_v32 = vadd.f32 %v12418_v38, %v5584_v41  ;;  %v5590_v41 = vadd.f32 %v12570_v49, %v12418_v38 }
 0x5c5   : > { %v12533_v44 = vpop.f32.mrf.mxu1  ;;  %5822 = vrot.lane.b32.xlu0 %v5017_v18, %s7823_s30  ;;  %5960 = vrot.lane.b32.xlu1 %v5618_v57, %s7824_s16  ;;  %v12589_v57 = vpop.permute.xlu1 %5704  ;;  %v5621_v18 = vmax.f32 %v5569_v4, 0.0 }
 0x5c7   : > { %v4979_v48 = vpop.f32.mrf.mxu1 }
 0x5c8   : > { %v5623_v48 = vmax.f32 %v5577_v59, 0.0 }
 0x5c9   : > { %v12544_v13 = vpop.f32.mrf.mxu1  ;;  %5962 = vrot.lane.b32.xlu0 %v5619_v24, %s7824_s16  ;;  %5956 = vrot.lane.b32.xlu1 %v5616_v35, %s7824_s16  ;;  %v12598_v35 = vpop.permute.xlu0 %5706 }
 0x5ca   : > { %v12600_v24 = vpop.permute.xlu1 %5708  ;;  %v4981_v4 = vadd.f32 %v12385_v37, %v12544_v13 }
 0x5cb   : > { %v4982_v58 = vpop.f32.mrf.mxu1 }
 0x5cd   : > { %5958 = vrot.lane.b32.xlu0 %v5617_v20, %s7824_s16  ;;  %5824 = vrot.lane.b32.xlu1 %v5018_v54, %s7823_s30  ;;  %v12607_v54 = vpop.permute.xlu0 %5710  ;;  %v5022_v20 = vmax.f32 %v4962_v51, 0.0 }
 0x5ce   : > { %v12609_v7 = vpop.permute.xlu1 %5712 }
 0x5d1   : > { %5826 = vrot.lane.b32.xlu0 %v5019_v52, %s7823_s30  ;;  %5968 = vrot.lane.b32.xlu1 %v5622_v45, %s7824_s16  ;;  %v4965_v45 = vadd.f32 %v12385_v37, %v12480_v21  ;;  %v5625_v52 = vmax.f32 %v5585_v32, 0.0  ;;  %v12617_v11 = vpop.permute.xlu0 %5714  ;;  %v4978_v21 = vadd.f32 %v12385_v37, %v12533_v44 }
 0x5d2   : > { %v12619_v17 = vpop.permute.xlu1 %5716 }
 0x5d3   : > { %v5023_v59 = vmax.f32 %v4965_v45, 0.0 }
 0x5d5   : > { %5970 = vrot.lane.b32.xlu0 %v5623_v48, %s7824_s16  ;;  %5964 = vrot.lane.b32.xlu1 %v5620_v53, %s7824_s16  ;;  %v5026_v48 = vmax.f32 %v4978_v21, 0.0 }
 0x5d6   : > { %v12568_v10 = vpop.f32.mrf.mxu1  ;;  %v12629_v25 = vpop.permute.xlu1 %5720 }
 0x5d8   : > { %v4987_v55 = vpop.f32.mrf.mxu1 }
 0x5d9   : > { %5966 = vrot.lane.b32.xlu0 %v5621_v18, %s7824_s16  ;;  %5828 = vrot.lane.b32.xlu1 %v5020_v22, %s7823_s30  ;;  %v4970_v55 = vadd.f32 %v12385_v37, %v12492_v15  ;;  %v12627_v15 = vpop.permute.xlu0 %5718  ;;  %v5027_v22 = vmax.f32 %v4981_v4, 0.0 }
 0x5da   : > { %v4988_v6 = vpop.f32.mrf.mxu1  ;;  %v5789_v44 = vpop.permute.xlu1 %5788 }
 0x5db   : > { %v5024_v39 = vmax.f32 %v4970_v55, 0.0  ;;  %v4989_v18 = vadd.f32 %v12385_v37, %v4988_v6  ;;  %v5626_v6 = vmax.f32 %v5590_v41, 0.0  ;;  %v14656_v41 = vld [vmem:[#allocation51_spill] sm:$0xff] }
 0x5dc   : > { %v4990_v62 = vpop.f32.mrf.mxu1 }
 0x5dd   : > { %5830 = vrot.lane.b32.xlu0 %v5021_v3, %s7823_s30  ;;  %5972 = vrot.lane.b32.xlu1 %v5624_v0, %s7824_s16  ;;  %v4973_v62 = vadd.f32 %v12385_v37, %v12498_v43  ;;  %v12637_v43 = vpop.permute.xlu0 %5722 }
 0x5de   : > { %v4993_v26 = vpop.f32.mrf.mxu1 }
 0x5df   : > { %v5025_v53 = vmax.f32 %v4973_v62, 0.0  ;;  %v4994_v33 = vadd.f32 %v12385_v37, %v4993_v26  ;;  %v5593_v26 = vadd.f32 %v12585_v30, %v12418_v38 }
 0x5e0   : > { %v4995_v58 = vpop.f32.mrf.mxu1 }
 0x5e1   : > { %5974 = vrot.lane.b32.xlu0 %v5625_v52, %s7824_s16  ;;  %5832 = vrot.lane.b32.xlu1 %v5022_v20, %s7823_s30  ;;  %v4986_v58 = vadd.f32 %v12385_v37, %v12568_v10  ;;  %v5791_v13 = vpop.permute.xlu0 %5790  ;;  %v5029_v10 = vmax.f32 %v4989_v18, 0.0  ;;  %v5627_v49 = vmax.f32 %v5593_v26, 0.0  ;;  %v14655_v18 = vld [vmem:[#allocation50_spill] sm:$0xff] }
 0x5e2   : > { %v4996_v23 = vpop.f32.mrf.mxu1 }
 0x5e3   : > { %v5028_v63 = vmax.f32 %v4986_v58, 0.0  ;;  %v4997_v3 = vadd.f32 %v12385_v37, %v4996_v23  ;;  %v5793_v51 = vpop.permute.xlu1 %5792  ;;  %v14649_v23 = vld [vmem:[#allocation47_spill] sm:$0xff] }
 0x5e4   : > { %v4998_v42 = vpop.f32.mrf.mxu1  ;;  %v6014_v38 = vsel %vm14650_vm12, %v14649_v23, %v12459_v36  ;;  %v14653_v36 = vld [vmem:[#allocation48_spill] sm:$0xff]  ;;  %vm14688_vm12 = vmmov %vm14667_vm0 }
 0x5e5   : > { %5834 = vrot.lane.b32.xlu0 %v5023_v59, %s7823_s30  ;;  %5836 = vrot.lane.b32.xlu1 %v5024_v39, %s7823_s30  ;;  %v5030_v42 = vmax.f32 %v4994_v33, 0.0  ;;  %v5031_v0 = vmax.f32 %v4997_v3, 0.0  ;;  %v6047_v30 = vsel %vm6044_vm3, %v6014_v38, %v5793_v51  ;;  %v14651_v39 = vld [vmem:[#allocation49_spill] sm:$0xff]  ;;  %v6015_v21 = vsel %vm14654_vm13, %v14653_v36, %v12472_v40  ;;  %vm14694_vm13 = vmmov %vm14667_vm0 }
 0x5e6   : > { %v6012_v62 = vsel %vm14652_vm8, %v14651_v39, %v12446_v28  ;;  %v6013_v28 = vsel %vm14633_vm7, %v14655_v18, %v12457_v34  ;;  %vm14691_vm8 = vmmov %vm14667_vm0 }
 0x5e7   : > { %v5795_v32 = vpop.permute.xlu0 %5794  ;;  %v6046_v33 = vsel %vm6044_vm3, %v6013_v28, %v5791_v13  ;;  %v14659_v13 = vld [vmem:[#allocation54_spill] sm:$0xff]  ;;  %vm14697_vm7 = vmmov %vm14667_vm0 }
 0x5e9   : > { %5838 = vrot.lane.b32.xlu0 %v5025_v53, %s7823_s30  ;;  %5840 = vrot.lane.b32.xlu1 %v5026_v48, %s7823_s30  ;;  %v6045_v53 = vsel %vm6044_vm3, %v6012_v62, %v5789_v44  ;;  %v6048_v48 = vsel %vm6044_vm3, %v6015_v21, %v5795_v32 }
 0x5ed   : > { %5842 = vrot.lane.b32.xlu0 %v5027_v22, %s7823_s30  ;;  %5844 = vrot.lane.b32.xlu1 %v5028_v63, %s7823_s30 }
 0x5f1   : > { %5846 = vrot.lane.b32.xlu0 %v5029_v10, %s7823_s30  ;;  %5848 = vrot.lane.b32.xlu1 %v5030_v42, %s7823_s30  ;;  %v14657_v42 = vmax.f32 %v14656_v41, 0.0 }
 0x5f3   : > { %v5797_v20 = vpop.permute.xlu1 %5796  ;;  %v6018_v3 = vsel %vm14658_vm15, %v14657_v42, %v12487_v19  ;;  %vm14699_vm15 = vmmov %vm14667_vm0 }
 0x5f5   : > { %5850 = vrot.lane.b32.xlu0 %v5031_v0, %s7823_s30  ;;  %5976 = vrot.lane.b32.xlu1 %v5626_v6, %s7824_s16  ;;  %v14660_v0 = vmax.f32 %v14659_v13, 0.0 }
 0x5f7   : > { %v5799_v45 = vpop.permute.xlu0 %5798  ;;  %v5801_v37 = vpop.permute.xlu1 %5800  ;;  %v6016_v32 = vsel %vm14661_vm2, %v14660_v0, %v12474_v47  ;;  %v14665_v47 = vld [vmem:[#allocation53_spill] sm:$0xff]  ;;  %vm14701_vm2 = vmmov %vm14667_vm0 }
 0x5f8   : > { %v6051_v51 = vsel %vm6044_vm3, %v6018_v3, %v5801_v37  ;;  %v6049_v19 = vsel %vm6044_vm3, %v6016_v32, %v5797_v20  ;;  %v14666_v62 = vmax.f32 %v14665_v47, 0.0 }
 0x5f9   : > { %5978 = vrot.lane.b32.xlu0 %v5627_v49, %s7824_s16  ;;  %v14662_v49 = vld [vmem:[#allocation52_spill] sm:$0xff]  ;;  %s7825_s16 = smov [#allocation2]  }
 0x5fa   : > { %v14663_v23 = vmax.f32 %v14662_v49, 0.0  ;;  %v6017_v36 = vsel %vm14667_vm0, %v14666_v62, %v12485_v31  ;;  %v14686_v62 = vld [vmem:[#allocation59_spill] sm:$0xff]  ;;  %s7755_s25 = sshll.u32 %s7825_s16, 4  ;;  %s7756_s25 = int_to_ptr.vmem [resolvable:$false] %s7755_s25 }
 0x5fb   : > { %v5803_v55 = vpop.permute.xlu0 %5802  ;;  %v5921_v52 = vpop.permute.xlu1 %5920  ;;  %s7757_s14 = scalar_lea.vmem %s7756_s25, 8192  ;;  %p7758_p0 = scmp.lt.s32.totalorder %s12868_s12, %s7756_s25 }
 0x5fc   : > { %v6080_v59 = vsel %vm6077_vm10, %v6047_v30, %v5921_v52  ;;  %v6019_v38 = vsel %vm14664_vm1, %v14663_v23, %v12500_v1  ;;  %v6050_v1 = vsel %vm6044_vm3, %v6017_v36, %v5799_v45  ;;  %v14671_v45 = vld [vmem:[#allocation57_spill] sm:$0xff]  ;;  %v14687_v36 = vmax.f32 %v14686_v62, 0.0  ;;  %vm14703_vm1 = vmmov %vm14667_vm0  ;;  %p7759_p1 = scmp.lt.s32.totalorder %s7757_s14, %s7751_s15 }
 0x5fd   : > { %6112 = vst [vmem:[%s12661_s29 + $0x10] sm:$0xff] %v6080_v59  ;;  %v6052_v37 = vsel %vm6044_vm3, %v6019_v38, %v5803_v55  ;;  %v14672_v18 = vmax.f32 %v14671_v45, 0.0  ;;  %v14680_v38 = vld [vmem:[#allocation63_spill] sm:$0xff] }
 0x5fe   : > { %p7760_p2 = por %p7759_p1, %p7758_p0 }
 0x5ff   : > { %v5923_v4 = vpop.permute.xlu0 %5922  ;;  %v5917_v58 = vpop.permute.xlu1 %5916  ;;  %v6020_v28 = vsel %vm14673_vm11, %v14672_v18, %v12502_v50  ;;  %v14677_v50 = vld [vmem:[#allocation58_spill] sm:$0xff]  ;;  %vm14708_vm11 = vmmov %vm14667_vm0 }
 0x600   : > { %v6081_v22 = vsel %vm6077_vm10, %v6048_v48, %v5923_v4  ;;  %v6078_v63 = vsel %vm6077_vm10, %v6045_v53, %v5917_v58  ;;  %v14668_v53 = vld [vmem:[#allocation55_spill] sm:$0xff]  ;;  %p7761_p3 = pnand %p7760_p2, %p7754_p13 }
 0x601   : > { %6113 = vst [vmem:[%s12661_s29 + $0x18] sm:$0xff] %v6081_v22  ;;  %6110 = vst [vmem:[%s12661_s29] sm:$0xff] %v6078_v63  ;;  %v14669_v48 = vmax.f32 %v14668_v53, 0.0 }
 0x603   : > { %v5919_v40 = vpop.permute.xlu0 %5918  ;;  %v5805_v10 = vpop.permute.xlu1 %5804  ;;  %v6022_v4 = vsel %vm14670_vm14, %v14669_v48, %v12513_v8  ;;  %vm14706_vm14 = vmmov %vm14667_vm0 }
 0x604   : > { %v6079_v44 = vsel %vm6077_vm10, %v6046_v33, %v5919_v40  ;;  %v14674_v33 = vld [vmem:[#allocation56_spill] sm:$0xff]  ;;  %v6053_v8 = vsel %vm6044_vm3, %v6020_v28, %v5805_v10  ;;  %v14692_v28 = vld [vmem:[#allocation73_spill] sm:$0xff] }
 0x605   : > { %6111 = vst [vmem:[%s12661_s29 + $0x8] sm:$0xff] %v6079_v44  ;;  %v14675_v40 = vmax.f32 %v14674_v33, 0.0  ;;  %v14693_v33 = vmax.f32 %v14692_v28, 0.0 }
 0x607   : > { %v5807_v6 = vpop.permute.xlu0 %5806  ;;  %v5929_v26 = vpop.permute.xlu1 %5928  ;;  %v6023_v44 = vsel %vm14676_vm5, %v14675_v40, %v12522_v9  ;;  %v6028_v40 = vsel %vm14694_vm13, %v14693_v33, %v12550_v27  ;;  %vm14710_vm5 = vmmov %vm14667_vm0 }
 0x608   : > { %v6084_v34 = vsel %vm6077_vm10, %v6051_v51, %v5929_v26  ;;  %vm14722_vm13 = vmmov %vm14667_vm0 }
 0x609   : > { %6116 = vst [vmem:[%s12661_s29 + $0x30] sm:$0xff] %v6084_v34  ;;  %v14678_v34 = vmax.f32 %v14677_v50, 0.0 }
 0x60b   : > { %v5931_v30 = vpop.permute.xlu0 %5930  ;;  %v5925_v52 = vpop.permute.xlu1 %5924  ;;  %v6021_v13 = vsel %vm14679_vm4, %v14678_v34, %v12511_v16  ;;  %vm14712_vm4 = vmmov %vm14667_vm0 }
 0x60c   : > { %v6085_v59 = vsel %vm6077_vm10, %v6052_v37, %v5931_v30  ;;  %v6082_v39 = vsel %vm6077_vm10, %v6049_v19, %v5925_v52  ;;  %v6054_v9 = vsel %vm6044_vm3, %v6021_v13, %v5807_v6  ;;  %v14681_v19 = vmax.f32 %v14680_v38, 0.0  ;;  %v14700_v38 = vld [vmem:[#allocation66_spill] sm:$0xff] }
 0x60d   : > { %6117 = vst [vmem:[%s12661_s29 + $0x38] sm:$0xff] %v6085_v59  ;;  %6114 = vst [vmem:[%s12661_s29 + $0x20] sm:$0xff] %v6082_v39  ;;  %v14683_v59 = vld [vmem:[#allocation64_spill] sm:$0xff] }
 0x60e   : > { %v6024_v37 = vsel %vm14682_vm6, %v14681_v19, %v12524_v46  ;;  %v14684_v39 = vmax.f32 %v14683_v59, 0.0  ;;  %v6031_v19 = vsel %vm14701_vm2, %v14700_v38, %v12574_v60  ;;  %v14702_v59 = vld [vmem:[#allocation71_spill] sm:$0xff]  ;;  %vm14714_vm6 = vmmov %vm14667_vm0 }
 0x60f   : > { %v5927_v21 = vpop.permute.xlu0 %5926  ;;  %v5809_v20 = vpop.permute.xlu1 %5808 }
 0x610   : > { %v6083_v55 = vsel %vm6077_vm10, %v6050_v1, %v5927_v21  ;;  %v6055_v58 = vsel %vm6044_vm3, %v6022_v4, %v5809_v20  ;;  %v6025_v47 = vsel %vm14685_vm9, %v14684_v39, %v12535_v29  ;;  %v6026_v1 = vsel %vm14688_vm12, %v14687_v36, %v12537_v2  ;;  %v14689_v29 = vld [vmem:[#allocation60_spill] sm:$0xff]  ;;  %vm14716_vm9 = vmmov %vm14667_vm0 }
 0x611   : > { %6115 = vst [vmem:[%s12661_s29 + $0x28] sm:$0xff] %v6083_v55  ;;  %v14690_v4 = vmax.f32 %v14689_v29, 0.0  ;;  %v6032_v39 = vsel %vm14703_vm1, %v14702_v59, %v12576_v14  ;;  %v14705_v14 = vld [vmem:[#allocation75_spill] sm:$0xff]  ;;  %vm14718_vm12 = vmmov %vm14667_vm0 }
 0x613   : > { %v5811_v22 = vpop.permute.xlu0 %5810  ;;  %v5937_v63 = vpop.permute.xlu1 %5936 }
 0x614   : > { %v6088_v31 = vsel %vm6077_vm10, %v6055_v58, %v5937_v63  ;;  %v6056_v41 = vsel %vm6044_vm3, %v6023_v44, %v5811_v22  ;;  %v6027_v58 = vsel %vm14691_vm8, %v14690_v4, %v12548_v5  ;;  %vm14720_vm8 = vmmov %vm14667_vm0 }
 0x615   : > { %6120 = vst [vmem:[%s12661_s29 + $0x50] sm:$0xff] %v6088_v31 }
 0x617   : > { %v5939_v42 = vpop.permute.xlu0 %5938  ;;  %v5933_v3 = vpop.permute.xlu1 %5932 }
 0x618   : > { %v6089_v51 = vsel %vm6077_vm10, %v6056_v41, %v5939_v42  ;;  %v6086_v26 = vsel %vm6077_vm10, %v6053_v8, %v5933_v3  ;;  %v14695_v42 = vld [vmem:[#allocation74_spill] sm:$0xff] }
 0x619   : > { %6121 = vst [vmem:[%s12661_s29 + $0x58] sm:$0xff] %v6089_v51  ;;  %6118 = vst [vmem:[%s12661_s29 + $0x40] sm:$0xff] %v6086_v26  ;;  %v14696_v3 = vmax.f32 %v14695_v42, 0.0 }
 0x61b   : > { %v5935_v0 = vpop.permute.xlu0 %5934  ;;  %v5813_v10 = vpop.permute.xlu1 %5812  ;;  %v6029_v51 = vsel %vm14697_vm7, %v14696_v3, %v12559_v56  ;;  %vm14724_vm7 = vmmov %vm14667_vm0 }
 0x61c   : > { %v6087_v32 = vsel %vm6077_vm10, %v6054_v9, %v5935_v0  ;;  %v6057_v30 = vsel %vm6044_vm3, %v6024_v37, %v5813_v10  ;;  %v14698_v0 = vld [vmem:[#allocation65_spill] sm:$0xff] }
 0x61d   : > { %6119 = vst [vmem:[%s12661_s29 + $0x48] sm:$0xff] %v6087_v32  ;;  %v6030_v10 = vsel %vm14699_vm15, %v14698_v0, %v12561_v12 }
 0x61f   : > { %v5815_v49 = vpop.permute.xlu0 %5814  ;;  %v5945_v23 = vpop.permute.xlu1 %5944 }
 0x620   : > { %v6058_v46 = vsel %vm6044_vm3, %v6025_v47, %v5815_v49 }
 0x623   : > { %v5947_v52 = vpop.permute.xlu0 %5946  ;;  %v5941_v16 = vpop.permute.xlu1 %5940 }
 0x624   : > { %v6090_v6 = vsel %vm6077_vm10, %v6057_v30, %v5941_v16 }
 0x625   : > { %6122 = vst [vmem:[%s12661_s29 + $0x60] sm:$0xff] %v6090_v6 }
 0x627   : > { %v5943_v21 = vpop.permute.xlu0 %5942  ;;  %v5817_v20 = vpop.permute.xlu1 %5816 }
 0x628   : > { %v6091_v55 = vsel %vm6077_vm10, %v6058_v46, %v5943_v21  ;;  %v6059_v53 = vsel %vm6044_vm3, %v6026_v1, %v5817_v20  ;;  %v14704_v1 = vld [vmem:[#allocation83_spill] sm:$0xff] }
 0x629   : > { %6123 = vst [vmem:[%s12661_s29 + $0x68] sm:$0xff] %v6091_v55  ;;  %v6092_v48 = vsel %vm6077_vm10, %v6059_v53, %v5945_v23  ;;  %v6033_v46 = vsel %vm14667_vm0, %v14704_v1, %v12587_v61  ;;  %v14707_v61 = vld [vmem:[#allocation76_spill] sm:$0xff] }
 0x62a   : > { %6124 = vst [vmem:[%s12661_s29 + $0x70] sm:$0xff] %v6092_v48  ;;  %v6034_v48 = vsel %vm14706_vm14, %v14705_v14, %v12589_v57 }
 0x62b   : > { %v5819_v22 = vpop.permute.xlu0 %5818  ;;  %v5953_v2 = vpop.permute.xlu1 %5952 }
 0x62c   : > { %v6060_v63 = vsel %vm6044_vm3, %v6027_v58, %v5819_v22 }
 0x62d   : > { %v6093_v31 = vsel %vm6077_vm10, %v6060_v63, %v5947_v52  ;;  %v14709_v63 = vld [vmem:[#allocation90_spill] sm:$0xff] }
 0x62e   : > { %6125 = vst [vmem:[%s12661_s29 + $0x78] sm:$0xff] %v6093_v31  ;;  %v6036_v31 = vsel %vm14710_vm5, %v14709_v63, %v12600_v24  ;;  %v14713_v24 = vld [vmem:[#allocation78_spill] sm:$0xff] }
 0x62f   : > { %v5955_v45 = vpop.permute.xlu0 %5954  ;;  %v5949_v18 = vpop.permute.xlu1 %5948 }
 0x633   : > { %v5951_v44 = vpop.permute.xlu0 %5950  ;;  %v5821_v8 = vpop.permute.xlu1 %5820 }
 0x634   : > { %v6061_v41 = vsel %vm6044_vm3, %v6028_v40, %v5821_v8  ;;  %v6038_v8 = vsel %vm14714_vm6, %v14713_v24, %v12609_v7  ;;  %v14717_v7 = vld [vmem:[#allocation98_spill] sm:$0xff] }
 0x635   : > { %v6094_v5 = vsel %vm6077_vm10, %v6061_v41, %v5949_v18 }
 0x636   : > { %6126 = vst [vmem:[%s12661_s29 + $0x80] sm:$0xff] %v6094_v5 }
 0x637   : > { %v5823_v26 = vpop.permute.xlu0 %5822  ;;  %v5961_v50 = vpop.permute.xlu1 %5960 }
 0x638   : > { %v6062_v34 = vsel %vm6044_vm3, %v6029_v51, %v5823_v26 }
 0x639   : > { %v6095_v27 = vsel %vm6077_vm10, %v6062_v34, %v5951_v44  ;;  %v6040_v34 = vsel %vm14718_vm12, %v14717_v7, %v12619_v17 }
 0x63a   : > { %6127 = vst [vmem:[%s12661_s29 + $0x88] sm:$0xff] %v6095_v27 }
 0x63b   : > { %v5963_v13 = vpop.permute.xlu0 %5962  ;;  %v5957_v9 = vpop.permute.xlu1 %5956 }
 0x63f   : > { %v5959_v32 = vpop.permute.xlu0 %5958  ;;  %v5825_v49 = vpop.permute.xlu1 %5824 }
 0x640   : > { %v6063_v23 = vsel %vm6044_vm3, %v6030_v10, %v5825_v49 }
 0x641   : > { %v6096_v56 = vsel %vm6077_vm10, %v6063_v23, %v5953_v2  ;;  %v6035_v2 = vsel %vm14708_vm11, %v14707_v61, %v12598_v35  ;;  %v14711_v35 = vld [vmem:[#allocation91_spill] sm:$0xff] }
 0x642   : > { %6128 = vst [vmem:[%s12661_s29 + $0x90] sm:$0xff] %v6096_v56  ;;  %v6037_v44 = vsel %vm14712_vm4, %v14711_v35, %v12607_v54  ;;  %v14715_v54 = vld [vmem:[#allocation79_spill] sm:$0xff] }
 0x643   : > { %v5827_v37 = vpop.permute.xlu0 %5826  ;;  %v5969_v30 = vpop.permute.xlu1 %5968 }
 0x644   : > { %v6064_v52 = vsel %vm6044_vm3, %v6031_v19, %v5827_v37  ;;  %v14721_v19 = vld [vmem:[#allocation85_spill] sm:$0xff] }
 0x645   : > { %v6097_v16 = vsel %vm6077_vm10, %v6064_v52, %v5955_v45  ;;  %v6042_v37 = vsel %vm14722_vm13, %v14721_v19, %v12629_v25 }
 0x646   : > { %6129 = vst [vmem:[%s12661_s29 + $0x98] sm:$0xff] %v6097_v16 }
 0x647   : > { %v5971_v12 = vpop.permute.xlu0 %5970  ;;  %v5965_v6 = vpop.permute.xlu1 %5964 }
 0x64b   : > { %v5967_v47 = vpop.permute.xlu0 %5966  ;;  %v5829_v62 = vpop.permute.xlu1 %5828 }
 0x64c   : > { %v6065_v36 = vsel %vm6044_vm3, %v6032_v39, %v5829_v62 }
 0x64d   : > { %v6098_v60 = vsel %vm6077_vm10, %v6065_v36, %v5957_v9 }
 0x64e   : > { %6130 = vst [vmem:[%s12661_s29 + $0xa0] sm:$0xff] %v6098_v60 }
 0x64f   : > { %v5831_v21 = vpop.permute.xlu0 %5830  ;;  %v5973_v20 = vpop.permute.xlu1 %5972 }
 0x650   : > { %v6066_v55 = vsel %vm6044_vm3, %v6033_v46, %v5831_v21 }
 0x651   : > { %v6099_v53 = vsel %vm6077_vm10, %v6066_v55, %v5959_v32 }
 0x652   : > { %6131 = vst [vmem:[%s12661_s29 + $0xa8] sm:$0xff] %v6099_v53 }
 0x653   : > { %v5975_v29 = vpop.permute.xlu0 %5974  ;;  %v5833_v4 = vpop.permute.xlu1 %5832 }
 0x654   : > { %v6067_v58 = vsel %vm6044_vm3, %v6034_v48, %v5833_v4 }
 0x655   : > { %v6100_v22 = vsel %vm6077_vm10, %v6067_v58, %v5961_v50  ;;  %v6039_v50 = vsel %vm14716_vm9, %v14715_v54, %v12617_v11  ;;  %v14719_v11 = vld [vmem:[#allocation100_spill] sm:$0xff] }
 0x656   : > { %6132 = vst [vmem:[%s12661_s29 + $0xb0] sm:$0xff] %v6100_v22  ;;  %v6041_v49 = vsel %vm14720_vm8, %v14719_v11, %v12627_v15 }
 0x657   : > { %v5835_v45 = vpop.permute.xlu0 %5834  ;;  %v5837_v18 = vpop.permute.xlu1 %5836 }
 0x658   : > { %v6068_v57 = vsel %vm6044_vm3, %v6035_v2, %v5835_v45  ;;  %v6069_v28 = vsel %vm6044_vm3, %v6036_v31, %v5837_v18 }
 0x659   : > { %v6101_v33 = vsel %vm6077_vm10, %v6068_v57, %v5963_v13  ;;  %v6102_v40 = vsel %vm6077_vm10, %v6069_v28, %v5965_v6 }
 0x65a   : > { %6133 = vst [vmem:[%s12661_s29 + $0xb8] sm:$0xff] %v6101_v33  ;;  %6134 = vst [vmem:[%s12661_s29 + $0xc0] sm:$0xff] %v6102_v40 }
 0x65b   : > { %v5839_v41 = vpop.permute.xlu0 %5838  ;;  %v5841_v5 = vpop.permute.xlu1 %5840 }
 0x65c   : > { %v6070_v42 = vsel %vm6044_vm3, %v6037_v44, %v5839_v41  ;;  %v6071_v3 = vsel %vm6044_vm3, %v6038_v8, %v5841_v5 }
 0x65d   : > { %v6103_v51 = vsel %vm6077_vm10, %v6070_v42, %v5967_v47  ;;  %v6104_v26 = vsel %vm6077_vm10, %v6071_v3, %v5969_v30 }
 0x65e   : > { %6135 = vst [vmem:[%s12661_s29 + $0xc8] sm:$0xff] %v6103_v51  ;;  %6136 = vst [vmem:[%s12661_s29 + $0xd0] sm:$0xff] %v6104_v26 }
 0x65f   : > { %v5843_v27 = vpop.permute.xlu0 %5842  ;;  %v5845_v13 = vpop.permute.xlu1 %5844 }
 0x660   : > { %v6072_v9 = vsel %vm6044_vm3, %v6039_v50, %v5843_v27  ;;  %v6073_v0 = vsel %vm6044_vm3, %v6040_v34, %v5845_v13 }
 0x661   : > { %v6105_v10 = vsel %vm6077_vm10, %v6072_v9, %v5971_v12  ;;  %v6106_v32 = vsel %vm6077_vm10, %v6073_v0, %v5973_v20  ;;  %v14723_v12 = vld [vmem:[#allocation86_spill] sm:$0xff] }
 0x662   : > { %6137 = vst [vmem:[%s12661_s29 + $0xd8] sm:$0xff] %v6105_v10  ;;  %6138 = vst [vmem:[%s12661_s29 + $0xe0] sm:$0xff] %v6106_v32  ;;  %v6043_v6 = vsel %vm14724_vm7, %v14723_v12, %v12637_v43 }
 0x663   : > { %v5847_v17 = vpop.permute.xlu0 %5846  ;;  %v5849_v23 = vpop.permute.xlu1 %5848 }
 0x664   : > { %v6074_v56 = vsel %vm6044_vm3, %v6041_v49, %v5847_v17  ;;  %v6075_v30 = vsel %vm6044_vm3, %v6042_v37, %v5849_v23 }
 0x665   : > { %v6107_v38 = vsel %vm6077_vm10, %v6074_v56, %v5975_v29 }
 0x666   : > { %6139 = vst [vmem:[%s12661_s29 + $0xe8] sm:$0xff] %v6107_v38 }
 0x667   : > { %v5851_v52 = vpop.permute.xlu0 %5850  ;;  %v5977_v16 = vpop.permute.xlu1 %5976 }
 0x668   : > { %v6108_v15 = vsel %vm6077_vm10, %v6075_v30, %v5977_v16  ;;  %v6076_v25 = vsel %vm6044_vm3, %v6043_v6, %v5851_v52 }
 0x669   : > { %6140 = vst [vmem:[%s12661_s29 + $0xf0] sm:$0xff] %v6108_v15 }
 0x66b   : > { %v5979_v59 = vpop.permute.xlu0 %5978 }
 0x66c   : > { %v6109_v39 = vsel %vm6077_vm10, %v6076_v25, %v5979_v59 }
 0x66d   : > { %6141 = vst [vmem:[%s12661_s29 + $0xf8] sm:$0xff] %v6109_v39 }
 0x66e   : > { %7764 = shalt.err (!%p7761_p3)
}
 0x66f   : > { %s7765_s24 = scalar_lea.hbm %s12866_s22, 4096  ;;  %s7769_s30 = scalar_lea.hbm %s12926_s11, 8192 }
 0x670   : > { %p7766_p4 = scmp.ne.s32.totalorder %s12866_s22, %s7765_s24  ;;  %p7770_p9 = scmp.lt.s32.totalorder %s12866_s22, %s12926_s11 }
 0x671   : > { %p7771_p10 = scmp.lt.s32.totalorder %s7769_s30, %s7765_s24 }
 0x672   : > { %p7767_p7 = pnand %p7766_p4, %p7926_p5 }
 0x673   : > { %p7772_p11 = por %p7771_p10, %p7770_p9 }
 0x674   : > { %p7768_p8 = pneg %p7767_p7 }
 0x676   : > { %p7773_p12 = pnand %p7772_p11, %p7768_p8 }
 0x678   : > { %7776 = shalt.err (!%p7773_p12)
}
 0x679   : > { %s7826_s15 = smov 128   ;;  %s7827_s25 = smov 8  }
 0x67a   : > { %6520 = dma.vmem_to_hbm [thread:$0]  (%p7926_p5), %s12868_s12, 4096, %s12866_s22, %s12875_s21, %s7826_s15, %s7826_s15, %s7827_s25  }
 0x67b PF: > { %p6526_p13 = scmp.ge.s32.totalorder %s7811_s20, 2  ;;  %s6171_s14 = sand.u32 1, %s7799_s17  }
 0x67c   : > { %s6172_s0 = scalar_lea.sflag [#allocation3], %s6171_s14 }
 0x67d   : > { %p6523_p0 = pnand %p6526_p13, %p7930_p6 }
 0x67f   : > { %p6524_p1 = pneg %p6523_p0 }
 0x681   : > { %7794 = dma.done.wait (%p6524_p1), %s6172_s0, 4096  }
 0x682   : > { %7796 = vsyncadd (%p6524_p1), %s6172_s0, 4294963200  ;;  %p21_p2 = scmp.ge.s32.totalorder %s7913_s23, 4   ;;  %s14725_s17 = smov %s7803_s18 }
 0x683   : > { %s14726_s18 = smov %s7807_s19  ;;  %s14727_s19 = smov %s7924_s26 }
 0x684   : > { %s14728_s20 = smov %s7913_s23  ;;  %23 = sbr.rel (!%p21_p2) target bundleno = 5 (0x5), region = 99 }
 0x689   :  { %6177 = vsyncpa [#allocation3], 1 }
 0x68a   :  { %6179 = vsyncpa [#allocation3 + $0x1], 1 }

</bundles_post_ra>
